<compile_context>
chip_gen: v7x
topology: tpu7x:2x2x1
jax: 0.10.0
libtpu: 0.0.40
codegen_flags: <defaults>
</compile_context>

<pallas_src>
import functools

import jax
import jax.numpy as jnp
from jax import lax
from jax.experimental import pallas as pl
from jax.experimental.pallas import tpu as pltpu

LN_EPS = 1e-5     # nn.LayerNorm default eps
L2_EPS = 1e-12    # F.normalize default eps
LANE = 128
SUBLANE = 8


def _cdiv(a, b):
    return (a + b - 1) // b


def _round_up(n, m):
    return ((n + m - 1) // m) * m


def _as_row(a):
    return a.reshape(1, -1)


def _pad2d(a, rows, cols):
    return jnp.pad(a, ((0, rows - a.shape[0]), (0, cols - a.shape[1])))


# --- single-buffering hint for resident (constant index_map) operands -------
def _make_buffered_one():
    if not hasattr(pl, "Buffered"):
        return None
    try:
        return pl.Buffered(1)
    except Exception:
        return None


_BUFFERED_ONE = _make_buffered_one()
_SINGLE_BUFFER_OK = [True]     # flipped off if the hint fails to lower


def _const_spec(shape, single_buffer):
    index_map = lambda i: (0,) * len(shape)
    if single_buffer and _BUFFERED_ONE is not None:
        try:
            return pl.BlockSpec(shape, index_map, pipeline_mode=_BUFFERED_ONE)
        except TypeError:
            pass
    return pl.BlockSpec(shape, index_map)


def _physical_vmem_bytes():
    try:
        return int(getattr(pltpu.get_tpu_info(), "vmem_capacity_bytes"))
    except Exception:
        return 64 << 20          # conservative: v7x per-TensorCore VMEM


def _default_group_budget():
    # Keep resident weights under ~half of physical VMEM so the x/out tiles,
    # live activations and compiler scratch still fit.
    return _physical_vmem_bytes() // 2


# ----------------------------------------------------------------------------
# Kernel
# ----------------------------------------------------------------------------
def _ln(y, gamma, beta, d_real, d_pad):
    """LayerNorm over the last axis of a (possibly) lane-padded activation.

    Two-pass centered form (robust vs E[x^2]-mean^2 cancellation).  Padded
    columns of y are zero by construction, are masked out of the variance,
    and gamma/beta are zero there, so padded output columns stay exactly 0.
    """
    inv_d = 1.0 / float(d_real)
    mean = jnp.sum(y, axis=-1, keepdims=True) * inv_d
    centered = y - mean
    if d_pad != d_real:
        col = lax.broadcasted_iota(jnp.int32, y.shape, 1)
        centered = jnp.where(col < d_real, centered, 0.0)
    var = jnp.sum(centered * centered, axis=-1, keepdims=True) * inv_d
    return centered * lax.rsqrt(var + LN_EPS) * gamma + beta


def _fused_group_kernel(*refs, layers, input_ln, d_in_real, d_in_pad):
    """[optional input LN] -> chain of (Linear -> LN -> [ReLU] -> [+residual]
    -> [L2 normalize]) layers, all weights VMEM-resident."""
    out_ref = refs[-1]
    it = iter(refs[:-1])
    h = next(it)[...].astype(jnp.float32)
    if input_ln:
        g_ref, b_ref = next(it), next(it)
        h = _ln(h, g_ref[...], b_ref[...], d_in_real, d_in_pad)

    for lyr in layers:
        w_ref, b_ref, g_ref, be_ref = next(it), next(it), next(it), next(it)
        dpad = lyr["dout_pad"]

        # One MXU matmul per layer; for the residual-projection branch W and
        # Wp are pre-fused along the output axis -> exactly one cast of h.
        y = jnp.dot(h.astype(w_ref.dtype), w_ref[...],
                    preferred_element_type=jnp.float32) + b_ref[...]

        res = None
        if lyr["residual"] == "proj":
            res = y[:, dpad:]            # x @ Wp + bp (128-lane-aligned split)
            y = y[:, :dpad]

        y = _ln(y, g_ref[...], be_ref[...], lyr["dout_real"], dpad)
        if lyr["relu"]:
            y = jnp.maximum(y, 0.0)
        # TODO(synk): training-mode dropout not implemented (eval()/identity).
        if lyr["residual"] == "identity":
            y = y + h
        elif lyr["residual"] == "proj":
            y = y + res
        if lyr["l2norm"]:
            # F.normalize(dim=1): y / max(||y||, eps)
            ss = jnp.sum(y * y, axis=-1, keepdims=True)
            y = y * lax.rsqrt(jnp.maximum(ss, L2_EPS * L2_EPS))
        h = y

    out_ref[...] = h.astype(out_ref.dtype)


# ----------------------------------------------------------------------------
# One-time parameter preparation (cache and reuse across forward calls)
# ----------------------------------------------------------------------------
def prepare_encoder_params(params, *, matmul_dtype=jnp.bfloat16):
    """Pad every feature dim to 128 lanes, fuse [W | Wp] along the output axis
    for residual-projection blocks, and cast matmul operands to matmul_dtype.
    Call once; reuse the result across forward calls (no per-call prep pass).
    """
    d_in = _as_row(params["in_gamma"]).shape[-1]
    d_in_pad = _round_up(d_in, LANE)

    layer_defs = []
    for blk in params["blocks"]:
        residual = "proj" if "wp" in blk else "identity"
        layer_defs.append((blk["w"], blk["b"], blk.get("wp"), blk.get("bp"),
                           blk["gamma"], blk["beta"], True, residual, False))
    p = params["proj"]
    layer_defs.append((p["w1"], p["b1"], None, None, p["g1"], p["be1"],
                       True, "none", False))
    layer_defs.append((p["w2"], p["b2"], None, None, p["g2"], p["be2"],
                       False, "none", True))

    layers = []
    din_pad = d_in_pad
    for (w, b, wp, bp, gamma, beta, relu, residual, l2norm) in layer_defs:
        dout_real = w.shape[1]
        dout_pad = _round_up(dout_real, LANE)
        w_p = _pad2d(w, din_pad, dout_pad)
        b_p = _pad2d(_as_row(b), 1, dout_pad)
        if residual == "proj":
            w_p = jnp.concatenate([w_p, _pad2d(wp, din_pad, dout_pad)], axis=1)
            b_p = jnp.concatenate([b_p, _pad2d(_as_row(bp), 1, dout_pad)], axis=1)
        layers.append(dict(
            w=w_p.astype(matmul_dtype),
            b=b_p.astype(jnp.float32),
            gamma=_pad2d(_as_row(gamma), 1, dout_pad).astype(jnp.float32),
            beta=_pad2d(_as_row(beta), 1, dout_pad).astype(jnp.float32),
            din_pad=din_pad, dout_real=dout_real, dout_pad=dout_pad,
            w_cols=int(w_p.shape[1]), relu=relu, residual=residual,
            l2norm=l2norm))
        din_pad = dout_pad

    return dict(
        d_in=d_in, d_in_pad=d_in_pad,
        in_gamma=_pad2d(_as_row(params["in_gamma"]), 1, d_in_pad).astype(jnp.float32),
        in_beta=_pad2d(_as_row(params["in_beta"]), 1, d_in_pad).astype(jnp.float32),
        layers=layers,
        emb_real=int(layer_defs[-1][0].shape[1]), emb_pad=din_pad)


def _layer_resident_bytes(lyr):
    return sum(int(a.size) * a.dtype.itemsize
               for a in (lyr["w"], lyr["b"], lyr["gamma"], lyr["beta"]))


def _group_layers(layers, budget_bytes):
    """Greedily pack layers into groups whose resident weights fit the VMEM
    budget.  One pallas_call per group (streaming fallback for v7x / very wide
    models); on v5e/v6e with moderate widths this is a single fused call."""
    groups, cur, cur_bytes = [], [], 0
    for lyr in layers:
        lb = _layer_resident_bytes(lyr)
        if cur and cur_bytes + lb > budget_bytes:
            groups.append(cur)
            cur, cur_bytes = [], 0
        cur.append(lyr)
        cur_bytes += lb
    if cur:
        groups.append(cur)
    # TODO(synk): if a single layer alone exceeds the budget, stream its weight
    # over an 'arbitrary' K grid axis / manual make_async_copy instead.
    return groups


def _pick_tile_b(batch, max_tile=256):
    """Row tile: minimize masked boundary rows while keeping >=2 grid steps
    (megacore) and filling the 256-wide v6e/v7x MXU for large batches.
    Always a multiple of 8 sublanes."""
    n_steps = max(2, _cdiv(batch, max_tile))
    tile = _round_up(_cdiv(batch, n_steps), SUBLANE)
    return max(SUBLANE, min(tile, _round_up(batch, SUBLANE)))


# ----------------------------------------------------------------------------
# Forward
# ----------------------------------------------------------------------------
def _run_group(prepped, layers, x, tile_b, *, input_ln, out_dtype, single_buffer):
    B = x.shape[0]
    d_in_pad = layers[0]["din_pad"]
    out_pad = layers[-1]["dout_pad"]
    grid_b = _cdiv(B, tile_b)

    args = [x]
    in_specs = [pl.BlockSpec((tile_b, d_in_pad), lambda i: (i, 0))]
    resident_bytes = 0
    if input_ln:
        args += [prepped["in_gamma"], prepped["in_beta"]]
        in_specs += [_const_spec((1, d_in_pad), single_buffer),
                     _const_spec((1, d_in_pad), single_buffer)]
        resident_bytes += 2 * d_in_pad * 4

    meta = []
    flops = 0
    for lyr in layers:
        args += [lyr["w"], lyr["b"], lyr["gamma"], lyr["beta"]]
        in_specs += [
            _const_spec((lyr["din_pad"], lyr["w_cols"]), single_buffer),
            _const_spec((1, lyr["w_cols"]), single_buffer),
            _const_spec((1, lyr["dout_pad"]), single_buffer),
            _const_spec((1, lyr["dout_pad"]), single_buffer),
        ]
        resident_bytes += _layer_resident_bytes(lyr)
        meta.append(dict(dout_real=lyr["dout_real"], dout_pad=lyr["dout_pad"],
                         relu=lyr["relu"], residual=lyr["residual"],
                         l2norm=lyr["l2norm"]))
        flops += 2 * grid_b * tile_b * lyr["din_pad"] * lyr["w_cols"]

    # Explicit VMEM budget: resident weights (single- or double-buffered),
    # double-buffered x/out tiles, live activations, compiler scratch slack.
    buf_factor = 1 if (single_buffer and _BUFFERED_ONE is not None) else 2
    max_cols = max(max(l["w_cols"] for l in layers), d_in_pad)
    vmem_needed = (buf_factor * resident_bytes
                   + 2 * tile_b * d_in_pad * x.dtype.itemsize
                   + 2 * tile_b * out_pad * jnp.dtype(out_dtype).itemsize
                   + 8 * tile_b * max_cols * 4
                   + (4 << 20))
    vmem_limit = int(min(_physical_vmem_bytes(), max(vmem_needed, 32 << 20)))

    bytes_accessed = (sum(int(a.size) * a.dtype.itemsize for a in args)
                      + B * out_pad * jnp.dtype(out_dtype).itemsize)
    cost = pl.CostEstimate(flops=int(flops),
                           transcendentals=int(grid_b * tile_b * (len(layers) + 2)),
                           bytes_accessed=int(bytes_accessed))

    kernel = functools.partial(_fused_group_kernel, layers=tuple(meta),
                               input_ln=input_ln,
                               d_in_real=prepped["d_in"], d_in_pad=d_in_pad)

    return pl.pallas_call(
        kernel,
        out_shape=jax.ShapeDtypeStruct((B, out_pad), out_dtype),
        grid=(grid_b,),
        in_specs=in_specs,
        out_specs=pl.BlockSpec((tile_b, out_pad), lambda i: (i, 0)),
        compiler_params=pltpu.CompilerParams(
            dimension_semantics=("parallel",),
            vmem_limit_bytes=vmem_limit),
        cost_estimate=cost,
    )(*args)


def encoder_network_forward(prepped, x, *, tile_b=None, out_dtype=jnp.float32,
                            group_budget_bytes=None):
    """Fused EncoderNetwork forward.  `prepped` = prepare_encoder_params(...).

    The batch is NOT padded host-side: the ragged last row-block is handled by
    Pallas's boundary-block masking (every op is row-independent, so junk rows
    never contaminate valid rows).  The input feature dim is zero-padded only
    if it is not already a multiple of 128.
    """
    B, d_in = x.shape
    assert d_in == prepped["d_in"], "input feature dim mismatch"
    d_in_pad = prepped["d_in_pad"]
    if tile_b is None:
        tile_b = _pick_tile_b(B)
    if d_in_pad != d_in:
        x = jnp.pad(x, ((0, 0), (0, d_in_pad - d_in)))

    budget = (_default_group_budget() if group_budget_bytes is None
              else group_budget_bytes)
    groups = _group_layers(prepped["layers"], budget)

    h = x
    for gi, g in enumerate(groups):
        dt = out_dtype if gi == len(groups) - 1 else jnp.float32
        kwargs = dict(input_ln=(gi == 0), out_dtype=dt)
        if _SINGLE_BUFFER_OK[0]:
            try:
                h = _run_group(prepped, g, h, tile_b, single_buffer=True, **kwargs)
                continue
            except Exception:
                _SINGLE_BUFFER_OK[0] = False    # fall back to default buffering
        h = _run_group(prepped, g, h, tile_b, single_buffer=False, **kwargs)

    return h[:, :prepped["emb_real"]]


# ----------------------------------------------------------------------------
# Parameter init (deterministic, mimics PyTorch nn.Linear U(-1/sqrt(fan_in), +))
# Linear weights stored as (in_features, out_features) so y = x @ W + b.
# ----------------------------------------------------------------------------
def _linear_params(key, din, dout):
    k1, k2 = jax.random.split(key)
    bound = 1.0 / (din ** 0.5)
    w = jax.random.uniform(k1, (din, dout), jnp.float32, -bound, bound)
    b = jax.random.uniform(k2, (1, dout), jnp.float32, -bound, bound)
    return w, b


def init_encoder_network(key, input_dim, hidden_dims, embedding_dim):
    params = {
        "in_gamma": jnp.ones((1, input_dim), jnp.float32),
        "in_beta": jnp.zeros((1, input_dim), jnp.float32),
        "blocks": [],
    }
    prev = input_dim
    for dim in hidden_dims:
        key, k = jax.random.split(key)
        w, b = _linear_params(k, prev, dim)
        blk = {"w": w, "b": b,
               "gamma": jnp.ones((1, dim), jnp.float32),
               "beta": jnp.zeros((1, dim), jnp.float32)}
        if prev != dim:                       # residual_proj branch
            key, k = jax.random.split(key)
            blk["wp"], blk["bp"] = _linear_params(k, prev, dim)
        params["blocks"].append(blk)
        prev = dim

    half = hidden_dims[-1] // 2
    key, k1 = jax.random.split(key)
    w1, b1 = _linear_params(k1, hidden_dims[-1], half)
    key, k2 = jax.random.split(key)
    w2, b2 = _linear_params(k2, half, embedding_dim)
    params["proj"] = {
        "w1": w1, "b1": b1,
        "g1": jnp.ones((1, half), jnp.float32),
        "be1": jnp.zeros((1, half), jnp.float32),
        "w2": w2, "b2": b2,
        "g2": jnp.ones((1, embedding_dim), jnp.float32),
        "be2": jnp.zeros((1, embedding_dim), jnp.float32),
    }
    return params


# ----------------------------------------------------------------------------
# Pure-JAX reference (eval-mode PyTorch semantics) for validation.
# ----------------------------------------------------------------------------
def _reference_forward(params, x):
    def ln(y, g, b):
        m = jnp.mean(y, -1, keepdims=True)
        v = jnp.mean((y - m) ** 2, -1, keepdims=True)
        return (y - m) * lax.rsqrt(v + LN_EPS) * g + b

    h = ln(x.astype(jnp.float32), params["in_gamma"], params["in_beta"])
    for blk in params["blocks"]:
        y = jnp.maximum(ln(h @ blk["w"] + blk["b"], blk["gamma"], blk["beta"]), 0.0)
        if "wp" in blk:
            h = y + h @ blk["wp"] + blk["bp"]
        else:
            h = y + h
    p = params["proj"]
    h = jnp.maximum(ln(h @ p["w1"] + p["b1"], p["g1"], p["be1"]), 0.0)
    z = ln(h @ p["w2"] + p["b2"], p["g2"], p["be2"])
    n = jnp.linalg.norm(z, axis=1, keepdims=True)
    return z / jnp.maximum(n, L2_EPS)


if __name__ == "__main__":
    # Small shapes consistent with the module's (batch, input_dim) interface.
    # batch=200 is ragged vs the auto-picked 104-row tile (2 parallel grid
    # steps, masked boundary block; no host-side batch padding).
    batch = 200
    input_dim = 128
    hidden_dims = [128, 64]   # block 0: identity residual, block 1: residual_proj
    embedding_dim = 64        # projection head: 64 -> 32 -> 64

    key = jax.random.PRNGKey(0)
    key, kx, kp = jax.random.split(key, 3)
    x = jax.random.normal(kx, (batch, input_dim), jnp.float32)
    params = init_encoder_network(kp, input_dim, hidden_dims, embedding_dim)
    z_ref = jax.block_until_ready(_reference_forward(params, x))

    # Correctness: f32-matmul kernel (fully fused, single group) vs reference.
    prep_f32 = prepare_encoder_params(params, matmul_dtype=jnp.float32)
    z_f32 = jax.block_until_ready(
        encoder_network_forward(prep_f32, x, out_dtype=jnp.float32))
    assert z_f32.shape == (batch, embedding_dim)
    assert bool(jnp.max(jnp.abs(z_f32 - z_ref)) < 5e-3)

    # Streaming fallback path: force one pallas_call per layer group (v7x
    # VMEM-budget regime) and check it still matches the reference.
    z_split = jax.block_until_ready(
        encoder_network_forward(prep_f32, x, out_dtype=jnp.float32,
                                group_budget_bytes=1))
    assert bool(jnp.max(jnp.abs(z_split - z_ref)) < 5e-3)

    # Fast path: weights prepared once (bf16 operands, f32 accumulation),
    # bf16 output store; the prepared params are reused across calls.
    prep_bf16 = prepare_encoder_params(params, matmul_dtype=jnp.bfloat16)
    z = jax.block_until_ready(
        encoder_network_forward(prep_bf16, x, out_dtype=jnp.bfloat16))
    assert z.shape == (batch, embedding_dim)
    zf = z.astype(jnp.float32)
    assert bool(jnp.all(jnp.isfinite(zf)))
    row_norms = jnp.linalg.norm(zf, axis=1)
    assert bool(jnp.all(jnp.abs(row_norms - 1.0) < 2e-2))
    # Second call: no per-call parameter prep pass.
    jax.block_until_ready(
        encoder_network_forward(prep_bf16, x, out_dtype=jnp.bfloat16))

    print("KERNEL_OK")
</pallas_src>

<mosaic_0001>
module attributes {stable_mosaic.version = 11 : i64} {
  func.func @_fused_group_kernel(%arg0: i32, %arg1: memref<104x128xf32, #tpu.memory_space<vmem>>, %arg2: memref<1x128xf32, #tpu.memory_space<vmem>>, %arg3: memref<1x128xf32, #tpu.memory_space<vmem>>, %arg4: memref<128x128xf32, #tpu.memory_space<vmem>>, %arg5: memref<1x128xf32, #tpu.memory_space<vmem>>, %arg6: memref<1x128xf32, #tpu.memory_space<vmem>>, %arg7: memref<1x128xf32, #tpu.memory_space<vmem>>, %arg8: memref<128x256xf32, #tpu.memory_space<vmem>>, %arg9: memref<1x256xf32, #tpu.memory_space<vmem>>, %arg10: memref<1x128xf32, #tpu.memory_space<vmem>>, %arg11: memref<1x128xf32, #tpu.memory_space<vmem>>, %arg12: memref<128x128xf32, #tpu.memory_space<vmem>>, %arg13: memref<1x128xf32, #tpu.memory_space<vmem>>, %arg14: memref<1x128xf32, #tpu.memory_space<vmem>>, %arg15: memref<1x128xf32, #tpu.memory_space<vmem>>, %arg16: memref<128x128xf32, #tpu.memory_space<vmem>>, %arg17: memref<1x128xf32, #tpu.memory_space<vmem>>, %arg18: memref<1x128xf32, #tpu.memory_space<vmem>>, %arg19: memref<1x128xf32, #tpu.memory_space<vmem>>, %arg20: memref<104x128xf32, #tpu.memory_space<vmem>>) attributes {dimension_semantics = [#tpu.dimension_semantics<parallel>], iteration_bounds = array<i64: 2>, scalar_prefetch = 0 : i64, scratch_operands = 0 : i64, tpu.core_type = #tpu.core_type<tc>, window_params = [{transform_indices = @transform_0, window_bounds = array<i64: 104, 128>}, {pipeline_mode = #tpu.pipeline_mode<synchronous>, transform_indices = @transform_1, window_bounds = array<i64: 1, 128>}, {pipeline_mode = #tpu.pipeline_mode<synchronous>, transform_indices = @transform_2, window_bounds = array<i64: 1, 128>}, {pipeline_mode = #tpu.pipeline_mode<synchronous>, transform_indices = @transform_3, window_bounds = array<i64: 128, 128>}, {pipeline_mode = #tpu.pipeline_mode<synchronous>, transform_indices = @transform_4, window_bounds = array<i64: 1, 128>}, {pipeline_mode = #tpu.pipeline_mode<synchronous>, transform_indices = @transform_5, window_bounds = array<i64: 1, 128>}, {pipeline_mode = #tpu.pipeline_mode<synchronous>, transform_indices = @transform_6, window_bounds = array<i64: 1, 128>}, {pipeline_mode = #tpu.pipeline_mode<synchronous>, transform_indices = @transform_7, window_bounds = array<i64: 128, 256>}, {pipeline_mode = #tpu.pipeline_mode<synchronous>, transform_indices = @transform_8, window_bounds = array<i64: 1, 256>}, {pipeline_mode = #tpu.pipeline_mode<synchronous>, transform_indices = @transform_9, window_bounds = array<i64: 1, 128>}, {pipeline_mode = #tpu.pipeline_mode<synchronous>, transform_indices = @transform_10, window_bounds = array<i64: 1, 128>}, {pipeline_mode = #tpu.pipeline_mode<synchronous>, transform_indices = @transform_11, window_bounds = array<i64: 128, 128>}, {pipeline_mode = #tpu.pipeline_mode<synchronous>, transform_indices = @transform_12, window_bounds = array<i64: 1, 128>}, {pipeline_mode = #tpu.pipeline_mode<synchronous>, transform_indices = @transform_13, window_bounds = array<i64: 1, 128>}, {pipeline_mode = #tpu.pipeline_mode<synchronous>, transform_indices = @transform_14, window_bounds = array<i64: 1, 128>}, {pipeline_mode = #tpu.pipeline_mode<synchronous>, transform_indices = @transform_15, window_bounds = array<i64: 128, 128>}, {pipeline_mode = #tpu.pipeline_mode<synchronous>, transform_indices = @transform_16, window_bounds = array<i64: 1, 128>}, {pipeline_mode = #tpu.pipeline_mode<synchronous>, transform_indices = @transform_17, window_bounds = array<i64: 1, 128>}, {pipeline_mode = #tpu.pipeline_mode<synchronous>, transform_indices = @transform_18, window_bounds = array<i64: 1, 128>}, {transform_indices = @transform_19, window_bounds = array<i64: 104, 128>}]} {
    %c0 = arith.constant 0 : index
    %c0_0 = arith.constant 0 : index
    %0 = vector.load %arg1[%c0, %c0_0] : memref<104x128xf32, #tpu.memory_space<vmem>>, vector<104x128xf32>
    %c0_1 = arith.constant 0 : index
    %c0_2 = arith.constant 0 : index
    %1 = vector.load %arg2[%c0_1, %c0_2] : memref<1x128xf32, #tpu.memory_space<vmem>>, vector<1x128xf32>
    %c0_3 = arith.constant 0 : index
    %c0_4 = arith.constant 0 : index
    %2 = vector.load %arg3[%c0_3, %c0_4] : memref<1x128xf32, #tpu.memory_space<vmem>>, vector<1x128xf32>
    %cst = arith.constant dense<0.000000e+00> : vector<104xf32>
    %3 = vector.multi_reduction <add>, %0, %cst [1] : vector<104x128xf32> to vector<104xf32>
    %4 = vector.shape_cast %3 : vector<104xf32> to vector<104x1xf32>
    %cst_5 = arith.constant 7.812500e-03 : f32
    %5 = vector.broadcast %cst_5 : f32 to vector<104x1xf32>
    %6 = arith.mulf %4, %5 : vector<104x1xf32>
    %7 = vector.broadcast %6 : vector<104x1xf32> to vector<104x128xf32>
    %8 = arith.subf %0, %7 : vector<104x128xf32>
    %9 = arith.mulf %8, %8 : vector<104x128xf32>
    %cst_6 = arith.constant dense<0.000000e+00> : vector<104xf32>
    %10 = vector.multi_reduction <add>, %9, %cst_6 [1] : vector<104x128xf32> to vector<104xf32>
    %11 = vector.shape_cast %10 : vector<104xf32> to vector<104x1xf32>
    %cst_7 = arith.constant 7.812500e-03 : f32
    %12 = vector.broadcast %cst_7 : f32 to vector<104x1xf32>
    %13 = arith.mulf %11, %12 : vector<104x1xf32>
    %cst_8 = arith.constant 9.99999974E-6 : f32
    %14 = vector.broadcast %cst_8 : f32 to vector<104x1xf32>
    %15 = arith.addf %13, %14 : vector<104x1xf32>
    %16 = math.rsqrt %15 : vector<104x1xf32>
    %17 = vector.broadcast %16 : vector<104x1xf32> to vector<104x128xf32>
    %18 = arith.mulf %8, %17 : vector<104x128xf32>
    %19 = vector.broadcast %1 : vector<1x128xf32> to vector<104x128xf32>
    %20 = arith.mulf %18, %19 : vector<104x128xf32>
    %21 = vector.broadcast %2 : vector<1x128xf32> to vector<104x128xf32>
    %22 = arith.addf %20, %21 : vector<104x128xf32>
    %c0_9 = arith.constant 0 : index
    %c0_10 = arith.constant 0 : index
    %23 = vector.load %arg4[%c0_9, %c0_10] : memref<128x128xf32, #tpu.memory_space<vmem>>, vector<128x128xf32>
    %cst_11 = arith.constant dense<0.000000e+00> : vector<104x128xf32>
    %24 = tpu.matmul %22, %23, %cst_11 {dimension_numbers = #tpu.dot_dimension_numbers<[1], [0], [0], [1], [0, 0, 1, 1], [], []>} : vector<104x128xf32>, vector<128x128xf32>, vector<104x128xf32> -> vector<104x128xf32>
    %c0_12 = arith.constant 0 : index
    %c0_13 = arith.constant 0 : index
    %25 = vector.load %arg5[%c0_12, %c0_13] : memref<1x128xf32, #tpu.memory_space<vmem>>, vector<1x128xf32>
    %26 = vector.broadcast %25 : vector<1x128xf32> to vector<104x128xf32>
    %27 = arith.addf %24, %26 : vector<104x128xf32>
    %c0_14 = arith.constant 0 : index
    %c0_15 = arith.constant 0 : index
    %28 = vector.load %arg6[%c0_14, %c0_15] : memref<1x128xf32, #tpu.memory_space<vmem>>, vector<1x128xf32>
    %c0_16 = arith.constant 0 : index
    %c0_17 = arith.constant 0 : index
    %29 = vector.load %arg7[%c0_16, %c0_17] : memref<1x128xf32, #tpu.memory_space<vmem>>, vector<1x128xf32>
    %cst_18 = arith.constant dense<0.000000e+00> : vector<104xf32>
    %30 = vector.multi_reduction <add>, %27, %cst_18 [1] : vector<104x128xf32> to vector<104xf32>
    %31 = vector.shape_cast %30 : vector<104xf32> to vector<104x1xf32>
    %cst_19 = arith.constant 7.812500e-03 : f32
    %32 = vector.broadcast %cst_19 : f32 to vector<104x1xf32>
    %33 = arith.mulf %31, %32 : vector<104x1xf32>
    %34 = vector.broadcast %33 : vector<104x1xf32> to vector<104x128xf32>
    %35 = arith.subf %27, %34 : vector<104x128xf32>
    %36 = arith.mulf %35, %35 : vector<104x128xf32>
    %cst_20 = arith.constant dense<0.000000e+00> : vector<104xf32>
    %37 = vector.multi_reduction <add>, %36, %cst_20 [1] : vector<104x128xf32> to vector<104xf32>
    %38 = vector.shape_cast %37 : vector<104xf32> to vector<104x1xf32>
    %cst_21 = arith.constant 7.812500e-03 : f32
    %39 = vector.broadcast %cst_21 : f32 to vector<104x1xf32>
    %40 = arith.mulf %38, %39 : vector<104x1xf32>
    %cst_22 = arith.constant 9.99999974E-6 : f32
    %41 = vector.broadcast %cst_22 : f32 to vector<104x1xf32>
    %42 = arith.addf %40, %41 : vector<104x1xf32>
    %43 = math.rsqrt %42 : vector<104x1xf32>
    %44 = vector.broadcast %43 : vector<104x1xf32> to vector<104x128xf32>
    %45 = arith.mulf %35, %44 : vector<104x128xf32>
    %46 = vector.broadcast %28 : vector<1x128xf32> to vector<104x128xf32>
    %47 = arith.mulf %45, %46 : vector<104x128xf32>
    %48 = vector.broadcast %29 : vector<1x128xf32> to vector<104x128xf32>
    %49 = arith.addf %47, %48 : vector<104x128xf32>
    %cst_23 = arith.constant 0.000000e+00 : f32
    %50 = vector.broadcast %cst_23 : f32 to vector<104x128xf32>
    %51 = arith.maximumf %49, %50 : vector<104x128xf32>
    %52 = arith.addf %51, %22 : vector<104x128xf32>
    %c0_24 = arith.constant 0 : index
    %c0_25 = arith.constant 0 : index
    %53 = vector.load %arg8[%c0_24, %c0_25] : memref<128x256xf32, #tpu.memory_space<vmem>>, vector<128x256xf32>
    %cst_26 = arith.constant dense<0.000000e+00> : vector<104x256xf32>
    %54 = tpu.matmul %52, %53, %cst_26 {dimension_numbers = #tpu.dot_dimension_numbers<[1], [0], [0], [1], [0, 0, 1, 1], [], []>} : vector<104x128xf32>, vector<128x256xf32>, vector<104x256xf32> -> vector<104x256xf32>
    %c0_27 = arith.constant 0 : index
    %c0_28 = arith.constant 0 : index
    %55 = vector.load %arg9[%c0_27, %c0_28] : memref<1x256xf32, #tpu.memory_space<vmem>>, vector<1x256xf32>
    %56 = vector.broadcast %55 : vector<1x256xf32> to vector<104x256xf32>
    %57 = arith.addf %54, %56 : vector<104x256xf32>
    %58 = vector.extract_strided_slice %57 {offsets = [0, 128], sizes = [104, 128], strides = [1, 1]} : vector<104x256xf32> to vector<104x128xf32>
    %59 = vector.extract_strided_slice %57 {offsets = [0, 0], sizes = [104, 128], strides = [1, 1]} : vector<104x256xf32> to vector<104x128xf32>
    %c0_29 = arith.constant 0 : index
    %c0_30 = arith.constant 0 : index
    %60 = vector.load %arg10[%c0_29, %c0_30] : memref<1x128xf32, #tpu.memory_space<vmem>>, vector<1x128xf32>
    %c0_31 = arith.constant 0 : index
    %c0_32 = arith.constant 0 : index
    %61 = vector.load %arg11[%c0_31, %c0_32] : memref<1x128xf32, #tpu.memory_space<vmem>>, vector<1x128xf32>
    %cst_33 = arith.constant dense<0.000000e+00> : vector<104xf32>
    %62 = vector.multi_reduction <add>, %59, %cst_33 [1] : vector<104x128xf32> to vector<104xf32>
    %63 = vector.shape_cast %62 : vector<104xf32> to vector<104x1xf32>
    %cst_34 = arith.constant 1.562500e-02 : f32
    %64 = vector.broadcast %cst_34 : f32 to vector<104x1xf32>
    %65 = arith.mulf %63, %64 : vector<104x1xf32>
    %66 = vector.broadcast %65 : vector<104x1xf32> to vector<104x128xf32>
    %67 = arith.subf %59, %66 : vector<104x128xf32>
    %68 = tpu.iota {dimensions = array<i32: 1>} : vector<104x128xi32>
    %c64_i32 = arith.constant 64 : i32
    %69 = vector.broadcast %c64_i32 : i32 to vector<104x128xi32>
    %70 = arith.cmpi slt, %68, %69 : vector<104x128xi32>
    %cst_35 = arith.constant 0.000000e+00 : f32
    %71 = vector.broadcast %cst_35 : f32 to vector<104x128xf32>
    %72 = arith.select %70, %67, %71 : vector<104x128xi1>, vector<104x128xf32>
    %73 = arith.mulf %72, %72 : vector<104x128xf32>
    %cst_36 = arith.constant dense<0.000000e+00> : vector<104xf32>
    %74 = vector.multi_reduction <add>, %73, %cst_36 [1] : vector<104x128xf32> to vector<104xf32>
    %75 = vector.shape_cast %74 : vector<104xf32> to vector<104x1xf32>
    %cst_37 = arith.constant 1.562500e-02 : f32
    %76 = vector.broadcast %cst_37 : f32 to vector<104x1xf32>
    %77 = arith.mulf %75, %76 : vector<104x1xf32>
    %cst_38 = arith.constant 9.99999974E-6 : f32
    %78 = vector.broadcast %cst_38 : f32 to vector<104x1xf32>
    %79 = arith.addf %77, %78 : vector<104x1xf32>
    %80 = math.rsqrt %79 : vector<104x1xf32>
    %81 = vector.broadcast %80 : vector<104x1xf32> to vector<104x128xf32>
    %82 = arith.mulf %72, %81 : vector<104x128xf32>
    %83 = vector.broadcast %60 : vector<1x128xf32> to vector<104x128xf32>
    %84 = arith.mulf %82, %83 : vector<104x128xf32>
    %85 = vector.broadcast %61 : vector<1x128xf32> to vector<104x128xf32>
    %86 = arith.addf %84, %85 : vector<104x128xf32>
    %cst_39 = arith.constant 0.000000e+00 : f32
    %87 = vector.broadcast %cst_39 : f32 to vector<104x128xf32>
    %88 = arith.maximumf %86, %87 : vector<104x128xf32>
    %89 = arith.addf %88, %58 : vector<104x128xf32>
    %c0_40 = arith.constant 0 : index
    %c0_41 = arith.constant 0 : index
    %90 = vector.load %arg12[%c0_40, %c0_41] : memref<128x128xf32, #tpu.memory_space<vmem>>, vector<128x128xf32>
    %cst_42 = arith.constant dense<0.000000e+00> : vector<104x128xf32>
    %91 = tpu.matmul %89, %90, %cst_42 {dimension_numbers = #tpu.dot_dimension_numbers<[1], [0], [0], [1], [0, 0, 1, 1], [], []>} : vector<104x128xf32>, vector<128x128xf32>, vector<104x128xf32> -> vector<104x128xf32>
    %c0_43 = arith.constant 0 : index
    %c0_44 = arith.constant 0 : index
    %92 = vector.load %arg13[%c0_43, %c0_44] : memref<1x128xf32, #tpu.memory_space<vmem>>, vector<1x128xf32>
    %93 = vector.broadcast %92 : vector<1x128xf32> to vector<104x128xf32>
    %94 = arith.addf %91, %93 : vector<104x128xf32>
    %c0_45 = arith.constant 0 : index
    %c0_46 = arith.constant 0 : index
    %95 = vector.load %arg14[%c0_45, %c0_46] : memref<1x128xf32, #tpu.memory_space<vmem>>, vector<1x128xf32>
    %c0_47 = arith.constant 0 : index
    %c0_48 = arith.constant 0 : index
    %96 = vector.load %arg15[%c0_47, %c0_48] : memref<1x128xf32, #tpu.memory_space<vmem>>, vector<1x128xf32>
    %cst_49 = arith.constant dense<0.000000e+00> : vector<104xf32>
    %97 = vector.multi_reduction <add>, %94, %cst_49 [1] : vector<104x128xf32> to vector<104xf32>
    %98 = vector.shape_cast %97 : vector<104xf32> to vector<104x1xf32>
    %cst_50 = arith.constant 3.125000e-02 : f32
    %99 = vector.broadcast %cst_50 : f32 to vector<104x1xf32>
    %100 = arith.mulf %98, %99 : vector<104x1xf32>
    %101 = vector.broadcast %100 : vector<104x1xf32> to vector<104x128xf32>
    %102 = arith.subf %94, %101 : vector<104x128xf32>
    %103 = tpu.iota {dimensions = array<i32: 1>} : vector<104x128xi32>
    %c32_i32 = arith.constant 32 : i32
    %104 = vector.broadcast %c32_i32 : i32 to vector<104x128xi32>
    %105 = arith.cmpi slt, %103, %104 : vector<104x128xi32>
    %cst_51 = arith.constant 0.000000e+00 : f32
    %106 = vector.broadcast %cst_51 : f32 to vector<104x128xf32>
    %107 = arith.select %105, %102, %106 : vector<104x128xi1>, vector<104x128xf32>
    %108 = arith.mulf %107, %107 : vector<104x128xf32>
    %cst_52 = arith.constant dense<0.000000e+00> : vector<104xf32>
    %109 = vector.multi_reduction <add>, %108, %cst_52 [1] : vector<104x128xf32> to vector<104xf32>
    %110 = vector.shape_cast %109 : vector<104xf32> to vector<104x1xf32>
    %cst_53 = arith.constant 3.125000e-02 : f32
    %111 = vector.broadcast %cst_53 : f32 to vector<104x1xf32>
    %112 = arith.mulf %110, %111 : vector<104x1xf32>
    %cst_54 = arith.constant 9.99999974E-6 : f32
    %113 = vector.broadcast %cst_54 : f32 to vector<104x1xf32>
    %114 = arith.addf %112, %113 : vector<104x1xf32>
    %115 = math.rsqrt %114 : vector<104x1xf32>
    %116 = vector.broadcast %115 : vector<104x1xf32> to vector<104x128xf32>
    %117 = arith.mulf %107, %116 : vector<104x128xf32>
    %118 = vector.broadcast %95 : vector<1x128xf32> to vector<104x128xf32>
    %119 = arith.mulf %117, %118 : vector<104x128xf32>
    %120 = vector.broadcast %96 : vector<1x128xf32> to vector<104x128xf32>
    %121 = arith.addf %119, %120 : vector<104x128xf32>
    %cst_55 = arith.constant 0.000000e+00 : f32
    %122 = vector.broadcast %cst_55 : f32 to vector<104x128xf32>
    %123 = arith.maximumf %121, %122 : vector<104x128xf32>
    %c0_56 = arith.constant 0 : index
    %c0_57 = arith.constant 0 : index
    %124 = vector.load %arg16[%c0_56, %c0_57] : memref<128x128xf32, #tpu.memory_space<vmem>>, vector<128x128xf32>
    %cst_58 = arith.constant dense<0.000000e+00> : vector<104x128xf32>
    %125 = tpu.matmul %123, %124, %cst_58 {dimension_numbers = #tpu.dot_dimension_numbers<[1], [0], [0], [1], [0, 0, 1, 1], [], []>} : vector<104x128xf32>, vector<128x128xf32>, vector<104x128xf32> -> vector<104x128xf32>
    %c0_59 = arith.constant 0 : index
    %c0_60 = arith.constant 0 : index
    %126 = vector.load %arg17[%c0_59, %c0_60] : memref<1x128xf32, #tpu.memory_space<vmem>>, vector<1x128xf32>
    %127 = vector.broadcast %126 : vector<1x128xf32> to vector<104x128xf32>
    %128 = arith.addf %125, %127 : vector<104x128xf32>
    %c0_61 = arith.constant 0 : index
    %c0_62 = arith.constant 0 : index
    %129 = vector.load %arg18[%c0_61, %c0_62] : memref<1x128xf32, #tpu.memory_space<vmem>>, vector<1x128xf32>
    %c0_63 = arith.constant 0 : index
    %c0_64 = arith.constant 0 : index
    %130 = vector.load %arg19[%c0_63, %c0_64] : memref<1x128xf32, #tpu.memory_space<vmem>>, vector<1x128xf32>
    %cst_65 = arith.constant dense<0.000000e+00> : vector<104xf32>
    %131 = vector.multi_reduction <add>, %128, %cst_65 [1] : vector<104x128xf32> to vector<104xf32>
    %132 = vector.shape_cast %131 : vector<104xf32> to vector<104x1xf32>
    %cst_66 = arith.constant 1.562500e-02 : f32
    %133 = vector.broadcast %cst_66 : f32 to vector<104x1xf32>
    %134 = arith.mulf %132, %133 : vector<104x1xf32>
    %135 = vector.broadcast %134 : vector<104x1xf32> to vector<104x128xf32>
    %136 = arith.subf %128, %135 : vector<104x128xf32>
    %137 = tpu.iota {dimensions = array<i32: 1>} : vector<104x128xi32>
    %c64_i32_67 = arith.constant 64 : i32
    %138 = vector.broadcast %c64_i32_67 : i32 to vector<104x128xi32>
    %139 = arith.cmpi slt, %137, %138 : vector<104x128xi32>
    %cst_68 = arith.constant 0.000000e+00 : f32
    %140 = vector.broadcast %cst_68 : f32 to vector<104x128xf32>
    %141 = arith.select %139, %136, %140 : vector<104x128xi1>, vector<104x128xf32>
    %142 = arith.mulf %141, %141 : vector<104x128xf32>
    %cst_69 = arith.constant dense<0.000000e+00> : vector<104xf32>
    %143 = vector.multi_reduction <add>, %142, %cst_69 [1] : vector<104x128xf32> to vector<104xf32>
    %144 = vector.shape_cast %143 : vector<104xf32> to vector<104x1xf32>
    %cst_70 = arith.constant 1.562500e-02 : f32
    %145 = vector.broadcast %cst_70 : f32 to vector<104x1xf32>
    %146 = arith.mulf %144, %145 : vector<104x1xf32>
    %cst_71 = arith.constant 9.99999974E-6 : f32
    %147 = vector.broadcast %cst_71 : f32 to vector<104x1xf32>
    %148 = arith.addf %146, %147 : vector<104x1xf32>
    %149 = math.rsqrt %148 : vector<104x1xf32>
    %150 = vector.broadcast %149 : vector<104x1xf32> to vector<104x128xf32>
    %151 = arith.mulf %141, %150 : vector<104x128xf32>
    %152 = vector.broadcast %129 : vector<1x128xf32> to vector<104x128xf32>
    %153 = arith.mulf %151, %152 : vector<104x128xf32>
    %154 = vector.broadcast %130 : vector<1x128xf32> to vector<104x128xf32>
    %155 = arith.addf %153, %154 : vector<104x128xf32>
    %156 = arith.mulf %155, %155 : vector<104x128xf32>
    %cst_72 = arith.constant dense<0.000000e+00> : vector<104xf32>
    %157 = vector.multi_reduction <add>, %156, %cst_72 [1] : vector<104x128xf32> to vector<104xf32>
    %158 = vector.shape_cast %157 : vector<104xf32> to vector<104x1xf32>
    %cst_73 = arith.constant 1.000000e-24 : f32
    %159 = vector.broadcast %cst_73 : f32 to vector<104x1xf32>
    %160 = arith.maximumf %158, %159 : vector<104x1xf32>
    %161 = math.rsqrt %160 : vector<104x1xf32>
    %162 = vector.broadcast %161 : vector<104x1xf32> to vector<104x128xf32>
    %163 = arith.mulf %155, %162 : vector<104x128xf32>
    %c0_74 = arith.constant 0 : index
    %c0_75 = arith.constant 0 : index
    %164 = vector.load %arg20[%c0_74, %c0_75] : memref<104x128xf32, #tpu.memory_space<vmem>>, vector<104x128xf32>
    tpu.vector_store %arg20[%c0_74, %c0_75], %163 {strides = array<i32>} : memref<104x128xf32, #tpu.memory_space<vmem>>, vector<104x128xf32>,
    return
  }
  func.func @transform_0(%arg0: i32) -> (i32, i32) {
    %c0_i32 = arith.constant 0 : i32
    %c0_i32_0 = arith.constant 0 : i32
    return %arg0, %c0_i32 : i32, i32
  }
  func.func @transform_1(%arg0: i32) -> (i32, i32) {
    %c0_i32 = arith.constant 0 : i32
    %c0_i32_0 = arith.constant 0 : i32
    %c0_i32_1 = arith.constant 0 : i32
    return %c0_i32, %c0_i32_0 : i32, i32
  }
  func.func @transform_2(%arg0: i32) -> (i32, i32) {
    %c0_i32 = arith.constant 0 : i32
    %c0_i32_0 = arith.constant 0 : i32
    %c0_i32_1 = arith.constant 0 : i32
    return %c0_i32, %c0_i32_0 : i32, i32
  }
  func.func @transform_3(%arg0: i32) -> (i32, i32) {
    %c0_i32 = arith.constant 0 : i32
    %c0_i32_0 = arith.constant 0 : i32
    %c0_i32_1 = arith.constant 0 : i32
    return %c0_i32, %c0_i32_0 : i32, i32
  }
  func.func @transform_4(%arg0: i32) -> (i32, i32) {
    %c0_i32 = arith.constant 0 : i32
    %c0_i32_0 = arith.constant 0 : i32
    %c0_i32_1 = arith.constant 0 : i32
    return %c0_i32, %c0_i32_0 : i32, i32
  }
  func.func @transform_5(%arg0: i32) -> (i32, i32) {
    %c0_i32 = arith.constant 0 : i32
    %c0_i32_0 = arith.constant 0 : i32
    %c0_i32_1 = arith.constant 0 : i32
    return %c0_i32, %c0_i32_0 : i32, i32
  }
  func.func @transform_6(%arg0: i32) -> (i32, i32) {
    %c0_i32 = arith.constant 0 : i32
    %c0_i32_0 = arith.constant 0 : i32
    %c0_i32_1 = arith.constant 0 : i32
    return %c0_i32, %c0_i32_0 : i32, i32
  }
  func.func @transform_7(%arg0: i32) -> (i32, i32) {
    %c0_i32 = arith.constant 0 : i32
    %c0_i32_0 = arith.constant 0 : i32
    %c0_i32_1 = arith.constant 0 : i32
    return %c0_i32, %c0_i32_0 : i32, i32
  }
  func.func @transform_8(%arg0: i32) -> (i32, i32) {
    %c0_i32 = arith.constant 0 : i32
    %c0_i32_0 = arith.constant 0 : i32
    %c0_i32_1 = arith.constant 0 : i32
    return %c0_i32, %c0_i32_0 : i32, i32
  }
  func.func @transform_9(%arg0: i32) -> (i32, i32) {
    %c0_i32 = arith.constant 0 : i32
    %c0_i32_0 = arith.constant 0 : i32
    %c0_i32_1 = arith.constant 0 : i32
    return %c0_i32, %c0_i32_0 : i32, i32
  }
  func.func @transform_10(%arg0: i32) -> (i32, i32) {
    %c0_i32 = arith.constant 0 : i32
    %c0_i32_0 = arith.constant 0 : i32
    %c0_i32_1 = arith.constant 0 : i32
    return %c0_i32, %c0_i32_0 : i32, i32
  }
  func.func @transform_11(%arg0: i32) -> (i32, i32) {
    %c0_i32 = arith.constant 0 : i32
    %c0_i32_0 = arith.constant 0 : i32
    %c0_i32_1 = arith.constant 0 : i32
    return %c0_i32, %c0_i32_0 : i32, i32
  }
  func.func @transform_12(%arg0: i32) -> (i32, i32) {
    %c0_i32 = arith.constant 0 : i32
    %c0_i32_0 = arith.constant 0 : i32
    %c0_i32_1 = arith.constant 0 : i32
    return %c0_i32, %c0_i32_0 : i32, i32
  }
  func.func @transform_13(%arg0: i32) -> (i32, i32) {
    %c0_i32 = arith.constant 0 : i32
    %c0_i32_0 = arith.constant 0 : i32
    %c0_i32_1 = arith.constant 0 : i32
    return %c0_i32, %c0_i32_0 : i32, i32
  }
  func.func @transform_14(%arg0: i32) -> (i32, i32) {
    %c0_i32 = arith.constant 0 : i32
    %c0_i32_0 = arith.constant 0 : i32
    %c0_i32_1 = arith.constant 0 : i32
    return %c0_i32, %c0_i32_0 : i32, i32
  }
  func.func @transform_15(%arg0: i32) -> (i32, i32) {
    %c0_i32 = arith.constant 0 : i32
    %c0_i32_0 = arith.constant 0 : i32
    %c0_i32_1 = arith.constant 0 : i32
    return %c0_i32, %c0_i32_0 : i32, i32
  }
  func.func @transform_16(%arg0: i32) -> (i32, i32) {
    %c0_i32 = arith.constant 0 : i32
    %c0_i32_0 = arith.constant 0 : i32
    %c0_i32_1 = arith.constant 0 : i32
    return %c0_i32, %c0_i32_0 : i32, i32
  }
  func.func @transform_17(%arg0: i32) -> (i32, i32) {
    %c0_i32 = arith.constant 0 : i32
    %c0_i32_0 = arith.constant 0 : i32
    %c0_i32_1 = arith.constant 0 : i32
    return %c0_i32, %c0_i32_0 : i32, i32
  }
  func.func @transform_18(%arg0: i32) -> (i32, i32) {
    %c0_i32 = arith.constant 0 : i32
    %c0_i32_0 = arith.constant 0 : i32
    %c0_i32_1 = arith.constant 0 : i32
    return %c0_i32, %c0_i32_0 : i32, i32
  }
  func.func @transform_19(%arg0: i32) -> (i32, i32) {
    %c0_i32 = arith.constant 0 : i32
    %c0_i32_0 = arith.constant 0 : i32
    return %arg0, %c0_i32 : i32, i32
  }
}

module attributes {stable_mosaic.version = 11 : i64} {
  func.func @_fused_group_kernel(%arg0: i32, %arg1: memref<104x128xf32, #tpu.memory_space<vmem>>, %arg2: memref<1x128xf32, #tpu.memory_space<vmem>>, %arg3: memref<1x128xf32, #tpu.memory_space<vmem>>, %arg4: memref<128x128xf32, #tpu.memory_space<vmem>>, %arg5: memref<1x128xf32, #tpu.memory_space<vmem>>, %arg6: memref<1x128xf32, #tpu.memory_space<vmem>>, %arg7: memref<1x128xf32, #tpu.memory_space<vmem>>, %arg8: memref<128x256xf32, #tpu.memory_space<vmem>>, %arg9: memref<1x256xf32, #tpu.memory_space<vmem>>, %arg10: memref<1x128xf32, #tpu.memory_space<vmem>>, %arg11: memref<1x128xf32, #tpu.memory_space<vmem>>, %arg12: memref<128x128xf32, #tpu.memory_space<vmem>>, %arg13: memref<1x128xf32, #tpu.memory_space<vmem>>, %arg14: memref<1x128xf32, #tpu.memory_space<vmem>>, %arg15: memref<1x128xf32, #tpu.memory_space<vmem>>, %arg16: memref<128x128xf32, #tpu.memory_space<vmem>>, %arg17: memref<1x128xf32, #tpu.memory_space<vmem>>, %arg18: memref<1x128xf32, #tpu.memory_space<vmem>>, %arg19: memref<1x128xf32, #tpu.memory_space<vmem>>, %arg20: memref<104x128xf32, #tpu.memory_space<vmem>>) attributes {dimension_semantics = [#tpu.dimension_semantics<parallel>], iteration_bounds = array<i64: 2>, scalar_prefetch = 0 : i64, scratch_operands = 0 : i64, tpu.core_type = #tpu.core_type<tc>, window_params = [{transform_indices = @transform_0, window_bounds = array<i64: 104, 128>}, {pipeline_mode = #tpu.pipeline_mode<synchronous>, transform_indices = @transform_1, window_bounds = array<i64: 1, 128>}, {pipeline_mode = #tpu.pipeline_mode<synchronous>, transform_indices = @transform_2, window_bounds = array<i64: 1, 128>}, {pipeline_mode = #tpu.pipeline_mode<synchronous>, transform_indices = @transform_3, window_bounds = array<i64: 128, 128>}, {pipeline_mode = #tpu.pipeline_mode<synchronous>, transform_indices = @transform_4, window_bounds = array<i64: 1, 128>}, {pipeline_mode = #tpu.pipeline_mode<synchronous>, transform_indices = @transform_5, window_bounds = array<i64: 1, 128>}, {pipeline_mode = #tpu.pipeline_mode<synchronous>, transform_indices = @transform_6, window_bounds = array<i64: 1, 128>}, {pipeline_mode = #tpu.pipeline_mode<synchronous>, transform_indices = @transform_7, window_bounds = array<i64: 128, 256>}, {pipeline_mode = #tpu.pipeline_mode<synchronous>, transform_indices = @transform_8, window_bounds = array<i64: 1, 256>}, {pipeline_mode = #tpu.pipeline_mode<synchronous>, transform_indices = @transform_9, window_bounds = array<i64: 1, 128>}, {pipeline_mode = #tpu.pipeline_mode<synchronous>, transform_indices = @transform_10, window_bounds = array<i64: 1, 128>}, {pipeline_mode = #tpu.pipeline_mode<synchronous>, transform_indices = @transform_11, window_bounds = array<i64: 128, 128>}, {pipeline_mode = #tpu.pipeline_mode<synchronous>, transform_indices = @transform_12, window_bounds = array<i64: 1, 128>}, {pipeline_mode = #tpu.pipeline_mode<synchronous>, transform_indices = @transform_13, window_bounds = array<i64: 1, 128>}, {pipeline_mode = #tpu.pipeline_mode<synchronous>, transform_indices = @transform_14, window_bounds = array<i64: 1, 128>}, {pipeline_mode = #tpu.pipeline_mode<synchronous>, transform_indices = @transform_15, window_bounds = array<i64: 128, 128>}, {pipeline_mode = #tpu.pipeline_mode<synchronous>, transform_indices = @transform_16, window_bounds = array<i64: 1, 128>}, {pipeline_mode = #tpu.pipeline_mode<synchronous>, transform_indices = @transform_17, window_bounds = array<i64: 1, 128>}, {pipeline_mode = #tpu.pipeline_mode<synchronous>, transform_indices = @transform_18, window_bounds = array<i64: 1, 128>}, {transform_indices = @transform_19, window_bounds = array<i64: 104, 128>}]} {
    %c0 = arith.constant 0 : index
    %c0_0 = arith.constant 0 : index
    %0 = vector.load %arg1[%c0, %c0_0] : memref<104x128xf32, #tpu.memory_space<vmem>>, vector<104x128xf32>
    %c0_1 = arith.constant 0 : index
    %c0_2 = arith.constant 0 : index
    %1 = vector.load %arg2[%c0_1, %c0_2] : memref<1x128xf32, #tpu.memory_space<vmem>>, vector<1x128xf32>
    %c0_3 = arith.constant 0 : index
    %c0_4 = arith.constant 0 : index
    %2 = vector.load %arg3[%c0_3, %c0_4] : memref<1x128xf32, #tpu.memory_space<vmem>>, vector<1x128xf32>
    %cst = arith.constant dense<0.000000e+00> : vector<104xf32>
    %3 = vector.multi_reduction <add>, %0, %cst [1] : vector<104x128xf32> to vector<104xf32>
    %4 = vector.shape_cast %3 : vector<104xf32> to vector<104x1xf32>
    %cst_5 = arith.constant 7.812500e-03 : f32
    %5 = vector.broadcast %cst_5 : f32 to vector<104x1xf32>
    %6 = arith.mulf %4, %5 : vector<104x1xf32>
    %7 = vector.broadcast %6 : vector<104x1xf32> to vector<104x128xf32>
    %8 = arith.subf %0, %7 : vector<104x128xf32>
    %9 = arith.mulf %8, %8 : vector<104x128xf32>
    %cst_6 = arith.constant dense<0.000000e+00> : vector<104xf32>
    %10 = vector.multi_reduction <add>, %9, %cst_6 [1] : vector<104x128xf32> to vector<104xf32>
    %11 = vector.shape_cast %10 : vector<104xf32> to vector<104x1xf32>
    %cst_7 = arith.constant 7.812500e-03 : f32
    %12 = vector.broadcast %cst_7 : f32 to vector<104x1xf32>
    %13 = arith.mulf %11, %12 : vector<104x1xf32>
    %cst_8 = arith.constant 9.99999974E-6 : f32
    %14 = vector.broadcast %cst_8 : f32 to vector<104x1xf32>
    %15 = arith.addf %13, %14 : vector<104x1xf32>
    %16 = math.rsqrt %15 : vector<104x1xf32>
    %17 = vector.broadcast %16 : vector<104x1xf32> to vector<104x128xf32>
    %18 = arith.mulf %8, %17 : vector<104x128xf32>
    %19 = vector.broadcast %1 : vector<1x128xf32> to vector<104x128xf32>
    %20 = arith.mulf %18, %19 : vector<104x128xf32>
    %21 = vector.broadcast %2 : vector<1x128xf32> to vector<104x128xf32>
    %22 = arith.addf %20, %21 : vector<104x128xf32>
    %c0_9 = arith.constant 0 : index
    %c0_10 = arith.constant 0 : index
    %23 = vector.load %arg4[%c0_9, %c0_10] : memref<128x128xf32, #tpu.memory_space<vmem>>, vector<128x128xf32>
    %cst_11 = arith.constant dense<0.000000e+00> : vector<104x128xf32>
    %24 = tpu.matmul %22, %23, %cst_11 {dimension_numbers = #tpu.dot_dimension_numbers<[1], [0], [0], [1], [0, 0, 1, 1], [], []>} : vector<104x128xf32>, vector<128x128xf32>, vector<104x128xf32> -> vector<104x128xf32>
    %c0_12 = arith.constant 0 : index
    %c0_13 = arith.constant 0 : index
    %25 = vector.load %arg5[%c0_12, %c0_13] : memref<1x128xf32, #tpu.memory_space<vmem>>, vector<1x128xf32>
    %26 = vector.broadcast %25 : vector<1x128xf32> to vector<104x128xf32>
    %27 = arith.addf %24, %26 : vector<104x128xf32>
    %c0_14 = arith.constant 0 : index
    %c0_15 = arith.constant 0 : index
    %28 = vector.load %arg6[%c0_14, %c0_15] : memref<1x128xf32, #tpu.memory_space<vmem>>, vector<1x128xf32>
    %c0_16 = arith.constant 0 : index
    %c0_17 = arith.constant 0 : index
    %29 = vector.load %arg7[%c0_16, %c0_17] : memref<1x128xf32, #tpu.memory_space<vmem>>, vector<1x128xf32>
    %cst_18 = arith.constant dense<0.000000e+00> : vector<104xf32>
    %30 = vector.multi_reduction <add>, %27, %cst_18 [1] : vector<104x128xf32> to vector<104xf32>
    %31 = vector.shape_cast %30 : vector<104xf32> to vector<104x1xf32>
    %cst_19 = arith.constant 7.812500e-03 : f32
    %32 = vector.broadcast %cst_19 : f32 to vector<104x1xf32>
    %33 = arith.mulf %31, %32 : vector<104x1xf32>
    %34 = vector.broadcast %33 : vector<104x1xf32> to vector<104x128xf32>
    %35 = arith.subf %27, %34 : vector<104x128xf32>
    %36 = arith.mulf %35, %35 : vector<104x128xf32>
    %cst_20 = arith.constant dense<0.000000e+00> : vector<104xf32>
    %37 = vector.multi_reduction <add>, %36, %cst_20 [1] : vector<104x128xf32> to vector<104xf32>
    %38 = vector.shape_cast %37 : vector<104xf32> to vector<104x1xf32>
    %cst_21 = arith.constant 7.812500e-03 : f32
    %39 = vector.broadcast %cst_21 : f32 to vector<104x1xf32>
    %40 = arith.mulf %38, %39 : vector<104x1xf32>
    %cst_22 = arith.constant 9.99999974E-6 : f32
    %41 = vector.broadcast %cst_22 : f32 to vector<104x1xf32>
    %42 = arith.addf %40, %41 : vector<104x1xf32>
    %43 = math.rsqrt %42 : vector<104x1xf32>
    %44 = vector.broadcast %43 : vector<104x1xf32> to vector<104x128xf32>
    %45 = arith.mulf %35, %44 : vector<104x128xf32>
    %46 = vector.broadcast %28 : vector<1x128xf32> to vector<104x128xf32>
    %47 = arith.mulf %45, %46 : vector<104x128xf32>
    %48 = vector.broadcast %29 : vector<1x128xf32> to vector<104x128xf32>
    %49 = arith.addf %47, %48 : vector<104x128xf32>
    %cst_23 = arith.constant 0.000000e+00 : f32
    %50 = vector.broadcast %cst_23 : f32 to vector<104x128xf32>
    %51 = arith.maximumf %49, %50 : vector<104x128xf32>
    %52 = arith.addf %51, %22 : vector<104x128xf32>
    %c0_24 = arith.constant 0 : index
    %c0_25 = arith.constant 0 : index
    %53 = vector.load %arg8[%c0_24, %c0_25] : memref<128x256xf32, #tpu.memory_space<vmem>>, vector<128x256xf32>
    %cst_26 = arith.constant dense<0.000000e+00> : vector<104x256xf32>
    %54 = tpu.matmul %52, %53, %cst_26 {dimension_numbers = #tpu.dot_dimension_numbers<[1], [0], [0], [1], [0, 0, 1, 1], [], []>} : vector<104x128xf32>, vector<128x256xf32>, vector<104x256xf32> -> vector<104x256xf32>
    %c0_27 = arith.constant 0 : index
    %c0_28 = arith.constant 0 : index
    %55 = vector.load %arg9[%c0_27, %c0_28] : memref<1x256xf32, #tpu.memory_space<vmem>>, vector<1x256xf32>
    %56 = vector.broadcast %55 : vector<1x256xf32> to vector<104x256xf32>
    %57 = arith.addf %54, %56 : vector<104x256xf32>
    %58 = vector.extract_strided_slice %57 {offsets = [0, 128], sizes = [104, 128], strides = [1, 1]} : vector<104x256xf32> to vector<104x128xf32>
    %59 = vector.extract_strided_slice %57 {offsets = [0, 0], sizes = [104, 128], strides = [1, 1]} : vector<104x256xf32> to vector<104x128xf32>
    %c0_29 = arith.constant 0 : index
    %c0_30 = arith.constant 0 : index
    %60 = vector.load %arg10[%c0_29, %c0_30] : memref<1x128xf32, #tpu.memory_space<vmem>>, vector<1x128xf32>
    %c0_31 = arith.constant 0 : index
    %c0_32 = arith.constant 0 : index
    %61 = vector.load %arg11[%c0_31, %c0_32] : memref<1x128xf32, #tpu.memory_space<vmem>>, vector<1x128xf32>
    %cst_33 = arith.constant dense<0.000000e+00> : vector<104xf32>
    %62 = vector.multi_reduction <add>, %59, %cst_33 [1] : vector<104x128xf32> to vector<104xf32>
    %63 = vector.shape_cast %62 : vector<104xf32> to vector<104x1xf32>
    %cst_34 = arith.constant 1.562500e-02 : f32
    %64 = vector.broadcast %cst_34 : f32 to vector<104x1xf32>
    %65 = arith.mulf %63, %64 : vector<104x1xf32>
    %66 = vector.broadcast %65 : vector<104x1xf32> to vector<104x128xf32>
    %67 = arith.subf %59, %66 : vector<104x128xf32>
    %68 = tpu.iota {dimensions = array<i32: 1>} : vector<104x128xi32>
    %c64_i32 = arith.constant 64 : i32
    %69 = vector.broadcast %c64_i32 : i32 to vector<104x128xi32>
    %70 = arith.cmpi slt, %68, %69 : vector<104x128xi32>
    %cst_35 = arith.constant 0.000000e+00 : f32
    %71 = vector.broadcast %cst_35 : f32 to vector<104x128xf32>
    %72 = arith.select %70, %67, %71 : vector<104x128xi1>, vector<104x128xf32>
    %73 = arith.mulf %72, %72 : vector<104x128xf32>
    %cst_36 = arith.constant dense<0.000000e+00> : vector<104xf32>
    %74 = vector.multi_reduction <add>, %73, %cst_36 [1] : vector<104x128xf32> to vector<104xf32>
    %75 = vector.shape_cast %74 : vector<104xf32> to vector<104x1xf32>
    %cst_37 = arith.constant 1.562500e-02 : f32
    %76 = vector.broadcast %cst_37 : f32 to vector<104x1xf32>
    %77 = arith.mulf %75, %76 : vector<104x1xf32>
    %cst_38 = arith.constant 9.99999974E-6 : f32
    %78 = vector.broadcast %cst_38 : f32 to vector<104x1xf32>
    %79 = arith.addf %77, %78 : vector<104x1xf32>
    %80 = math.rsqrt %79 : vector<104x1xf32>
    %81 = vector.broadcast %80 : vector<104x1xf32> to vector<104x128xf32>
    %82 = arith.mulf %72, %81 : vector<104x128xf32>
    %83 = vector.broadcast %60 : vector<1x128xf32> to vector<104x128xf32>
    %84 = arith.mulf %82, %83 : vector<104x128xf32>
    %85 = vector.broadcast %61 : vector<1x128xf32> to vector<104x128xf32>
    %86 = arith.addf %84, %85 : vector<104x128xf32>
    %cst_39 = arith.constant 0.000000e+00 : f32
    %87 = vector.broadcast %cst_39 : f32 to vector<104x128xf32>
    %88 = arith.maximumf %86, %87 : vector<104x128xf32>
    %89 = arith.addf %88, %58 : vector<104x128xf32>
    %c0_40 = arith.constant 0 : index
    %c0_41 = arith.constant 0 : index
    %90 = vector.load %arg12[%c0_40, %c0_41] : memref<128x128xf32, #tpu.memory_space<vmem>>, vector<128x128xf32>
    %cst_42 = arith.constant dense<0.000000e+00> : vector<104x128xf32>
    %91 = tpu.matmul %89, %90, %cst_42 {dimension_numbers = #tpu.dot_dimension_numbers<[1], [0], [0], [1], [0, 0, 1, 1], [], []>} : vector<104x128xf32>, vector<128x128xf32>, vector<104x128xf32> -> vector<104x128xf32>
    %c0_43 = arith.constant 0 : index
    %c0_44 = arith.constant 0 : index
    %92 = vector.load %arg13[%c0_43, %c0_44] : memref<1x128xf32, #tpu.memory_space<vmem>>, vector<1x128xf32>
    %93 = vector.broadcast %92 : vector<1x128xf32> to vector<104x128xf32>
    %94 = arith.addf %91, %93 : vector<104x128xf32>
    %c0_45 = arith.constant 0 : index
    %c0_46 = arith.constant 0 : index
    %95 = vector.load %arg14[%c0_45, %c0_46] : memref<1x128xf32, #tpu.memory_space<vmem>>, vector<1x128xf32>
    %c0_47 = arith.constant 0 : index
    %c0_48 = arith.constant 0 : index
    %96 = vector.load %arg15[%c0_47, %c0_48] : memref<1x128xf32, #tpu.memory_space<vmem>>, vector<1x128xf32>
    %cst_49 = arith.constant dense<0.000000e+00> : vector<104xf32>
    %97 = vector.multi_reduction <add>, %94, %cst_49 [1] : vector<104x128xf32> to vector<104xf32>
    %98 = vector.shape_cast %97 : vector<104xf32> to vector<104x1xf32>
    %cst_50 = arith.constant 3.125000e-02 : f32
    %99 = vector.broadcast %cst_50 : f32 to vector<104x1xf32>
    %100 = arith.mulf %98, %99 : vector<104x1xf32>
    %101 = vector.broadcast %100 : vector<104x1xf32> to vector<104x128xf32>
    %102 = arith.subf %94, %101 : vector<104x128xf32>
    %103 = tpu.iota {dimensions = array<i32: 1>} : vector<104x128xi32>
    %c32_i32 = arith.constant 32 : i32
    %104 = vector.broadcast %c32_i32 : i32 to vector<104x128xi32>
    %105 = arith.cmpi slt, %103, %104 : vector<104x128xi32>
    %cst_51 = arith.constant 0.000000e+00 : f32
    %106 = vector.broadcast %cst_51 : f32 to vector<104x128xf32>
    %107 = arith.select %105, %102, %106 : vector<104x128xi1>, vector<104x128xf32>
    %108 = arith.mulf %107, %107 : vector<104x128xf32>
    %cst_52 = arith.constant dense<0.000000e+00> : vector<104xf32>
    %109 = vector.multi_reduction <add>, %108, %cst_52 [1] : vector<104x128xf32> to vector<104xf32>
    %110 = vector.shape_cast %109 : vector<104xf32> to vector<104x1xf32>
    %cst_53 = arith.constant 3.125000e-02 : f32
    %111 = vector.broadcast %cst_53 : f32 to vector<104x1xf32>
    %112 = arith.mulf %110, %111 : vector<104x1xf32>
    %cst_54 = arith.constant 9.99999974E-6 : f32
    %113 = vector.broadcast %cst_54 : f32 to vector<104x1xf32>
    %114 = arith.addf %112, %113 : vector<104x1xf32>
    %115 = math.rsqrt %114 : vector<104x1xf32>
    %116 = vector.broadcast %115 : vector<104x1xf32> to vector<104x128xf32>
    %117 = arith.mulf %107, %116 : vector<104x128xf32>
    %118 = vector.broadcast %95 : vector<1x128xf32> to vector<104x128xf32>
    %119 = arith.mulf %117, %118 : vector<104x128xf32>
    %120 = vector.broadcast %96 : vector<1x128xf32> to vector<104x128xf32>
    %121 = arith.addf %119, %120 : vector<104x128xf32>
    %cst_55 = arith.constant 0.000000e+00 : f32
    %122 = vector.broadcast %cst_55 : f32 to vector<104x128xf32>
    %123 = arith.maximumf %121, %122 : vector<104x128xf32>
    %c0_56 = arith.constant 0 : index
    %c0_57 = arith.constant 0 : index
    %124 = vector.load %arg16[%c0_56, %c0_57] : memref<128x128xf32, #tpu.memory_space<vmem>>, vector<128x128xf32>
    %cst_58 = arith.constant dense<0.000000e+00> : vector<104x128xf32>
    %125 = tpu.matmul %123, %124, %cst_58 {dimension_numbers = #tpu.dot_dimension_numbers<[1], [0], [0], [1], [0, 0, 1, 1], [], []>} : vector<104x128xf32>, vector<128x128xf32>, vector<104x128xf32> -> vector<104x128xf32>
    %c0_59 = arith.constant 0 : index
    %c0_60 = arith.constant 0 : index
    %126 = vector.load %arg17[%c0_59, %c0_60] : memref<1x128xf32, #tpu.memory_space<vmem>>, vector<1x128xf32>
    %127 = vector.broadcast %126 : vector<1x128xf32> to vector<104x128xf32>
    %128 = arith.addf %125, %127 : vector<104x128xf32>
    %c0_61 = arith.constant 0 : index
    %c0_62 = arith.constant 0 : index
    %129 = vector.load %arg18[%c0_61, %c0_62] : memref<1x128xf32, #tpu.memory_space<vmem>>, vector<1x128xf32>
    %c0_63 = arith.constant 0 : index
    %c0_64 = arith.constant 0 : index
    %130 = vector.load %arg19[%c0_63, %c0_64] : memref<1x128xf32, #tpu.memory_space<vmem>>, vector<1x128xf32>
    %cst_65 = arith.constant dense<0.000000e+00> : vector<104xf32>
    %131 = vector.multi_reduction <add>, %128, %cst_65 [1] : vector<104x128xf32> to vector<104xf32>
    %132 = vector.shape_cast %131 : vector<104xf32> to vector<104x1xf32>
    %cst_66 = arith.constant 1.562500e-02 : f32
    %133 = vector.broadcast %cst_66 : f32 to vector<104x1xf32>
    %134 = arith.mulf %132, %133 : vector<104x1xf32>
    %135 = vector.broadcast %134 : vector<104x1xf32> to vector<104x128xf32>
    %136 = arith.subf %128, %135 : vector<104x128xf32>
    %137 = tpu.iota {dimensions = array<i32: 1>} : vector<104x128xi32>
    %c64_i32_67 = arith.constant 64 : i32
    %138 = vector.broadcast %c64_i32_67 : i32 to vector<104x128xi32>
    %139 = arith.cmpi slt, %137, %138 : vector<104x128xi32>
    %cst_68 = arith.constant 0.000000e+00 : f32
    %140 = vector.broadcast %cst_68 : f32 to vector<104x128xf32>
    %141 = arith.select %139, %136, %140 : vector<104x128xi1>, vector<104x128xf32>
    %142 = arith.mulf %141, %141 : vector<104x128xf32>
    %cst_69 = arith.constant dense<0.000000e+00> : vector<104xf32>
    %143 = vector.multi_reduction <add>, %142, %cst_69 [1] : vector<104x128xf32> to vector<104xf32>
    %144 = vector.shape_cast %143 : vector<104xf32> to vector<104x1xf32>
    %cst_70 = arith.constant 1.562500e-02 : f32
    %145 = vector.broadcast %cst_70 : f32 to vector<104x1xf32>
    %146 = arith.mulf %144, %145 : vector<104x1xf32>
    %cst_71 = arith.constant 9.99999974E-6 : f32
    %147 = vector.broadcast %cst_71 : f32 to vector<104x1xf32>
    %148 = arith.addf %146, %147 : vector<104x1xf32>
    %149 = math.rsqrt %148 : vector<104x1xf32>
    %150 = vector.broadcast %149 : vector<104x1xf32> to vector<104x128xf32>
    %151 = arith.mulf %141, %150 : vector<104x128xf32>
    %152 = vector.broadcast %129 : vector<1x128xf32> to vector<104x128xf32>
    %153 = arith.mulf %151, %152 : vector<104x128xf32>
    %154 = vector.broadcast %130 : vector<1x128xf32> to vector<104x128xf32>
    %155 = arith.addf %153, %154 : vector<104x128xf32>
    %156 = arith.mulf %155, %155 : vector<104x128xf32>
    %cst_72 = arith.constant dense<0.000000e+00> : vector<104xf32>
    %157 = vector.multi_reduction <add>, %156, %cst_72 [1] : vector<104x128xf32> to vector<104xf32>
    %158 = vector.shape_cast %157 : vector<104xf32> to vector<104x1xf32>
    %cst_73 = arith.constant 1.000000e-24 : f32
    %159 = vector.broadcast %cst_73 : f32 to vector<104x1xf32>
    %160 = arith.maximumf %158, %159 : vector<104x1xf32>
    %161 = math.rsqrt %160 : vector<104x1xf32>
    %162 = vector.broadcast %161 : vector<104x1xf32> to vector<104x128xf32>
    %163 = arith.mulf %155, %162 : vector<104x128xf32>
    %c0_74 = arith.constant 0 : index
    %c0_75 = arith.constant 0 : index
    %164 = vector.load %arg20[%c0_74, %c0_75] : memref<104x128xf32, #tpu.memory_space<vmem>>, vector<104x128xf32>
    tpu.vector_store %arg20[%c0_74, %c0_75], %163 {strides = array<i32>} : memref<104x128xf32, #tpu.memory_space<vmem>>, vector<104x128xf32>,
    return
  }
  func.func @transform_0(%arg0: i32) -> (i32, i32) {
    %c0_i32 = arith.constant 0 : i32
    %c0_i32_0 = arith.constant 0 : i32
    return %arg0, %c0_i32 : i32, i32
  }
  func.func @transform_1(%arg0: i32) -> (i32, i32) {
    %c0_i32 = arith.constant 0 : i32
    %c0_i32_0 = arith.constant 0 : i32
    %c0_i32_1 = arith.constant 0 : i32
    return %c0_i32, %c0_i32_0 : i32, i32
  }
  func.func @transform_2(%arg0: i32) -> (i32, i32) {
    %c0_i32 = arith.constant 0 : i32
    %c0_i32_0 = arith.constant 0 : i32
    %c0_i32_1 = arith.constant 0 : i32
    return %c0_i32, %c0_i32_0 : i32, i32
  }
  func.func @transform_3(%arg0: i32) -> (i32, i32) {
    %c0_i32 = arith.constant 0 : i32
    %c0_i32_0 = arith.constant 0 : i32
    %c0_i32_1 = arith.constant 0 : i32
    return %c0_i32, %c0_i32_0 : i32, i32
  }
  func.func @transform_4(%arg0: i32) -> (i32, i32) {
    %c0_i32 = arith.constant 0 : i32
    %c0_i32_0 = arith.constant 0 : i32
    %c0_i32_1 = arith.constant 0 : i32
    return %c0_i32, %c0_i32_0 : i32, i32
  }
  func.func @transform_5(%arg0: i32) -> (i32, i32) {
    %c0_i32 = arith.constant 0 : i32
    %c0_i32_0 = arith.constant 0 : i32
    %c0_i32_1 = arith.constant 0 : i32
    return %c0_i32, %c0_i32_0 : i32, i32
  }
  func.func @transform_6(%arg0: i32) -> (i32, i32) {
    %c0_i32 = arith.constant 0 : i32
    %c0_i32_0 = arith.constant 0 : i32
    %c0_i32_1 = arith.constant 0 : i32
    return %c0_i32, %c0_i32_0 : i32, i32
  }
  func.func @transform_7(%arg0: i32) -> (i32, i32) {
    %c0_i32 = arith.constant 0 : i32
    %c0_i32_0 = arith.constant 0 : i32
    %c0_i32_1 = arith.constant 0 : i32
    return %c0_i32, %c0_i32_0 : i32, i32
  }
  func.func @transform_8(%arg0: i32) -> (i32, i32) {
    %c0_i32 = arith.constant 0 : i32
    %c0_i32_0 = arith.constant 0 : i32
    %c0_i32_1 = arith.constant 0 : i32
    return %c0_i32, %c0_i32_0 : i32, i32
  }
  func.func @transform_9(%arg0: i32) -> (i32, i32) {
    %c0_i32 = arith.constant 0 : i32
    %c0_i32_0 = arith.constant 0 : i32
    %c0_i32_1 = arith.constant 0 : i32
    return %c0_i32, %c0_i32_0 : i32, i32
  }
  func.func @transform_10(%arg0: i32) -> (i32, i32) {
    %c0_i32 = arith.constant 0 : i32
    %c0_i32_0 = arith.constant 0 : i32
    %c0_i32_1 = arith.constant 0 : i32
    return %c0_i32, %c0_i32_0 : i32, i32
  }
  func.func @transform_11(%arg0: i32) -> (i32, i32) {
    %c0_i32 = arith.constant 0 : i32
    %c0_i32_0 = arith.constant 0 : i32
    %c0_i32_1 = arith.constant 0 : i32
    return %c0_i32, %c0_i32_0 : i32, i32
  }
  func.func @transform_12(%arg0: i32) -> (i32, i32) {
    %c0_i32 = arith.constant 0 : i32
    %c0_i32_0 = arith.constant 0 : i32
    %c0_i32_1 = arith.constant 0 : i32
    return %c0_i32, %c0_i32_0 : i32, i32
  }
  func.func @transform_13(%arg0: i32) -> (i32, i32) {
    %c0_i32 = arith.constant 0 : i32
    %c0_i32_0 = arith.constant 0 : i32
    %c0_i32_1 = arith.constant 0 : i32
    return %c0_i32, %c0_i32_0 : i32, i32
  }
  func.func @transform_14(%arg0: i32) -> (i32, i32) {
    %c0_i32 = arith.constant 0 : i32
    %c0_i32_0 = arith.constant 0 : i32
    %c0_i32_1 = arith.constant 0 : i32
    return %c0_i32, %c0_i32_0 : i32, i32
  }
  func.func @transform_15(%arg0: i32) -> (i32, i32) {
    %c0_i32 = arith.constant 0 : i32
    %c0_i32_0 = arith.constant 0 : i32
    %c0_i32_1 = arith.constant 0 : i32
    return %c0_i32, %c0_i32_0 : i32, i32
  }
  func.func @transform_16(%arg0: i32) -> (i32, i32) {
    %c0_i32 = arith.constant 0 : i32
    %c0_i32_0 = arith.constant 0 : i32
    %c0_i32_1 = arith.constant 0 : i32
    return %c0_i32, %c0_i32_0 : i32, i32
  }
  func.func @transform_17(%arg0: i32) -> (i32, i32) {
    %c0_i32 = arith.constant 0 : i32
    %c0_i32_0 = arith.constant 0 : i32
    %c0_i32_1 = arith.constant 0 : i32
    return %c0_i32, %c0_i32_0 : i32, i32
  }
  func.func @transform_18(%arg0: i32) -> (i32, i32) {
    %c0_i32 = arith.constant 0 : i32
    %c0_i32_0 = arith.constant 0 : i32
    %c0_i32_1 = arith.constant 0 : i32
    return %c0_i32, %c0_i32_0 : i32, i32
  }
  func.func @transform_19(%arg0: i32) -> (i32, i32) {
    %c0_i32 = arith.constant 0 : i32
    %c0_i32_0 = arith.constant 0 : i32
    return %arg0, %c0_i32 : i32, i32
  }
}

</mosaic_0001>

<bundles_post_ra>
// kernel: tpu_custom_call.1
= control target key start
LH: loop header
LB: loop body
LE: loop exit
PB: predicated region body
PF: predicated region fallthrough
CT: control target
= control target key end

     0   :  { %s5068_s0 = inlined_call_operand.hbm [shape: f32[200,128], index: 0, kind: input, shape index: {}]   ;;  %s5069_s1 = inlined_call_operand.vmem [shape: f32[1,128], index: 1, kind: input, shape index: {}]   ;;  %s5070_s2 = inlined_call_operand.vmem [shape: f32[1,128], index: 2, kind: input, shape index: {}]   ;;  %s5071_s3 = inlined_call_operand.hbm [shape: f32[128,128], index: 3, kind: input, shape index: {}]   ;;  %s5072_s4 = inlined_call_operand.vmem [shape: f32[1,128], index: 4, kind: input, shape index: {}]   ;;  %s5073_s5 = inlined_call_operand.vmem [shape: f32[1,128], index: 5, kind: input, shape index: {}]   ;;  %s5074_s6 = inlined_call_operand.vmem [shape: f32[1,128], index: 6, kind: input, shape index: {}]   ;;  %s5075_s7 = inlined_call_operand.hbm [shape: f32[128,256], index: 7, kind: input, shape index: {}]   ;;  %s5076_s8 = inlined_call_operand.vmem [shape: f32[1,256], index: 8, kind: input, shape index: {}]   ;;  %s5077_s9 = inlined_call_operand.vmem [shape: f32[1,128], index: 9, kind: input, shape index: {}]   ;;  %s5078_s10 = inlined_call_operand.vmem [shape: f32[1,128], index: 10, kind: input, shape index: {}]   ;;  %s5079_s11 = inlined_call_operand.hbm [shape: f32[128,128], index: 11, kind: input, shape index: {}]   ;;  %s5080_s12 = inlined_call_operand.vmem [shape: f32[1,128], index: 12, kind: input, shape index: {}]   ;;  %s5081_s13 = inlined_call_operand.vmem [shape: f32[1,128], index: 13, kind: input, shape index: {}]   ;;  %s5082_s14 = inlined_call_operand.vmem [shape: f32[1,128], index: 14, kind: input, shape index: {}]   ;;  %s5083_s15 = inlined_call_operand.hbm [shape: f32[128,128], index: 15, kind: input, shape index: {}]   ;;  %s5084_s16 = inlined_call_operand.vmem [shape: f32[1,128], index: 16, kind: input, shape index: {}]   ;;  %s5085_s17 = inlined_call_operand.vmem [shape: f32[1,128], index: 17, kind: input, shape index: {}]   ;;  %s5086_s18 = inlined_call_operand.vmem [shape: f32[1,128], index: 18, kind: input, shape index: {}]   ;;  %s5087_s19 = inlined_call_operand.hbm [shape: f32[200,128], index: 19, kind: output, shape index: {}]  }
   0x1   :  { %5102 = sst [smem:[#allocation21_spill]] %s5068_s0 }
   0x2   :  { %5103 = sst [smem:[#allocation22_spill]] %s5069_s1 }
   0x3   :  { %5104 = sst [smem:[#allocation23_spill]] %s5070_s2 }
   0x4   :  { %5105 = sst [smem:[#allocation24_spill]] %s5071_s3 }
   0x5   :  { %5106 = sst [smem:[#allocation25_spill]] %s5078_s10 }
   0x6   :  { %5107 = sst [smem:[#allocation26_spill]] %s5080_s12 }
   0x7   :  { %5108 = sst [smem:[#allocation27_spill]] %s5081_s13 }
   0x8   :  { %5109 = sst [smem:[#allocation28_spill]] %s5082_s14 }
   0x9   :  { %5110 = sst [smem:[#allocation29_spill]] %s5084_s16 }
   0xa   :  { %5111 = sst [smem:[#allocation30_spill]] %s5085_s17 }
   0xb   :  { %5112 = sst [smem:[#allocation31_spill]] %s5086_s18 }
   0xc   :  { %5113 = sst [smem:[#allocation32_spill]] %s5087_s19 }
   0xd   :  { %24 = vsyncpa [#allocation3], 0 }
   0xe   :  { %26 = vsyncpa [#allocation3 + $0x1], 0 }
   0xf   :  { %27 = vsyncpa [#allocation6], 0 }
  0x10   :  { %28 = vsyncpa [#allocation9], 0 }
  0x11   :  { %29 = vsyncpa [#allocation4], 0 }
  0x12   :  { %31 = vsyncpa [#allocation4 + $0x1], 0  ;;  %s3624_s0 = smov 0   ;;  %s3626_s30 = smov 0  }
  0x13   :  { %s3628_s20 = smov 0   ;;  %s3630_s21 = smov 0  }
  0x14 LB: > { %5114 = sst [smem:[#allocation16_spill]] %s3493_s0  ;;  %s3645_s1 = sadd.s32 4294967295, %s3505_s21   ;;  %s3505_s21 = sphi %s3630_s21, %s5152_s21   ;;  %s3501_s20 = sphi %s3628_s20, %s5156_s20   ;;  %s3497_s30 = sphi %s3626_s30, %s5155_s30   ;;  %s3493_s0 = sphi %s3624_s0, %s5154_s0  }
  0x15   : > { %s2599_s22 = sadd.s32 4294967294, %s3505_s21   ;;  %s3649_s2 = sadd.s32 1, %s3505_s21  }
  0x16   : > { %5115 = sst [smem:[#allocation17_spill]] %s3649_s2  ;;  %s44_s23 = sadd.s32 1, %s3501_s20 }
  0x17   : > { %s41_s24 = ssub.s32 %s3505_s21, %s3649_s2  ;;  %p51_p0 = scmp.ne.s32.totalorder %s3501_s20, %s3497_s30 }
  0x18   : > { %p42_p1 = scmp.eq.s32.totalorder %s41_s24, 0  ;;  %p52_p2 = scmp.eq.s32.totalorder %s3505_s21, 0 }
  0x19   : > { %p57_p3 = scmp.ne.s32.totalorder %s3497_s30, %s3493_s0  ;;  %p5096_p4 = scmp.eq.s32.totalorder %s3645_s1, 0 }
  0x1a   : > { %s3661_s25 = scalar_select %p42_p1, %s3501_s20, %s44_s23  }
  0x1b   : > { %p3663_p5 = por %p52_p2, %p51_p0  ;;  %p3669_p6 = por %p5096_p4, %p57_p3 }
  0x1c   : > { %5116 = sst [smem:[#allocation18_spill]] %s3661_s25  ;;  %p459_p7 = scmp.eq.s32.totalorder %s3645_s1, 1 }
  0x1d   : > { %s5117_s3 = scalar_select %p3663_p5, 1, 0 }
  0x1e   : > { %s5118_s26 = scalar_select %p3669_p6, 1, 0 }
  0x1f   : > { %p465_p8 = scmp.eq.s32.totalorder %s2599_s22, 1  ;;  %p2600_p9 = scmp.ge.s32.totalorder %s3505_s21, 1 }
  0x20   : > { %p472_p10 = scmp.lt.s32.totalorder %s3505_s21, 3  ;;  %p3676_p11 = por %p459_p7, %p51_p0 }
  0x21   : > { %p3680_p12 = por %p465_p8, %p57_p3  ;;  %s3507_s23 = smov [#allocation5]  }
  0x22   : > { %s5119_s27 = scalar_select %p3676_p11, 1, 0 }
  0x23   : > { %s5121_s28 = scalar_select %p3680_p12, 1, 0 }
  0x24   : > { %5120 = sst [smem:[#allocation19_spill]] %s5119_s27  ;;  %p3684_p13 = pnand %p2600_p9, %p472_p10 }
  0x25   : > { %5122 = sst [smem:[#allocation20_spill]] %s5121_s28  ;;  %s490_s24 = sshll.u32 %s3507_s23, 4  ;;  %s491_s24 = int_to_ptr.vmem [resolvable:$true] %s490_s24 }
  0x26   : > { %s5123_s29 = scalar_select %p3684_p13, 1, 0 }
  0x27   : > { %p3062_p1 = pneg %p3684_p13  ;;  %s3508_s25 = smov [#allocation8]  }
  0x28   : > { %s534_s2 = sshll.u32 %s3508_s25, 4  ;;  %s5125_s19 = sld [smem:[#allocation24_spill]]  ;;  %s3696_s2 = int_to_ptr.vmem [resolvable:$true] %s534_s2 }
  0x29   : > { %p3692_p2 = pnand %p3062_p1, %p5096_p4 }
  0x2b   : > { %p3706_p3 = pneg %p3692_p2 }
  0x2e   : > { %s3291_s27 = scalar_lea.hbm %s5125_s19, 2048 }
  0x2f   : > { %p3292_p0 = scmp.ne.s32.totalorder %s5125_s19, %s3291_s27  ;;  %p3298_p9 = scmp.lt.u32.totalorder %s3291_s27, %s5125_s19 }
  0x31   : > { %p3294_p7 = pnand %p3706_p3, %p3292_p0 }
  0x33   : > { %p3295_p8 = pneg %p3294_p7 }
  0x35   : > { %p3300_p10 = pnand %p3298_p9, %p3295_p8 }
  0x37   : > { %3303 = shalt.err (!%p3300_p10)
}
  0x38   : > { %s3304_s0 = scalar_lea.vmem %s491_s24, 2048  ;;  %p3312_p11 = scmp.lt.s32.totalorder %s491_s24, %s491_s24 }
  0x39   : > { %p3305_p1 = scmp.ne.s32.totalorder %s491_s24, %s3304_s0  ;;  %p3313_p6 = scmp.lt.s32.totalorder %s3304_s0, %s3304_s0 }
  0x3b   : > { %p3307_p4 = pnand %p3305_p1, %p3706_p3  ;;  %p3314_p13 = por %p3313_p6, %p3312_p11 }
  0x3d   : > { %p3308_p12 = pneg %p3307_p4 }
  0x3f   : > { %p3315_p5 = pnand %p3314_p13, %p3308_p12 }
  0x41   : > { %3318 = shalt.err (!%p3315_p5)
}
  0x42   : > { %s5100_s17 = smov 128   ;;  %s5101_s18 = smov 8  }
  0x43   : > { %3065 = dma.hbm_to_vmem [thread:$0]  (!%p3692_p2), %s5125_s19, 2048, %s491_s24, [#allocation6], %s5100_s17, %s5100_s17, %s5101_s18  }
  0x44   : > { %s3319_s14 = scalar_lea.hbm %s5079_s11, 2048 }
  0x45   : > { %p3320_p4 = scmp.ne.s32.totalorder %s5079_s11, %s3319_s14  ;;  %p3326_p11 = scmp.lt.u32.totalorder %s3319_s14, %s5079_s11 }
  0x47   : > { %p3322_p5 = pnand %p3320_p4, %p3706_p3 }
  0x49   : > { %p3323_p6 = pneg %p3322_p5 }
  0x4b   : > { %p3328_p12 = pnand %p3326_p11, %p3323_p6 }
  0x4d   : > { %3331 = shalt.err (!%p3328_p12)
}
  0x4e   : > { %s3332_s24 = scalar_lea.vmem %s3696_s2, 2048  ;;  %p3340_p8 = scmp.lt.s32.totalorder %s3696_s2, %s3696_s2 }
  0x4f   : > { %p3333_p13 = scmp.ne.s32.totalorder %s3696_s2, %s3332_s24  ;;  %p3341_p9 = scmp.lt.s32.totalorder %s3332_s24, %s3332_s24 }
  0x51   : > { %p3335_p0 = pnand %p3333_p13, %p3706_p3  ;;  %p3342_p10 = por %p3341_p9, %p3340_p8 }
  0x53   : > { %p3336_p7 = pneg %p3335_p0 }
  0x55   : > { %p3343_p1 = pnand %p3342_p10, %p3336_p7 }
  0x57   : > { %3346 = shalt.err (!%p3343_p1)
}
  0x58   : > { %3071 = dma.hbm_to_vmem [thread:$0]  (!%p3692_p2), %s5079_s11, 2048, %s3696_s2, [#allocation9], %s5100_s17, %s5100_s17, %s5101_s18  }
  0x59   : > { %s3511_s13 = smov [#allocation7]   ;;  %s3347_s28 = scalar_lea.hbm %s5075_s7, 4096 }
  0x5a   : > { %s512_s14 = sshll.u32 %s3511_s13, 4  ;;  %p3348_p4 = scmp.ne.s32.totalorder %s5075_s7, %s3347_s28  ;;  %s513_s14 = int_to_ptr.vmem [resolvable:$true] %s512_s14 }
  0x5b   : > { %p3354_p11 = scmp.lt.u32.totalorder %s3347_s28, %s5075_s7 }
  0x5c   : > { %p3350_p5 = pnand %p3348_p4, %p3706_p3 }
  0x5e   : > { %p3351_p6 = pneg %p3350_p5 }
  0x60   : > { %p3356_p12 = pnand %p3354_p11, %p3351_p6 }
  0x62   : > { %3359 = shalt.err (!%p3356_p12)
}
  0x63   : > { %s3360_s2 = scalar_lea.vmem %s513_s14, 4096  ;;  %p3368_p8 = scmp.lt.s32.totalorder %s513_s14, %s513_s14 }
  0x64   : > { %p3361_p13 = scmp.ne.s32.totalorder %s513_s14, %s3360_s2  ;;  %p3369_p9 = scmp.lt.s32.totalorder %s3360_s2, %s3360_s2 }
  0x66   : > { %p3363_p0 = pnand %p3361_p13, %p3706_p3  ;;  %p3370_p10 = por %p3369_p9, %p3368_p8 }
  0x68   : > { %p3364_p7 = pneg %p3363_p0 }
  0x6a   : > { %p3371_p1 = pnand %p3370_p10, %p3364_p7 }
  0x6c   : > { %3374 = shalt.err (!%p3371_p1)
}
  0x6d   : > { %s3512_s10 = smov 256   ;;  %s3513_s12 = smov 16  }
  0x6e   : > { %3068 = dma.hbm_to_vmem [thread:$0]  (!%p3692_p2), %s5075_s7, 4096, %s513_s14, [#allocation6], %s3512_s10, %s3512_s10, %s3513_s12  }
  0x6f   : > { %s3514_s16 = smov [#allocation10]   ;;  %s3375_s0 = scalar_lea.hbm %s5083_s15, 2048 }
  0x70   : > { %s556_s27 = sshll.u32 %s3514_s16, 4  ;;  %p3376_p4 = scmp.ne.s32.totalorder %s5083_s15, %s3375_s0  ;;  %s557_s27 = int_to_ptr.vmem [resolvable:$true] %s556_s27 }
  0x71   : > { %p3382_p11 = scmp.lt.u32.totalorder %s3375_s0, %s5083_s15 }
  0x72   : > { %p3378_p5 = pnand %p3376_p4, %p3706_p3 }
  0x74   : > { %p3379_p6 = pneg %p3378_p5 }
  0x76   : > { %p3384_p12 = pnand %p3382_p11, %p3379_p6 }
  0x78   : > { %3387 = shalt.err (!%p3384_p12)
}
  0x79   : > { %s3388_s14 = scalar_lea.vmem %s557_s27, 2048  ;;  %p3396_p8 = scmp.lt.s32.totalorder %s557_s27, %s557_s27 }
  0x7a   : > { %p3389_p13 = scmp.ne.s32.totalorder %s557_s27, %s3388_s14  ;;  %p3397_p9 = scmp.lt.s32.totalorder %s3388_s14, %s3388_s14 }
  0x7c   : > { %p3391_p0 = pnand %p3389_p13, %p3706_p3  ;;  %p3398_p10 = por %p3397_p9, %p3396_p8 }
  0x7e   : > { %p3392_p7 = pneg %p3391_p0 }
  0x80   : > { %p3399_p1 = pnand %p3398_p10, %p3392_p7 }
  0x82   : > { %3402 = shalt.err (!%p3399_p1)
}
  0x83   : > { %s5127_s10 = smov 8   ;;  %s5128_s12 = smov 128  }
  0x84   : > { %3074 = dma.hbm_to_vmem [thread:$0]  (!%p3692_p2), %s5083_s15, 2048, %s557_s27, [#allocation9], %s5128_s12, %s5128_s12, %s5127_s10  }
  0x85   : > { %p2605_p4 = scmp.ge.s32.totalorder %s3505_s21, 2 }
  0x86   : > { %p5129_p3 = scmp.ne.s32.totalorder (!%p2605_p4), %s5117_s3, 0 }
  0x87   : > { %575 = sbr.rel (%p2605_p4) target bundleno = 182 (0xb6), region = 88 }
  0x8e   : > { %578 = sbr.rel (!%p5129_p3) target bundleno = 182 (0xb6), region = 92  ;;  %s579_s23 = sand.u32 (%p5129_p3), 1, %s3501_s20  }
  0x8f   : > { %s584_s19 = smul.u32 (%p5129_p3), 13, %s3505_s21  ;;  %s3800_s28 = scalar_lea.sflag (%p5129_p3), [#allocation3], %s579_s23 }
  0x90   : > { %s3042_s22 = smul.u32 (%p5129_p3), 104, %s579_s23 }
  0x91   : > { %s585_s13 = ssub.s32 (%p5129_p3), 25, %s584_s19 }
  0x92   : > { %p586_p5 = scmp.lt.s32.totalorder (%p5129_p3), %s585_s13, 13  ;;  %s583_s25 = scalar_lea.vmem (%p5129_p3), [#allocation2], %s3042_s22 }
  0x95   : > { %s5158_s13 = smov (!%p586_p5, %s585_s13), 13 }
  0x96   : > { %s3797_s16 = sshll.u32 %s5158_s13, 7 }
  0x97   : > { %s590_s27 = ssub.s32 1664, %s3797_s16 }
  0x98   : > { %591 = vsyncadd %s3800_s28, %s590_s27  ;;  %p2607_p2 = scmp.ne.s32.totalorder %s3797_s16, 0  ;;  %s2636_s3 = smul.u32 1664, %s3505_s21 }
  0x99   : > { %s596_s0 = sshll.u32 %s583_s25, 4  ;;  %s5130_s14 = sld [smem:[#allocation21_spill]]  ;;  %s3810_s0 = int_to_ptr.vmem [resolvable:$true] %s596_s0 }
  0x9f   : > { %s3808_s10 = scalar_lea.hbm %s5130_s14, %s2636_s3  ;;  %s3407_s23 = scalar_lea.hbm %s5130_s14, 3200 }
  0xa0   : > { %s3403_s12 = scalar_lea.hbm %s3808_s10, %s3797_s16  ;;  %p3408_p13 = scmp.lt.u32.totalorder %s3808_s10, %s5130_s14 }
  0xa1   : > { %p3404_p6 = scmp.ne.s32.totalorder %s3808_s10, %s3403_s12  ;;  %p3409_p0 = scmp.lt.u32.totalorder %s3407_s23, %s3403_s12 }
  0xa2   : > { %p3411_p8 = scmp.lt.u32.totalorder %s3403_s12, %s3808_s10 }
  0xa3   : > { %p3405_p11 = pnand %p3404_p6, %p2607_p2  ;;  %p3410_p7 = por %p3409_p0, %p3408_p13 }
  0xa5   : > { %p3406_p12 = pneg %p3405_p11  ;;  %p3412_p9 = por %p3411_p8, %p3410_p7 }
  0xa7   : > { %p3413_p10 = pnand %p3412_p9, %p3406_p12 }
  0xa9   : > { %3416 = shalt.err (!%p3413_p10)
}
  0xaa   : > { %s3417_s13 = scalar_lea.vmem %s3810_s0, %s3797_s16  ;;  %s3515_s27 = smov [#allocation2]  }
  0xab   : > { %p3418_p1 = scmp.ne.s32.totalorder %s3810_s0, %s3417_s13  ;;  %s3421_s25 = sshll.u32 %s3515_s27, 4  ;;  %s3422_s25 = int_to_ptr.vmem [resolvable:$false] %s3421_s25 }
  0xac   : > { %s3423_s3 = scalar_lea.vmem %s3422_s25, 3328  ;;  %p3424_p6 = scmp.lt.s32.totalorder %s3810_s0, %s3422_s25 }
  0xad   : > { %p3419_p3 = pnand %p3418_p1, %p2607_p2  ;;  %p3425_p11 = scmp.lt.s32.totalorder %s3423_s3, %s3417_s13 }
  0xaf   : > { %p3420_p5 = pneg %p3419_p3  ;;  %p3426_p13 = por %p3425_p11, %p3424_p6 }
  0xb1   : > { %p3427_p0 = pnand %p3426_p13, %p3420_p5 }
  0xb3   : > { %3430 = shalt.err (!%p3427_p0)
}
  0xb4   : > { %s3516_s24 = smov 128   ;;  %s3517_s2 = smov 8  }
  0xb5   : > { %602 = dma.hbm_to_vmem [thread:$0]  (%p2607_p2), %s3808_s10, %s3797_s16, %s3810_s0, %s3800_s28, %s3516_s24, %s3516_s24, %s3517_s2  }
  0xb6 PF: > { %p5131_p12 = scmp.ne.s32.totalorder %s5123_s29, 0 }
  0xb7   : > { %s3840_s12 = sand.u32 (!%p5131_p12), 1, %s3497_s30   ;;  %p5132_p7 = scmp.ne.s32.totalorder (!%p5131_p12), %s5118_s26, 0 }
  0xb8   : > { %608 = sbr.rel (%p5131_p12) target bundleno = 2861 (0xb2d), region = 96  ;;  %s611_s18 = scalar_lea.sflag (!%p5131_p12), [#allocation3], %s3840_s12 }
  0xb9   : > { %s3043_s17 = smul.u32 (!%p5131_p12), 104, %s3840_s12 }
  0xbb   : > { %s3846_s23 = scalar_lea.vmem (!%p5131_p12), [#allocation2], %s3043_s17 }
  0xbf   : > { %3476 = dma.done.wait (%p5132_p7), %s611_s18, 1664  }
  0xc0   : > { %3478 = vsyncadd (%p5132_p7), %s611_s18, 4294965632  ;;  %p5133_p2 = scmp.eq.s32.totalorder %s3645_s1, 0 }
  0xc2   : > { %3480 = dma.done.wait (%p5133_p2), [#allocation6], 6144   ;;  %p5134_p8 = pmov %p5133_p2 }
  0xc3   : > { %p5135_p9 = pmov %p5133_p2 }
  0xc4   : > { %3482 = vsyncadd (%p5134_p8), [#allocation6], 4294961152 }
  0xc5   : > { %3484 = dma.done.wait (%p5135_p9), [#allocation9], 4096   ;;  %p5136_p10 = pmov %p5133_p2 }
  0xc6   : > { %v695_v0 = vld [vmem:[%s3846_s23] sm:$0xff]  ;;  %v697_v1 = vld [vmem:[%s3846_s23 + $0x10] sm:$0xff]  ;;  %v696_v2 = vld [vmem:[%s3846_s23 + $0x8] sm:$0xff]  ;;  %v3518_v16 = vmov 0.0|0.0   ;;  %vm3519_vm0 = vmmov 0   ;;  %s5137_s16 = sld [smem:[#allocation22_spill]] }
  0xc7   : > { %3486 = vsyncadd (%p5136_p10), [#allocation9], 4294963200  ;;  %710 = vadd.xlane.f32.xlu0 %v695_v0  ;;  %714 = vadd.xlane.f32.xlu1 %v697_v1  ;;  %v698_v3 = vld [vmem:[%s3846_s23 + $0x18] sm:$0xff]  ;;  %v699_v4 = vld [vmem:[%s3846_s23 + $0x20] sm:$0xff]  ;;  %s5138_s10 = sld [smem:[#allocation23_spill]]  ;;  %s5141_s13 = sld [smem:[#allocation27_spill]] }
  0xc8   : > { %v700_v5 = vld [vmem:[%s3846_s23 + $0x28] sm:$0xff]  ;;  %v3867_v6 = vld [vmem:[%s3846_s23 + $0x30] sm:$0xff]  ;;  %v3870_v7 = vld [vmem:[%s3846_s23 + $0x38] sm:$0xff]  ;;  %2938 = vmatprep.subr.bf16.mxu0 %v3518_v16  ;;  %s5142_s3 = sld [smem:[#allocation28_spill]]  ;;  %s5143_s18 = sld [smem:[#allocation29_spill]] }
  0xc9   : > { %v3875_v8 = vld [vmem:[%s3846_s23 + $0x40] sm:$0xff]  ;;  %v3878_v9 = vld [vmem:[%s3846_s23 + $0x48] sm:$0xff]  ;;  %v3883_v10 = vld [vmem:[%s3846_s23 + $0x50] sm:$0xff]  ;;  %s5144_s29 = sld [smem:[#allocation30_spill]]  ;;  %s5145_s0 = sld [smem:[#allocation31_spill]] }
  0xca   : > { %v3886_v11 = vld [vmem:[%s3846_s23 + $0x58] sm:$0xff]  ;;  %v3891_v12 = vld [vmem:[%s3846_s23 + $0x60] sm:$0xff]  ;;  %v891_v13 = vld [vmem:[#allocation5] sm:$0xff]  ;;  %s5146_s19 = sld [smem:[#allocation19_spill]] }
  0xcb   : > { %712 = vadd.xlane.f32.xlu0 %v696_v2  ;;  %716 = vadd.xlane.f32.xlu1 %v698_v3  ;;  %v892_v14 = vld [vmem:[#allocation5 + $0x8] sm:$0xff]  ;;  %v893_v15 = vld [vmem:[#allocation5 + $0x10] sm:$0xff]  ;;  %v894_v18 = vld [vmem:[#allocation5 + $0x18] sm:$0xff] }
  0xcc   : > { %v2939_v17 = vpack.c.bf16 %v892_v14, %v891_v13  ;;  %v2942_v19 = vpack.c.bf16 %v894_v18, %v893_v15  ;;  %v895_v20 = vld [vmem:[#allocation5 + $0x20] sm:$0xff]  ;;  %v896_v21 = vld [vmem:[#allocation5 + $0x28] sm:$0xff]  ;;  %v897_v63 = vld [vmem:[#allocation5 + $0x30] sm:$0xff] }
  0xcd   : > { %v2945_v22 = vpack.c.bf16 %v896_v21, %v895_v20  ;;  %v899_v14 = vld [vmem:[#allocation5 + $0x40] sm:$0xff]  ;;  %v900_v15 = vld [vmem:[#allocation5 + $0x48] sm:$0xff]  ;;  %v902_v20 = vld [vmem:[#allocation5 + $0x58] sm:$0xff] }
  0xce   : > { %2940 = vmatpush3.bf16.msra.mxu0 %v2939_v17  ;;  %v2951_v17 = vpack.c.bf16 %v900_v15, %v899_v14 }
  0xcf   : > { %718 = vadd.xlane.f32.xlu0 %v699_v4  ;;  %720 = vadd.xlane.f32.xlu1 %v700_v5 }
  0xd0   : > { %2941 = vmatprep.subr.bf16.mxu0 %v3518_v16  ;;  %p5147_p1 = scmp.ne.s32.totalorder %s5146_s19, 0 }
  0xd1   : > { %s2476_s22 = smul.u32 (%p5147_p1), 13, %s3645_s1 }
  0xd2   : > { %2943 = vmatpush3.bf16.msra.mxu0 %v2942_v19  ;;  %v901_v19 = vld [vmem:[#allocation5 + $0x50] sm:$0xff] }
  0xd3   : > { %722 = vadd.xlane.f32.xlu0 %v3867_v6  ;;  %724 = vadd.xlane.f32.xlu1 %v3870_v7  ;;  %v2954_v21 = vpack.c.bf16 %v902_v20, %v901_v19 }
  0xd4   : > { %2944 = vmatprep.subr.bf16.mxu0 %v3518_v16 }
  0xd6   : > { %2946 = vmatpush3.bf16.msra.mxu0 %v2945_v22  ;;  %v903_v22 = vld [vmem:[#allocation5 + $0x60] sm:$0xff] }
  0xd7   : > { %726 = vadd.xlane.f32.xlu0 %v3875_v8  ;;  %728 = vadd.xlane.f32.xlu1 %v3878_v9 }
  0xd8   : > { %2947 = vmatprep.subr.bf16.mxu0 %v3518_v16 }
  0xdb   : > { %730 = vadd.xlane.f32.xlu0 %v3883_v10  ;;  %732 = vadd.xlane.f32.xlu1 %v3886_v11 }
  0xdf   : > { %734 = vadd.xlane.f32.xlu0 %v3891_v12 }
 0x154   : > { %v711_v23 = vpop.xlane.xlu0 %710  ;;  %v715_v24 = vpop.xlane.xlu1 %714 }
 0x155   : > { %v736_v25 = vmul.f32 0.0078125, %v711_v23  ;;  %v738_v26 = vmul.f32 0.0078125, %v715_v24  ;;  %v904_v23 = vld [vmem:[#allocation5 + $0x68] sm:$0xff] }
 0x156   : > { %v2957_v24 = vpack.c.bf16 %v904_v23, %v903_v22 }
 0x157   : > { %v3898_v27 = vsub.f32 %v695_v0, %v736_v25  ;;  %v3900_v28 = vsub.f32 %v697_v1, %v738_v26  ;;  %v898_v0 = vld [vmem:[#allocation5 + $0x38] sm:$0xff] }
 0x158   : > { %v713_v29 = vpop.xlane.xlu0 %712  ;;  %v717_v30 = vpop.xlane.xlu1 %716  ;;  %v906_v25 = vld [vmem:[#allocation5 + $0x78] sm:$0xff] }
 0x159   : > { %v737_v31 = vmul.f32 0.0078125, %v713_v29  ;;  %v762_v32 = vmul.f32 %v3898_v27, %v3898_v27  ;;  %v739_v33 = vmul.f32 0.0078125, %v717_v30  ;;  %v764_v34 = vmul.f32 %v3900_v28, %v3900_v28 }
 0x15a   : > { %v3520_v29 = vmov 0.0  }
 0x15b   : > { %775 = vadd.xlane.f32.xlu1 %v762_v32  ;;  %v3906_v35 = vsub.f32 %v696_v2, %v737_v31  ;;  %v3908_v36 = vsub.f32 %v698_v3, %v739_v33  ;;  %2757 = vmatprep.mubr.msk.f32.mxu0 %vm3519_vm0, %v3520_v29 }
 0x15c   : > { %v719_v37 = vpop.xlane.xlu0 %718  ;;  %v721_v38 = vpop.xlane.xlu1 %720  ;;  %1361 = vmatprep.mubr.f32.mxu1 %v3520_v29 }
 0x15d   : > { %v740_v39 = vmul.f32 0.0078125, %v719_v37  ;;  %v763_v40 = vmul.f32 %v3906_v35, %v3906_v35  ;;  %v741_v41 = vmul.f32 0.0078125, %v721_v38  ;;  %v765_v42 = vmul.f32 %v3908_v36, %v3908_v36 }
 0x15f   : > { %779 = vadd.xlane.f32.xlu1 %v764_v34  ;;  %777 = vadd.xlane.f32.xlu0 %v763_v40  ;;  %v3914_v43 = vsub.f32 %v699_v4, %v740_v39  ;;  %v3916_v44 = vsub.f32 %v700_v5, %v741_v41  ;;  %v2948_v4 = vpack.c.bf16 %v898_v0, %v897_v63 }
 0x160   : > { %v723_v45 = vpop.xlane.xlu0 %722  ;;  %v725_v46 = vpop.xlane.xlu1 %724 }
 0x161   : > { %v742_v47 = vmul.f32 0.0078125, %v723_v45  ;;  %v766_v48 = vmul.f32 %v3914_v43, %v3914_v43  ;;  %v743_v49 = vmul.f32 0.0078125, %v725_v46  ;;  %v767_v50 = vmul.f32 %v3916_v44, %v3916_v44  ;;  %2949 = vmatpush3.bf16.msra.mxu0 %v2948_v4 }
 0x162   : > { %2950 = vmatprep.subr.bf16.mxu0 %v3518_v16 }
 0x163   : > { %781 = vadd.xlane.f32.xlu0 %v765_v42  ;;  %783 = vadd.xlane.f32.xlu1 %v766_v48  ;;  %v3923_v51 = vsub.f32 %v3867_v6, %v742_v47  ;;  %v3926_v52 = vsub.f32 %v3870_v7, %v743_v49 }
 0x164   : > { %v727_v53 = vpop.xlane.xlu0 %726  ;;  %v729_v54 = vpop.xlane.xlu1 %728 }
 0x165   : > { %v744_v55 = vmul.f32 0.0078125, %v727_v53  ;;  %v768_v56 = vmul.f32 %v3923_v51, %v3923_v51  ;;  %v745_v57 = vmul.f32 0.0078125, %v729_v54  ;;  %v769_v58 = vmul.f32 %v3926_v52, %v3926_v52  ;;  %2952 = vmatpush3.bf16.msra.mxu0 %v2951_v17 }
 0x166   : > { %2953 = vmatprep.subr.bf16.mxu0 %v3518_v16 }
 0x167   : > { %785 = vadd.xlane.f32.xlu0 %v767_v50  ;;  %787 = vadd.xlane.f32.xlu1 %v768_v56  ;;  %v3933_v59 = vsub.f32 %v3875_v8, %v744_v55  ;;  %v3936_v60 = vsub.f32 %v3878_v9, %v745_v57  ;;  %v3968_v55 = vld [vmem:[%s5137_s16] ss:$0 sm:$0xff]  ;;  %s5139_s16 = sld [smem:[#allocation25_spill]] }
 0x168   : > { %v731_v61 = vpop.xlane.xlu0 %730  ;;  %v733_v62 = vpop.xlane.xlu1 %732 }
 0x169   : > { %v746_v1 = vmul.f32 0.0078125, %v731_v61  ;;  %v770_v2 = vmul.f32 %v3933_v59, %v3933_v59  ;;  %v747_v3 = vmul.f32 0.0078125, %v733_v62  ;;  %v771_v5 = vmul.f32 %v3936_v60, %v3936_v60  ;;  %2955 = vmatpush3.bf16.msra.mxu0 %v2954_v21  ;;  %v3974_v62 = vld [vmem:[%s5138_s10] ss:$0 sm:$0xff]  ;;  %s5140_s10 = sld [smem:[#allocation26_spill]] }
 0x16a   : > { %2956 = vmatprep.subr.bf16.mxu0 %v3518_v16 }
 0x16b   : > { %789 = vadd.xlane.f32.xlu0 %v769_v58  ;;  %791 = vadd.xlane.f32.xlu1 %v770_v2  ;;  %v3943_v6 = vsub.f32 %v3883_v10, %v746_v1  ;;  %v3946_v7 = vsub.f32 %v3886_v11, %v747_v3 }
 0x16c   : > { %v735_v8 = vpop.xlane.xlu0 %734 }
 0x16d   : > { %v748_v9 = vmul.f32 0.0078125, %v735_v8  ;;  %v772_v13 = vmul.f32 %v3943_v6, %v3943_v6  ;;  %v773_v10 = vmul.f32 %v3946_v7, %v3946_v7  ;;  %2958 = vmatpush3.bf16.msra.mxu0 %v2957_v24 }
 0x16e   : > { %2959 = vmatprep.subr.bf16.mxu0 %v3518_v16 }
 0x16f   : > { %793 = vadd.xlane.f32.xlu0 %v771_v5  ;;  %795 = vadd.xlane.f32.xlu1 %v772_v13  ;;  %v3954_v18 = vsub.f32 %v3891_v12, %v748_v9  ;;  %v905_v12 = vld [vmem:[#allocation5 + $0x70] sm:$0xff] }
 0x170   : > { %v2960_v26 = vpack.c.bf16 %v906_v25, %v905_v12 }
 0x171   : > { %v774_v11 = vmul.f32 %v3954_v18, %v3954_v18 }
 0x172   : > { %2961 = vmatpush3.bf16.msra.mxu0 %v2960_v26 }
 0x173   : > { %797 = vadd.xlane.f32.xlu0 %v773_v10  ;;  %799 = vadd.xlane.f32.xlu1 %v774_v11 }
 0x174   : > { %2994 = vmatprep.subr.bf16.mxu0 %v3518_v16 }
 0x1e8   : > { %v776_v30 = vpop.xlane.xlu1 %775 }
 0x1e9   : > { %v801_v31 = vmul.f32 0.0078125, %v776_v30 }
 0x1eb   : > { %v814_v32 = vadd.f32 1e-05, %v801_v31 }
 0x1ec   : > { %v780_v33 = vpop.xlane.xlu1 %779  ;;  %v778_v34 = vpop.xlane.xlu0 %777 }
 0x1ed   : > { %3135 = vrsqrt.f32 %v814_v32  ;;  %v803_v37 = vmul.f32 0.0078125, %v780_v33  ;;  %v802_v38 = vmul.f32 0.0078125, %v778_v34 }
 0x1ef   : > { %v816_v39 = vadd.f32 1e-05, %v803_v37  ;;  %v815_v40 = vadd.f32 1e-05, %v802_v38 }
 0x1f0   : > { %v784_v41 = vpop.xlane.xlu1 %783  ;;  %v782_v42 = vpop.xlane.xlu0 %781 }
 0x1f1   : > { %3137 = vrsqrt.f32 %v816_v39  ;;  %v805_v45 = vmul.f32 0.0078125, %v784_v41  ;;  %v804_v46 = vmul.f32 0.0078125, %v782_v42 }
 0x1f2   : > { %3139 = vrsqrt.f32 %v815_v40 }
 0x1f3   : > { %v817_v47 = vadd.f32 1e-05, %v804_v46  ;;  %v818_v48 = vadd.f32 1e-05, %v805_v45 }
 0x1f4   : > { %v786_v49 = vpop.xlane.xlu0 %785  ;;  %v788_v50 = vpop.xlane.xlu1 %787 }
 0x1f5   : > { %v806_v53 = vmul.f32 0.0078125, %v786_v49  ;;  %3141 = vrsqrt.f32 %v817_v47  ;;  %v807_v56 = vmul.f32 0.0078125, %v788_v50 }
 0x1f6   : > { %3143 = vrsqrt.f32 %v818_v48 }
 0x1f7   : > { %v3136_v54 = vpop.eup %3135  ;;  %v819_v57 = vadd.f32 1e-05, %v806_v53  ;;  %v820_v2 = vadd.f32 1e-05, %v807_v56 }
 0x1f8   : > { %v840_v58 = vmul.f32 %v3136_v54, %v3898_v27  ;;  %v790_v61 = vpop.xlane.xlu0 %789  ;;  %v792_v5 = vpop.xlane.xlu1 %791 }
 0x1f9   : > { %3145 = vrsqrt.f32 %v819_v57  ;;  %v808_v3 = vmul.f32 0.0078125, %v790_v61  ;;  %v809_v14 = vmul.f32 0.0078125, %v792_v5 }
 0x1fa   : > { %v859_v63 = vmul.f32 %v3968_v55, %v840_v58  ;;  %3147 = vrsqrt.f32 %v820_v2 }
 0x1fb   : > { %v3138_v0 = vpop.eup %3137  ;;  %v821_v15 = vadd.f32 1e-05, %v808_v3  ;;  %v822_v19 = vadd.f32 1e-05, %v809_v14 }
 0x1fc   : > { %v3140_v1 = vpop.eup %3139  ;;  %v3978_v4 = vadd.f32 %v3974_v62, %v859_v63  ;;  %v842_v27 = vmul.f32 %v3138_v0, %v3900_v28  ;;  %v794_v17 = vpop.xlane.xlu0 %793 }
 0x1fd   : > { %v841_v8 = vmul.f32 %v3140_v1, %v3906_v35  ;;  %3149 = vrsqrt.f32 %v821_v15  ;;  %v810_v20 = vmul.f32 0.0078125, %v794_v17  ;;  %v796_v21 = vpop.xlane.xlu1 %795 }
 0x1fe   : > { %2758 = vmatmul.mubr.f32.vlgmr.msra.gmra.mrb[0].mxu0 %v3978_v4  ;;  %v861_v11 = vmul.f32 %v3968_v55, %v842_v27  ;;  %3151 = vrsqrt.f32 %v822_v19 }
 0x1ff   : > { %2760 = vmatprep.mubr.msk.f32.mxu0 %vm3519_vm0, %v3520_v29  ;;  %v860_v9 = vmul.f32 %v3968_v55, %v841_v8  ;;  %v3142_v13 = vpop.eup %3141  ;;  %v823_v25 = vadd.f32 1e-05, %v810_v20 }
 0x200   : > { %v3144_v35 = vpop.eup %3143  ;;  %v843_v28 = vmul.f32 %v3142_v13, %v3908_v36  ;;  %v3995_v22 = vadd.f32 %v3974_v62, %v861_v11  ;;  %v811_v36 = vmul.f32 0.0078125, %v796_v21  ;;  %v798_v26 = vpop.xlane.xlu0 %797 }
 0x201   : > { %v3987_v10 = vadd.f32 %v3974_v62, %v860_v9  ;;  %v844_v24 = vmul.f32 %v3144_v35, %v3914_v43  ;;  %3153 = vrsqrt.f32 %v823_v25  ;;  %v812_v34 = vmul.f32 0.0078125, %v798_v26  ;;  %v800_v37 = vpop.xlane.xlu1 %799 }
 0x202   : > { %v862_v23 = vmul.f32 %v3968_v55, %v843_v28  ;;  %v824_v43 = vadd.f32 1e-05, %v811_v36 }
 0x203   : > { %2761 = vmatmul.mubr.f32.gmra.mrb[2].mxu0 %v3987_v10  ;;  %v3146_v12 = vpop.eup %3145  ;;  %v863_v31 = vmul.f32 %v3968_v55, %v844_v24  ;;  %v825_v42 = vadd.f32 1e-05, %v812_v34 }
 0x204   : > { %2763 = vmatprep.mubr.msk.f32.mxu0 %vm3519_vm0, %v3520_v29  ;;  %v4003_v30 = vadd.f32 %v3974_v62, %v862_v23  ;;  %v845_v32 = vmul.f32 %v3146_v12, %v3916_v44  ;;  %v3148_v33 = vpop.eup %3147  ;;  %3155 = vrsqrt.f32 %v824_v43  ;;  %v813_v44 = vmul.f32 0.0078125, %v800_v37 }
 0x205   : > { %v4011_v38 = vadd.f32 %v3974_v62, %v863_v31  ;;  %v846_v40 = vmul.f32 %v3148_v33, %v3923_v51  ;;  %3157 = vrsqrt.f32 %v825_v42 }
 0x206   : > { %v864_v39 = vmul.f32 %v3968_v55, %v845_v32  ;;  %v826_v51 = vadd.f32 1e-05, %v813_v44 }
 0x207   : > { %2764 = vmatmul.mubr.f32.gmra.mrb[4].mxu0 %v3995_v22  ;;  %v3150_v41 = vpop.eup %3149  ;;  %v865_v46 = vmul.f32 %v3968_v55, %v846_v40 }
 0x208   : > { %2766 = vmatprep.mubr.msk.f32.mxu0 %vm3519_vm0, %v3520_v29  ;;  %v4019_v45 = vadd.f32 %v3974_v62, %v864_v39  ;;  %v847_v47 = vmul.f32 %v3150_v41, %v3926_v52  ;;  %v3152_v48 = vpop.eup %3151  ;;  %3159 = vrsqrt.f32 %v826_v51 }
 0x209   : > { %v4027_v49 = vadd.f32 %v3974_v62, %v865_v46  ;;  %v848_v53 = vmul.f32 %v3152_v48, %v3933_v59 }
 0x20a   : > { %v866_v50 = vmul.f32 %v3968_v55, %v847_v47 }
 0x20b   : > { %2767 = vmatmul.mubr.f32.gmra.mrb[6].mxu0 %v4003_v30  ;;  %v3154_v54 = vpop.eup %3153  ;;  %v867_v56 = vmul.f32 %v3968_v55, %v848_v53 }
 0x20c   : > { %2769 = vmatprep.mubr.msk.f32.mxu0 %vm3519_vm0, %v3520_v29  ;;  %v4035_v52 = vadd.f32 %v3974_v62, %v866_v50  ;;  %v849_v57 = vmul.f32 %v3154_v54, %v3936_v60 }
 0x20d   : > { %v4043_v59 = vadd.f32 %v3974_v62, %v867_v56 }
 0x20e   : > { %v3156_v58 = vpop.eup %3155  ;;  %v868_v61 = vmul.f32 %v3968_v55, %v849_v57 }
 0x20f   : > { %2770 = vmatmul.mubr.f32.gmra.mrb[8].mxu0 %v4011_v38  ;;  %v850_v63 = vmul.f32 %v3156_v58, %v3943_v6  ;;  %v3158_v0 = vpop.eup %3157 }
 0x210   : > { %2772 = vmatprep.mubr.msk.f32.mxu0 %vm3519_vm0, %v3520_v29  ;;  %v4051_v60 = vadd.f32 %v3974_v62, %v868_v61  ;;  %v851_v2 = vmul.f32 %v3158_v0, %v3946_v7  ;;  %v1254_v61 = vld [vmem:[#allocation7 + $0x8] sm:$0xff]  ;;  %v1253_v0 = vld [vmem:[#allocation7] sm:$0xff] }
 0x211   : > { %v869_v1 = vmul.f32 %v3968_v55, %v850_v63  ;;  %v1256_v63 = vld [vmem:[#allocation7 + $0x18] sm:$0xff] }
 0x212   : > { %v3160_v3 = vpop.eup %3159  ;;  %v870_v5 = vmul.f32 %v3968_v55, %v851_v2  ;;  %v1255_v2 = vld [vmem:[#allocation7 + $0x10] sm:$0xff] }
 0x213   : > { %2773 = vmatmul.mubr.f32.gmra.mrb[10].mxu0 %v4019_v45  ;;  %v4059_v6 = vadd.f32 %v3974_v62, %v869_v1  ;;  %v852_v8 = vmul.f32 %v3160_v3, %v3954_v18  ;;  %v2618_v18 = vld [vmem:[%s5072_s4] ss:$0 sm:$0xff]  ;;  %v2962_v1 = vpack.c.bf16 %v1256_v63, %v1254_v61  ;;  %v1258_v3 = vld [vmem:[#allocation7 + $0x28] sm:$0xff] }
 0x214   : > { %2775 = vmatprep.mubr.msk.f32.mxu0 %vm3519_vm0, %v3520_v29  ;;  %v4067_v7 = vadd.f32 %v3974_v62, %v870_v5  ;;  %v1260_v5 = vld [vmem:[#allocation7 + $0x38] sm:$0xff] }
 0x215   : > { %v871_v27 = vmul.f32 %v3968_v55, %v852_v8  ;;  %v2964_v8 = vpack.c.bf16 %v1255_v2, %v1253_v0  ;;  %2963 = vmatprep.subr.bf16.mxu1 %v2962_v1  ;;  %v1268_v0 = vld [vmem:[#allocation7 + $0x78] sm:$0xff] }
 0x217   : > { %2776 = vmatmul.mubr.f32.gmra.mrb[12].mxu0 %v4027_v49  ;;  %v4074_v9 = vadd.f32 %v3974_v62, %v871_v27  ;;  %v2966_v27 = vpack.c.bf16 %v1260_v5, %v1258_v3  ;;  %2965 = vmatpush1.bf16.msra.mxu1 %v2964_v8  ;;  %v1265_v5 = vld [vmem:[#allocation7 + $0x60] sm:$0xff]  ;;  %v1267_v8 = vld [vmem:[#allocation7 + $0x70] sm:$0xff] }
 0x218   : > { %2778 = vmatprep.mubr.msk.f32.mxu0 %vm3519_vm0, %v3520_v29 }
 0x219   : > { %2967 = vmatprep.subr.bf16.mxu1 %v2966_v27  ;;  %v2976_v27 = vpack.c.bf16 %v1267_v8, %v1265_v5  ;;  %v1281_v8 = vld [vmem:[#allocation7 + $0xe0] sm:$0xff] }
 0x21b   : > { %2779 = vmatmul.mubr.f32.gmra.mrb[14].mxu0 %v4035_v52 }
 0x21c   : > { %2781 = vmatprep.mubr.msk.f32.mxu0 %vm3519_vm0, %v3520_v29 }
 0x21f   : > { %2782 = vmatmul.mubr.f32.gmra.mrb[16].mxu0 %v4043_v59 }
 0x220   : > { %2784 = vmatprep.mubr.msk.f32.mxu0 %vm3519_vm0, %v3520_v29 }
 0x223   : > { %2785 = vmatmul.mubr.f32.gmra.mrb[18].mxu0 %v4051_v60 }
 0x224   : > { %2787 = vmatprep.mubr.msk.f32.mxu0 %vm3519_vm0, %v3520_v29 }
 0x227   : > { %2788 = vmatmul.mubr.f32.gmra.mrb[20].mxu0 %v4059_v6 }
 0x228   : > { %2790 = vmatprep.mubr.msk.f32.mxu0 %vm3519_vm0, %v3520_v29 }
 0x22b   : > { %2791 = vmatmul.mubr.f32.gmra.mrb[22].mxu0 %v4067_v7 }
 0x22c   : > { %2793 = vmatprep.mubr.msk.f32.mxu0 %vm3519_vm0, %v3520_v29 }
 0x22f   : > { %2794 = vmatmul.mubr.f32.gmra.mrb[24].mxu0 %v4074_v9 }
 0x230   : > { %2828 = vmatprep.mubr.msk.f32.mxu0 %vm3519_vm0, %v3520_v29 }
 0x2d1   : > { %v980_v13 = vpop.f32.mrb[0].mxu0 }
 0x2d2   : > { %v4082_v14 = vadd.f32 %v2618_v18, %v980_v13  ;;  %v2759_v55 = vpop.f32.mrb[1].mxu0  ;;  %v1257_v13 = vld [vmem:[#allocation7 + $0x20] sm:$0xff] }
 0x2d3   : > { %v1259_v55 = vld [vmem:[#allocation7 + $0x30] sm:$0xff] }
 0x2d4   : > { %1046 = vadd.xlane.f32.xlu0 %v4082_v14 }
 0x2d6   : > { %v985_v15 = vpop.f32.mrb[2].mxu0 }
 0x2d7   : > { %v4085_v17 = vadd.f32 %v2618_v18, %v985_v15  ;;  %v2762_v62 = vpop.f32.mrb[3].mxu0  ;;  %v2968_v15 = vpack.c.bf16 %v1259_v55, %v1257_v13  ;;  %v1270_v55 = vld [vmem:[#allocation7 + $0x88] sm:$0xff] }
 0x2d9   : > { %1048 = vadd.xlane.f32.xlu1 %v4085_v17  ;;  %2969 = vmatpush1.bf16.msra.mxu1 %v2968_v15  ;;  %v1272_v15 = vld [vmem:[#allocation7 + $0x98] sm:$0xff] }
 0x2da   : > { %v990_v11 = vpop.f32.mrb[4].mxu0 }
 0x2db   : > { %v4088_v35 = vadd.f32 %v2618_v18, %v990_v11  ;;  %v2765_v28 = vpop.f32.mrb[5].mxu0 }
 0x2dd   : > { %1050 = vadd.xlane.f32.xlu0 %v4088_v35 }
 0x2de   : > { %v995_v19 = vpop.f32.mrb[6].mxu0 }
 0x2df   : > { %v4091_v20 = vadd.f32 %v2618_v18, %v995_v19  ;;  %v2768_v21 = vpop.f32.mrb[7].mxu0 }
 0x2e1   : > { %1052 = vadd.xlane.f32.xlu1 %v4091_v20 }
 0x2e2   : > { %v1000_v23 = vpop.f32.mrb[8].mxu0 }
 0x2e3   : > { %v4094_v24 = vadd.f32 %v2618_v18, %v1000_v23  ;;  %v2771_v12 = vpop.f32.mrb[9].mxu0 }
 0x2e5   : > { %1054 = vadd.xlane.f32.xlu0 %v4094_v24 }
 0x2e6   : > { %v1005_v36 = vpop.f32.mrb[10].mxu0 }
 0x2e7   : > { %v4097_v25 = vadd.f32 %v2618_v18, %v1005_v36  ;;  %v2774_v26 = vpop.f32.mrb[11].mxu0 }
 0x2e9   : > { %1056 = vadd.xlane.f32.xlu1 %v4097_v25 }
 0x2ea   : > { %v1010_v31 = vpop.f32.mrb[12].mxu0 }
 0x2eb   : > { %v4100_v32 = vadd.f32 %v2618_v18, %v1010_v31  ;;  %v2777_v33 = vpop.f32.mrb[13].mxu0 }
 0x2ed   : > { %1058 = vadd.xlane.f32.xlu0 %v4100_v32 }
 0x2ee   : > { %v1015_v43 = vpop.f32.mrb[14].mxu0 }
 0x2ef   : > { %v4103_v34 = vadd.f32 %v2618_v18, %v1015_v43  ;;  %v2780_v37 = vpop.f32.mrb[15].mxu0 }
 0x2f1   : > { %1060 = vadd.xlane.f32.xlu1 %v4103_v34 }
 0x2f2   : > { %v1020_v39 = vpop.f32.mrb[16].mxu0 }
 0x2f3   : > { %v4106_v40 = vadd.f32 %v2618_v18, %v1020_v39  ;;  %v2783_v41 = vpop.f32.mrb[17].mxu0 }
 0x2f5   : > { %1062 = vadd.xlane.f32.xlu0 %v4106_v40 }
 0x2f6   : > { %v1025_v44 = vpop.f32.mrb[18].mxu0 }
 0x2f7   : > { %v4109_v42 = vadd.f32 %v2618_v18, %v1025_v44  ;;  %v2786_v46 = vpop.f32.mrb[19].mxu0 }
 0x2f8   : > { %v1262_v46 = vld [vmem:[#allocation7 + $0x48] sm:$0xff] }
 0x2f9   : > { %1064 = vadd.xlane.f32.xlu1 %v4109_v42 }
 0x2fa   : > { %v1030_v47 = vpop.f32.mrb[20].mxu0 }
 0x2fb   : > { %v4112_v48 = vadd.f32 %v2618_v18, %v1030_v47  ;;  %v2789_v51 = vpop.f32.mrb[21].mxu0  ;;  %v1264_v47 = vld [vmem:[#allocation7 + $0x58] sm:$0xff] }
 0x2fd   : > { %1066 = vadd.xlane.f32.xlu0 %v4112_v48 }
 0x2fe   : > { %v1035_v50 = vpop.f32.mrb[22].mxu0 }
 0x2ff   : > { %v4115_v53 = vadd.f32 %v2618_v18, %v1035_v50  ;;  %v2792_v54 = vpop.f32.mrb[23].mxu0 }
 0x300   : > { %v2970_v54 = vpack.c.bf16 %v1264_v47, %v1262_v46  ;;  %v1278_v47 = vld [vmem:[#allocation7 + $0xc8] sm:$0xff] }
 0x301   : > { %1068 = vadd.xlane.f32.xlu1 %v4115_v53 }
 0x302   : > { %v1040_v56 = vpop.f32.mrb[24].mxu0  ;;  %2971 = vmatprep.subr.bf16.mxu1 %v2970_v54 }
 0x303   : > { %v4118_v57 = vadd.f32 %v2618_v18, %v1040_v56  ;;  %v2795_v58 = vpop.f32.mrb[25].mxu0  ;;  %v1261_v56 = vld [vmem:[#allocation7 + $0x40] sm:$0xff] }
 0x305   : > { %1070 = vadd.xlane.f32.xlu0 %v4118_v57 }
 0x361   : > { %v1047_v18 = vpop.xlane.xlu0 %1046 }
 0x362   : > { %v1072_v62 = vmul.f32 0.0078125, %v1047_v18 }
 0x364   : > { %v4122_v11 = vsub.f32 %v4082_v14, %v1072_v62 }
 0x366   : > { %v1049_v28 = vpop.xlane.xlu1 %1048  ;;  %v1098_v19 = vmul.f32 %v4122_v11, %v4122_v11 }
 0x367   : > { %v1073_v21 = vmul.f32 0.0078125, %v1049_v28  ;;  %v2978_v28 = vpack.c.bf16 %v1272_v15, %v1270_v55 }
 0x368   : > { %1111 = vadd.xlane.f32.xlu1 %v1098_v19  ;;  %v1269_v19 = vld [vmem:[#allocation7 + $0x80] sm:$0xff] }
 0x369   : > { %v4127_v23 = vsub.f32 %v4085_v17, %v1073_v21  ;;  %v1271_v21 = vld [vmem:[#allocation7 + $0x90] sm:$0xff] }
 0x36a   : > { %v1051_v12 = vpop.xlane.xlu0 %1050 }
 0x36b   : > { %v1074_v36 = vmul.f32 0.0078125, %v1051_v12  ;;  %v1099_v26 = vmul.f32 %v4127_v23, %v4127_v23  ;;  %v2980_v12 = vpack.c.bf16 %v1271_v21, %v1269_v19 }
 0x36d   : > { %1113 = vadd.xlane.f32.xlu0 %v1099_v26  ;;  %v4132_v31 = vsub.f32 %v4088_v35, %v1074_v36  ;;  %v1274_v26 = vld [vmem:[#allocation7 + $0xa8] sm:$0xff] }
 0x36e   : > { %v1053_v14 = vpop.xlane.xlu1 %1052 }
 0x36f   : > { %v1075_v33 = vmul.f32 0.0078125, %v1053_v14  ;;  %v1100_v43 = vmul.f32 %v4132_v31, %v4132_v31  ;;  %v1276_v14 = vld [vmem:[#allocation7 + $0xb8] sm:$0xff] }
 0x371   : > { %1115 = vadd.xlane.f32.xlu1 %v1100_v43  ;;  %v4137_v37 = vsub.f32 %v4091_v20, %v1075_v33  ;;  %v1263_v20 = vld [vmem:[#allocation7 + $0x50] sm:$0xff] }
 0x372   : > { %v1055_v17 = vpop.xlane.xlu0 %1054  ;;  %v2972_v58 = vpack.c.bf16 %v1263_v20, %v1261_v56  ;;  %v1277_v20 = vld [vmem:[#allocation7 + $0xc0] sm:$0xff] }
 0x373   : > { %v1076_v39 = vmul.f32 0.0078125, %v1055_v17  ;;  %v1101_v41 = vmul.f32 %v4137_v37, %v4137_v37  ;;  %v2982_v17 = vpack.c.bf16 %v1276_v14, %v1274_v26 }
 0x374   : > { %2973 = vmatpush1.bf16.msra.mxu1 %v2972_v58  ;;  %v1279_v58 = vld [vmem:[#allocation7 + $0xd0] sm:$0xff] }
 0x375   : > { %1117 = vadd.xlane.f32.xlu0 %v1101_v41  ;;  %v4142_v44 = vsub.f32 %v4094_v24, %v1076_v39  ;;  %v1266_v24 = vld [vmem:[#allocation7 + $0x68] sm:$0xff]  ;;  %v1273_v39 = vld [vmem:[#allocation7 + $0xa0] sm:$0xff]  ;;  %v1275_v41 = vld [vmem:[#allocation7 + $0xb0] sm:$0xff] }
 0x376   : > { %v1057_v35 = vpop.xlane.xlu1 %1056  ;;  %v2974_v3 = vpack.c.bf16 %v1268_v0, %v1266_v24  ;;  %v1282_v0 = vld [vmem:[#allocation7 + $0xe8] sm:$0xff] }
 0x377   : > { %v1077_v51 = vmul.f32 0.0078125, %v1057_v35  ;;  %v1102_v50 = vmul.f32 %v4142_v44, %v4142_v44  ;;  %v2984_v35 = vpack.c.bf16 %v1275_v41, %v1273_v39 }
 0x378   : > { %2975 = vmatprep.subr.bf16.mxu1 %v2974_v3 }
 0x379   : > { %1119 = vadd.xlane.f32.xlu1 %v1102_v50  ;;  %v4147_v61 = vsub.f32 %v4097_v25, %v1077_v51  ;;  %2977 = vmatpush1.bf16.msra.mxu1 %v2976_v27  ;;  %v1280_v51 = vld [vmem:[#allocation7 + $0xd8] sm:$0xff]  ;;  %v1283_v27 = vld [vmem:[#allocation7 + $0xf0] sm:$0xff] }
 0x37a   : > { %v1059_v63 = vpop.xlane.xlu0 %1058  ;;  %2979 = vmatprep.subr.bf16.mxu1 %v2978_v28  ;;  %v2986_v56 = vpack.c.bf16 %v1280_v51, %v1278_v47  ;;  %v4190_v47 = vld [vmem:[%s5073_s5] ss:$0 sm:$0xff] }
 0x37b   : > { %v1078_v1 = vmul.f32 0.0078125, %v1059_v63  ;;  %v1103_v2 = vmul.f32 %v4147_v61, %v4147_v61  ;;  %v2988_v63 = vpack.c.bf16 %v1279_v58, %v1277_v20 }
 0x37d   : > { %1121 = vadd.xlane.f32.xlu0 %v1103_v2  ;;  %v4152_v13 = vsub.f32 %v4100_v32, %v1078_v1  ;;  %2981 = vmatpush1.bf16.msra.mxu1 %v2980_v12  ;;  %v1284_v1 = vld [vmem:[#allocation7 + $0xf8] sm:$0xff] }
 0x37e   : > { %v1061_v25 = vpop.xlane.xlu1 %1060  ;;  %2983 = vmatprep.subr.bf16.mxu1 %v2982_v17  ;;  %v2990_v5 = vpack.c.bf16 %v1284_v1, %v1282_v0 }
 0x37f   : > { %v1079_v18 = vmul.f32 0.0078125, %v1061_v25  ;;  %v1104_v62 = vmul.f32 %v4152_v13, %v4152_v13  ;;  %v2992_v25 = vpack.c.bf16 %v1283_v27, %v1281_v8 }
 0x381   : > { %1123 = vadd.xlane.f32.xlu1 %v1104_v62  ;;  %v4157_v36 = vsub.f32 %v4103_v34, %v1079_v18  ;;  %2985 = vmatpush1.bf16.msra.mxu1 %v2984_v35 }
 0x382   : > { %v1063_v32 = vpop.xlane.xlu0 %1062  ;;  %2987 = vmatprep.subr.bf16.mxu1 %v2986_v56  ;;  %v4196_v56 = vld [vmem:[%s5074_s6] ss:$0 sm:$0xff] }
 0x383   : > { %v1080_v33 = vmul.f32 0.0078125, %v1063_v32  ;;  %v1105_v43 = vmul.f32 %v4157_v36, %v4157_v36 }
 0x385   : > { %1125 = vadd.xlane.f32.xlu0 %v1105_v43  ;;  %v4162_v46 = vsub.f32 %v4106_v40, %v1080_v33  ;;  %2989 = vmatpush1.bf16.msra.mxu1 %v2988_v63 }
 0x386   : > { %v1065_v34 = vpop.xlane.xlu1 %1064  ;;  %2991 = vmatprep.subr.bf16.mxu1 %v2990_v5 }
 0x387   : > { %v1081_v50 = vmul.f32 0.0078125, %v1065_v34  ;;  %v1106_v54 = vmul.f32 %v4162_v46, %v4162_v46 }
 0x389   : > { %1127 = vadd.xlane.f32.xlu1 %v1106_v54  ;;  %v4167_v24 = vsub.f32 %v4109_v42, %v1081_v50  ;;  %2993 = vmatpush1.bf16.msra.mxu1 %v2992_v25 }
 0x38a   : > { %v1067_v40 = vpop.xlane.xlu0 %1066  ;;  %3018 = vmatprep.subr.bf16.mxu1 %v3518_v16 }
 0x38b   : > { %v1082_v2 = vmul.f32 0.0078125, %v1067_v40  ;;  %v1107_v3 = vmul.f32 %v4167_v24, %v4167_v24 }
 0x38d   : > { %1129 = vadd.xlane.f32.xlu0 %v1107_v3  ;;  %v4172_v55 = vsub.f32 %v4112_v48, %v1082_v2 }
 0x38e   : > { %v1069_v42 = vpop.xlane.xlu1 %1068 }
 0x38f   : > { %v1083_v15 = vmul.f32 0.0078125, %v1069_v42  ;;  %v1108_v18 = vmul.f32 %v4172_v55, %v4172_v55 }
 0x391   : > { %1131 = vadd.xlane.f32.xlu1 %v1108_v18  ;;  %v4178_v62 = vsub.f32 %v4115_v53, %v1083_v15 }
 0x392   : > { %v1071_v28 = vpop.xlane.xlu0 %1070 }
 0x393   : > { %v1084_v19 = vmul.f32 0.0078125, %v1071_v28  ;;  %v1109_v21 = vmul.f32 %v4178_v62, %v4178_v62 }
 0x395   : > { %1133 = vadd.xlane.f32.xlu0 %v1109_v21  ;;  %v4183_v48 = vsub.f32 %v4118_v57, %v1084_v19 }
 0x397   : > { %v1110_v12 = vmul.f32 %v4183_v48, %v4183_v48 }
 0x399   : > { %1135 = vadd.xlane.f32.xlu1 %v1110_v12 }
 0x3f5   : > { %v1112_v32 = vpop.xlane.xlu1 %1111 }
 0x3f6   : > { %v1137_v26 = vmul.f32 0.0078125, %v1112_v32 }
 0x3f8   : > { %v1150_v14 = vadd.f32 1e-05, %v1137_v26 }
 0x3fa   : > { %3161 = vrsqrt.f32 %v1150_v14  ;;  %v1114_v33 = vpop.xlane.xlu0 %1113 }
 0x3fb   : > { %v1138_v53 = vmul.f32 0.0078125, %v1114_v33 }
 0x3fd   : > { %v1151_v43 = vadd.f32 1e-05, %v1138_v53 }
 0x3fe   : > { %v1116_v17 = vpop.xlane.xlu1 %1115 }
 0x3ff   : > { %3163 = vrsqrt.f32 %v1151_v43  ;;  %v1139_v39 = vmul.f32 0.0078125, %v1116_v17 }
 0x401   : > { %v1152_v41 = vadd.f32 1e-05, %v1139_v39 }
 0x402   : > { %v1118_v35 = vpop.xlane.xlu0 %1117 }
 0x403   : > { %3165 = vrsqrt.f32 %v1152_v41  ;;  %v1140_v34 = vmul.f32 0.0078125, %v1118_v35 }
 0x404   : > { %v3162_v57 = vpop.eup %3161 }
 0x405   : > { %v1153_v51 = vadd.f32 1e-05, %v1140_v34  ;;  %v1176_v50 = vmul.f32 %v3162_v57, %v4122_v11 }
 0x406   : > { %v1120_v54 = vpop.xlane.xlu1 %1119 }
 0x407   : > { %3167 = vrsqrt.f32 %v1153_v51  ;;  %v1141_v20 = vmul.f32 0.0078125, %v1120_v54  ;;  %v1195_v58 = vmul.f32 %v4190_v47, %v1176_v50 }
 0x409   : > { %v3164_v63 = vpop.eup %3163  ;;  %v1154_v40 = vadd.f32 1e-05, %v1141_v20  ;;  %v1214_v0 = vadd.f32 %v4196_v56, %v1195_v58 }
 0x40a   : > { %v1122_v1 = vpop.xlane.xlu0 %1121  ;;  %v1177_v2 = vmul.f32 %v3164_v63, %v4127_v23 }
 0x40b   : > { %3169 = vrsqrt.f32 %v1154_v40  ;;  %v1142_v3 = vmul.f32 0.0078125, %v1122_v1  ;;  %v1227_v11 = vmax.f32 %v1214_v0, 0.0 }
 0x40c   : > { %v1196_v5 = vmul.f32 %v4190_v47, %v1177_v2 }
 0x40d   : > { %v3166_v8 = vpop.eup %3165  ;;  %v1155_v27 = vadd.f32 1e-05, %v1142_v3  ;;  %v1240_v25 = vadd.f32 %v1227_v11, %v3978_v4 }
 0x40e   : > { %v1124_v42 = vpop.xlane.xlu1 %1123  ;;  %v1215_v15 = vadd.f32 %v4196_v56, %v1196_v5  ;;  %v1178_v18 = vmul.f32 %v3166_v8, %v4132_v31 }
 0x40f   : > { %3171 = vrsqrt.f32 %v1155_v27  ;;  %v1143_v28 = vmul.f32 0.0078125, %v1124_v42  ;;  %1362 = vmatmul.mubr.f32.vlgmr.msra.gmra.mrb[0].mxu1 %v1240_v25 }
 0x410   : > { %1367 = vmatprep.mubr.f32.mxu1 %v3520_v29  ;;  %v1228_v23 = vmax.f32 %v1215_v15, 0.0  ;;  %v1197_v19 = vmul.f32 %v4190_v47, %v1178_v18 }
 0x411   : > { %v3168_v21 = vpop.eup %3167  ;;  %v1156_v12 = vadd.f32 1e-05, %v1143_v28 }
 0x412   : > { %v1126_v32 = vpop.xlane.xlu0 %1125  ;;  %v1241_v26 = vadd.f32 %v1228_v23, %v3987_v10  ;;  %v1216_v4 = vadd.f32 %v4196_v56, %v1197_v19  ;;  %v1179_v14 = vmul.f32 %v3168_v21, %v4137_v37 }
 0x413   : > { %3173 = vrsqrt.f32 %v1156_v12  ;;  %v1144_v33 = vmul.f32 0.0078125, %v1126_v32 }
 0x414   : > { %1368 = vmatmul.mubr.f32.gmra.mrb[2].mxu1 %v1241_v26  ;;  %v1229_v31 = vmax.f32 %v1216_v4, 0.0  ;;  %v1198_v53 = vmul.f32 %v4190_v47, %v1179_v14 }
 0x415   : > { %v3170_v43 = vpop.eup %3169  ;;  %v1157_v17 = vadd.f32 1e-05, %v1144_v33  ;;  %1373 = vmatprep.mubr.f32.mxu1 %v3520_v29 }
 0x416   : > { %v1128_v39 = vpop.xlane.xlu1 %1127  ;;  %v1242_v41 = vadd.f32 %v1229_v31, %v3995_v22  ;;  %v1217_v35 = vadd.f32 %v4196_v56, %v1198_v53  ;;  %v1180_v10 = vmul.f32 %v3170_v43, %v4142_v44 }
 0x417   : > { %3175 = vrsqrt.f32 %v1157_v17  ;;  %v1145_v34 = vmul.f32 0.0078125, %v1128_v39 }
 0x418   : > { %1374 = vmatmul.mubr.f32.gmra.mrb[4].mxu1 %v1242_v41  ;;  %v1230_v37 = vmax.f32 %v1217_v35, 0.0  ;;  %v1199_v57 = vmul.f32 %v4190_v47, %v1180_v10 }
 0x419   : > { %v3172_v51 = vpop.eup %3171  ;;  %v1158_v50 = vadd.f32 1e-05, %v1145_v34  ;;  %1379 = vmatprep.mubr.f32.mxu1 %v3520_v29 }
 0x41a   : > { %v1130_v54 = vpop.xlane.xlu0 %1129  ;;  %v1243_v20 = vadd.f32 %v1230_v37, %v4003_v30  ;;  %v1218_v58 = vadd.f32 %v4196_v56, %v1199_v57  ;;  %v1181_v22 = vmul.f32 %v3172_v51, %v4147_v61 }
 0x41b   : > { %3177 = vrsqrt.f32 %v1158_v50  ;;  %v1146_v63 = vmul.f32 0.0078125, %v1130_v54 }
 0x41c   : > { %1380 = vmatmul.mubr.f32.gmra.mrb[6].mxu1 %v1243_v20  ;;  %v1231_v44 = vmax.f32 %v1218_v58, 0.0  ;;  %v1200_v40 = vmul.f32 %v4190_v47, %v1181_v22 }
 0x41d   : > { %v3174_v0 = vpop.eup %3173  ;;  %v1159_v1 = vadd.f32 1e-05, %v1146_v63  ;;  %1385 = vmatprep.mubr.f32.mxu1 %v3520_v29 }
 0x41e   : > { %v1132_v2 = vpop.xlane.xlu1 %1131  ;;  %v1244_v3 = vadd.f32 %v1231_v44, %v4011_v38  ;;  %v1219_v11 = vadd.f32 %v4196_v56, %v1200_v40  ;;  %v1182_v30 = vmul.f32 %v3174_v0, %v4152_v13 }
 0x41f   : > { %3179 = vrsqrt.f32 %v1159_v1  ;;  %v1147_v5 = vmul.f32 0.0078125, %v1132_v2 }
 0x420   : > { %1386 = vmatmul.mubr.f32.gmra.mrb[8].mxu1 %v1244_v3  ;;  %v1232_v61 = vmax.f32 %v1219_v11, 0.0  ;;  %v1201_v8 = vmul.f32 %v4190_v47, %v1182_v30 }
 0x421   : > { %v3176_v27 = vpop.eup %3175  ;;  %v1160_v25 = vadd.f32 1e-05, %v1147_v5  ;;  %1391 = vmatprep.mubr.f32.mxu1 %v3520_v29 }
 0x422   : > { %v1134_v42 = vpop.xlane.xlu0 %1133  ;;  %v1245_v15 = vadd.f32 %v1232_v61, %v4019_v45  ;;  %v1220_v18 = vadd.f32 %v4196_v56, %v1201_v8  ;;  %v1183_v38 = vmul.f32 %v3176_v27, %v4157_v36 }
 0x423   : > { %3181 = vrsqrt.f32 %v1160_v25  ;;  %v1148_v28 = vmul.f32 0.0078125, %v1134_v42 }
 0x424   : > { %1392 = vmatmul.mubr.f32.gmra.mrb[10].mxu1 %v1245_v15  ;;  %v1233_v13 = vmax.f32 %v1220_v18, 0.0  ;;  %v1202_v23 = vmul.f32 %v4190_v47, %v1183_v38 }
 0x425   : > { %v3178_v19 = vpop.eup %3177  ;;  %v1161_v21 = vadd.f32 1e-05, %v1148_v28  ;;  %1397 = vmatprep.mubr.f32.mxu1 %v3520_v29 }
 0x426   : > { %v1136_v12 = vpop.xlane.xlu1 %1135  ;;  %v1246_v32 = vadd.f32 %v1233_v13, %v4027_v49  ;;  %v1221_v26 = vadd.f32 %v4196_v56, %v1202_v23  ;;  %v1184_v45 = vmul.f32 %v3178_v19, %v4162_v46 }
 0x427   : > { %3183 = vrsqrt.f32 %v1161_v21  ;;  %v1149_v4 = vmul.f32 0.0078125, %v1136_v12 }
 0x428   : > { %1398 = vmatmul.mubr.f32.gmra.mrb[12].mxu1 %v1246_v32  ;;  %v1234_v36 = vmax.f32 %v1221_v26, 0.0  ;;  %v1203_v14 = vmul.f32 %v4190_v47, %v1184_v45 }
 0x429   : > { %v3180_v33 = vpop.eup %3179  ;;  %v1162_v31 = vadd.f32 1e-05, %v1149_v4  ;;  %1403 = vmatprep.mubr.f32.mxu1 %v3520_v29 }
 0x42a   : > { %v1247_v53 = vadd.f32 %v1234_v36, %v4035_v52  ;;  %v1222_v43 = vadd.f32 %v4196_v56, %v1203_v14  ;;  %v1185_v49 = vmul.f32 %v3180_v33, %v4167_v24 }
 0x42b   : > { %3185 = vrsqrt.f32 %v1162_v31 }
 0x42c   : > { %1404 = vmatmul.mubr.f32.gmra.mrb[14].mxu1 %v1247_v53  ;;  %v1235_v17 = vmax.f32 %v1222_v43, 0.0  ;;  %v1204_v46 = vmul.f32 %v4190_v47, %v1185_v49 }
 0x42d   : > { %v3182_v39 = vpop.eup %3181  ;;  %1409 = vmatprep.mubr.f32.mxu1 %v3520_v29 }
 0x42e   : > { %v1248_v41 = vadd.f32 %v1235_v17, %v4043_v59  ;;  %v1223_v35 = vadd.f32 %v4196_v56, %v1204_v46  ;;  %v1186_v10 = vmul.f32 %v3182_v39, %v4172_v55 }
 0x430   : > { %1410 = vmatmul.mubr.f32.gmra.mrb[16].mxu1 %v1248_v41  ;;  %v1236_v52 = vmax.f32 %v1223_v35, 0.0  ;;  %v1205_v34 = vmul.f32 %v4190_v47, %v1186_v10 }
 0x431   : > { %v3184_v37 = vpop.eup %3183  ;;  %1415 = vmatprep.mubr.f32.mxu1 %v3520_v29 }
 0x432   : > { %v1249_v24 = vadd.f32 %v1236_v52, %v4051_v60  ;;  %v1224_v57 = vadd.f32 %v4196_v56, %v1205_v34  ;;  %v1187_v51 = vmul.f32 %v3184_v37, %v4178_v62  ;;  %v1665_v52 = vld [vmem:[#allocation8] sm:$0xff]  ;;  %v1666_v34 = vld [vmem:[#allocation8 + $0x8] sm:$0xff]  ;;  %v1667_v37 = vld [vmem:[#allocation8 + $0x10] sm:$0xff] }
 0x434   : > { %1416 = vmatmul.mubr.f32.gmra.mrb[18].mxu1 %v1249_v24  ;;  %v1237_v50 = vmax.f32 %v1224_v57, 0.0  ;;  %v1206_v59 = vmul.f32 %v4190_v47, %v1187_v51  ;;  %v2995_v24 = vpack.c.bf16 %v1666_v34, %v1665_v52  ;;  %v1668_v57 = vld [vmem:[#allocation8 + $0x18] sm:$0xff] }
 0x435   : > { %v3186_v54 = vpop.eup %3185  ;;  %1421 = vmatprep.mubr.f32.mxu1 %v3520_v29  ;;  %v2998_v51 = vpack.c.bf16 %v1668_v57, %v1667_v37 }
 0x436   : > { %v1250_v55 = vadd.f32 %v1237_v50, %v4059_v6  ;;  %v1225_v20 = vadd.f32 %v4196_v56, %v1206_v59  ;;  %v1188_v58 = vmul.f32 %v3186_v54, %v4183_v48  ;;  %v1287_v48 = vlaneseq  ;;  %2996 = vmatpush3.bf16.msra.mxu0 %v2995_v24  ;;  %v1669_v50 = vld [vmem:[#allocation8 + $0x20] sm:$0xff]  ;;  %v1670_v59 = vld [vmem:[#allocation8 + $0x28] sm:$0xff] }
 0x437   : > { %2997 = vmatprep.subr.bf16.mxu0 %v3518_v16  ;;  %v3001_v54 = vpack.c.bf16 %v1670_v59, %v1669_v50 }
 0x438   : > { %1422 = vmatmul.mubr.f32.gmra.mrb[20].mxu1 %v1250_v55  ;;  %v1238_v22 = vmax.f32 %v1225_v20, 0.0  ;;  %v1207_v60 = vmul.f32 %v4190_v47, %v1188_v58  ;;  %v4264_v40 = vshrl.u32 %v1287_v48, 7  ;;  %v1671_v55 = vld [vmem:[#allocation8 + $0x30] sm:$0xff]  ;;  %v1672_v20 = vld [vmem:[#allocation8 + $0x38] sm:$0xff] }
 0x439   : > { %1427 = vmatprep.mubr.f32.mxu1 %v3520_v29  ;;  %v3004_v58 = vpack.c.bf16 %v1672_v20, %v1671_v55 }
 0x43a   : > { %v1251_v62 = vadd.f32 %v1238_v22, %v4067_v7  ;;  %v1226_v63 = vadd.f32 %v4196_v56, %v1207_v60  ;;  %v1289_v47 = vsub.s32 0, %v4264_v40  ;;  %v4270_v7 = vld [vmem:[%s5076_s8] sm:$0x3]  ;;  %2999 = vmatpush3.bf16.msra.mxu0 %v2998_v51  ;;  %v1673_v22 = vld [vmem:[#allocation8 + $0x40] sm:$0xff]  ;;  %v1674_v60 = vld [vmem:[#allocation8 + $0x48] sm:$0xff] }
 0x43b   : > { %3000 = vmatprep.subr.bf16.mxu0 %v3518_v16 }
 0x43c   : > { %1428 = vmatmul.mubr.f32.gmra.mrb[22].mxu1 %v1251_v62  ;;  %v1239_v44 = vmax.f32 %v1226_v63, 0.0  ;;  %v1290_v56 = vrot.slane %v4270_v7, %v1289_v47  ;;  %v3007_v62 = vpack.c.bf16 %v1674_v60, %v1673_v22  ;;  %v4344_v63 = vand.u32 127, %v1287_v48 }
 0x43d   : > { %1433 = vmatprep.mubr.f32.mxu1 %v3520_v29 }
 0x43e   : > { %v1252_v6 = vadd.f32 %v1239_v44, %v4074_v9  ;;  %3002 = vmatpush3.bf16.msra.mxu0 %v3001_v54  ;;  %vm1496_vm1 = vcmp.lt.s32.totalorder %v4344_v63, 64  ;;  %vm1872_vm2 = vcmp.lt.s32.totalorder %v4344_v63, 32 }
 0x43f   : > { %3003 = vmatprep.subr.bf16.mxu0 %v3518_v16 }
 0x440   : > { %1434 = vmatmul.mubr.f32.gmra.mrb[24].mxu1 %v1252_v6 }
 0x441   : > { %2899 = vmatprep.mubr.msk.f32.mxu1 %vm3519_vm0, %v3520_v29 }
 0x442   : > { %3005 = vmatpush3.bf16.msra.mxu0 %v3004_v58 }
 0x443   : > { %3006 = vmatprep.subr.bf16.mxu0 %v3518_v16 }
 0x446   : > { %3008 = vmatpush3.bf16.msra.mxu0 %v3007_v62 }
 0x447   : > { %3009 = vmatprep.subr.bf16.mxu0 %v3518_v16 }
 0x4e2   : > { %v1363_v0 = vpop.f32.mrb[0].mxu1 }
 0x4e3   : > { %v4273_v1 = vadd.f32 %v1363_v0, %v1290_v56  ;;  %v4275_v9 = vpop.f32.mrb[1].mxu1 }
 0x4e5   : > { %1442 = vadd.xlane.f32.xlu0 %v4273_v1 }
 0x4e7   : > { %v1369_v2 = vpop.f32.mrb[2].mxu1 }
 0x4e8   : > { %v4278_v3 = vadd.f32 %v1369_v2, %v1290_v56  ;;  %v4280_v11 = vpop.f32.mrb[3].mxu1 }
 0x4ea   : > { %1444 = vadd.xlane.f32.xlu1 %v4278_v3 }
 0x4eb   : > { %v1375_v30 = vpop.f32.mrb[4].mxu1 }
 0x4ec   : > { %v4283_v5 = vadd.f32 %v1375_v30, %v1290_v56  ;;  %v4285_v61 = vpop.f32.mrb[5].mxu1 }
 0x4ee   : > { %1446 = vadd.xlane.f32.xlu0 %v4283_v5 }
 0x4ef   : > { %v1381_v8 = vpop.f32.mrb[6].mxu1 }
 0x4f0   : > { %v4288_v27 = vadd.f32 %v1381_v8, %v1290_v56  ;;  %v4290_v25 = vpop.f32.mrb[7].mxu1 }
 0x4f2   : > { %1448 = vadd.xlane.f32.xlu1 %v4288_v27 }
 0x4f3   : > { %v1387_v42 = vpop.f32.mrb[8].mxu1 }
 0x4f4   : > { %v4293_v15 = vadd.f32 %v1387_v42, %v1290_v56  ;;  %v4295_v18 = vpop.f32.mrb[9].mxu1 }
 0x4f6   : > { %1450 = vadd.xlane.f32.xlu0 %v4293_v15 }
 0x4f7   : > { %v1393_v38 = vpop.f32.mrb[10].mxu1 }
 0x4f8   : > { %v4298_v28 = vadd.f32 %v1393_v38, %v1290_v56  ;;  %v4300_v13 = vpop.f32.mrb[11].mxu1 }
 0x4fa   : > { %1452 = vadd.xlane.f32.xlu1 %v4298_v28 }
 0x4fb   : > { %v1399_v23 = vpop.f32.mrb[12].mxu1 }
 0x4fc   : > { %v4303_v19 = vadd.f32 %v1399_v23, %v1290_v56  ;;  %v4305_v21 = vpop.f32.mrb[13].mxu1 }
 0x4fe   : > { %1454 = vadd.xlane.f32.xlu0 %v4303_v19 }
 0x4ff   : > { %v1405_v12 = vpop.f32.mrb[14].mxu1 }
 0x500   : > { %v4308_v32 = vadd.f32 %v1405_v12, %v1290_v56  ;;  %v4310_v26 = vpop.f32.mrb[15].mxu1 }
 0x502   : > { %1456 = vadd.xlane.f32.xlu1 %v4308_v32 }
 0x503   : > { %v1411_v45 = vpop.f32.mrb[16].mxu1 }
 0x504   : > { %v4313_v4 = vadd.f32 %v1411_v45, %v1290_v56  ;;  %v4315_v36 = vpop.f32.mrb[17].mxu1 }
 0x506   : > { %1458 = vadd.xlane.f32.xlu0 %v4313_v4 }
 0x507   : > { %v1417_v14 = vpop.f32.mrb[18].mxu1 }
 0x508   : > { %v4318_v33 = vadd.f32 %v1417_v14, %v1290_v56  ;;  %v4320_v31 = vpop.f32.mrb[19].mxu1 }
 0x50a   : > { %1460 = vadd.xlane.f32.xlu1 %v4318_v33 }
 0x50b   : > { %v1423_v53 = vpop.f32.mrb[20].mxu1 }
 0x50c   : > { %v4323_v43 = vadd.f32 %v1423_v53, %v1290_v56  ;;  %v4325_v49 = vpop.f32.mrb[21].mxu1 }
 0x50e   : > { %1462 = vadd.xlane.f32.xlu0 %v4323_v43 }
 0x50f   : > { %v1429_v17 = vpop.f32.mrb[22].mxu1 }
 0x510   : > { %v4328_v46 = vadd.f32 %v1429_v17, %v1290_v56  ;;  %v4330_v39 = vpop.f32.mrb[23].mxu1 }
 0x512   : > { %1464 = vadd.xlane.f32.xlu1 %v4328_v46 }
 0x513   : > { %v1435_v41 = vpop.f32.mrb[24].mxu1 }
 0x514   : > { %v4333_v35 = vadd.f32 %v1435_v41, %v1290_v56  ;;  %v4335_v10 = vpop.f32.mrb[25].mxu1 }
 0x516   : > { %1466 = vadd.xlane.f32.xlu0 %v4333_v35 }
 0x572   : > { %v1443_v44 = vpop.xlane.xlu0 %1442 }
 0x573   : > { %v1468_v6 = vmul.f32 0.015625, %v1443_v44 }
 0x575   : > { %v1481_v47 = vsub.f32 %v4273_v1, %v1468_v6 }
 0x577   : > { %v1445_v56 = vpop.xlane.xlu1 %1444  ;;  %v4350_v0 = vsel %vm1496_vm1, %v1481_v47, 0.0  ;;  %v1675_v47 = vld [vmem:[#allocation8 + $0x50] sm:$0xff] }
 0x578   : > { %v1469_v2 = vmul.f32 0.015625, %v1445_v56  ;;  %v1510_v30 = vmul.f32 %v4350_v0, %v4350_v0  ;;  %v1676_v56 = vld [vmem:[#allocation8 + $0x58] sm:$0xff] }
 0x57a   : > { %v1482_v8 = vsub.f32 %v4278_v3, %v1469_v2  ;;  %1523 = vadd.xlane.f32.xlu1 %v1510_v30  ;;  %v3010_v30 = vpack.c.bf16 %v1676_v56, %v1675_v47 }
 0x57b   : > { %v1447_v48 = vpop.xlane.xlu0 %1446 }
 0x57c   : > { %v1470_v42 = vmul.f32 0.015625, %v1447_v48  ;;  %v4357_v38 = vsel %vm1496_vm1, %v1482_v8, 0.0  ;;  %3011 = vmatpush3.bf16.msra.mxu0 %v3010_v30 }
 0x57d   : > { %v1511_v1 = vmul.f32 %v4357_v38, %v4357_v38  ;;  %3012 = vmatprep.subr.bf16.mxu0 %v3518_v16 }
 0x57e   : > { %v1483_v23 = vsub.f32 %v4283_v5, %v1470_v42 }
 0x57f   : > { %v1449_v12 = vpop.xlane.xlu1 %1448  ;;  %1525 = vadd.xlane.f32.xlu0 %v1511_v1  ;;  %v1677_v1 = vld [vmem:[#allocation8 + $0x60] sm:$0xff] }
 0x580   : > { %v1471_v45 = vmul.f32 0.015625, %v1449_v12  ;;  %v4364_v14 = vsel %vm1496_vm1, %v1483_v23, 0.0  ;;  %v1678_v23 = vld [vmem:[#allocation8 + $0x68] sm:$0xff] }
 0x581   : > { %v1512_v3 = vmul.f32 %v4364_v14, %v4364_v14 }
 0x582   : > { %v1484_v53 = vsub.f32 %v4288_v27, %v1471_v45  ;;  %v3013_v45 = vpack.c.bf16 %v1678_v23, %v1677_v1  ;;  %v4444_v1 = vld [vmem:[%s5077_s9] ss:$0 sm:$0xff] }
 0x583   : > { %1527 = vadd.xlane.f32.xlu1 %v1512_v3  ;;  %v1451_v17 = vpop.xlane.xlu0 %1450 }
 0x584   : > { %v1472_v41 = vmul.f32 0.015625, %v1451_v17  ;;  %v4371_v52 = vsel %vm1496_vm1, %v1484_v53, 0.0  ;;  %3014 = vmatpush3.bf16.msra.mxu0 %v3013_v45 }
 0x585   : > { %v1513_v5 = vmul.f32 %v4371_v52, %v4371_v52  ;;  %3015 = vmatprep.subr.bf16.mxu0 %v3518_v16 }
 0x586   : > { %v1485_v34 = vsub.f32 %v4293_v15, %v1472_v41  ;;  %v1679_v41 = vld [vmem:[#allocation8 + $0x70] sm:$0xff] }
 0x587   : > { %v1453_v37 = vpop.xlane.xlu1 %1452  ;;  %1529 = vadd.xlane.f32.xlu0 %v1513_v5  ;;  %v1680_v5 = vld [vmem:[#allocation8 + $0x78] sm:$0xff] }
 0x588   : > { %v1473_v24 = vmul.f32 0.015625, %v1453_v37  ;;  %v4378_v57 = vsel %vm1496_vm1, %v1485_v34, 0.0  ;;  %v3016_v37 = vpack.c.bf16 %v1680_v5, %v1679_v41 }
 0x589   : > { %v1514_v27 = vmul.f32 %v4378_v57, %v4378_v57 }
 0x58a   : > { %v1486_v51 = vsub.f32 %v4298_v28, %v1473_v24  ;;  %3017 = vmatpush3.bf16.msra.mxu0 %v3016_v37 }
 0x58b   : > { %1531 = vadd.xlane.f32.xlu1 %v1514_v27  ;;  %v1455_v50 = vpop.xlane.xlu0 %1454 }
 0x58c   : > { %v1474_v59 = vmul.f32 0.015625, %v1455_v50  ;;  %v4385_v54 = vsel %vm1496_vm1, %v1486_v51, 0.0 }
 0x58d   : > { %v1515_v15 = vmul.f32 %v4385_v54, %v4385_v54 }
 0x58e   : > { %v1487_v55 = vsub.f32 %v4303_v19, %v1474_v59 }
 0x58f   : > { %v1457_v20 = vpop.xlane.xlu1 %1456  ;;  %1533 = vadd.xlane.f32.xlu0 %v1515_v15 }
 0x590   : > { %v1475_v58 = vmul.f32 0.015625, %v1457_v20  ;;  %v4392_v22 = vsel %vm1496_vm1, %v1487_v55, 0.0 }
 0x591   : > { %v1516_v28 = vmul.f32 %v4392_v22, %v4392_v22 }
 0x592   : > { %v1488_v60 = vsub.f32 %v4308_v32, %v1475_v58 }
 0x593   : > { %1535 = vadd.xlane.f32.xlu1 %v1516_v28  ;;  %v1459_v62 = vpop.xlane.xlu0 %1458 }
 0x594   : > { %v1476_v44 = vmul.f32 0.015625, %v1459_v62  ;;  %v4399_v6 = vsel %vm1496_vm1, %v1488_v60, 0.0 }
 0x595   : > { %v1517_v19 = vmul.f32 %v4399_v6, %v4399_v6 }
 0x596   : > { %v1489_v2 = vsub.f32 %v4313_v4, %v1476_v44 }
 0x597   : > { %v1461_v8 = vpop.xlane.xlu1 %1460  ;;  %1537 = vadd.xlane.f32.xlu0 %v1517_v19 }
 0x598   : > { %v1477_v48 = vmul.f32 0.015625, %v1461_v8  ;;  %v4406_v32 = vsel %vm1496_vm1, %v1489_v2, 0.0  ;;  %v1293_v8 = vsub.s32 1, %v4264_v40 }
 0x599   : > { %v1518_v42 = vmul.f32 %v4406_v32, %v4406_v32 }
 0x59a   : > { %v1490_v12 = vsub.f32 %v4318_v33, %v1477_v48 }
 0x59b   : > { %1539 = vadd.xlane.f32.xlu1 %v1518_v42  ;;  %v1463_v4 = vpop.xlane.xlu0 %1462 }
 0x59c   : > { %v1478_v3 = vmul.f32 0.015625, %v1463_v4  ;;  %v4414_v53 = vsel %vm1496_vm1, %v1490_v12, 0.0  ;;  %v4450_v4 = vld [vmem:[%s5139_s16] ss:$0 sm:$0xff] }
 0x59d   : > { %v1519_v17 = vmul.f32 %v4414_v53, %v4414_v53 }
 0x59e   : > { %v1491_v34 = vsub.f32 %v4323_v43, %v1478_v3  ;;  %v4453_v3 = vrot.slane %v4270_v7, %v1293_v8 }
 0x59f   : > { %1541 = vadd.xlane.f32.xlu0 %v1519_v17  ;;  %v1465_v33 = vpop.xlane.xlu1 %1464 }
 0x5a0   : > { %v1479_v24 = vmul.f32 0.015625, %v1465_v33  ;;  %v4422_v27 = vsel %vm1496_vm1, %v1491_v34, 0.0  ;;  %v1366_v33 = vadd.f32 %v4275_v9, %v4453_v3 }
 0x5a1   : > { %v1520_v51 = vmul.f32 %v4422_v27, %v4422_v27 }
 0x5a2   : > { %v1492_v50 = vsub.f32 %v4328_v46, %v1479_v24 }
 0x5a3   : > { %1543 = vadd.xlane.f32.xlu1 %v1520_v51  ;;  %v1467_v59 = vpop.xlane.xlu0 %1466 }
 0x5a4   : > { %v1480_v15 = vmul.f32 0.015625, %v1467_v59  ;;  %v4429_v43 = vsel %vm1496_vm1, %v1492_v50, 0.0 }
 0x5a5   : > { %v1521_v55 = vmul.f32 %v4429_v43, %v4429_v43 }
 0x5a6   : > { %v1493_v20 = vsub.f32 %v4333_v35, %v1480_v15 }
 0x5a7   : > { %1545 = vadd.xlane.f32.xlu0 %v1521_v55 }
 0x5a8   : > { %v4436_v58 = vsel %vm1496_vm1, %v1493_v20, 0.0 }
 0x5a9   : > { %v1522_v46 = vmul.f32 %v4436_v58, %v4436_v58 }
 0x5ab   : > { %1547 = vadd.xlane.f32.xlu1 %v1522_v46 }
 0x607   : > { %v1524_v28 = vpop.xlane.xlu1 %1523 }
 0x608   : > { %v1549_v60 = vmul.f32 0.015625, %v1524_v28 }
 0x60a   : > { %v1562_v62 = vadd.f32 1e-05, %v1549_v60 }
 0x60c   : > { %3187 = vrsqrt.f32 %v1562_v62  ;;  %v1526_v44 = vpop.xlane.xlu0 %1525 }
 0x60d   : > { %v1550_v19 = vmul.f32 0.015625, %v1526_v44 }
 0x60f   : > { %v1563_v47 = vadd.f32 1e-05, %v1550_v19 }
 0x610   : > { %v1528_v56 = vpop.xlane.xlu1 %1527 }
 0x611   : > { %3189 = vrsqrt.f32 %v1563_v47  ;;  %v1551_v2 = vmul.f32 0.015625, %v1528_v56 }
 0x613   : > { %v1564_v35 = vadd.f32 1e-05, %v1551_v2 }
 0x614   : > { %v1530_v30 = vpop.xlane.xlu0 %1529 }
 0x615   : > { %3191 = vrsqrt.f32 %v1564_v35  ;;  %v1552_v48 = vmul.f32 0.015625, %v1530_v30  ;;  %v1378_v35 = vadd.f32 %v4285_v61, %v4453_v3  ;;  %v1384_v61 = vadd.f32 %v4290_v25, %v4453_v3 }
 0x616   : > { %v3188_v42 = vpop.eup %3187  ;;  %v1390_v25 = vadd.f32 %v4295_v18, %v4453_v3  ;;  %v1396_v18 = vadd.f32 %v4300_v13, %v4453_v3  ;;  %v1402_v13 = vadd.f32 %v4305_v21, %v4453_v3  ;;  %v1408_v21 = vadd.f32 %v4310_v26, %v4453_v3 }
 0x617   : > { %v1588_v23 = vmul.f32 %v3188_v42, %v4350_v0  ;;  %v1565_v12 = vadd.f32 1e-05, %v1552_v48 }
 0x618   : > { %v1532_v45 = vpop.xlane.xlu1 %1531 }
 0x619   : > { %v1607_v40 = vmul.f32 %v4444_v1, %v1588_v23  ;;  %3193 = vrsqrt.f32 %v1565_v12  ;;  %v1553_v17 = vmul.f32 0.015625, %v1532_v45 }
 0x61b   : > { %v3190_v41 = vpop.eup %3189  ;;  %v1566_v5 = vadd.f32 1e-05, %v1553_v17  ;;  %v1626_v34 = vadd.f32 %v4450_v4, %v1607_v40 }
 0x61c   : > { %v1534_v37 = vpop.xlane.xlu0 %1533  ;;  %v1589_v0 = vmul.f32 %v3190_v41, %v4357_v38  ;;  %v1372_v38 = vadd.f32 %v4280_v11, %v4453_v3 }
 0x61d   : > { %3195 = vrsqrt.f32 %v1566_v5  ;;  %v1554_v24 = vmul.f32 0.015625, %v1534_v37  ;;  %v1639_v51 = vmax.f32 %v1626_v34, 0.0 }
 0x61e   : > { %v1608_v7 = vmul.f32 %v4444_v1, %v1589_v0 }
 0x61f   : > { %v3192_v50 = vpop.eup %3191  ;;  %v1567_v59 = vadd.f32 1e-05, %v1554_v24  ;;  %v1652_v15 = vadd.f32 %v1639_v51, %v1366_v33 }
 0x620   : > { %v1536_v55 = vpop.xlane.xlu1 %1535  ;;  %v1627_v20 = vadd.f32 %v4450_v4, %v1608_v7  ;;  %v1590_v46 = vmul.f32 %v3192_v50, %v4364_v14 }
 0x621   : > { %3197 = vrsqrt.f32 %v1567_v59  ;;  %v1555_v28 = vmul.f32 0.015625, %v1536_v55  ;;  %2829 = vmatmul.mubr.f32.vlgmr.msra.gmra.mrb[26].mxu0 %v1652_v15 }
 0x622   : > { %2831 = vmatprep.mubr.msk.f32.mxu0 %vm3519_vm0, %v3520_v29  ;;  %v1640_v9 = vmax.f32 %v1627_v20, 0.0  ;;  %v1609_v60 = vmul.f32 %v4444_v1, %v1590_v46 }
 0x623   : > { %v3194_v62 = vpop.eup %3193  ;;  %v1568_v44 = vadd.f32 1e-05, %v1555_v28 }
 0x624   : > { %v1538_v19 = vpop.xlane.xlu0 %1537  ;;  %v1653_v47 = vadd.f32 %v1640_v9, %v1372_v38  ;;  %v1628_v56 = vadd.f32 %v4450_v4, %v1609_v60  ;;  %v1591_v14 = vmul.f32 %v3194_v62, %v4371_v52 }
 0x625   : > { %3199 = vrsqrt.f32 %v1568_v44  ;;  %v1556_v2 = vmul.f32 0.015625, %v1538_v19 }
 0x626   : > { %2832 = vmatmul.mubr.f32.gmra.mrb[28].mxu0 %v1653_v47  ;;  %v1641_v11 = vmax.f32 %v1628_v56, 0.0  ;;  %v1610_v30 = vmul.f32 %v4444_v1, %v1591_v14 }
 0x627   : > { %v3196_v8 = vpop.eup %3195  ;;  %v1569_v48 = vadd.f32 1e-05, %v1556_v2  ;;  %2834 = vmatprep.mubr.msk.f32.mxu0 %vm3519_vm0, %v3520_v29 }
 0x628   : > { %v1540_v42 = vpop.xlane.xlu1 %1539  ;;  %v1654_v23 = vadd.f32 %v1641_v11, %v1378_v35  ;;  %v1629_v12 = vadd.f32 %v4450_v4, %v1610_v30  ;;  %v1592_v52 = vmul.f32 %v3196_v8, %v4378_v57 }
 0x629   : > { %3201 = vrsqrt.f32 %v1569_v48  ;;  %v1557_v45 = vmul.f32 0.015625, %v1540_v42 }
 0x62a   : > { %2835 = vmatmul.mubr.f32.gmra.mrb[30].mxu0 %v1654_v23  ;;  %v1642_v40 = vmax.f32 %v1629_v12, 0.0  ;;  %v1611_v17 = vmul.f32 %v4444_v1, %v1592_v52 }
 0x62b   : > { %v3198_v41 = vpop.eup %3197  ;;  %v1570_v5 = vadd.f32 1e-05, %v1557_v45  ;;  %2837 = vmatprep.mubr.msk.f32.mxu0 %vm3519_vm0, %v3520_v29 }
 0x62c   : > { %v1542_v34 = vpop.xlane.xlu0 %1541  ;;  %v1655_v37 = vadd.f32 %v1642_v40, %v1384_v61  ;;  %v1630_v0 = vadd.f32 %v4450_v4, %v1611_v17  ;;  %v1593_v57 = vmul.f32 %v3198_v41, %v4385_v54 }
 0x62d   : > { %3203 = vrsqrt.f32 %v1570_v5  ;;  %v1558_v33 = vmul.f32 0.015625, %v1542_v34 }
 0x62e   : > { %2838 = vmatmul.mubr.f32.gmra.mrb[32].mxu0 %v1655_v37  ;;  %v1643_v24 = vmax.f32 %v1630_v0, 0.0  ;;  %v1612_v51 = vmul.f32 %v4444_v1, %v1593_v57 }
 0x62f   : > { %v3200_v7 = vpop.eup %3199  ;;  %v1571_v50 = vadd.f32 1e-05, %v1558_v33  ;;  %2840 = vmatprep.mubr.msk.f32.mxu0 %vm3519_vm0, %v3520_v29 }
 0x630   : > { %v1544_v59 = vpop.xlane.xlu1 %1543  ;;  %v1656_v15 = vadd.f32 %v1643_v24, %v1390_v25  ;;  %v1631_v55 = vadd.f32 %v4450_v4, %v1612_v51  ;;  %v1594_v54 = vmul.f32 %v3200_v7, %v4392_v22  ;;  %v1426_v24 = vadd.f32 %v4325_v49, %v4453_v3 }
 0x631   : > { %3205 = vrsqrt.f32 %v1571_v50  ;;  %v1559_v20 = vmul.f32 0.015625, %v1544_v59 }
 0x632   : > { %2841 = vmatmul.mubr.f32.gmra.mrb[34].mxu0 %v1656_v15  ;;  %v1644_v46 = vmax.f32 %v1631_v55, 0.0  ;;  %v1613_v28 = vmul.f32 %v4444_v1, %v1594_v54  ;;  %v1432_v15 = vadd.f32 %v4330_v39, %v4453_v3  ;;  %v2623_v39 = vld [vmem:[%s5140_s10] ss:$0 sm:$0xff]  ;;  %s4978_s10 = scalar_lea.vmem [#allocation11], %s3043_s17  ;;  %s2469_s17 = scalar_lea.sflag [#allocation4], %s3840_s12 }
 0x633   : > { %v3202_v38 = vpop.eup %3201  ;;  %v1572_v9 = vadd.f32 1e-05, %v1559_v20  ;;  %2843 = vmatprep.mubr.msk.f32.mxu0 %vm3519_vm0, %v3520_v29  ;;  %v1438_v20 = vadd.f32 %v4335_v10, %v4453_v3 }
 0x634   : > { %v1546_v60 = vpop.xlane.xlu0 %1545  ;;  %v1657_v62 = vadd.f32 %v1644_v46, %v1396_v18  ;;  %v1632_v44 = vadd.f32 %v4450_v4, %v1613_v28  ;;  %v1595_v22 = vmul.f32 %v3202_v38, %v4399_v6 }
 0x635   : > { %3207 = vrsqrt.f32 %v1572_v9  ;;  %v1560_v19 = vmul.f32 0.015625, %v1546_v60 }
 0x636   : > { %2844 = vmatmul.mubr.f32.gmra.mrb[36].mxu0 %v1657_v62  ;;  %v1645_v47 = vmax.f32 %v1632_v44, 0.0  ;;  %v1614_v56 = vmul.f32 %v4444_v1, %v1595_v22 }
 0x637   : > { %v3204_v14 = vpop.eup %3203  ;;  %v1573_v2 = vadd.f32 1e-05, %v1560_v19  ;;  %2846 = vmatprep.mubr.msk.f32.mxu0 %vm3519_vm0, %v3520_v29 }
 0x638   : > { %v1548_v35 = vpop.xlane.xlu1 %1547  ;;  %v1658_v11 = vadd.f32 %v1645_v47, %v1402_v13  ;;  %v1633_v30 = vadd.f32 %v4450_v4, %v1614_v56  ;;  %v1596_v6 = vmul.f32 %v3204_v14, %v4406_v32  ;;  %v1414_v32 = vadd.f32 %v4315_v36, %v4453_v3 }
 0x639   : > { %3209 = vrsqrt.f32 %v1573_v2  ;;  %v1561_v8 = vmul.f32 0.015625, %v1548_v35 }
 0x63a   : > { %2847 = vmatmul.mubr.f32.gmra.mrb[38].mxu0 %v1658_v11  ;;  %v1646_v48 = vmax.f32 %v1633_v30, 0.0  ;;  %v1615_v42 = vmul.f32 %v4444_v1, %v1596_v6 }
 0x63b   : > { %v3206_v23 = vpop.eup %3205  ;;  %v1574_v12 = vadd.f32 1e-05, %v1561_v8  ;;  %2849 = vmatprep.mubr.msk.f32.mxu0 %vm3519_vm0, %v3520_v29 }
 0x63c   : > { %v1659_v52 = vadd.f32 %v1646_v48, %v1408_v21  ;;  %v1634_v45 = vadd.f32 %v4450_v4, %v1615_v42  ;;  %v1597_v61 = vmul.f32 %v3206_v23, %v4414_v53  ;;  %v1420_v53 = vadd.f32 %v4320_v31, %v4453_v3 }
 0x63d   : > { %3211 = vrsqrt.f32 %v1574_v12 }
 0x63e   : > { %2850 = vmatmul.mubr.f32.gmra.mrb[40].mxu0 %v1659_v52  ;;  %v1647_v26 = vmax.f32 %v1634_v45, 0.0  ;;  %v1616_v40 = vmul.f32 %v4444_v1, %v1597_v61 }
 0x63f   : > { %v3208_v17 = vpop.eup %3207  ;;  %2852 = vmatprep.mubr.msk.f32.mxu0 %vm3519_vm0, %v3520_v29 }
 0x640   : > { %v1660_v41 = vadd.f32 %v1647_v26, %v1414_v32  ;;  %v1635_v5 = vadd.f32 %v4450_v4, %v1616_v40  ;;  %v1598_v34 = vmul.f32 %v3208_v17, %v4422_v27 }
 0x642   : > { %2853 = vmatmul.mubr.f32.gmra.mrb[42].mxu0 %v1660_v41  ;;  %v1648_v37 = vmax.f32 %v1635_v5, 0.0  ;;  %v1617_v36 = vmul.f32 %v4444_v1, %v1598_v34 }
 0x643   : > { %v3210_v0 = vpop.eup %3209  ;;  %2855 = vmatprep.mubr.msk.f32.mxu0 %vm3519_vm0, %v3520_v29 }
 0x644   : > { %v1661_v57 = vadd.f32 %v1648_v37, %v1420_v53  ;;  %v1636_v33 = vadd.f32 %v4450_v4, %v1617_v36  ;;  %v1599_v25 = vmul.f32 %v3210_v0, %v4429_v43  ;;  %v2028_v37 = vld [vmem:[#allocation10] sm:$0xff]  ;;  %v2029_v36 = vld [vmem:[#allocation10 + $0x8] sm:$0xff]  ;;  %v2030_v0 = vld [vmem:[#allocation10 + $0x10] sm:$0xff] }
 0x646   : > { %2856 = vmatmul.mubr.f32.gmra.mrb[44].mxu0 %v1661_v57  ;;  %v1649_v27 = vmax.f32 %v1636_v33, 0.0  ;;  %v1618_v31 = vmul.f32 %v4444_v1, %v1599_v25  ;;  %v3019_v57 = vpack.c.bf16 %v2029_v36, %v2028_v37  ;;  %v2031_v33 = vld [vmem:[#allocation10 + $0x18] sm:$0xff]  ;;  %v2038_v37 = vld [vmem:[#allocation10 + $0x50] sm:$0xff] }
 0x647   : > { %v3212_v51 = vpop.eup %3211  ;;  %2858 = vmatprep.mubr.msk.f32.mxu0 %vm3519_vm0, %v3520_v29  ;;  %v3022_v25 = vpack.c.bf16 %v2031_v33, %v2030_v0  ;;  %v2039_v36 = vld [vmem:[#allocation10 + $0x58] sm:$0xff] }
 0x648   : > { %v1662_v7 = vadd.f32 %v1649_v27, %v1426_v24  ;;  %v1637_v50 = vadd.f32 %v4450_v4, %v1618_v31  ;;  %v1600_v59 = vmul.f32 %v3212_v51, %v4436_v58  ;;  %3020 = vmatpush3.bf16.msra.mxu1 %v3019_v57  ;;  %v2032_v24 = vld [vmem:[#allocation10 + $0x20] sm:$0xff]  ;;  %v2033_v27 = vld [vmem:[#allocation10 + $0x28] sm:$0xff]  ;;  %v2034_v51 = vld [vmem:[#allocation10 + $0x30] sm:$0xff]  ;;  %v3034_v57 = vpack.c.bf16 %v2039_v36, %v2038_v37 }
 0x649   : > { %3021 = vmatprep.subr.bf16.mxu1 %v3518_v16  ;;  %v3025_v31 = vpack.c.bf16 %v2033_v27, %v2032_v24  ;;  %v2041_v27 = vld [vmem:[#allocation10 + $0x68] sm:$0xff] }
 0x64a   : > { %2859 = vmatmul.mubr.f32.gmra.mrb[46].mxu0 %v1662_v7  ;;  %v1650_v43 = vmax.f32 %v1637_v50, 0.0  ;;  %v1619_v49 = vmul.f32 %v4444_v1, %v1600_v59  ;;  %v2035_v7 = vld [vmem:[#allocation10 + $0x38] sm:$0xff]  ;;  %v2036_v59 = vld [vmem:[#allocation10 + $0x40] sm:$0xff] }
 0x64b   : > { %2861 = vmatprep.mubr.msk.f32.mxu0 %vm3519_vm0, %v3520_v29  ;;  %v3028_v50 = vpack.c.bf16 %v2035_v7, %v2034_v51 }
 0x64c   : > { %v1663_v55 = vadd.f32 %v1650_v43, %v1432_v15  ;;  %v1638_v54 = vadd.f32 %v4450_v4, %v1619_v49  ;;  %3023 = vmatpush3.bf16.msra.mxu1 %v3022_v25  ;;  %v2037_v15 = vld [vmem:[#allocation10 + $0x48] sm:$0xff] }
 0x64d   : > { %3024 = vmatprep.subr.bf16.mxu1 %v3518_v16  ;;  %v3031_v43 = vpack.c.bf16 %v2037_v15, %v2036_v59  ;;  %v2042_v15 = vld [vmem:[#allocation10 + $0x70] sm:$0xff] }
 0x64e   : > { %2862 = vmatmul.mubr.f32.gmra.mrb[48].mxu0 %v1663_v55  ;;  %v1651_v18 = vmax.f32 %v1638_v54, 0.0 }
 0x64f   : > { %2864 = vmatprep.mubr.msk.f32.mxu0 %vm3519_vm0, %v3520_v29 }
 0x650   : > { %v1664_v58 = vadd.f32 %v1651_v18, %v1438_v20  ;;  %3026 = vmatpush3.bf16.msra.mxu1 %v3025_v31 }
 0x651   : > { %3027 = vmatprep.subr.bf16.mxu1 %v3518_v16 }
 0x652   : > { %2865 = vmatmul.mubr.f32.gmra.mrb[50].mxu0 %v1664_v58 }
 0x654   : > { %3029 = vmatpush3.bf16.msra.mxu1 %v3028_v50 }
 0x655   : > { %3030 = vmatprep.subr.bf16.mxu1 %v3518_v16 }
 0x658   : > { %3032 = vmatpush3.bf16.msra.mxu1 %v3031_v43  ;;  %v2043_v43 = vld [vmem:[#allocation10 + $0x78] sm:$0xff] }
 0x659   : > { %3033 = vmatprep.subr.bf16.mxu1 %v3518_v16 }
 0x65c   : > { %3035 = vmatpush3.bf16.msra.mxu1 %v3034_v57 }
 0x65d   : > { %3036 = vmatprep.subr.bf16.mxu1 %v3518_v16 }
 0x6f4   : > { %v1754_v1 = vpop.f32.mrb[26].mxu0 }
 0x6f5   : > { %v4546_v46 = vadd.f32 %v2623_v39, %v1754_v1  ;;  %v2830_v28 = vpop.f32.mrb[27].mxu0 }
 0x6f7   : > { %1820 = vadd.xlane.f32.xlu0 %v4546_v46 }
 0x6f9   : > { %v1759_v4 = vpop.f32.mrb[28].mxu0 }
 0x6fa   : > { %v4549_v38 = vadd.f32 %v2623_v39, %v1759_v4  ;;  %v2833_v10 = vpop.f32.mrb[29].mxu0 }
 0x6fc   : > { %1822 = vadd.xlane.f32.xlu1 %v4549_v38 }
 0x6fd   : > { %v1764_v3 = vpop.f32.mrb[30].mxu0 }
 0x6fe   : > { %v4552_v9 = vadd.f32 %v2623_v39, %v1764_v3  ;;  %v2836_v60 = vpop.f32.mrb[31].mxu0 }
 0x700   : > { %1824 = vadd.xlane.f32.xlu0 %v4552_v9 }
 0x701   : > { %v1769_v62 = vpop.f32.mrb[32].mxu0 }
 0x702   : > { %v4555_v44 = vadd.f32 %v2623_v39, %v1769_v62  ;;  %v2839_v22 = vpop.f32.mrb[33].mxu0 }
 0x704   : > { %1826 = vadd.xlane.f32.xlu1 %v4555_v44 }
 0x705   : > { %v1774_v19 = vpop.f32.mrb[34].mxu0 }
 0x706   : > { %v4558_v13 = vadd.f32 %v2623_v39, %v1774_v19  ;;  %v2842_v47 = vpop.f32.mrb[35].mxu0 }
 0x708   : > { %1828 = vadd.xlane.f32.xlu0 %v4558_v13 }
 0x709   : > { %v1779_v56 = vpop.f32.mrb[36].mxu0 }
 0x70a   : > { %v4561_v14 = vadd.f32 %v2623_v39, %v1779_v56  ;;  %v2845_v2 = vpop.f32.mrb[37].mxu0 }
 0x70c   : > { %1830 = vadd.xlane.f32.xlu1 %v4561_v14 }
 0x70d   : > { %v1784_v35 = vpop.f32.mrb[38].mxu0 }
 0x70e   : > { %v4564_v11 = vadd.f32 %v2623_v39, %v1784_v35  ;;  %v2848_v30 = vpop.f32.mrb[39].mxu0 }
 0x710   : > { %1832 = vadd.xlane.f32.xlu0 %v4564_v11 }
 0x711   : > { %v1789_v6 = vpop.f32.mrb[40].mxu0 }
 0x712   : > { %v4567_v8 = vadd.f32 %v2623_v39, %v1789_v6  ;;  %v2851_v21 = vpop.f32.mrb[41].mxu0 }
 0x714   : > { %1834 = vadd.xlane.f32.xlu1 %v4567_v8 }
 0x715   : > { %v1794_v48 = vpop.f32.mrb[42].mxu0 }
 0x716   : > { %v4570_v42 = vadd.f32 %v2623_v39, %v1794_v48  ;;  %v2854_v23 = vpop.f32.mrb[43].mxu0 }
 0x718   : > { %1836 = vadd.xlane.f32.xlu0 %v4570_v42 }
 0x719   : > { %v1799_v12 = vpop.f32.mrb[44].mxu0 }
 0x71a   : > { %v4573_v52 = vadd.f32 %v2623_v39, %v1799_v12  ;;  %v2857_v45 = vpop.f32.mrb[45].mxu0 }
 0x71c   : > { %1838 = vadd.xlane.f32.xlu1 %v4573_v52 }
 0x71d   : > { %v1804_v61 = vpop.f32.mrb[46].mxu0 }
 0x71e   : > { %v4576_v32 = vadd.f32 %v2623_v39, %v1804_v61  ;;  %v2860_v26 = vpop.f32.mrb[47].mxu0 }
 0x720   : > { %1840 = vadd.xlane.f32.xlu0 %v4576_v32 }
 0x721   : > { %v1809_v40 = vpop.f32.mrb[48].mxu0 }
 0x722   : > { %v4579_v17 = vadd.f32 %v2623_v39, %v1809_v40  ;;  %v2863_v41 = vpop.f32.mrb[49].mxu0 }
 0x724   : > { %1842 = vadd.xlane.f32.xlu1 %v4579_v17 }
 0x725   : > { %v1814_v5 = vpop.f32.mrb[50].mxu0 }
 0x726   : > { %v4582_v34 = vadd.f32 %v2623_v39, %v1814_v5  ;;  %v2866_v53 = vpop.f32.mrb[51].mxu0 }
 0x728   : > { %1844 = vadd.xlane.f32.xlu0 %v4582_v34 }
 0x784   : > { %v1821_v49 = vpop.xlane.xlu0 %1820 }
 0x785   : > { %v1846_v55 = vmul.f32 0.03125, %v1821_v49 }
 0x787   : > { %v1859_v54 = vsub.f32 %v4546_v46, %v1846_v55 }
 0x789   : > { %v1823_v20 = vpop.xlane.xlu1 %1822  ;;  %v4594_v18 = vsel %vm1872_vm2, %v1859_v54, 0.0  ;;  %v3040_v54 = vpack.c.bf16 %v2043_v43, %v2042_v15 }
 0x78a   : > { %v1847_v58 = vmul.f32 0.03125, %v1823_v20  ;;  %v1886_v39 = vmul.f32 %v4594_v18, %v4594_v18 }
 0x78c   : > { %v1860_v1 = vsub.f32 %v4549_v38, %v1847_v58  ;;  %1899 = vadd.xlane.f32.xlu1 %v1886_v39 }
 0x78d   : > { %v1825_v28 = vpop.xlane.xlu0 %1824 }
 0x78e   : > { %v1848_v4 = vmul.f32 0.03125, %v1825_v28  ;;  %v4601_v10 = vsel %vm1872_vm2, %v1860_v1, 0.0 }
 0x78f   : > { %v1887_v46 = vmul.f32 %v4601_v10, %v4601_v10 }
 0x790   : > { %v1861_v3 = vsub.f32 %v4552_v9, %v1848_v4 }
 0x791   : > { %v1827_v60 = vpop.xlane.xlu1 %1826  ;;  %1901 = vadd.xlane.f32.xlu0 %v1887_v46 }
 0x792   : > { %v1849_v62 = vmul.f32 0.03125, %v1827_v60  ;;  %v4608_v22 = vsel %vm1872_vm2, %v1861_v3, 0.0 }
 0x793   : > { %v1888_v38 = vmul.f32 %v4608_v22, %v4608_v22 }
 0x794   : > { %v1862_v19 = vsub.f32 %v4555_v44, %v1849_v62 }
 0x795   : > { %1903 = vadd.xlane.f32.xlu1 %v1888_v38  ;;  %v1829_v47 = vpop.xlane.xlu0 %1828 }
 0x796   : > { %v1850_v56 = vmul.f32 0.03125, %v1829_v47  ;;  %v4615_v2 = vsel %vm1872_vm2, %v1862_v19, 0.0 }
 0x797   : > { %v1889_v9 = vmul.f32 %v4615_v2, %v4615_v2 }
 0x798   : > { %v1863_v35 = vsub.f32 %v4558_v13, %v1850_v56 }
 0x799   : > { %v1831_v30 = vpop.xlane.xlu1 %1830  ;;  %1905 = vadd.xlane.f32.xlu0 %v1889_v9 }
 0x79a   : > { %v1851_v6 = vmul.f32 0.03125, %v1831_v30  ;;  %v4622_v21 = vsel %vm1872_vm2, %v1863_v35, 0.0 }
 0x79b   : > { %v1890_v44 = vmul.f32 %v4622_v21, %v4622_v21 }
 0x79c   : > { %v1864_v48 = vsub.f32 %v4561_v14, %v1851_v6 }
 0x79d   : > { %1907 = vadd.xlane.f32.xlu1 %v1890_v44  ;;  %v1833_v23 = vpop.xlane.xlu0 %1832 }
 0x79e   : > { %v1852_v12 = vmul.f32 0.03125, %v1833_v23  ;;  %v4629_v45 = vsel %vm1872_vm2, %v1864_v48, 0.0 }
 0x79f   : > { %v1891_v13 = vmul.f32 %v4629_v45, %v4629_v45 }
 0x7a0   : > { %v1865_v61 = vsub.f32 %v4564_v11, %v1852_v12  ;;  %v4687_v12 = vld [vmem:[%s5141_s13] ss:$0 sm:$0xff]  ;;  %s2477_s13 = ssub.s32 (%p5147_p1), 25, %s2476_s22 }
 0x7a1   : > { %v1835_v26 = vpop.xlane.xlu1 %1834  ;;  %1909 = vadd.xlane.f32.xlu0 %v1891_v13  ;;  %p2478_p3 = scmp.lt.s32.totalorder (%p5147_p1), %s2477_s13, 13 }
 0x7a2   : > { %v1853_v40 = vmul.f32 0.03125, %v1835_v26  ;;  %v4636_v41 = vsel %vm1872_vm2, %v1865_v61, 0.0 }
 0x7a3   : > { %v1892_v14 = vmul.f32 %v4636_v41, %v4636_v41 }
 0x7a4   : > { %v1866_v5 = vsub.f32 %v4567_v8, %v1853_v40  ;;  %v2040_v8 = vld [vmem:[#allocation10 + $0x60] sm:$0xff]  ;;  %v4693_v40 = vld [vmem:[%s5142_s3] ss:$0 sm:$0xff] }
 0x7a5   : > { %1911 = vadd.xlane.f32.xlu1 %v1892_v14  ;;  %v1837_v53 = vpop.xlane.xlu0 %1836  ;;  %v3037_v7 = vpack.c.bf16 %v2041_v27, %v2040_v8 }
 0x7a6   : > { %v4643_v0 = vsel %vm1872_vm2, %v1866_v5, 0.0  ;;  %v1854_v11 = vmul.f32 0.03125, %v1837_v53 }
 0x7a7   : > { %v1893_v33 = vmul.f32 %v4643_v0, %v4643_v0  ;;  %3038 = vmatpush3.bf16.msra.mxu1 %v3037_v7 }
 0x7a8   : > { %v1867_v25 = vsub.f32 %v4570_v42, %v1854_v11  ;;  %3039 = vmatprep.subr.bf16.mxu1 %v3518_v16 }
 0x7a9   : > { %v1839_v24 = vpop.xlane.xlu1 %1838  ;;  %1913 = vadd.xlane.f32.xlu0 %v1893_v33 }
 0x7aa   : > { %v4651_v31 = vsel %vm1872_vm2, %v1867_v25, 0.0  ;;  %v1855_v51 = vmul.f32 0.03125, %v1839_v24 }
 0x7ab   : > { %v1894_v50 = vmul.f32 %v4651_v31, %v4651_v31  ;;  %3041 = vmatpush3.bf16.msra.mxu1 %v3040_v54 }
 0x7ac   : > { %v1868_v59 = vsub.f32 %v4573_v52, %v1855_v51 }
 0x7ad   : > { %1915 = vadd.xlane.f32.xlu1 %v1894_v50  ;;  %v1841_v42 = vpop.xlane.xlu0 %1840 }
 0x7ae   : > { %v4659_v49 = vsel %vm1872_vm2, %v1868_v59, 0.0  ;;  %v1856_v55 = vmul.f32 0.03125, %v1841_v42 }
 0x7af   : > { %v1895_v20 = vmul.f32 %v4659_v49, %v4659_v49 }
 0x7b0   : > { %v1869_v58 = vsub.f32 %v4576_v32, %v1856_v55 }
 0x7b1   : > { %v1843_v52 = vpop.xlane.xlu1 %1842  ;;  %1917 = vadd.xlane.f32.xlu0 %v1895_v20 }
 0x7b2   : > { %v4666_v39 = vsel %vm1872_vm2, %v1869_v58, 0.0  ;;  %v1857_v16 = vmul.f32 0.03125, %v1843_v52 }
 0x7b3   : > { %v1896_v1 = vmul.f32 %v4666_v39, %v4666_v39 }
 0x7b4   : > { %v1870_v28 = vsub.f32 %v4579_v17, %v1857_v16 }
 0x7b5   : > { %1919 = vadd.xlane.f32.xlu1 %v1896_v1  ;;  %v1845_v4 = vpop.xlane.xlu0 %1844 }
 0x7b6   : > { %v4673_v46 = vsel %vm1872_vm2, %v1870_v28, 0.0  ;;  %v1858_v32 = vmul.f32 0.03125, %v1845_v4 }
 0x7b7   : > { %v1897_v3 = vmul.f32 %v4673_v46, %v4673_v46 }
 0x7b8   : > { %v1871_v60 = vsub.f32 %v4582_v34, %v1858_v32 }
 0x7b9   : > { %1921 = vadd.xlane.f32.xlu0 %v1897_v3 }
 0x7ba   : > { %v4680_v62 = vsel %vm1872_vm2, %v1871_v60, 0.0 }
 0x7bb   : > { %v1898_v17 = vmul.f32 %v4680_v62, %v4680_v62 }
 0x7bd   : > { %1923 = vadd.xlane.f32.xlu1 %v1898_v17 }
 0x819   : > { %v1900_v38 = vpop.xlane.xlu1 %1899 }
 0x81a   : > { %v1925_v19 = vmul.f32 0.03125, %v1900_v38 }
 0x81c   : > { %v1938_v47 = vadd.f32 1e-05, %v1925_v19 }
 0x81e   : > { %3213 = vrsqrt.f32 %v1938_v47  ;;  %v1902_v56 = vpop.xlane.xlu0 %1901 }
 0x81f   : > { %v1926_v9 = vmul.f32 0.03125, %v1902_v56 }
 0x821   : > { %v1939_v35 = vadd.f32 1e-05, %v1926_v9 }
 0x822   : > { %v1904_v30 = vpop.xlane.xlu1 %1903 }
 0x823   : > { %3215 = vrsqrt.f32 %v1939_v35  ;;  %v1927_v6 = vmul.f32 0.03125, %v1904_v30 }
 0x825   : > { %v1940_v34 = vadd.f32 1e-05, %v1927_v6 }
 0x826   : > { %v1906_v44 = vpop.xlane.xlu0 %1905 }
 0x827   : > { %3217 = vrsqrt.f32 %v1940_v34  ;;  %v1928_v48 = vmul.f32 0.03125, %v1906_v44 }
 0x828   : > { %v3214_v23 = vpop.eup %3213 }
 0x829   : > { %v1964_v13 = vmul.f32 %v3214_v23, %v4594_v18  ;;  %v1941_v61 = vadd.f32 1e-05, %v1928_v48 }
 0x82a   : > { %v1908_v26 = vpop.xlane.xlu1 %1907 }
 0x82b   : > { %3219 = vrsqrt.f32 %v1941_v61  ;;  %v1929_v14 = vmul.f32 0.03125, %v1908_v26  ;;  %v1983_v5 = vmul.f32 %v4687_v12, %v1964_v13 }
 0x82d   : > { %v3216_v53 = vpop.eup %3215  ;;  %v1942_v37 = vadd.f32 1e-05, %v1929_v14  ;;  %v2002_v36 = vadd.f32 %v4693_v40, %v1983_v5 }
 0x82e   : > { %v1910_v11 = vpop.xlane.xlu0 %1909  ;;  %v1965_v57 = vmul.f32 %v3216_v53, %v4601_v10 }
 0x82f   : > { %3221 = vrsqrt.f32 %v1942_v37  ;;  %v1930_v18 = vmul.f32 0.03125, %v1910_v11  ;;  %v2015_v33 = vmax.f32 %v2002_v36, 0.0 }
 0x830   : > { %v1984_v25 = vmul.f32 %v4687_v12, %v1965_v57 }
 0x831   : > { %v3218_v24 = vpop.eup %3217  ;;  %v1943_v8 = vadd.f32 1e-05, %v1930_v18  ;;  %2900 = vmatmul.mubr.f32.vlgmr.msra.gmra.mrb[26].mxu1 %v2015_v33 }
 0x832   : > { %v1912_v27 = vpop.xlane.xlu1 %1911  ;;  %2902 = vmatprep.mubr.msk.f32.mxu1 %vm3519_vm0, %v3520_v29  ;;  %v2003_v51 = vadd.f32 %v4693_v40, %v1984_v25  ;;  %v1966_v7 = vmul.f32 %v3218_v24, %v4608_v22 }
 0x833   : > { %3223 = vrsqrt.f32 %v1943_v8  ;;  %v1931_v50 = vmul.f32 0.03125, %v1912_v27 }
 0x834   : > { %v2016_v59 = vmax.f32 %v2003_v51, 0.0  ;;  %v1985_v10 = vmul.f32 %v4687_v12, %v1966_v7 }
 0x835   : > { %v3220_v42 = vpop.eup %3219  ;;  %v1944_v15 = vadd.f32 1e-05, %v1931_v50 }
 0x836   : > { %2903 = vmatmul.mubr.f32.gmra.mrb[28].mxu1 %v2016_v59  ;;  %v1914_v43 = vpop.xlane.xlu0 %1913  ;;  %v2004_v55 = vadd.f32 %v4693_v40, %v1985_v10  ;;  %v1967_v54 = vmul.f32 %v3220_v42, %v4615_v2 }
 0x837   : > { %3225 = vrsqrt.f32 %v1944_v15  ;;  %v1932_v20 = vmul.f32 0.03125, %v1914_v43  ;;  %2905 = vmatprep.mubr.msk.f32.mxu1 %vm3519_vm0, %v3520_v29 }
 0x838   : > { %v2017_v58 = vmax.f32 %v2004_v55, 0.0  ;;  %v1986_v22 = vmul.f32 %v4687_v12, %v1967_v54 }
 0x839   : > { %v3222_v52 = vpop.eup %3221  ;;  %v1945_v16 = vadd.f32 1e-05, %v1932_v20 }
 0x83a   : > { %v1916_v1 = vpop.xlane.xlu1 %1915  ;;  %2906 = vmatmul.mubr.f32.gmra.mrb[30].mxu1 %v2017_v58  ;;  %v2005_v28 = vadd.f32 %v4693_v40, %v1986_v22  ;;  %v1968_v4 = vmul.f32 %v3222_v52, %v4622_v21 }
 0x83b   : > { %3227 = vrsqrt.f32 %v1945_v16  ;;  %v1933_v32 = vmul.f32 0.03125, %v1916_v1  ;;  %2908 = vmatprep.mubr.msk.f32.mxu1 %vm3519_vm0, %v3520_v29 }
 0x83c   : > { %v2018_v2 = vmax.f32 %v2005_v28, 0.0  ;;  %v1987_v3 = vmul.f32 %v4687_v12, %v1968_v4  ;;  %v2626_v4 = vld [vmem:[%s5143_s18] ss:$0 sm:$0xff] }
 0x83d   : > { %v3224_v60 = vpop.eup %3223  ;;  %v1946_v17 = vadd.f32 1e-05, %v1933_v32 }
 0x83e   : > { %2909 = vmatmul.mubr.f32.gmra.mrb[32].mxu1 %v2018_v2  ;;  %v1918_v38 = vpop.xlane.xlu0 %1917  ;;  %v2006_v19 = vadd.f32 %v4693_v40, %v1987_v3  ;;  %v1969_v47 = vmul.f32 %v3224_v60, %v4629_v45 }
 0x83f   : > { %3229 = vrsqrt.f32 %v1946_v17  ;;  %v1934_v56 = vmul.f32 0.03125, %v1918_v38  ;;  %2911 = vmatprep.mubr.msk.f32.mxu1 %vm3519_vm0, %v3520_v29 }
 0x840   : > { %v2019_v21 = vmax.f32 %v2006_v19, 0.0  ;;  %v1988_v9 = vmul.f32 %v4687_v12, %v1969_v47 }
 0x841   : > { %v3226_v35 = vpop.eup %3225  ;;  %v1947_v30 = vadd.f32 1e-05, %v1934_v56 }
 0x842   : > { %v1920_v6 = vpop.xlane.xlu1 %1919  ;;  %2912 = vmatmul.mubr.f32.gmra.mrb[34].mxu1 %v2019_v21  ;;  %v2007_v34 = vadd.f32 %v4693_v40, %v1988_v9  ;;  %v1970_v44 = vmul.f32 %v3226_v35, %v4636_v41 }
 0x843   : > { %3231 = vrsqrt.f32 %v1947_v30  ;;  %v1935_v48 = vmul.f32 0.03125, %v1920_v6  ;;  %2914 = vmatprep.mubr.msk.f32.mxu1 %vm3519_vm0, %v3520_v29 }
 0x844   : > { %v2020_v45 = vmax.f32 %v2007_v34, 0.0  ;;  %v1989_v23 = vmul.f32 %v4687_v12, %v1970_v44 }
 0x845   : > { %v3228_v13 = vpop.eup %3227  ;;  %v1948_v61 = vadd.f32 1e-05, %v1935_v48 }
 0x846   : > { %2915 = vmatmul.mubr.f32.gmra.mrb[36].mxu1 %v2020_v45  ;;  %v1922_v26 = vpop.xlane.xlu0 %1921  ;;  %v2008_v14 = vadd.f32 %v4693_v40, %v1989_v23  ;;  %v1971_v5 = vmul.f32 %v3228_v13, %v4643_v0 }
 0x847   : > { %3233 = vrsqrt.f32 %v1948_v61  ;;  %v1936_v53 = vmul.f32 0.03125, %v1922_v26  ;;  %2917 = vmatprep.mubr.msk.f32.mxu1 %vm3519_vm0, %v3520_v29 }
 0x848   : > { %v2021_v41 = vmax.f32 %v2008_v14, 0.0  ;;  %v1990_v37 = vmul.f32 %v4687_v12, %v1971_v5 }
 0x849   : > { %v3230_v36 = vpop.eup %3229  ;;  %v1949_v11 = vadd.f32 1e-05, %v1936_v53 }
 0x84a   : > { %v1924_v57 = vpop.xlane.xlu1 %1923  ;;  %2918 = vmatmul.mubr.f32.gmra.mrb[38].mxu1 %v2021_v41  ;;  %v2009_v18 = vadd.f32 %v4693_v40, %v1990_v37  ;;  %v1972_v33 = vmul.f32 %v3230_v36, %v4651_v31 }
 0x84b   : > { %3235 = vrsqrt.f32 %v1949_v11  ;;  %v1937_v25 = vmul.f32 0.03125, %v1924_v57  ;;  %2920 = vmatprep.mubr.msk.f32.mxu1 %vm3519_vm0, %v3520_v29 }
 0x84c   : > { %v2022_v0 = vmax.f32 %v2009_v18, 0.0  ;;  %v1991_v24 = vmul.f32 %v4687_v12, %v1972_v33 }
 0x84d   : > { %v3232_v8 = vpop.eup %3231  ;;  %v1950_v27 = vadd.f32 1e-05, %v1937_v25 }
 0x84e   : > { %2921 = vmatmul.mubr.f32.gmra.mrb[40].mxu1 %v2022_v0  ;;  %v2010_v51 = vadd.f32 %v4693_v40, %v1991_v24  ;;  %v1973_v7 = vmul.f32 %v3232_v8, %v4659_v49 }
 0x84f   : > { %3237 = vrsqrt.f32 %v1950_v27  ;;  %2923 = vmatprep.mubr.msk.f32.mxu1 %vm3519_vm0, %v3520_v29 }
 0x850   : > { %v2023_v31 = vmax.f32 %v2010_v51, 0.0  ;;  %v1992_v50 = vmul.f32 %v4687_v12, %v1973_v7 }
 0x851   : > { %v3234_v59 = vpop.eup %3233 }
 0x852   : > { %2924 = vmatmul.mubr.f32.gmra.mrb[42].mxu1 %v2023_v31  ;;  %v2011_v10 = vadd.f32 %v4693_v40, %v1992_v50  ;;  %v1974_v42 = vmul.f32 %v3234_v59, %v4666_v39 }
 0x853   : > { %2926 = vmatprep.mubr.msk.f32.mxu1 %vm3519_vm0, %v3520_v29 }
 0x854   : > { %v2024_v15 = vmax.f32 %v2011_v10, 0.0  ;;  %v1993_v43 = vmul.f32 %v4687_v12, %v1974_v42 }
 0x855   : > { %v3236_v49 = vpop.eup %3235 }
 0x856   : > { %2927 = vmatmul.mubr.f32.gmra.mrb[44].mxu1 %v2024_v15  ;;  %v2012_v55 = vadd.f32 %v4693_v40, %v1993_v43  ;;  %v1975_v54 = vmul.f32 %v3236_v49, %v4673_v46 }
 0x857   : > { %2929 = vmatprep.mubr.msk.f32.mxu1 %vm3519_vm0, %v3520_v29 }
 0x858   : > { %v2025_v20 = vmax.f32 %v2012_v55, 0.0  ;;  %v1994_v58 = vmul.f32 %v4687_v12, %v1975_v54 }
 0x859   : > { %v3238_v22 = vpop.eup %3237 }
 0x85a   : > { %2930 = vmatmul.mubr.f32.gmra.mrb[46].mxu1 %v2025_v20  ;;  %v2013_v39 = vadd.f32 %v4693_v40, %v1994_v58  ;;  %v1976_v52 = vmul.f32 %v3238_v22, %v4680_v62 }
 0x85b   : > { %2932 = vmatprep.mubr.msk.f32.mxu1 %vm3519_vm0, %v3520_v29 }
 0x85c   : > { %v2026_v16 = vmax.f32 %v2013_v39, 0.0  ;;  %v1995_v1 = vmul.f32 %v4687_v12, %v1976_v52 }
 0x85e   : > { %2933 = vmatmul.mubr.f32.gmra.mrb[48].mxu1 %v2026_v16  ;;  %v2014_v46 = vadd.f32 %v4693_v40, %v1995_v1 }
 0x85f   : > { %2935 = vmatprep.mubr.msk.f32.mxu1 %vm3519_vm0, %v3520_v29 }
 0x860   : > { %v2027_v28 = vmax.f32 %v2014_v46, 0.0 }
 0x862   : > { %2936 = vmatmul.mubr.f32.gmra.mrb[50].mxu1 %v2027_v28 }
 0x904   : > { %v2117_v32 = vpop.f32.mrb[26].mxu1 }
 0x905   : > { %v2118_v62 = vadd.f32 %v2626_v4, %v2117_v32  ;;  %v2901_v2 = vpop.f32.mrb[27].mxu1 }
 0x907   : > { %2183 = vadd.xlane.f32.xlu0 %v2118_v62 }
 0x909   : > { %v2122_v3 = vpop.f32.mrb[28].mxu1 }
 0x90a   : > { %v2123_v60 = vadd.f32 %v2626_v4, %v2122_v3  ;;  %v2904_v17 = vpop.f32.mrb[29].mxu1 }
 0x90c   : > { %2185 = vadd.xlane.f32.xlu1 %v2123_v60 }
 0x90d   : > { %v2127_v12 = vpop.f32.mrb[30].mxu1 }
 0x90e   : > { %v2128_v38 = vadd.f32 %v2626_v4, %v2127_v12  ;;  %v2907_v40 = vpop.f32.mrb[31].mxu1 }
 0x910   : > { %2187 = vadd.xlane.f32.xlu0 %v2128_v38 }
 0x911   : > { %v2132_v19 = vpop.f32.mrb[32].mxu1 }
 0x912   : > { %v2133_v29 = vadd.f32 %v2626_v4, %v2132_v19  ;;  %v2910_v47 = vpop.f32.mrb[33].mxu1 }
 0x914   : > { %2189 = vadd.xlane.f32.xlu1 %v2133_v29 }
 0x915   : > { %v2137_v56 = vpop.f32.mrb[34].mxu1 }
 0x916   : > { %v4760_v21 = vadd.f32 %v2626_v4, %v2137_v56  ;;  %v2913_v9 = vpop.f32.mrb[35].mxu1 }
 0x918   : > { %2191 = vadd.xlane.f32.xlu0 %v4760_v21 }
 0x919   : > { %v2142_v35 = vpop.f32.mrb[36].mxu1 }
 0x91a   : > { %v4763_v30 = vadd.f32 %v2626_v4, %v2142_v35  ;;  %v2916_v6 = vpop.f32.mrb[37].mxu1 }
 0x91c   : > { %2193 = vadd.xlane.f32.xlu1 %v4763_v30 }
 0x91d   : > { %v2147_v34 = vpop.f32.mrb[38].mxu1 }
 0x91e   : > { %v4766_v44 = vadd.f32 %v2626_v4, %v2147_v34  ;;  %v2919_v48 = vpop.f32.mrb[39].mxu1 }
 0x920   : > { %2195 = vadd.xlane.f32.xlu0 %v4766_v44 }
 0x921   : > { %v2152_v45 = vpop.f32.mrb[40].mxu1 }
 0x922   : > { %v4769_v23 = vadd.f32 %v2626_v4, %v2152_v45  ;;  %v2922_v13 = vpop.f32.mrb[41].mxu1 }
 0x924   : > { %2197 = vadd.xlane.f32.xlu1 %v4769_v23 }
 0x925   : > { %v2157_v61 = vpop.f32.mrb[42].mxu1 }
 0x926   : > { %v4772_v26 = vadd.f32 %v2626_v4, %v2157_v61  ;;  %v2925_v14 = vpop.f32.mrb[43].mxu1 }
 0x928   : > { %2199 = vadd.xlane.f32.xlu0 %v4772_v26 }
 0x929   : > { %v2162_v5 = vpop.f32.mrb[44].mxu1 }
 0x92a   : > { %v4775_v53 = vadd.f32 %v2626_v4, %v2162_v5  ;;  %v2928_v41 = vpop.f32.mrb[45].mxu1 }
 0x92c   : > { %2201 = vadd.xlane.f32.xlu1 %v4775_v53 }
 0x92d   : > { %v2167_v37 = vpop.f32.mrb[46].mxu1 }
 0x92e   : > { %v4778_v36 = vadd.f32 %v2626_v4, %v2167_v37  ;;  %v2931_v11 = vpop.f32.mrb[47].mxu1 }
 0x930   : > { %2203 = vadd.xlane.f32.xlu0 %v4778_v36 }
 0x931   : > { %v2172_v57 = vpop.f32.mrb[48].mxu1 }
 0x932   : > { %v4781_v18 = vadd.f32 %v2626_v4, %v2172_v57  ;;  %v2934_v33 = vpop.f32.mrb[49].mxu1 }
 0x934   : > { %2205 = vadd.xlane.f32.xlu1 %v4781_v18 }
 0x935   : > { %v2177_v25 = vpop.f32.mrb[50].mxu1 }
 0x936   : > { %v4784_v0 = vadd.f32 %v2626_v4, %v2177_v25  ;;  %v2937_v24 = vpop.f32.mrb[51].mxu1 }
 0x938   : > { %2207 = vadd.xlane.f32.xlu0 %v4784_v0 }
 0x994   : > { %v2184_v8 = vpop.xlane.xlu0 %2183 }
 0x995   : > { %v2209_v27 = vmul.f32 0.015625, %v2184_v8 }
 0x997   : > { %v2222_v51 = vsub.f32 %v2118_v62, %v2209_v27 }
 0x999   : > { %v4789_v7 = vsel %vm1496_vm1, %v2222_v51, 0.0  ;;  %v2186_v31 = vpop.xlane.xlu1 %2185 }
 0x99a   : > { %v2210_v50 = vmul.f32 0.015625, %v2186_v31  ;;  %v2248_v59 = vmul.f32 %v4789_v7, %v4789_v7 }
 0x99c   : > { %v2223_v10 = vsub.f32 %v2123_v60, %v2210_v50  ;;  %2261 = vadd.xlane.f32.xlu1 %v2248_v59 }
 0x99d   : > { %v2188_v42 = vpop.xlane.xlu0 %2187 }
 0x99e   : > { %v4795_v15 = vsel %vm1496_vm1, %v2223_v10, 0.0  ;;  %v2211_v43 = vmul.f32 0.015625, %v2188_v42 }
 0x99f   : > { %v2249_v49 = vmul.f32 %v4795_v15, %v4795_v15 }
 0x9a0   : > { %v2224_v55 = vsub.f32 %v2128_v38, %v2211_v43 }
 0x9a1   : > { %v2190_v54 = vpop.xlane.xlu1 %2189  ;;  %2263 = vadd.xlane.f32.xlu0 %v2249_v49 }
 0x9a2   : > { %v4801_v20 = vsel %vm1496_vm1, %v2224_v55, 0.0  ;;  %v2212_v58 = vmul.f32 0.015625, %v2190_v54 }
 0x9a3   : > { %v2250_v22 = vmul.f32 %v4801_v20, %v4801_v20 }
 0x9a4   : > { %v2225_v39 = vsub.f32 %v2133_v29, %v2212_v58 }
 0x9a5   : > { %2265 = vadd.xlane.f32.xlu1 %v2250_v22  ;;  %v2192_v52 = vpop.xlane.xlu0 %2191  ;;  %v4877_v22 = vld [vmem:[%s5144_s29] ss:$0 sm:$0xff] }
 0x9a6   : > { %v4807_v16 = vsel %vm1496_vm1, %v2225_v39, 0.0  ;;  %v2213_v1 = vmul.f32 0.015625, %v2192_v52 }
 0x9a7   : > { %v2251_v46 = vmul.f32 %v4807_v16, %v4807_v16 }
 0x9a8   : > { %v2226_v28 = vsub.f32 %v4760_v21, %v2213_v1 }
 0x9a9   : > { %v2194_v4 = vpop.xlane.xlu1 %2193  ;;  %2267 = vadd.xlane.f32.xlu0 %v2251_v46  ;;  %v4883_v46 = vld [vmem:[%s5145_s0] ss:$0 sm:$0xff] }
 0x9aa   : > { %v4814_v32 = vsel %vm1496_vm1, %v2226_v28, 0.0  ;;  %v2214_v62 = vmul.f32 0.015625, %v2194_v4 }
 0x9ab   : > { %v2252_v2 = vmul.f32 %v4814_v32, %v4814_v32 }
 0x9ac   : > { %v2227_v3 = vsub.f32 %v4763_v30, %v2214_v62 }
 0x9ad   : > { %2269 = vadd.xlane.f32.xlu1 %v2252_v2  ;;  %v2196_v60 = vpop.xlane.xlu0 %2195 }
 0x9ae   : > { %v4821_v17 = vsel %vm1496_vm1, %v2227_v3, 0.0  ;;  %v2215_v12 = vmul.f32 0.015625, %v2196_v60 }
 0x9af   : > { %v2253_v38 = vmul.f32 %v4821_v17, %v4821_v17 }
 0x9b0   : > { %v2228_v40 = vsub.f32 %v4766_v44, %v2215_v12 }
 0x9b1   : > { %v2198_v19 = vpop.xlane.xlu1 %2197  ;;  %2271 = vadd.xlane.f32.xlu0 %v2253_v38 }
 0x9b2   : > { %v4828_v29 = vsel %vm1496_vm1, %v2228_v40, 0.0  ;;  %v2216_v47 = vmul.f32 0.015625, %v2198_v19 }
 0x9b3   : > { %v2254_v56 = vmul.f32 %v4828_v29, %v4828_v29 }
 0x9b4   : > { %v2229_v21 = vsub.f32 %v4769_v23, %v2216_v47 }
 0x9b5   : > { %2273 = vadd.xlane.f32.xlu1 %v2254_v56  ;;  %v2200_v9 = vpop.xlane.xlu0 %2199 }
 0x9b6   : > { %v4835_v35 = vsel %vm1496_vm1, %v2229_v21, 0.0  ;;  %v2217_v30 = vmul.f32 0.015625, %v2200_v9 }
 0x9b7   : > { %v2255_v6 = vmul.f32 %v4835_v35, %v4835_v35 }
 0x9b8   : > { %v2230_v34 = vsub.f32 %v4772_v26, %v2217_v30 }
 0x9b9   : > { %v2202_v44 = vpop.xlane.xlu1 %2201  ;;  %2275 = vadd.xlane.f32.xlu0 %v2255_v6 }
 0x9ba   : > { %v4842_v48 = vsel %vm1496_vm1, %v2230_v34, 0.0  ;;  %v2218_v45 = vmul.f32 0.015625, %v2202_v44 }
 0x9bb   : > { %v2256_v23 = vmul.f32 %v4842_v48, %v4842_v48 }
 0x9bc   : > { %v2231_v13 = vsub.f32 %v4775_v53, %v2218_v45 }
 0x9bd   : > { %2277 = vadd.xlane.f32.xlu1 %v2256_v23  ;;  %v2204_v61 = vpop.xlane.xlu0 %2203 }
 0x9be   : > { %v4849_v14 = vsel %vm1496_vm1, %v2231_v13, 0.0  ;;  %v2219_v5 = vmul.f32 0.015625, %v2204_v61 }
 0x9bf   : > { %v2257_v26 = vmul.f32 %v4849_v14, %v4849_v14 }
 0x9c0   : > { %v2232_v41 = vsub.f32 %v4778_v36, %v2219_v5 }
 0x9c1   : > { %v2206_v37 = vpop.xlane.xlu1 %2205  ;;  %2279 = vadd.xlane.f32.xlu0 %v2257_v26 }
 0x9c2   : > { %v4856_v11 = vsel %vm1496_vm1, %v2232_v41, 0.0  ;;  %v2220_v57 = vmul.f32 0.015625, %v2206_v37 }
 0x9c3   : > { %v2258_v53 = vmul.f32 %v4856_v11, %v4856_v11 }
 0x9c4   : > { %v2233_v33 = vsub.f32 %v4781_v18, %v2220_v57 }
 0x9c5   : > { %2281 = vadd.xlane.f32.xlu1 %v2258_v53  ;;  %v2208_v25 = vpop.xlane.xlu0 %2207 }
 0x9c6   : > { %v4863_v24 = vsel %vm1496_vm1, %v2233_v33, 0.0  ;;  %v2221_v8 = vmul.f32 0.015625, %v2208_v25 }
 0x9c7   : > { %v2259_v36 = vmul.f32 %v4863_v24, %v4863_v24 }
 0x9c8   : > { %v2234_v27 = vsub.f32 %v4784_v0, %v2221_v8 }
 0x9c9   : > { %2283 = vadd.xlane.f32.xlu0 %v2259_v36 }
 0x9ca   : > { %v4870_v51 = vsel %vm1496_vm1, %v2234_v27, 0.0 }
 0x9cb   : > { %v2260_v18 = vmul.f32 %v4870_v51, %v4870_v51 }
 0x9cd   : > { %2285 = vadd.xlane.f32.xlu1 %v2260_v18 }
 0xa29   : > { %v2262_v31 = vpop.xlane.xlu1 %2261 }
 0xa2a   : > { %v2287_v50 = vmul.f32 0.015625, %v2262_v31 }
 0xa2c   : > { %v2300_v59 = vadd.f32 1e-05, %v2287_v50 }
 0xa2e   : > { %3239 = vrsqrt.f32 %v2300_v59  ;;  %v2264_v10 = vpop.xlane.xlu0 %2263 }
 0xa2f   : > { %v2288_v42 = vmul.f32 0.015625, %v2264_v10 }
 0xa31   : > { %v2301_v43 = vadd.f32 1e-05, %v2288_v42 }
 0xa32   : > { %v2266_v49 = vpop.xlane.xlu1 %2265 }
 0xa33   : > { %3241 = vrsqrt.f32 %v2301_v43  ;;  %v2289_v55 = vmul.f32 0.015625, %v2266_v49 }
 0xa35   : > { %v2302_v0 = vadd.f32 1e-05, %v2289_v55 }
 0xa36   : > { %v2268_v54 = vpop.xlane.xlu0 %2267 }
 0xa37   : > { %3243 = vrsqrt.f32 %v2302_v0  ;;  %v2290_v63 = vmul.f32 0.015625, %v2268_v54 }
 0xa38   : > { %v3240_v58 = vpop.eup %3239 }
 0xa39   : > { %v2303_v39 = vadd.f32 1e-05, %v2290_v63  ;;  %v2326_v52 = vmul.f32 %v3240_v58, %v4789_v7 }
 0xa3a   : > { %v2270_v1 = vpop.xlane.xlu1 %2269 }
 0xa3b   : > { %3245 = vrsqrt.f32 %v2303_v39  ;;  %v2291_v28 = vmul.f32 0.015625, %v2270_v1  ;;  %v2345_v4 = vmul.f32 %v4877_v22, %v2326_v52 }
 0xa3d   : > { %v3242_v62 = vpop.eup %3241  ;;  %v2304_v2 = vadd.f32 1e-05, %v2291_v28  ;;  %v4887_v3 = vadd.f32 %v4883_v46, %v2345_v4 }
 0xa3e   : > { %v2272_v60 = vpop.xlane.xlu0 %2271  ;;  %v2327_v12 = vmul.f32 %v3242_v62, %v4795_v15 }
 0xa3f   : > { %3247 = vrsqrt.f32 %v2304_v2  ;;  %v2292_v7 = vmul.f32 0.015625, %v2272_v60  ;;  %v2377_v38 = vmul.f32 %v4887_v3, %v4887_v3 }
 0xa40   : > { %v2346_v40 = vmul.f32 %v4877_v22, %v2327_v12 }
 0xa41   : > { %v3244_v19 = vpop.eup %3243  ;;  %v2305_v47 = vadd.f32 1e-05, %v2292_v7  ;;  %2390 = vadd.xlane.f32.xlu0 %v2377_v38 }
 0xa42   : > { %v2274_v56 = vpop.xlane.xlu1 %2273  ;;  %v4894_v21 = vadd.f32 %v4883_v46, %v2346_v40  ;;  %v2328_v9 = vmul.f32 %v3244_v19, %v4801_v20 }
 0xa43   : > { %3249 = vrsqrt.f32 %v2305_v47  ;;  %v2293_v30 = vmul.f32 0.015625, %v2274_v56 }
 0xa44   : > { %v2378_v15 = vmul.f32 %v4894_v21, %v4894_v21  ;;  %v2347_v6 = vmul.f32 %v4877_v22, %v2328_v9 }
 0xa45   : > { %v3246_v34 = vpop.eup %3245  ;;  %v2306_v44 = vadd.f32 1e-05, %v2293_v30 }
 0xa46   : > { %2392 = vadd.xlane.f32.xlu1 %v2378_v15  ;;  %v2276_v45 = vpop.xlane.xlu0 %2275  ;;  %v4901_v23 = vadd.f32 %v4883_v46, %v2347_v6  ;;  %v2329_v13 = vmul.f32 %v3246_v34, %v4807_v16 }
 0xa47   : > { %3251 = vrsqrt.f32 %v2306_v44  ;;  %v2294_v61 = vmul.f32 0.015625, %v2276_v45 }
 0xa48   : > { %v2379_v20 = vmul.f32 %v4901_v23, %v4901_v23  ;;  %v2348_v5 = vmul.f32 %v4877_v22, %v2329_v13 }
 0xa49   : > { %v3248_v26 = vpop.eup %3247  ;;  %v2307_v41 = vadd.f32 1e-05, %v2294_v61 }
 0xa4a   : > { %2394 = vadd.xlane.f32.xlu0 %v2379_v20  ;;  %v2278_v37 = vpop.xlane.xlu1 %2277  ;;  %v4908_v57 = vadd.f32 %v4883_v46, %v2348_v5  ;;  %v2330_v53 = vmul.f32 %v3248_v26, %v4814_v32 }
 0xa4b   : > { %3253 = vrsqrt.f32 %v2307_v41  ;;  %v2295_v33 = vmul.f32 0.015625, %v2278_v37 }
 0xa4c   : > { %v2380_v16 = vmul.f32 %v4908_v57, %v4908_v57  ;;  %v2349_v25 = vmul.f32 %v4877_v22, %v2330_v53 }
 0xa4d   : > { %v3250_v8 = vpop.eup %3249  ;;  %v2308_v36 = vadd.f32 1e-05, %v2295_v33 }
 0xa4e   : > { %2396 = vadd.xlane.f32.xlu1 %v2380_v16  ;;  %v2280_v27 = vpop.xlane.xlu0 %2279  ;;  %v4915_v18 = vadd.f32 %v4883_v46, %v2349_v25  ;;  %v2331_v31 = vmul.f32 %v3250_v8, %v4821_v17 }
 0xa4f   : > { %3255 = vrsqrt.f32 %v2308_v36  ;;  %v2296_v50 = vmul.f32 0.015625, %v2280_v27 }
 0xa50   : > { %v2381_v32 = vmul.f32 %v4915_v18, %v4915_v18  ;;  %v2350_v59 = vmul.f32 %v4877_v22, %v2331_v31 }
 0xa51   : > { %v3252_v10 = vpop.eup %3251  ;;  %v2309_v42 = vadd.f32 1e-05, %v2296_v50 }
 0xa52   : > { %2398 = vadd.xlane.f32.xlu0 %v2381_v32  ;;  %v2282_v43 = vpop.xlane.xlu1 %2281  ;;  %v4922_v49 = vadd.f32 %v4883_v46, %v2350_v59  ;;  %v2332_v55 = vmul.f32 %v3252_v10, %v4828_v29 }
 0xa53   : > { %3257 = vrsqrt.f32 %v2309_v42  ;;  %v2297_v0 = vmul.f32 0.015625, %v2282_v43 }
 0xa54   : > { %v2382_v17 = vmul.f32 %v4922_v49, %v4922_v49  ;;  %v2351_v54 = vmul.f32 %v4877_v22, %v2332_v55 }
 0xa55   : > { %v3254_v63 = vpop.eup %3253  ;;  %v2310_v58 = vadd.f32 1e-05, %v2297_v0 }
 0xa56   : > { %2400 = vadd.xlane.f32.xlu1 %v2382_v17  ;;  %v2284_v39 = vpop.xlane.xlu0 %2283  ;;  %v4929_v52 = vadd.f32 %v4883_v46, %v2351_v54  ;;  %v2333_v1 = vmul.f32 %v3254_v63, %v4835_v35 }
 0xa57   : > { %3259 = vrsqrt.f32 %v2310_v58  ;;  %v2298_v28 = vmul.f32 0.015625, %v2284_v39 }
 0xa58   : > { %v2383_v29 = vmul.f32 %v4929_v52, %v4929_v52  ;;  %v2352_v4 = vmul.f32 %v4877_v22, %v2333_v1 }
 0xa59   : > { %v3256_v62 = vpop.eup %3255  ;;  %v2311_v2 = vadd.f32 1e-05, %v2298_v28 }
 0xa5a   : > { %2402 = vadd.xlane.f32.xlu0 %v2383_v29  ;;  %v2286_v60 = vpop.xlane.xlu1 %2285  ;;  %v4936_v12 = vadd.f32 %v4883_v46, %v2352_v4  ;;  %v2334_v7 = vmul.f32 %v3256_v62, %v4842_v48 }
 0xa5b   : > { %3261 = vrsqrt.f32 %v2311_v2  ;;  %v2299_v38 = vmul.f32 0.015625, %v2286_v60 }
 0xa5c   : > { %v2384_v35 = vmul.f32 %v4936_v12, %v4936_v12  ;;  %v2353_v40 = vmul.f32 %v4877_v22, %v2334_v7 }
 0xa5d   : > { %v3258_v19 = vpop.eup %3257  ;;  %v2312_v47 = vadd.f32 1e-05, %v2299_v38 }
 0xa5e   : > { %2404 = vadd.xlane.f32.xlu1 %v2384_v35  ;;  %v4943_v56 = vadd.f32 %v4883_v46, %v2353_v40  ;;  %v2335_v9 = vmul.f32 %v3258_v19, %v4849_v14 }
 0xa5f   : > { %3263 = vrsqrt.f32 %v2312_v47 }
 0xa60   : > { %v2385_v30 = vmul.f32 %v4943_v56, %v4943_v56  ;;  %v2354_v48 = vmul.f32 %v4877_v22, %v2335_v9 }
 0xa61   : > { %v3260_v15 = vpop.eup %3259 }
 0xa62   : > { %2406 = vadd.xlane.f32.xlu0 %v2385_v30  ;;  %v4950_v6 = vadd.f32 %v4883_v46, %v2354_v48  ;;  %v2336_v34 = vmul.f32 %v3260_v15, %v4856_v11 }
 0xa64   : > { %v2386_v44 = vmul.f32 %v4950_v6, %v4950_v6  ;;  %v2355_v45 = vmul.f32 %v4877_v22, %v2336_v34 }
 0xa65   : > { %v3262_v13 = vpop.eup %3261 }
 0xa66   : > { %2408 = vadd.xlane.f32.xlu1 %v2386_v44  ;;  %v4957_v14 = vadd.f32 %v4883_v46, %v2355_v45  ;;  %v2337_v61 = vmul.f32 %v3262_v13, %v4863_v24 }
 0xa68   : > { %v2387_v20 = vmul.f32 %v4957_v14, %v4957_v14  ;;  %v2356_v5 = vmul.f32 %v4877_v22, %v2337_v61 }
 0xa69   : > { %v3264_v26 = vpop.eup %3263 }
 0xa6a   : > { %2410 = vadd.xlane.f32.xlu0 %v2387_v20  ;;  %v4964_v11 = vadd.f32 %v4883_v46, %v2356_v5  ;;  %v2338_v41 = vmul.f32 %v3264_v26, %v4870_v51 }
 0xa6c   : > { %v2388_v37 = vmul.f32 %v4964_v11, %v4964_v11  ;;  %v2357_v53 = vmul.f32 %v4877_v22, %v2338_v41 }
 0xa6e   : > { %2412 = vadd.xlane.f32.xlu1 %v2388_v37  ;;  %v4971_v24 = vadd.f32 %v4883_v46, %v2357_v53 }
 0xa70   : > { %v2389_v33 = vmul.f32 %v4971_v24, %v4971_v24 }
 0xa72   : > { %2414 = vadd.xlane.f32.xlu0 %v2389_v33 }
 0xace   : > { %v2391_v16 = vpop.xlane.xlu0 %2390 }
 0xacf   : > { %v2416_v25 = vmax.f32 %v2391_v16, 1e-24 }
 0xad1   : > { %3265 = vrsqrt.f32 %v2416_v25 }
 0xad3   : > { %v2393_v8 = vpop.xlane.xlu1 %2392 }
 0xad4   : > { %v2417_v36 = vmax.f32 %v2393_v8, 1e-24 }
 0xad6   : > { %3267 = vrsqrt.f32 %v2417_v36 }
 0xad7   : > { %v2395_v51 = vpop.xlane.xlu0 %2394 }
 0xad8   : > { %v2418_v27 = vmax.f32 %v2395_v51, 1e-24 }
 0xada   : > { %3269 = vrsqrt.f32 %v2418_v27 }
 0xadb   : > { %v3266_v31 = vpop.eup %3265  ;;  %v2397_v22 = vpop.xlane.xlu1 %2396 }
 0xadc   : > { %v2442_v50 = vmul.f32 %v3266_v31, %v4887_v3  ;;  %v2419_v46 = vmax.f32 %v2397_v22, 1e-24 }
 0xade   : > { %2455 = vst [vmem:[%s4978_s10] sm:$0xff] %v2442_v50  ;;  %3271 = vrsqrt.f32 %v2419_v46 }
 0xadf   : > { %v2399_v32 = vpop.xlane.xlu0 %2398 }
 0xae0   : > { %v3268_v59 = vpop.eup %3267  ;;  %v2420_v10 = vmax.f32 %v2399_v32, 1e-24 }
 0xae1   : > { %v2443_v42 = vmul.f32 %v3268_v59, %v4894_v21 }
 0xae2   : > { %3273 = vrsqrt.f32 %v2420_v10 }
 0xae3   : > { %2456 = vst [vmem:[%s4978_s10 + $0x8] sm:$0xff] %v2443_v42  ;;  %v2401_v43 = vpop.xlane.xlu1 %2400 }
 0xae4   : > { %v3270_v55 = vpop.eup %3269  ;;  %v2421_v3 = vmax.f32 %v2401_v43, 1e-24 }
 0xae5   : > { %v2444_v0 = vmul.f32 %v3270_v55, %v4901_v23 }
 0xae6   : > { %3275 = vrsqrt.f32 %v2421_v3 }
 0xae7   : > { %2457 = vst [vmem:[%s4978_s10 + $0x10] sm:$0xff] %v2444_v0  ;;  %v2403_v17 = vpop.xlane.xlu0 %2402 }
 0xae8   : > { %v3272_v54 = vpop.eup %3271  ;;  %v2422_v63 = vmax.f32 %v2403_v17, 1e-24 }
 0xae9   : > { %v2445_v58 = vmul.f32 %v3272_v54, %v4908_v57 }
 0xaea   : > { %3277 = vrsqrt.f32 %v2422_v63 }
 0xaeb   : > { %2458 = vst [vmem:[%s4978_s10 + $0x18] sm:$0xff] %v2445_v58  ;;  %v2405_v39 = vpop.xlane.xlu1 %2404 }
 0xaec   : > { %v3274_v21 = vpop.eup %3273  ;;  %v2423_v1 = vmax.f32 %v2405_v39, 1e-24 }
 0xaed   : > { %v2446_v28 = vmul.f32 %v3274_v21, %v4915_v18 }
 0xaee   : > { %3279 = vrsqrt.f32 %v2423_v1 }
 0xaef   : > { %2459 = vst [vmem:[%s4978_s10 + $0x20] sm:$0xff] %v2446_v28  ;;  %v2407_v29 = vpop.xlane.xlu0 %2406 }
 0xaf0   : > { %v3276_v23 = vpop.eup %3275  ;;  %v2424_v4 = vmax.f32 %v2407_v29, 1e-24 }
 0xaf1   : > { %v2447_v62 = vmul.f32 %v3276_v23, %v4922_v49 }
 0xaf2   : > { %3281 = vrsqrt.f32 %v2424_v4 }
 0xaf3   : > { %2460 = vst [vmem:[%s4978_s10 + $0x28] sm:$0xff] %v2447_v62  ;;  %v2409_v2 = vpop.xlane.xlu1 %2408 }
 0xaf4   : > { %v3278_v57 = vpop.eup %3277  ;;  %v2425_v60 = vmax.f32 %v2409_v2, 1e-24 }
 0xaf5   : > { %v2448_v7 = vmul.f32 %v3278_v57, %v4929_v52 }
 0xaf6   : > { %3283 = vrsqrt.f32 %v2425_v60 }
 0xaf7   : > { %2461 = vst [vmem:[%s4978_s10 + $0x30] sm:$0xff] %v2448_v7  ;;  %v2411_v38 = vpop.xlane.xlu0 %2410 }
 0xaf8   : > { %v3280_v18 = vpop.eup %3279  ;;  %v2426_v35 = vmax.f32 %v2411_v38, 1e-24 }
 0xaf9   : > { %v2449_v40 = vmul.f32 %v3280_v18, %v4936_v12 }
 0xafa   : > { %3285 = vrsqrt.f32 %v2426_v35 }
 0xafb   : > { %2462 = vst [vmem:[%s4978_s10 + $0x38] sm:$0xff] %v2449_v40  ;;  %v2413_v49 = vpop.xlane.xlu1 %2412 }
 0xafc   : > { %v3282_v19 = vpop.eup %3281  ;;  %v2427_v47 = vmax.f32 %v2413_v49, 1e-24 }
 0xafd   : > { %v2450_v9 = vmul.f32 %v3282_v19, %v4943_v56 }
 0xafe   : > { %3287 = vrsqrt.f32 %v2427_v47 }
 0xaff   : > { %2463 = vst [vmem:[%s4978_s10 + $0x40] sm:$0xff] %v2450_v9  ;;  %v2415_v52 = vpop.xlane.xlu0 %2414 }
 0xb00   : > { %v3284_v30 = vpop.eup %3283  ;;  %v2428_v48 = vmax.f32 %v2415_v52, 1e-24 }
 0xb01   : > { %v2451_v15 = vmul.f32 %v3284_v30, %v4950_v6 }
 0xb02   : > { %3289 = vrsqrt.f32 %v2428_v48 }
 0xb03   : > { %2464 = vst [vmem:[%s4978_s10 + $0x48] sm:$0xff] %v2451_v15 }
 0xb04   : > { %v3286_v12 = vpop.eup %3285 }
 0xb05   : > { %v2452_v34 = vmul.f32 %v3286_v12, %v4957_v14 }
 0xb07   : > { %2465 = vst [vmem:[%s4978_s10 + $0x50] sm:$0xff] %v2452_v34 }
 0xb08   : > { %v3288_v44 = vpop.eup %3287 }
 0xb09   : > { %v2453_v45 = vmul.f32 %v3288_v44, %v4964_v11  ;;  %2475 = sbr.rel (!%p5147_p1) target bundleno = 2861 (0xb2d), region = 120 }
 0xb0b   : > { %2466 = vst [vmem:[%s4978_s10 + $0x58] sm:$0xff] %v2453_v45 }
 0xb0c   : > { %v3290_v56 = vpop.eup %3289 }
 0xb0d   : > { %v2454_v13 = vmul.f32 %v3290_v56, %v4971_v24 }
 0xb0f   : > { %2467 = vst [vmem:[%s4978_s10 + $0x60] sm:$0xff] %v2454_v13 }
 0xb10   : > { %s5160_s13 = smov (!%p2478_p3, %s2477_s13), 13 }
 0xb11   : > { %s5009_s27 = sshll.u32 %s5160_s13, 7 }
 0xb12   : > { %s2482_s25 = ssub.s32 1664, %s5009_s27 }
 0xb13   : > { %2483 = vsyncadd %s2469_s17, %s2482_s25  ;;  %p2630_p5 = scmp.ne.s32.totalorder %s5009_s27, 0  ;;  %s2637_s3 = smul.u32 1664, %s3645_s1 }
 0xb14   : > { %s2488_s24 = sshll.u32 %s4978_s10, 4  ;;  %s5148_s23 = sld [smem:[#allocation32_spill]]  ;;  %s5022_s24 = int_to_ptr.vmem [resolvable:$true] %s2488_s24 }
 0xb15   : > { %s3431_s29 = scalar_lea.vmem %s5022_s24, %s5009_s27  ;;  %s3521_s16 = smov [#allocation11]  }
 0xb16   : > { %p3432_p6 = scmp.ne.s32.totalorder %s5022_s24, %s3431_s29  ;;  %s3435_s28 = sshll.u32 %s3521_s16, 4  ;;  %s3436_s28 = int_to_ptr.vmem [resolvable:$false] %s3435_s28 }
 0xb17   : > { %s3437_s1 = scalar_lea.vmem %s3436_s28, 3328  ;;  %p3438_p0 = scmp.lt.s32.totalorder %s5022_s24, %s3436_s28 }
 0xb18   : > { %p3433_p11 = pnand %p3432_p6, %p2630_p5  ;;  %p3439_p12 = scmp.lt.s32.totalorder %s3437_s1, %s3431_s29 }
 0xb1a   : > { %s5020_s26 = scalar_lea.hbm %s5148_s23, %s2637_s3  ;;  %p3434_p13 = pneg %p3433_p11 }
 0xb1b   : > { %p3440_p7 = por %p3439_p12, %p3438_p0 }
 0xb1d   : > { %p3441_p2 = pnand %p3440_p7, %p3434_p13 }
 0xb1f   : > { %3444 = shalt.err (!%p3441_p2)
}
 0xb20   : > { %s3445_s0 = scalar_lea.hbm %s5020_s26, %s5009_s27  ;;  %s3449_s22 = scalar_lea.hbm %s5148_s23, 3200 }
 0xb21   : > { %p3446_p8 = scmp.ne.s32.totalorder %s5020_s26, %s3445_s0  ;;  %p3450_p1 = scmp.lt.u32.totalorder %s5020_s26, %s5148_s23 }
 0xb22   : > { %p3451_p3 = scmp.lt.u32.totalorder %s3449_s22, %s3445_s0  ;;  %p3453_p11 = scmp.lt.u32.totalorder %s3445_s0, %s5020_s26 }
 0xb23   : > { %p3447_p9 = pnand %p3446_p8, %p2630_p5 }
 0xb24   : > { %p3452_p6 = por %p3451_p3, %p3450_p1 }
 0xb25   : > { %p3448_p10 = pneg %p3447_p9 }
 0xb26   : > { %p3454_p13 = por %p3453_p11, %p3452_p6 }
 0xb28   : > { %p3455_p0 = pnand %p3454_p13, %p3448_p10 }
 0xb2a   : > { %3458 = shalt.err (!%p3455_p0)
}
 0xb2b   : > { %s3522_s3 = smov 128   ;;  %s3523_s2 = smov 8  }
 0xb2c   : > { %2494 = dma.vmem_to_hbm [thread:$0]  (%p2630_p5), %s5022_s24, %s5009_s27, %s5020_s26, %s2469_s17, %s3522_s3, %s3522_s3, %s3523_s2  }
 0xb2d PF: > { %s5149_s18 = sld [smem:[#allocation16_spill]]  ;;  %s5150_s29 = sld [smem:[#allocation20_spill]] }
 0xb33   : > { %s2503_s16 = sand.u32 1, %s5149_s18   ;;  %p5151_p12 = scmp.ne.s32.totalorder %s5150_s29, 0 }
 0xb34   : > { %s2504_s28 = scalar_lea.sflag [#allocation4], %s2503_s16 }
 0xb35   : > { %p3076_p7 = pnand %p2605_p4, %p5151_p12 }
 0xb37   : > { %3488 = dma.done.wait (!%p3076_p7), %s2504_s28, 1664  }
 0xb38   : > { %3490 = vsyncadd (!%p3076_p7), %s2504_s28, 4294965632  ;;  %s5152_s21 = sld [smem:[#allocation17_spill]]  ;;  %s5153_s1 = sld [smem:[#allocation18_spill]] }
 0xb39   : > { %s5154_s0 = smov %s3497_s30  ;;  %s5155_s30 = smov %s3501_s20 }
 0xb3e   : > { %p34_p2 = scmp.ge.s32.totalorder %s5152_s21, 4   ;;  %s5156_s20 = smov %s5153_s1 }
 0xb40   :  { %36 = sbr.rel (!%p34_p2) target bundleno = 20 (0x14), region = 157 }
 0xb47   :  { %2509 = vsyncpa [#allocation3], 1 }
 0xb48   :  { %2511 = vsyncpa [#allocation3 + $0x1], 1 }
 0xb49   :  { %2512 = vsyncpa [#allocation6], 1 }
 0xb4a   :  { %2513 = vsyncpa [#allocation9], 1 }
 0xb4b   :  { %2514 = vsyncpa [#allocation4], 1 }
 0xb4c   :  { %2516 = vsyncpa [#allocation4 + $0x1], 1 }

// kernel: tpu_custom_call.1
= control target key start
LH: loop header
LB: loop body
LE: loop exit
PB: predicated region body
PF: predicated region fallthrough
CT: control target
= control target key end

     0   :  { %s5068_s0 = inlined_call_operand.hbm [shape: f32[200,128], index: 0, kind: input, shape index: {}]   ;;  %s5069_s1 = inlined_call_operand.vmem [shape: f32[1,128], index: 1, kind: input, shape index: {}]   ;;  %s5070_s2 = inlined_call_operand.vmem [shape: f32[1,128], index: 2, kind: input, shape index: {}]   ;;  %s5071_s3 = inlined_call_operand.hbm [shape: f32[128,128], index: 3, kind: input, shape index: {}]   ;;  %s5072_s4 = inlined_call_operand.vmem [shape: f32[1,128], index: 4, kind: input, shape index: {}]   ;;  %s5073_s5 = inlined_call_operand.vmem [shape: f32[1,128], index: 5, kind: input, shape index: {}]   ;;  %s5074_s6 = inlined_call_operand.vmem [shape: f32[1,128], index: 6, kind: input, shape index: {}]   ;;  %s5075_s7 = inlined_call_operand.hbm [shape: f32[128,256], index: 7, kind: input, shape index: {}]   ;;  %s5076_s8 = inlined_call_operand.vmem [shape: f32[1,256], index: 8, kind: input, shape index: {}]   ;;  %s5077_s9 = inlined_call_operand.vmem [shape: f32[1,128], index: 9, kind: input, shape index: {}]   ;;  %s5078_s10 = inlined_call_operand.vmem [shape: f32[1,128], index: 10, kind: input, shape index: {}]   ;;  %s5079_s11 = inlined_call_operand.hbm [shape: f32[128,128], index: 11, kind: input, shape index: {}]   ;;  %s5080_s12 = inlined_call_operand.vmem [shape: f32[1,128], index: 12, kind: input, shape index: {}]   ;;  %s5081_s13 = inlined_call_operand.vmem [shape: f32[1,128], index: 13, kind: input, shape index: {}]   ;;  %s5082_s14 = inlined_call_operand.vmem [shape: f32[1,128], index: 14, kind: input, shape index: {}]   ;;  %s5083_s15 = inlined_call_operand.hbm [shape: f32[128,128], index: 15, kind: input, shape index: {}]   ;;  %s5084_s16 = inlined_call_operand.vmem [shape: f32[1,128], index: 16, kind: input, shape index: {}]   ;;  %s5085_s17 = inlined_call_operand.vmem [shape: f32[1,128], index: 17, kind: input, shape index: {}]   ;;  %s5086_s18 = inlined_call_operand.vmem [shape: f32[1,128], index: 18, kind: input, shape index: {}]   ;;  %s5087_s19 = inlined_call_operand.hbm [shape: f32[200,128], index: 19, kind: output, shape index: {}]  }
   0x1   :  { %5102 = sst [smem:[#allocation21_spill]] %s5068_s0 }
   0x2   :  { %5103 = sst [smem:[#allocation22_spill]] %s5069_s1 }
   0x3   :  { %5104 = sst [smem:[#allocation23_spill]] %s5070_s2 }
   0x4   :  { %5105 = sst [smem:[#allocation24_spill]] %s5071_s3 }
   0x5   :  { %5106 = sst [smem:[#allocation25_spill]] %s5078_s10 }
   0x6   :  { %5107 = sst [smem:[#allocation26_spill]] %s5080_s12 }
   0x7   :  { %5108 = sst [smem:[#allocation27_spill]] %s5081_s13 }
   0x8   :  { %5109 = sst [smem:[#allocation28_spill]] %s5082_s14 }
   0x9   :  { %5110 = sst [smem:[#allocation29_spill]] %s5084_s16 }
   0xa   :  { %5111 = sst [smem:[#allocation30_spill]] %s5085_s17 }
   0xb   :  { %5112 = sst [smem:[#allocation31_spill]] %s5086_s18 }
   0xc   :  { %5113 = sst [smem:[#allocation32_spill]] %s5087_s19 }
   0xd   :  { %24 = vsyncpa [#allocation3], 0 }
   0xe   :  { %26 = vsyncpa [#allocation3 + $0x1], 0 }
   0xf   :  { %27 = vsyncpa [#allocation6], 0 }
  0x10   :  { %28 = vsyncpa [#allocation9], 0 }
  0x11   :  { %29 = vsyncpa [#allocation4], 0 }
  0x12   :  { %31 = vsyncpa [#allocation4 + $0x1], 0  ;;  %s3624_s0 = smov 0   ;;  %s3626_s30 = smov 0  }
  0x13   :  { %s3628_s20 = smov 0   ;;  %s3630_s21 = smov 0  }
  0x14 LB: > { %5114 = sst [smem:[#allocation16_spill]] %s3493_s0  ;;  %s3645_s1 = sadd.s32 4294967295, %s3505_s21   ;;  %s3505_s21 = sphi %s3630_s21, %s5152_s21   ;;  %s3501_s20 = sphi %s3628_s20, %s5156_s20   ;;  %s3497_s30 = sphi %s3626_s30, %s5155_s30   ;;  %s3493_s0 = sphi %s3624_s0, %s5154_s0  }
  0x15   : > { %s2599_s22 = sadd.s32 4294967294, %s3505_s21   ;;  %s3649_s2 = sadd.s32 1, %s3505_s21  }
  0x16   : > { %5115 = sst [smem:[#allocation17_spill]] %s3649_s2  ;;  %s44_s23 = sadd.s32 1, %s3501_s20 }
  0x17   : > { %s41_s24 = ssub.s32 %s3505_s21, %s3649_s2  ;;  %p51_p0 = scmp.ne.s32.totalorder %s3501_s20, %s3497_s30 }
  0x18   : > { %p42_p1 = scmp.eq.s32.totalorder %s41_s24, 0  ;;  %p52_p2 = scmp.eq.s32.totalorder %s3505_s21, 0 }
  0x19   : > { %p57_p3 = scmp.ne.s32.totalorder %s3497_s30, %s3493_s0  ;;  %p5096_p4 = scmp.eq.s32.totalorder %s3645_s1, 0 }
  0x1a   : > { %s3661_s25 = scalar_select %p42_p1, %s3501_s20, %s44_s23  }
  0x1b   : > { %p3663_p5 = por %p52_p2, %p51_p0  ;;  %p3669_p6 = por %p5096_p4, %p57_p3 }
  0x1c   : > { %5116 = sst [smem:[#allocation18_spill]] %s3661_s25  ;;  %p459_p7 = scmp.eq.s32.totalorder %s3645_s1, 1 }
  0x1d   : > { %s5117_s3 = scalar_select %p3663_p5, 1, 0 }
  0x1e   : > { %s5118_s26 = scalar_select %p3669_p6, 1, 0 }
  0x1f   : > { %p465_p8 = scmp.eq.s32.totalorder %s2599_s22, 1  ;;  %p2600_p9 = scmp.ge.s32.totalorder %s3505_s21, 1 }
  0x20   : > { %p472_p10 = scmp.lt.s32.totalorder %s3505_s21, 3  ;;  %p3676_p11 = por %p459_p7, %p51_p0 }
  0x21   : > { %p3680_p12 = por %p465_p8, %p57_p3  ;;  %s3507_s23 = smov [#allocation5]  }
  0x22   : > { %s5119_s27 = scalar_select %p3676_p11, 1, 0 }
  0x23   : > { %s5121_s28 = scalar_select %p3680_p12, 1, 0 }
  0x24   : > { %5120 = sst [smem:[#allocation19_spill]] %s5119_s27  ;;  %p3684_p13 = pnand %p2600_p9, %p472_p10 }
  0x25   : > { %5122 = sst [smem:[#allocation20_spill]] %s5121_s28  ;;  %s490_s24 = sshll.u32 %s3507_s23, 4  ;;  %s491_s24 = int_to_ptr.vmem [resolvable:$true] %s490_s24 }
  0x26   : > { %s5123_s29 = scalar_select %p3684_p13, 1, 0 }
  0x27   : > { %p3062_p1 = pneg %p3684_p13  ;;  %s3508_s25 = smov [#allocation8]  }
  0x28   : > { %s534_s2 = sshll.u32 %s3508_s25, 4  ;;  %s5125_s19 = sld [smem:[#allocation24_spill]]  ;;  %s3696_s2 = int_to_ptr.vmem [resolvable:$true] %s534_s2 }
  0x29   : > { %p3692_p2 = pnand %p3062_p1, %p5096_p4 }
  0x2b   : > { %p3706_p3 = pneg %p3692_p2 }
  0x2e   : > { %s3291_s27 = scalar_lea.hbm %s5125_s19, 2048 }
  0x2f   : > { %p3292_p0 = scmp.ne.s32.totalorder %s5125_s19, %s3291_s27  ;;  %p3298_p9 = scmp.lt.u32.totalorder %s3291_s27, %s5125_s19 }
  0x31   : > { %p3294_p7 = pnand %p3706_p3, %p3292_p0 }
  0x33   : > { %p3295_p8 = pneg %p3294_p7 }
  0x35   : > { %p3300_p10 = pnand %p3298_p9, %p3295_p8 }
  0x37   : > { %3303 = shalt.err (!%p3300_p10)
}
  0x38   : > { %s3304_s0 = scalar_lea.vmem %s491_s24, 2048  ;;  %p3312_p11 = scmp.lt.s32.totalorder %s491_s24, %s491_s24 }
  0x39   : > { %p3305_p1 = scmp.ne.s32.totalorder %s491_s24, %s3304_s0  ;;  %p3313_p6 = scmp.lt.s32.totalorder %s3304_s0, %s3304_s0 }
  0x3b   : > { %p3307_p4 = pnand %p3305_p1, %p3706_p3  ;;  %p3314_p13 = por %p3313_p6, %p3312_p11 }
  0x3d   : > { %p3308_p12 = pneg %p3307_p4 }
  0x3f   : > { %p3315_p5 = pnand %p3314_p13, %p3308_p12 }
  0x41   : > { %3318 = shalt.err (!%p3315_p5)
}
  0x42   : > { %s5100_s17 = smov 128   ;;  %s5101_s18 = smov 8  }
  0x43   : > { %3065 = dma.hbm_to_vmem [thread:$0]  (!%p3692_p2), %s5125_s19, 2048, %s491_s24, [#allocation6], %s5100_s17, %s5100_s17, %s5101_s18  }
  0x44   : > { %s3319_s14 = scalar_lea.hbm %s5079_s11, 2048 }
  0x45   : > { %p3320_p4 = scmp.ne.s32.totalorder %s5079_s11, %s3319_s14  ;;  %p3326_p11 = scmp.lt.u32.totalorder %s3319_s14, %s5079_s11 }
  0x47   : > { %p3322_p5 = pnand %p3320_p4, %p3706_p3 }
  0x49   : > { %p3323_p6 = pneg %p3322_p5 }
  0x4b   : > { %p3328_p12 = pnand %p3326_p11, %p3323_p6 }
  0x4d   : > { %3331 = shalt.err (!%p3328_p12)
}
  0x4e   : > { %s3332_s24 = scalar_lea.vmem %s3696_s2, 2048  ;;  %p3340_p8 = scmp.lt.s32.totalorder %s3696_s2, %s3696_s2 }
  0x4f   : > { %p3333_p13 = scmp.ne.s32.totalorder %s3696_s2, %s3332_s24  ;;  %p3341_p9 = scmp.lt.s32.totalorder %s3332_s24, %s3332_s24 }
  0x51   : > { %p3335_p0 = pnand %p3333_p13, %p3706_p3  ;;  %p3342_p10 = por %p3341_p9, %p3340_p8 }
  0x53   : > { %p3336_p7 = pneg %p3335_p0 }
  0x55   : > { %p3343_p1 = pnand %p3342_p10, %p3336_p7 }
  0x57   : > { %3346 = shalt.err (!%p3343_p1)
}
  0x58   : > { %3071 = dma.hbm_to_vmem [thread:$0]  (!%p3692_p2), %s5079_s11, 2048, %s3696_s2, [#allocation9], %s5100_s17, %s5100_s17, %s5101_s18  }
  0x59   : > { %s3511_s13 = smov [#allocation7]   ;;  %s3347_s28 = scalar_lea.hbm %s5075_s7, 4096 }
  0x5a   : > { %s512_s14 = sshll.u32 %s3511_s13, 4  ;;  %p3348_p4 = scmp.ne.s32.totalorder %s5075_s7, %s3347_s28  ;;  %s513_s14 = int_to_ptr.vmem [resolvable:$true] %s512_s14 }
  0x5b   : > { %p3354_p11 = scmp.lt.u32.totalorder %s3347_s28, %s5075_s7 }
  0x5c   : > { %p3350_p5 = pnand %p3348_p4, %p3706_p3 }
  0x5e   : > { %p3351_p6 = pneg %p3350_p5 }
  0x60   : > { %p3356_p12 = pnand %p3354_p11, %p3351_p6 }
  0x62   : > { %3359 = shalt.err (!%p3356_p12)
}
  0x63   : > { %s3360_s2 = scalar_lea.vmem %s513_s14, 4096  ;;  %p3368_p8 = scmp.lt.s32.totalorder %s513_s14, %s513_s14 }
  0x64   : > { %p3361_p13 = scmp.ne.s32.totalorder %s513_s14, %s3360_s2  ;;  %p3369_p9 = scmp.lt.s32.totalorder %s3360_s2, %s3360_s2 }
  0x66   : > { %p3363_p0 = pnand %p3361_p13, %p3706_p3  ;;  %p3370_p10 = por %p3369_p9, %p3368_p8 }
  0x68   : > { %p3364_p7 = pneg %p3363_p0 }
  0x6a   : > { %p3371_p1 = pnand %p3370_p10, %p3364_p7 }
  0x6c   : > { %3374 = shalt.err (!%p3371_p1)
}
  0x6d   : > { %s3512_s10 = smov 256   ;;  %s3513_s12 = smov 16  }
  0x6e   : > { %3068 = dma.hbm_to_vmem [thread:$0]  (!%p3692_p2), %s5075_s7, 4096, %s513_s14, [#allocation6], %s3512_s10, %s3512_s10, %s3513_s12  }
  0x6f   : > { %s3514_s16 = smov [#allocation10]   ;;  %s3375_s0 = scalar_lea.hbm %s5083_s15, 2048 }
  0x70   : > { %s556_s27 = sshll.u32 %s3514_s16, 4  ;;  %p3376_p4 = scmp.ne.s32.totalorder %s5083_s15, %s3375_s0  ;;  %s557_s27 = int_to_ptr.vmem [resolvable:$true] %s556_s27 }
  0x71   : > { %p3382_p11 = scmp.lt.u32.totalorder %s3375_s0, %s5083_s15 }
  0x72   : > { %p3378_p5 = pnand %p3376_p4, %p3706_p3 }
  0x74   : > { %p3379_p6 = pneg %p3378_p5 }
  0x76   : > { %p3384_p12 = pnand %p3382_p11, %p3379_p6 }
  0x78   : > { %3387 = shalt.err (!%p3384_p12)
}
  0x79   : > { %s3388_s14 = scalar_lea.vmem %s557_s27, 2048  ;;  %p3396_p8 = scmp.lt.s32.totalorder %s557_s27, %s557_s27 }
  0x7a   : > { %p3389_p13 = scmp.ne.s32.totalorder %s557_s27, %s3388_s14  ;;  %p3397_p9 = scmp.lt.s32.totalorder %s3388_s14, %s3388_s14 }
  0x7c   : > { %p3391_p0 = pnand %p3389_p13, %p3706_p3  ;;  %p3398_p10 = por %p3397_p9, %p3396_p8 }
  0x7e   : > { %p3392_p7 = pneg %p3391_p0 }
  0x80   : > { %p3399_p1 = pnand %p3398_p10, %p3392_p7 }
  0x82   : > { %3402 = shalt.err (!%p3399_p1)
}
  0x83   : > { %s5127_s10 = smov 8   ;;  %s5128_s12 = smov 128  }
  0x84   : > { %3074 = dma.hbm_to_vmem [thread:$0]  (!%p3692_p2), %s5083_s15, 2048, %s557_s27, [#allocation9], %s5128_s12, %s5128_s12, %s5127_s10  }
  0x85   : > { %p2605_p4 = scmp.ge.s32.totalorder %s3505_s21, 2 }
  0x86   : > { %p5129_p3 = scmp.ne.s32.totalorder (!%p2605_p4), %s5117_s3, 0 }
  0x87   : > { %575 = sbr.rel (%p2605_p4) target bundleno = 182 (0xb6), region = 88 }
  0x8e   : > { %578 = sbr.rel (!%p5129_p3) target bundleno = 182 (0xb6), region = 92  ;;  %s579_s23 = sand.u32 (%p5129_p3), 1, %s3501_s20  }
  0x8f   : > { %s584_s19 = smul.u32 (%p5129_p3), 13, %s3505_s21  ;;  %s3800_s28 = scalar_lea.sflag (%p5129_p3), [#allocation3], %s579_s23 }
  0x90   : > { %s3042_s22 = smul.u32 (%p5129_p3), 104, %s579_s23 }
  0x91   : > { %s585_s13 = ssub.s32 (%p5129_p3), 25, %s584_s19 }
  0x92   : > { %p586_p5 = scmp.lt.s32.totalorder (%p5129_p3), %s585_s13, 13  ;;  %s583_s25 = scalar_lea.vmem (%p5129_p3), [#allocation2], %s3042_s22 }
  0x95   : > { %s5158_s13 = smov (!%p586_p5, %s585_s13), 13 }
  0x96   : > { %s3797_s16 = sshll.u32 %s5158_s13, 7 }
  0x97   : > { %s590_s27 = ssub.s32 1664, %s3797_s16 }
  0x98   : > { %591 = vsyncadd %s3800_s28, %s590_s27  ;;  %p2607_p2 = scmp.ne.s32.totalorder %s3797_s16, 0  ;;  %s2636_s3 = smul.u32 1664, %s3505_s21 }
  0x99   : > { %s596_s0 = sshll.u32 %s583_s25, 4  ;;  %s5130_s14 = sld [smem:[#allocation21_spill]]  ;;  %s3810_s0 = int_to_ptr.vmem [resolvable:$true] %s596_s0 }
  0x9f   : > { %s3808_s10 = scalar_lea.hbm %s5130_s14, %s2636_s3  ;;  %s3407_s23 = scalar_lea.hbm %s5130_s14, 3200 }
  0xa0   : > { %s3403_s12 = scalar_lea.hbm %s3808_s10, %s3797_s16  ;;  %p3408_p13 = scmp.lt.u32.totalorder %s3808_s10, %s5130_s14 }
  0xa1   : > { %p3404_p6 = scmp.ne.s32.totalorder %s3808_s10, %s3403_s12  ;;  %p3409_p0 = scmp.lt.u32.totalorder %s3407_s23, %s3403_s12 }
  0xa2   : > { %p3411_p8 = scmp.lt.u32.totalorder %s3403_s12, %s3808_s10 }
  0xa3   : > { %p3405_p11 = pnand %p3404_p6, %p2607_p2  ;;  %p3410_p7 = por %p3409_p0, %p3408_p13 }
  0xa5   : > { %p3406_p12 = pneg %p3405_p11  ;;  %p3412_p9 = por %p3411_p8, %p3410_p7 }
  0xa7   : > { %p3413_p10 = pnand %p3412_p9, %p3406_p12 }
  0xa9   : > { %3416 = shalt.err (!%p3413_p10)
}
  0xaa   : > { %s3417_s13 = scalar_lea.vmem %s3810_s0, %s3797_s16  ;;  %s3515_s27 = smov [#allocation2]  }
  0xab   : > { %p3418_p1 = scmp.ne.s32.totalorder %s3810_s0, %s3417_s13  ;;  %s3421_s25 = sshll.u32 %s3515_s27, 4  ;;  %s3422_s25 = int_to_ptr.vmem [resolvable:$false] %s3421_s25 }
  0xac   : > { %s3423_s3 = scalar_lea.vmem %s3422_s25, 3328  ;;  %p3424_p6 = scmp.lt.s32.totalorder %s3810_s0, %s3422_s25 }
  0xad   : > { %p3419_p3 = pnand %p3418_p1, %p2607_p2  ;;  %p3425_p11 = scmp.lt.s32.totalorder %s3423_s3, %s3417_s13 }
  0xaf   : > { %p3420_p5 = pneg %p3419_p3  ;;  %p3426_p13 = por %p3425_p11, %p3424_p6 }
  0xb1   : > { %p3427_p0 = pnand %p3426_p13, %p3420_p5 }
  0xb3   : > { %3430 = shalt.err (!%p3427_p0)
}
  0xb4   : > { %s3516_s24 = smov 128   ;;  %s3517_s2 = smov 8  }
  0xb5   : > { %602 = dma.hbm_to_vmem [thread:$0]  (%p2607_p2), %s3808_s10, %s3797_s16, %s3810_s0, %s3800_s28, %s3516_s24, %s3516_s24, %s3517_s2  }
  0xb6 PF: > { %p5131_p12 = scmp.ne.s32.totalorder %s5123_s29, 0 }
  0xb7   : > { %s3840_s12 = sand.u32 (!%p5131_p12), 1, %s3497_s30   ;;  %p5132_p7 = scmp.ne.s32.totalorder (!%p5131_p12), %s5118_s26, 0 }
  0xb8   : > { %608 = sbr.rel (%p5131_p12) target bundleno = 2861 (0xb2d), region = 96  ;;  %s611_s18 = scalar_lea.sflag (!%p5131_p12), [#allocation3], %s3840_s12 }
  0xb9   : > { %s3043_s17 = smul.u32 (!%p5131_p12), 104, %s3840_s12 }
  0xbb   : > { %s3846_s23 = scalar_lea.vmem (!%p5131_p12), [#allocation2], %s3043_s17 }
  0xbf   : > { %3476 = dma.done.wait (%p5132_p7), %s611_s18, 1664  }
  0xc0   : > { %3478 = vsyncadd (%p5132_p7), %s611_s18, 4294965632  ;;  %p5133_p2 = scmp.eq.s32.totalorder %s3645_s1, 0 }
  0xc2   : > { %3480 = dma.done.wait (%p5133_p2), [#allocation6], 6144   ;;  %p5134_p8 = pmov %p5133_p2 }
  0xc3   : > { %p5135_p9 = pmov %p5133_p2 }
  0xc4   : > { %3482 = vsyncadd (%p5134_p8), [#allocation6], 4294961152 }
  0xc5   : > { %3484 = dma.done.wait (%p5135_p9), [#allocation9], 4096   ;;  %p5136_p10 = pmov %p5133_p2 }
  0xc6   : > { %v695_v0 = vld [vmem:[%s3846_s23] sm:$0xff]  ;;  %v697_v1 = vld [vmem:[%s3846_s23 + $0x10] sm:$0xff]  ;;  %v696_v2 = vld [vmem:[%s3846_s23 + $0x8] sm:$0xff]  ;;  %v3518_v16 = vmov 0.0|0.0   ;;  %vm3519_vm0 = vmmov 0   ;;  %s5137_s16 = sld [smem:[#allocation22_spill]] }
  0xc7   : > { %3486 = vsyncadd (%p5136_p10), [#allocation9], 4294963200  ;;  %710 = vadd.xlane.f32.xlu0 %v695_v0  ;;  %714 = vadd.xlane.f32.xlu1 %v697_v1  ;;  %v698_v3 = vld [vmem:[%s3846_s23 + $0x18] sm:$0xff]  ;;  %v699_v4 = vld [vmem:[%s3846_s23 + $0x20] sm:$0xff]  ;;  %s5138_s10 = sld [smem:[#allocation23_spill]]  ;;  %s5141_s13 = sld [smem:[#allocation27_spill]] }
  0xc8   : > { %v700_v5 = vld [vmem:[%s3846_s23 + $0x28] sm:$0xff]  ;;  %v3867_v6 = vld [vmem:[%s3846_s23 + $0x30] sm:$0xff]  ;;  %v3870_v7 = vld [vmem:[%s3846_s23 + $0x38] sm:$0xff]  ;;  %2938 = vmatprep.subr.bf16.mxu0 %v3518_v16  ;;  %s5142_s3 = sld [smem:[#allocation28_spill]]  ;;  %s5143_s18 = sld [smem:[#allocation29_spill]] }
  0xc9   : > { %v3875_v8 = vld [vmem:[%s3846_s23 + $0x40] sm:$0xff]  ;;  %v3878_v9 = vld [vmem:[%s3846_s23 + $0x48] sm:$0xff]  ;;  %v3883_v10 = vld [vmem:[%s3846_s23 + $0x50] sm:$0xff]  ;;  %s5144_s29 = sld [smem:[#allocation30_spill]]  ;;  %s5145_s0 = sld [smem:[#allocation31_spill]] }
  0xca   : > { %v3886_v11 = vld [vmem:[%s3846_s23 + $0x58] sm:$0xff]  ;;  %v3891_v12 = vld [vmem:[%s3846_s23 + $0x60] sm:$0xff]  ;;  %v891_v13 = vld [vmem:[#allocation5] sm:$0xff]  ;;  %s5146_s19 = sld [smem:[#allocation19_spill]] }
  0xcb   : > { %712 = vadd.xlane.f32.xlu0 %v696_v2  ;;  %716 = vadd.xlane.f32.xlu1 %v698_v3  ;;  %v892_v14 = vld [vmem:[#allocation5 + $0x8] sm:$0xff]  ;;  %v893_v15 = vld [vmem:[#allocation5 + $0x10] sm:$0xff]  ;;  %v894_v18 = vld [vmem:[#allocation5 + $0x18] sm:$0xff] }
  0xcc   : > { %v2939_v17 = vpack.c.bf16 %v892_v14, %v891_v13  ;;  %v2942_v19 = vpack.c.bf16 %v894_v18, %v893_v15  ;;  %v895_v20 = vld [vmem:[#allocation5 + $0x20] sm:$0xff]  ;;  %v896_v21 = vld [vmem:[#allocation5 + $0x28] sm:$0xff]  ;;  %v897_v63 = vld [vmem:[#allocation5 + $0x30] sm:$0xff] }
  0xcd   : > { %v2945_v22 = vpack.c.bf16 %v896_v21, %v895_v20  ;;  %v899_v14 = vld [vmem:[#allocation5 + $0x40] sm:$0xff]  ;;  %v900_v15 = vld [vmem:[#allocation5 + $0x48] sm:$0xff]  ;;  %v902_v20 = vld [vmem:[#allocation5 + $0x58] sm:$0xff] }
  0xce   : > { %2940 = vmatpush3.bf16.msra.mxu0 %v2939_v17  ;;  %v2951_v17 = vpack.c.bf16 %v900_v15, %v899_v14 }
  0xcf   : > { %718 = vadd.xlane.f32.xlu0 %v699_v4  ;;  %720 = vadd.xlane.f32.xlu1 %v700_v5 }
  0xd0   : > { %2941 = vmatprep.subr.bf16.mxu0 %v3518_v16  ;;  %p5147_p1 = scmp.ne.s32.totalorder %s5146_s19, 0 }
  0xd1   : > { %s2476_s22 = smul.u32 (%p5147_p1), 13, %s3645_s1 }
  0xd2   : > { %2943 = vmatpush3.bf16.msra.mxu0 %v2942_v19  ;;  %v901_v19 = vld [vmem:[#allocation5 + $0x50] sm:$0xff] }
  0xd3   : > { %722 = vadd.xlane.f32.xlu0 %v3867_v6  ;;  %724 = vadd.xlane.f32.xlu1 %v3870_v7  ;;  %v2954_v21 = vpack.c.bf16 %v902_v20, %v901_v19 }
  0xd4   : > { %2944 = vmatprep.subr.bf16.mxu0 %v3518_v16 }
  0xd6   : > { %2946 = vmatpush3.bf16.msra.mxu0 %v2945_v22  ;;  %v903_v22 = vld [vmem:[#allocation5 + $0x60] sm:$0xff] }
  0xd7   : > { %726 = vadd.xlane.f32.xlu0 %v3875_v8  ;;  %728 = vadd.xlane.f32.xlu1 %v3878_v9 }
  0xd8   : > { %2947 = vmatprep.subr.bf16.mxu0 %v3518_v16 }
  0xdb   : > { %730 = vadd.xlane.f32.xlu0 %v3883_v10  ;;  %732 = vadd.xlane.f32.xlu1 %v3886_v11 }
  0xdf   : > { %734 = vadd.xlane.f32.xlu0 %v3891_v12 }
 0x154   : > { %v711_v23 = vpop.xlane.xlu0 %710  ;;  %v715_v24 = vpop.xlane.xlu1 %714 }
 0x155   : > { %v736_v25 = vmul.f32 0.0078125, %v711_v23  ;;  %v738_v26 = vmul.f32 0.0078125, %v715_v24  ;;  %v904_v23 = vld [vmem:[#allocation5 + $0x68] sm:$0xff] }
 0x156   : > { %v2957_v24 = vpack.c.bf16 %v904_v23, %v903_v22 }
 0x157   : > { %v3898_v27 = vsub.f32 %v695_v0, %v736_v25  ;;  %v3900_v28 = vsub.f32 %v697_v1, %v738_v26  ;;  %v898_v0 = vld [vmem:[#allocation5 + $0x38] sm:$0xff] }
 0x158   : > { %v713_v29 = vpop.xlane.xlu0 %712  ;;  %v717_v30 = vpop.xlane.xlu1 %716  ;;  %v906_v25 = vld [vmem:[#allocation5 + $0x78] sm:$0xff] }
 0x159   : > { %v737_v31 = vmul.f32 0.0078125, %v713_v29  ;;  %v762_v32 = vmul.f32 %v3898_v27, %v3898_v27  ;;  %v739_v33 = vmul.f32 0.0078125, %v717_v30  ;;  %v764_v34 = vmul.f32 %v3900_v28, %v3900_v28 }
 0x15a   : > { %v3520_v29 = vmov 0.0  }
 0x15b   : > { %775 = vadd.xlane.f32.xlu1 %v762_v32  ;;  %v3906_v35 = vsub.f32 %v696_v2, %v737_v31  ;;  %v3908_v36 = vsub.f32 %v698_v3, %v739_v33  ;;  %2757 = vmatprep.mubr.msk.f32.mxu0 %vm3519_vm0, %v3520_v29 }
 0x15c   : > { %v719_v37 = vpop.xlane.xlu0 %718  ;;  %v721_v38 = vpop.xlane.xlu1 %720  ;;  %1361 = vmatprep.mubr.f32.mxu1 %v3520_v29 }
 0x15d   : > { %v740_v39 = vmul.f32 0.0078125, %v719_v37  ;;  %v763_v40 = vmul.f32 %v3906_v35, %v3906_v35  ;;  %v741_v41 = vmul.f32 0.0078125, %v721_v38  ;;  %v765_v42 = vmul.f32 %v3908_v36, %v3908_v36 }
 0x15f   : > { %779 = vadd.xlane.f32.xlu1 %v764_v34  ;;  %777 = vadd.xlane.f32.xlu0 %v763_v40  ;;  %v3914_v43 = vsub.f32 %v699_v4, %v740_v39  ;;  %v3916_v44 = vsub.f32 %v700_v5, %v741_v41  ;;  %v2948_v4 = vpack.c.bf16 %v898_v0, %v897_v63 }
 0x160   : > { %v723_v45 = vpop.xlane.xlu0 %722  ;;  %v725_v46 = vpop.xlane.xlu1 %724 }
 0x161   : > { %v742_v47 = vmul.f32 0.0078125, %v723_v45  ;;  %v766_v48 = vmul.f32 %v3914_v43, %v3914_v43  ;;  %v743_v49 = vmul.f32 0.0078125, %v725_v46  ;;  %v767_v50 = vmul.f32 %v3916_v44, %v3916_v44  ;;  %2949 = vmatpush3.bf16.msra.mxu0 %v2948_v4 }
 0x162   : > { %2950 = vmatprep.subr.bf16.mxu0 %v3518_v16 }
 0x163   : > { %781 = vadd.xlane.f32.xlu0 %v765_v42  ;;  %783 = vadd.xlane.f32.xlu1 %v766_v48  ;;  %v3923_v51 = vsub.f32 %v3867_v6, %v742_v47  ;;  %v3926_v52 = vsub.f32 %v3870_v7, %v743_v49 }
 0x164   : > { %v727_v53 = vpop.xlane.xlu0 %726  ;;  %v729_v54 = vpop.xlane.xlu1 %728 }
 0x165   : > { %v744_v55 = vmul.f32 0.0078125, %v727_v53  ;;  %v768_v56 = vmul.f32 %v3923_v51, %v3923_v51  ;;  %v745_v57 = vmul.f32 0.0078125, %v729_v54  ;;  %v769_v58 = vmul.f32 %v3926_v52, %v3926_v52  ;;  %2952 = vmatpush3.bf16.msra.mxu0 %v2951_v17 }
 0x166   : > { %2953 = vmatprep.subr.bf16.mxu0 %v3518_v16 }
 0x167   : > { %785 = vadd.xlane.f32.xlu0 %v767_v50  ;;  %787 = vadd.xlane.f32.xlu1 %v768_v56  ;;  %v3933_v59 = vsub.f32 %v3875_v8, %v744_v55  ;;  %v3936_v60 = vsub.f32 %v3878_v9, %v745_v57  ;;  %v3968_v55 = vld [vmem:[%s5137_s16] ss:$0 sm:$0xff]  ;;  %s5139_s16 = sld [smem:[#allocation25_spill]] }
 0x168   : > { %v731_v61 = vpop.xlane.xlu0 %730  ;;  %v733_v62 = vpop.xlane.xlu1 %732 }
 0x169   : > { %v746_v1 = vmul.f32 0.0078125, %v731_v61  ;;  %v770_v2 = vmul.f32 %v3933_v59, %v3933_v59  ;;  %v747_v3 = vmul.f32 0.0078125, %v733_v62  ;;  %v771_v5 = vmul.f32 %v3936_v60, %v3936_v60  ;;  %2955 = vmatpush3.bf16.msra.mxu0 %v2954_v21  ;;  %v3974_v62 = vld [vmem:[%s5138_s10] ss:$0 sm:$0xff]  ;;  %s5140_s10 = sld [smem:[#allocation26_spill]] }
 0x16a   : > { %2956 = vmatprep.subr.bf16.mxu0 %v3518_v16 }
 0x16b   : > { %789 = vadd.xlane.f32.xlu0 %v769_v58  ;;  %791 = vadd.xlane.f32.xlu1 %v770_v2  ;;  %v3943_v6 = vsub.f32 %v3883_v10, %v746_v1  ;;  %v3946_v7 = vsub.f32 %v3886_v11, %v747_v3 }
 0x16c   : > { %v735_v8 = vpop.xlane.xlu0 %734 }
 0x16d   : > { %v748_v9 = vmul.f32 0.0078125, %v735_v8  ;;  %v772_v13 = vmul.f32 %v3943_v6, %v3943_v6  ;;  %v773_v10 = vmul.f32 %v3946_v7, %v3946_v7  ;;  %2958 = vmatpush3.bf16.msra.mxu0 %v2957_v24 }
 0x16e   : > { %2959 = vmatprep.subr.bf16.mxu0 %v3518_v16 }
 0x16f   : > { %793 = vadd.xlane.f32.xlu0 %v771_v5  ;;  %795 = vadd.xlane.f32.xlu1 %v772_v13  ;;  %v3954_v18 = vsub.f32 %v3891_v12, %v748_v9  ;;  %v905_v12 = vld [vmem:[#allocation5 + $0x70] sm:$0xff] }
 0x170   : > { %v2960_v26 = vpack.c.bf16 %v906_v25, %v905_v12 }
 0x171   : > { %v774_v11 = vmul.f32 %v3954_v18, %v3954_v18 }
 0x172   : > { %2961 = vmatpush3.bf16.msra.mxu0 %v2960_v26 }
 0x173   : > { %797 = vadd.xlane.f32.xlu0 %v773_v10  ;;  %799 = vadd.xlane.f32.xlu1 %v774_v11 }
 0x174   : > { %2994 = vmatprep.subr.bf16.mxu0 %v3518_v16 }
 0x1e8   : > { %v776_v30 = vpop.xlane.xlu1 %775 }
 0x1e9   : > { %v801_v31 = vmul.f32 0.0078125, %v776_v30 }
 0x1eb   : > { %v814_v32 = vadd.f32 1e-05, %v801_v31 }
 0x1ec   : > { %v780_v33 = vpop.xlane.xlu1 %779  ;;  %v778_v34 = vpop.xlane.xlu0 %777 }
 0x1ed   : > { %3135 = vrsqrt.f32 %v814_v32  ;;  %v803_v37 = vmul.f32 0.0078125, %v780_v33  ;;  %v802_v38 = vmul.f32 0.0078125, %v778_v34 }
 0x1ef   : > { %v816_v39 = vadd.f32 1e-05, %v803_v37  ;;  %v815_v40 = vadd.f32 1e-05, %v802_v38 }
 0x1f0   : > { %v784_v41 = vpop.xlane.xlu1 %783  ;;  %v782_v42 = vpop.xlane.xlu0 %781 }
 0x1f1   : > { %3137 = vrsqrt.f32 %v816_v39  ;;  %v805_v45 = vmul.f32 0.0078125, %v784_v41  ;;  %v804_v46 = vmul.f32 0.0078125, %v782_v42 }
 0x1f2   : > { %3139 = vrsqrt.f32 %v815_v40 }
 0x1f3   : > { %v817_v47 = vadd.f32 1e-05, %v804_v46  ;;  %v818_v48 = vadd.f32 1e-05, %v805_v45 }
 0x1f4   : > { %v786_v49 = vpop.xlane.xlu0 %785  ;;  %v788_v50 = vpop.xlane.xlu1 %787 }
 0x1f5   : > { %v806_v53 = vmul.f32 0.0078125, %v786_v49  ;;  %3141 = vrsqrt.f32 %v817_v47  ;;  %v807_v56 = vmul.f32 0.0078125, %v788_v50 }
 0x1f6   : > { %3143 = vrsqrt.f32 %v818_v48 }
 0x1f7   : > { %v3136_v54 = vpop.eup %3135  ;;  %v819_v57 = vadd.f32 1e-05, %v806_v53  ;;  %v820_v2 = vadd.f32 1e-05, %v807_v56 }
 0x1f8   : > { %v840_v58 = vmul.f32 %v3136_v54, %v3898_v27  ;;  %v790_v61 = vpop.xlane.xlu0 %789  ;;  %v792_v5 = vpop.xlane.xlu1 %791 }
 0x1f9   : > { %3145 = vrsqrt.f32 %v819_v57  ;;  %v808_v3 = vmul.f32 0.0078125, %v790_v61  ;;  %v809_v14 = vmul.f32 0.0078125, %v792_v5 }
 0x1fa   : > { %v859_v63 = vmul.f32 %v3968_v55, %v840_v58  ;;  %3147 = vrsqrt.f32 %v820_v2 }
 0x1fb   : > { %v3138_v0 = vpop.eup %3137  ;;  %v821_v15 = vadd.f32 1e-05, %v808_v3  ;;  %v822_v19 = vadd.f32 1e-05, %v809_v14 }
 0x1fc   : > { %v3140_v1 = vpop.eup %3139  ;;  %v3978_v4 = vadd.f32 %v3974_v62, %v859_v63  ;;  %v842_v27 = vmul.f32 %v3138_v0, %v3900_v28  ;;  %v794_v17 = vpop.xlane.xlu0 %793 }
 0x1fd   : > { %v841_v8 = vmul.f32 %v3140_v1, %v3906_v35  ;;  %3149 = vrsqrt.f32 %v821_v15  ;;  %v810_v20 = vmul.f32 0.0078125, %v794_v17  ;;  %v796_v21 = vpop.xlane.xlu1 %795 }
 0x1fe   : > { %2758 = vmatmul.mubr.f32.vlgmr.msra.gmra.mrb[0].mxu0 %v3978_v4  ;;  %v861_v11 = vmul.f32 %v3968_v55, %v842_v27  ;;  %3151 = vrsqrt.f32 %v822_v19 }
 0x1ff   : > { %2760 = vmatprep.mubr.msk.f32.mxu0 %vm3519_vm0, %v3520_v29  ;;  %v860_v9 = vmul.f32 %v3968_v55, %v841_v8  ;;  %v3142_v13 = vpop.eup %3141  ;;  %v823_v25 = vadd.f32 1e-05, %v810_v20 }
 0x200   : > { %v3144_v35 = vpop.eup %3143  ;;  %v843_v28 = vmul.f32 %v3142_v13, %v3908_v36  ;;  %v3995_v22 = vadd.f32 %v3974_v62, %v861_v11  ;;  %v811_v36 = vmul.f32 0.0078125, %v796_v21  ;;  %v798_v26 = vpop.xlane.xlu0 %797 }
 0x201   : > { %v3987_v10 = vadd.f32 %v3974_v62, %v860_v9  ;;  %v844_v24 = vmul.f32 %v3144_v35, %v3914_v43  ;;  %3153 = vrsqrt.f32 %v823_v25  ;;  %v812_v34 = vmul.f32 0.0078125, %v798_v26  ;;  %v800_v37 = vpop.xlane.xlu1 %799 }
 0x202   : > { %v862_v23 = vmul.f32 %v3968_v55, %v843_v28  ;;  %v824_v43 = vadd.f32 1e-05, %v811_v36 }
 0x203   : > { %2761 = vmatmul.mubr.f32.gmra.mrb[2].mxu0 %v3987_v10  ;;  %v3146_v12 = vpop.eup %3145  ;;  %v863_v31 = vmul.f32 %v3968_v55, %v844_v24  ;;  %v825_v42 = vadd.f32 1e-05, %v812_v34 }
 0x204   : > { %2763 = vmatprep.mubr.msk.f32.mxu0 %vm3519_vm0, %v3520_v29  ;;  %v4003_v30 = vadd.f32 %v3974_v62, %v862_v23  ;;  %v845_v32 = vmul.f32 %v3146_v12, %v3916_v44  ;;  %v3148_v33 = vpop.eup %3147  ;;  %3155 = vrsqrt.f32 %v824_v43  ;;  %v813_v44 = vmul.f32 0.0078125, %v800_v37 }
 0x205   : > { %v4011_v38 = vadd.f32 %v3974_v62, %v863_v31  ;;  %v846_v40 = vmul.f32 %v3148_v33, %v3923_v51  ;;  %3157 = vrsqrt.f32 %v825_v42 }
 0x206   : > { %v864_v39 = vmul.f32 %v3968_v55, %v845_v32  ;;  %v826_v51 = vadd.f32 1e-05, %v813_v44 }
 0x207   : > { %2764 = vmatmul.mubr.f32.gmra.mrb[4].mxu0 %v3995_v22  ;;  %v3150_v41 = vpop.eup %3149  ;;  %v865_v46 = vmul.f32 %v3968_v55, %v846_v40 }
 0x208   : > { %2766 = vmatprep.mubr.msk.f32.mxu0 %vm3519_vm0, %v3520_v29  ;;  %v4019_v45 = vadd.f32 %v3974_v62, %v864_v39  ;;  %v847_v47 = vmul.f32 %v3150_v41, %v3926_v52  ;;  %v3152_v48 = vpop.eup %3151  ;;  %3159 = vrsqrt.f32 %v826_v51 }
 0x209   : > { %v4027_v49 = vadd.f32 %v3974_v62, %v865_v46  ;;  %v848_v53 = vmul.f32 %v3152_v48, %v3933_v59 }
 0x20a   : > { %v866_v50 = vmul.f32 %v3968_v55, %v847_v47 }
 0x20b   : > { %2767 = vmatmul.mubr.f32.gmra.mrb[6].mxu0 %v4003_v30  ;;  %v3154_v54 = vpop.eup %3153  ;;  %v867_v56 = vmul.f32 %v3968_v55, %v848_v53 }
 0x20c   : > { %2769 = vmatprep.mubr.msk.f32.mxu0 %vm3519_vm0, %v3520_v29  ;;  %v4035_v52 = vadd.f32 %v3974_v62, %v866_v50  ;;  %v849_v57 = vmul.f32 %v3154_v54, %v3936_v60 }
 0x20d   : > { %v4043_v59 = vadd.f32 %v3974_v62, %v867_v56 }
 0x20e   : > { %v3156_v58 = vpop.eup %3155  ;;  %v868_v61 = vmul.f32 %v3968_v55, %v849_v57 }
 0x20f   : > { %2770 = vmatmul.mubr.f32.gmra.mrb[8].mxu0 %v4011_v38  ;;  %v850_v63 = vmul.f32 %v3156_v58, %v3943_v6  ;;  %v3158_v0 = vpop.eup %3157 }
 0x210   : > { %2772 = vmatprep.mubr.msk.f32.mxu0 %vm3519_vm0, %v3520_v29  ;;  %v4051_v60 = vadd.f32 %v3974_v62, %v868_v61  ;;  %v851_v2 = vmul.f32 %v3158_v0, %v3946_v7  ;;  %v1254_v61 = vld [vmem:[#allocation7 + $0x8] sm:$0xff]  ;;  %v1253_v0 = vld [vmem:[#allocation7] sm:$0xff] }
 0x211   : > { %v869_v1 = vmul.f32 %v3968_v55, %v850_v63  ;;  %v1256_v63 = vld [vmem:[#allocation7 + $0x18] sm:$0xff] }
 0x212   : > { %v3160_v3 = vpop.eup %3159  ;;  %v870_v5 = vmul.f32 %v3968_v55, %v851_v2  ;;  %v1255_v2 = vld [vmem:[#allocation7 + $0x10] sm:$0xff] }
 0x213   : > { %2773 = vmatmul.mubr.f32.gmra.mrb[10].mxu0 %v4019_v45  ;;  %v4059_v6 = vadd.f32 %v3974_v62, %v869_v1  ;;  %v852_v8 = vmul.f32 %v3160_v3, %v3954_v18  ;;  %v2618_v18 = vld [vmem:[%s5072_s4] ss:$0 sm:$0xff]  ;;  %v2962_v1 = vpack.c.bf16 %v1256_v63, %v1254_v61  ;;  %v1258_v3 = vld [vmem:[#allocation7 + $0x28] sm:$0xff] }
 0x214   : > { %2775 = vmatprep.mubr.msk.f32.mxu0 %vm3519_vm0, %v3520_v29  ;;  %v4067_v7 = vadd.f32 %v3974_v62, %v870_v5  ;;  %v1260_v5 = vld [vmem:[#allocation7 + $0x38] sm:$0xff] }
 0x215   : > { %v871_v27 = vmul.f32 %v3968_v55, %v852_v8  ;;  %v2964_v8 = vpack.c.bf16 %v1255_v2, %v1253_v0  ;;  %2963 = vmatprep.subr.bf16.mxu1 %v2962_v1  ;;  %v1268_v0 = vld [vmem:[#allocation7 + $0x78] sm:$0xff] }
 0x217   : > { %2776 = vmatmul.mubr.f32.gmra.mrb[12].mxu0 %v4027_v49  ;;  %v4074_v9 = vadd.f32 %v3974_v62, %v871_v27  ;;  %v2966_v27 = vpack.c.bf16 %v1260_v5, %v1258_v3  ;;  %2965 = vmatpush1.bf16.msra.mxu1 %v2964_v8  ;;  %v1265_v5 = vld [vmem:[#allocation7 + $0x60] sm:$0xff]  ;;  %v1267_v8 = vld [vmem:[#allocation7 + $0x70] sm:$0xff] }
 0x218   : > { %2778 = vmatprep.mubr.msk.f32.mxu0 %vm3519_vm0, %v3520_v29 }
 0x219   : > { %2967 = vmatprep.subr.bf16.mxu1 %v2966_v27  ;;  %v2976_v27 = vpack.c.bf16 %v1267_v8, %v1265_v5  ;;  %v1281_v8 = vld [vmem:[#allocation7 + $0xe0] sm:$0xff] }
 0x21b   : > { %2779 = vmatmul.mubr.f32.gmra.mrb[14].mxu0 %v4035_v52 }
 0x21c   : > { %2781 = vmatprep.mubr.msk.f32.mxu0 %vm3519_vm0, %v3520_v29 }
 0x21f   : > { %2782 = vmatmul.mubr.f32.gmra.mrb[16].mxu0 %v4043_v59 }
 0x220   : > { %2784 = vmatprep.mubr.msk.f32.mxu0 %vm3519_vm0, %v3520_v29 }
 0x223   : > { %2785 = vmatmul.mubr.f32.gmra.mrb[18].mxu0 %v4051_v60 }
 0x224   : > { %2787 = vmatprep.mubr.msk.f32.mxu0 %vm3519_vm0, %v3520_v29 }
 0x227   : > { %2788 = vmatmul.mubr.f32.gmra.mrb[20].mxu0 %v4059_v6 }
 0x228   : > { %2790 = vmatprep.mubr.msk.f32.mxu0 %vm3519_vm0, %v3520_v29 }
 0x22b   : > { %2791 = vmatmul.mubr.f32.gmra.mrb[22].mxu0 %v4067_v7 }
 0x22c   : > { %2793 = vmatprep.mubr.msk.f32.mxu0 %vm3519_vm0, %v3520_v29 }
 0x22f   : > { %2794 = vmatmul.mubr.f32.gmra.mrb[24].mxu0 %v4074_v9 }
 0x230   : > { %2828 = vmatprep.mubr.msk.f32.mxu0 %vm3519_vm0, %v3520_v29 }
 0x2d1   : > { %v980_v13 = vpop.f32.mrb[0].mxu0 }
 0x2d2   : > { %v4082_v14 = vadd.f32 %v2618_v18, %v980_v13  ;;  %v2759_v55 = vpop.f32.mrb[1].mxu0  ;;  %v1257_v13 = vld [vmem:[#allocation7 + $0x20] sm:$0xff] }
 0x2d3   : > { %v1259_v55 = vld [vmem:[#allocation7 + $0x30] sm:$0xff] }
 0x2d4   : > { %1046 = vadd.xlane.f32.xlu0 %v4082_v14 }
 0x2d6   : > { %v985_v15 = vpop.f32.mrb[2].mxu0 }
 0x2d7   : > { %v4085_v17 = vadd.f32 %v2618_v18, %v985_v15  ;;  %v2762_v62 = vpop.f32.mrb[3].mxu0  ;;  %v2968_v15 = vpack.c.bf16 %v1259_v55, %v1257_v13  ;;  %v1270_v55 = vld [vmem:[#allocation7 + $0x88] sm:$0xff] }
 0x2d9   : > { %1048 = vadd.xlane.f32.xlu1 %v4085_v17  ;;  %2969 = vmatpush1.bf16.msra.mxu1 %v2968_v15  ;;  %v1272_v15 = vld [vmem:[#allocation7 + $0x98] sm:$0xff] }
 0x2da   : > { %v990_v11 = vpop.f32.mrb[4].mxu0 }
 0x2db   : > { %v4088_v35 = vadd.f32 %v2618_v18, %v990_v11  ;;  %v2765_v28 = vpop.f32.mrb[5].mxu0 }
 0x2dd   : > { %1050 = vadd.xlane.f32.xlu0 %v4088_v35 }
 0x2de   : > { %v995_v19 = vpop.f32.mrb[6].mxu0 }
 0x2df   : > { %v4091_v20 = vadd.f32 %v2618_v18, %v995_v19  ;;  %v2768_v21 = vpop.f32.mrb[7].mxu0 }
 0x2e1   : > { %1052 = vadd.xlane.f32.xlu1 %v4091_v20 }
 0x2e2   : > { %v1000_v23 = vpop.f32.mrb[8].mxu0 }
 0x2e3   : > { %v4094_v24 = vadd.f32 %v2618_v18, %v1000_v23  ;;  %v2771_v12 = vpop.f32.mrb[9].mxu0 }
 0x2e5   : > { %1054 = vadd.xlane.f32.xlu0 %v4094_v24 }
 0x2e6   : > { %v1005_v36 = vpop.f32.mrb[10].mxu0 }
 0x2e7   : > { %v4097_v25 = vadd.f32 %v2618_v18, %v1005_v36  ;;  %v2774_v26 = vpop.f32.mrb[11].mxu0 }
 0x2e9   : > { %1056 = vadd.xlane.f32.xlu1 %v4097_v25 }
 0x2ea   : > { %v1010_v31 = vpop.f32.mrb[12].mxu0 }
 0x2eb   : > { %v4100_v32 = vadd.f32 %v2618_v18, %v1010_v31  ;;  %v2777_v33 = vpop.f32.mrb[13].mxu0 }
 0x2ed   : > { %1058 = vadd.xlane.f32.xlu0 %v4100_v32 }
 0x2ee   : > { %v1015_v43 = vpop.f32.mrb[14].mxu0 }
 0x2ef   : > { %v4103_v34 = vadd.f32 %v2618_v18, %v1015_v43  ;;  %v2780_v37 = vpop.f32.mrb[15].mxu0 }
 0x2f1   : > { %1060 = vadd.xlane.f32.xlu1 %v4103_v34 }
 0x2f2   : > { %v1020_v39 = vpop.f32.mrb[16].mxu0 }
 0x2f3   : > { %v4106_v40 = vadd.f32 %v2618_v18, %v1020_v39  ;;  %v2783_v41 = vpop.f32.mrb[17].mxu0 }
 0x2f5   : > { %1062 = vadd.xlane.f32.xlu0 %v4106_v40 }
 0x2f6   : > { %v1025_v44 = vpop.f32.mrb[18].mxu0 }
 0x2f7   : > { %v4109_v42 = vadd.f32 %v2618_v18, %v1025_v44  ;;  %v2786_v46 = vpop.f32.mrb[19].mxu0 }
 0x2f8   : > { %v1262_v46 = vld [vmem:[#allocation7 + $0x48] sm:$0xff] }
 0x2f9   : > { %1064 = vadd.xlane.f32.xlu1 %v4109_v42 }
 0x2fa   : > { %v1030_v47 = vpop.f32.mrb[20].mxu0 }
 0x2fb   : > { %v4112_v48 = vadd.f32 %v2618_v18, %v1030_v47  ;;  %v2789_v51 = vpop.f32.mrb[21].mxu0  ;;  %v1264_v47 = vld [vmem:[#allocation7 + $0x58] sm:$0xff] }
 0x2fd   : > { %1066 = vadd.xlane.f32.xlu0 %v4112_v48 }
 0x2fe   : > { %v1035_v50 = vpop.f32.mrb[22].mxu0 }
 0x2ff   : > { %v4115_v53 = vadd.f32 %v2618_v18, %v1035_v50  ;;  %v2792_v54 = vpop.f32.mrb[23].mxu0 }
 0x300   : > { %v2970_v54 = vpack.c.bf16 %v1264_v47, %v1262_v46  ;;  %v1278_v47 = vld [vmem:[#allocation7 + $0xc8] sm:$0xff] }
 0x301   : > { %1068 = vadd.xlane.f32.xlu1 %v4115_v53 }
 0x302   : > { %v1040_v56 = vpop.f32.mrb[24].mxu0  ;;  %2971 = vmatprep.subr.bf16.mxu1 %v2970_v54 }
 0x303   : > { %v4118_v57 = vadd.f32 %v2618_v18, %v1040_v56  ;;  %v2795_v58 = vpop.f32.mrb[25].mxu0  ;;  %v1261_v56 = vld [vmem:[#allocation7 + $0x40] sm:$0xff] }
 0x305   : > { %1070 = vadd.xlane.f32.xlu0 %v4118_v57 }
 0x361   : > { %v1047_v18 = vpop.xlane.xlu0 %1046 }
 0x362   : > { %v1072_v62 = vmul.f32 0.0078125, %v1047_v18 }
 0x364   : > { %v4122_v11 = vsub.f32 %v4082_v14, %v1072_v62 }
 0x366   : > { %v1049_v28 = vpop.xlane.xlu1 %1048  ;;  %v1098_v19 = vmul.f32 %v4122_v11, %v4122_v11 }
 0x367   : > { %v1073_v21 = vmul.f32 0.0078125, %v1049_v28  ;;  %v2978_v28 = vpack.c.bf16 %v1272_v15, %v1270_v55 }
 0x368   : > { %1111 = vadd.xlane.f32.xlu1 %v1098_v19  ;;  %v1269_v19 = vld [vmem:[#allocation7 + $0x80] sm:$0xff] }
 0x369   : > { %v4127_v23 = vsub.f32 %v4085_v17, %v1073_v21  ;;  %v1271_v21 = vld [vmem:[#allocation7 + $0x90] sm:$0xff] }
 0x36a   : > { %v1051_v12 = vpop.xlane.xlu0 %1050 }
 0x36b   : > { %v1074_v36 = vmul.f32 0.0078125, %v1051_v12  ;;  %v1099_v26 = vmul.f32 %v4127_v23, %v4127_v23  ;;  %v2980_v12 = vpack.c.bf16 %v1271_v21, %v1269_v19 }
 0x36d   : > { %1113 = vadd.xlane.f32.xlu0 %v1099_v26  ;;  %v4132_v31 = vsub.f32 %v4088_v35, %v1074_v36  ;;  %v1274_v26 = vld [vmem:[#allocation7 + $0xa8] sm:$0xff] }
 0x36e   : > { %v1053_v14 = vpop.xlane.xlu1 %1052 }
 0x36f   : > { %v1075_v33 = vmul.f32 0.0078125, %v1053_v14  ;;  %v1100_v43 = vmul.f32 %v4132_v31, %v4132_v31  ;;  %v1276_v14 = vld [vmem:[#allocation7 + $0xb8] sm:$0xff] }
 0x371   : > { %1115 = vadd.xlane.f32.xlu1 %v1100_v43  ;;  %v4137_v37 = vsub.f32 %v4091_v20, %v1075_v33  ;;  %v1263_v20 = vld [vmem:[#allocation7 + $0x50] sm:$0xff] }
 0x372   : > { %v1055_v17 = vpop.xlane.xlu0 %1054  ;;  %v2972_v58 = vpack.c.bf16 %v1263_v20, %v1261_v56  ;;  %v1277_v20 = vld [vmem:[#allocation7 + $0xc0] sm:$0xff] }
 0x373   : > { %v1076_v39 = vmul.f32 0.0078125, %v1055_v17  ;;  %v1101_v41 = vmul.f32 %v4137_v37, %v4137_v37  ;;  %v2982_v17 = vpack.c.bf16 %v1276_v14, %v1274_v26 }
 0x374   : > { %2973 = vmatpush1.bf16.msra.mxu1 %v2972_v58  ;;  %v1279_v58 = vld [vmem:[#allocation7 + $0xd0] sm:$0xff] }
 0x375   : > { %1117 = vadd.xlane.f32.xlu0 %v1101_v41  ;;  %v4142_v44 = vsub.f32 %v4094_v24, %v1076_v39  ;;  %v1266_v24 = vld [vmem:[#allocation7 + $0x68] sm:$0xff]  ;;  %v1273_v39 = vld [vmem:[#allocation7 + $0xa0] sm:$0xff]  ;;  %v1275_v41 = vld [vmem:[#allocation7 + $0xb0] sm:$0xff] }
 0x376   : > { %v1057_v35 = vpop.xlane.xlu1 %1056  ;;  %v2974_v3 = vpack.c.bf16 %v1268_v0, %v1266_v24  ;;  %v1282_v0 = vld [vmem:[#allocation7 + $0xe8] sm:$0xff] }
 0x377   : > { %v1077_v51 = vmul.f32 0.0078125, %v1057_v35  ;;  %v1102_v50 = vmul.f32 %v4142_v44, %v4142_v44  ;;  %v2984_v35 = vpack.c.bf16 %v1275_v41, %v1273_v39 }
 0x378   : > { %2975 = vmatprep.subr.bf16.mxu1 %v2974_v3 }
 0x379   : > { %1119 = vadd.xlane.f32.xlu1 %v1102_v50  ;;  %v4147_v61 = vsub.f32 %v4097_v25, %v1077_v51  ;;  %2977 = vmatpush1.bf16.msra.mxu1 %v2976_v27  ;;  %v1280_v51 = vld [vmem:[#allocation7 + $0xd8] sm:$0xff]  ;;  %v1283_v27 = vld [vmem:[#allocation7 + $0xf0] sm:$0xff] }
 0x37a   : > { %v1059_v63 = vpop.xlane.xlu0 %1058  ;;  %2979 = vmatprep.subr.bf16.mxu1 %v2978_v28  ;;  %v2986_v56 = vpack.c.bf16 %v1280_v51, %v1278_v47  ;;  %v4190_v47 = vld [vmem:[%s5073_s5] ss:$0 sm:$0xff] }
 0x37b   : > { %v1078_v1 = vmul.f32 0.0078125, %v1059_v63  ;;  %v1103_v2 = vmul.f32 %v4147_v61, %v4147_v61  ;;  %v2988_v63 = vpack.c.bf16 %v1279_v58, %v1277_v20 }
 0x37d   : > { %1121 = vadd.xlane.f32.xlu0 %v1103_v2  ;;  %v4152_v13 = vsub.f32 %v4100_v32, %v1078_v1  ;;  %2981 = vmatpush1.bf16.msra.mxu1 %v2980_v12  ;;  %v1284_v1 = vld [vmem:[#allocation7 + $0xf8] sm:$0xff] }
 0x37e   : > { %v1061_v25 = vpop.xlane.xlu1 %1060  ;;  %2983 = vmatprep.subr.bf16.mxu1 %v2982_v17  ;;  %v2990_v5 = vpack.c.bf16 %v1284_v1, %v1282_v0 }
 0x37f   : > { %v1079_v18 = vmul.f32 0.0078125, %v1061_v25  ;;  %v1104_v62 = vmul.f32 %v4152_v13, %v4152_v13  ;;  %v2992_v25 = vpack.c.bf16 %v1283_v27, %v1281_v8 }
 0x381   : > { %1123 = vadd.xlane.f32.xlu1 %v1104_v62  ;;  %v4157_v36 = vsub.f32 %v4103_v34, %v1079_v18  ;;  %2985 = vmatpush1.bf16.msra.mxu1 %v2984_v35 }
 0x382   : > { %v1063_v32 = vpop.xlane.xlu0 %1062  ;;  %2987 = vmatprep.subr.bf16.mxu1 %v2986_v56  ;;  %v4196_v56 = vld [vmem:[%s5074_s6] ss:$0 sm:$0xff] }
 0x383   : > { %v1080_v33 = vmul.f32 0.0078125, %v1063_v32  ;;  %v1105_v43 = vmul.f32 %v4157_v36, %v4157_v36 }
 0x385   : > { %1125 = vadd.xlane.f32.xlu0 %v1105_v43  ;;  %v4162_v46 = vsub.f32 %v4106_v40, %v1080_v33  ;;  %2989 = vmatpush1.bf16.msra.mxu1 %v2988_v63 }
 0x386   : > { %v1065_v34 = vpop.xlane.xlu1 %1064  ;;  %2991 = vmatprep.subr.bf16.mxu1 %v2990_v5 }
 0x387   : > { %v1081_v50 = vmul.f32 0.0078125, %v1065_v34  ;;  %v1106_v54 = vmul.f32 %v4162_v46, %v4162_v46 }
 0x389   : > { %1127 = vadd.xlane.f32.xlu1 %v1106_v54  ;;  %v4167_v24 = vsub.f32 %v4109_v42, %v1081_v50  ;;  %2993 = vmatpush1.bf16.msra.mxu1 %v2992_v25 }
 0x38a   : > { %v1067_v40 = vpop.xlane.xlu0 %1066  ;;  %3018 = vmatprep.subr.bf16.mxu1 %v3518_v16 }
 0x38b   : > { %v1082_v2 = vmul.f32 0.0078125, %v1067_v40  ;;  %v1107_v3 = vmul.f32 %v4167_v24, %v4167_v24 }
 0x38d   : > { %1129 = vadd.xlane.f32.xlu0 %v1107_v3  ;;  %v4172_v55 = vsub.f32 %v4112_v48, %v1082_v2 }
 0x38e   : > { %v1069_v42 = vpop.xlane.xlu1 %1068 }
 0x38f   : > { %v1083_v15 = vmul.f32 0.0078125, %v1069_v42  ;;  %v1108_v18 = vmul.f32 %v4172_v55, %v4172_v55 }
 0x391   : > { %1131 = vadd.xlane.f32.xlu1 %v1108_v18  ;;  %v4178_v62 = vsub.f32 %v4115_v53, %v1083_v15 }
 0x392   : > { %v1071_v28 = vpop.xlane.xlu0 %1070 }
 0x393   : > { %v1084_v19 = vmul.f32 0.0078125, %v1071_v28  ;;  %v1109_v21 = vmul.f32 %v4178_v62, %v4178_v62 }
 0x395   : > { %1133 = vadd.xlane.f32.xlu0 %v1109_v21  ;;  %v4183_v48 = vsub.f32 %v4118_v57, %v1084_v19 }
 0x397   : > { %v1110_v12 = vmul.f32 %v4183_v48, %v4183_v48 }
 0x399   : > { %1135 = vadd.xlane.f32.xlu1 %v1110_v12 }
 0x3f5   : > { %v1112_v32 = vpop.xlane.xlu1 %1111 }
 0x3f6   : > { %v1137_v26 = vmul.f32 0.0078125, %v1112_v32 }
 0x3f8   : > { %v1150_v14 = vadd.f32 1e-05, %v1137_v26 }
 0x3fa   : > { %3161 = vrsqrt.f32 %v1150_v14  ;;  %v1114_v33 = vpop.xlane.xlu0 %1113 }
 0x3fb   : > { %v1138_v53 = vmul.f32 0.0078125, %v1114_v33 }
 0x3fd   : > { %v1151_v43 = vadd.f32 1e-05, %v1138_v53 }
 0x3fe   : > { %v1116_v17 = vpop.xlane.xlu1 %1115 }
 0x3ff   : > { %3163 = vrsqrt.f32 %v1151_v43  ;;  %v1139_v39 = vmul.f32 0.0078125, %v1116_v17 }
 0x401   : > { %v1152_v41 = vadd.f32 1e-05, %v1139_v39 }
 0x402   : > { %v1118_v35 = vpop.xlane.xlu0 %1117 }
 0x403   : > { %3165 = vrsqrt.f32 %v1152_v41  ;;  %v1140_v34 = vmul.f32 0.0078125, %v1118_v35 }
 0x404   : > { %v3162_v57 = vpop.eup %3161 }
 0x405   : > { %v1153_v51 = vadd.f32 1e-05, %v1140_v34  ;;  %v1176_v50 = vmul.f32 %v3162_v57, %v4122_v11 }
 0x406   : > { %v1120_v54 = vpop.xlane.xlu1 %1119 }
 0x407   : > { %3167 = vrsqrt.f32 %v1153_v51  ;;  %v1141_v20 = vmul.f32 0.0078125, %v1120_v54  ;;  %v1195_v58 = vmul.f32 %v4190_v47, %v1176_v50 }
 0x409   : > { %v3164_v63 = vpop.eup %3163  ;;  %v1154_v40 = vadd.f32 1e-05, %v1141_v20  ;;  %v1214_v0 = vadd.f32 %v4196_v56, %v1195_v58 }
 0x40a   : > { %v1122_v1 = vpop.xlane.xlu0 %1121  ;;  %v1177_v2 = vmul.f32 %v3164_v63, %v4127_v23 }
 0x40b   : > { %3169 = vrsqrt.f32 %v1154_v40  ;;  %v1142_v3 = vmul.f32 0.0078125, %v1122_v1  ;;  %v1227_v11 = vmax.f32 %v1214_v0, 0.0 }
 0x40c   : > { %v1196_v5 = vmul.f32 %v4190_v47, %v1177_v2 }
 0x40d   : > { %v3166_v8 = vpop.eup %3165  ;;  %v1155_v27 = vadd.f32 1e-05, %v1142_v3  ;;  %v1240_v25 = vadd.f32 %v1227_v11, %v3978_v4 }
 0x40e   : > { %v1124_v42 = vpop.xlane.xlu1 %1123  ;;  %v1215_v15 = vadd.f32 %v4196_v56, %v1196_v5  ;;  %v1178_v18 = vmul.f32 %v3166_v8, %v4132_v31 }
 0x40f   : > { %3171 = vrsqrt.f32 %v1155_v27  ;;  %v1143_v28 = vmul.f32 0.0078125, %v1124_v42  ;;  %1362 = vmatmul.mubr.f32.vlgmr.msra.gmra.mrb[0].mxu1 %v1240_v25 }
 0x410   : > { %1367 = vmatprep.mubr.f32.mxu1 %v3520_v29  ;;  %v1228_v23 = vmax.f32 %v1215_v15, 0.0  ;;  %v1197_v19 = vmul.f32 %v4190_v47, %v1178_v18 }
 0x411   : > { %v3168_v21 = vpop.eup %3167  ;;  %v1156_v12 = vadd.f32 1e-05, %v1143_v28 }
 0x412   : > { %v1126_v32 = vpop.xlane.xlu0 %1125  ;;  %v1241_v26 = vadd.f32 %v1228_v23, %v3987_v10  ;;  %v1216_v4 = vadd.f32 %v4196_v56, %v1197_v19  ;;  %v1179_v14 = vmul.f32 %v3168_v21, %v4137_v37 }
 0x413   : > { %3173 = vrsqrt.f32 %v1156_v12  ;;  %v1144_v33 = vmul.f32 0.0078125, %v1126_v32 }
 0x414   : > { %1368 = vmatmul.mubr.f32.gmra.mrb[2].mxu1 %v1241_v26  ;;  %v1229_v31 = vmax.f32 %v1216_v4, 0.0  ;;  %v1198_v53 = vmul.f32 %v4190_v47, %v1179_v14 }
 0x415   : > { %v3170_v43 = vpop.eup %3169  ;;  %v1157_v17 = vadd.f32 1e-05, %v1144_v33  ;;  %1373 = vmatprep.mubr.f32.mxu1 %v3520_v29 }
 0x416   : > { %v1128_v39 = vpop.xlane.xlu1 %1127  ;;  %v1242_v41 = vadd.f32 %v1229_v31, %v3995_v22  ;;  %v1217_v35 = vadd.f32 %v4196_v56, %v1198_v53  ;;  %v1180_v10 = vmul.f32 %v3170_v43, %v4142_v44 }
 0x417   : > { %3175 = vrsqrt.f32 %v1157_v17  ;;  %v1145_v34 = vmul.f32 0.0078125, %v1128_v39 }
 0x418   : > { %1374 = vmatmul.mubr.f32.gmra.mrb[4].mxu1 %v1242_v41  ;;  %v1230_v37 = vmax.f32 %v1217_v35, 0.0  ;;  %v1199_v57 = vmul.f32 %v4190_v47, %v1180_v10 }
 0x419   : > { %v3172_v51 = vpop.eup %3171  ;;  %v1158_v50 = vadd.f32 1e-05, %v1145_v34  ;;  %1379 = vmatprep.mubr.f32.mxu1 %v3520_v29 }
 0x41a   : > { %v1130_v54 = vpop.xlane.xlu0 %1129  ;;  %v1243_v20 = vadd.f32 %v1230_v37, %v4003_v30  ;;  %v1218_v58 = vadd.f32 %v4196_v56, %v1199_v57  ;;  %v1181_v22 = vmul.f32 %v3172_v51, %v4147_v61 }
 0x41b   : > { %3177 = vrsqrt.f32 %v1158_v50  ;;  %v1146_v63 = vmul.f32 0.0078125, %v1130_v54 }
 0x41c   : > { %1380 = vmatmul.mubr.f32.gmra.mrb[6].mxu1 %v1243_v20  ;;  %v1231_v44 = vmax.f32 %v1218_v58, 0.0  ;;  %v1200_v40 = vmul.f32 %v4190_v47, %v1181_v22 }
 0x41d   : > { %v3174_v0 = vpop.eup %3173  ;;  %v1159_v1 = vadd.f32 1e-05, %v1146_v63  ;;  %1385 = vmatprep.mubr.f32.mxu1 %v3520_v29 }
 0x41e   : > { %v1132_v2 = vpop.xlane.xlu1 %1131  ;;  %v1244_v3 = vadd.f32 %v1231_v44, %v4011_v38  ;;  %v1219_v11 = vadd.f32 %v4196_v56, %v1200_v40  ;;  %v1182_v30 = vmul.f32 %v3174_v0, %v4152_v13 }
 0x41f   : > { %3179 = vrsqrt.f32 %v1159_v1  ;;  %v1147_v5 = vmul.f32 0.0078125, %v1132_v2 }
 0x420   : > { %1386 = vmatmul.mubr.f32.gmra.mrb[8].mxu1 %v1244_v3  ;;  %v1232_v61 = vmax.f32 %v1219_v11, 0.0  ;;  %v1201_v8 = vmul.f32 %v4190_v47, %v1182_v30 }
 0x421   : > { %v3176_v27 = vpop.eup %3175  ;;  %v1160_v25 = vadd.f32 1e-05, %v1147_v5  ;;  %1391 = vmatprep.mubr.f32.mxu1 %v3520_v29 }
 0x422   : > { %v1134_v42 = vpop.xlane.xlu0 %1133  ;;  %v1245_v15 = vadd.f32 %v1232_v61, %v4019_v45  ;;  %v1220_v18 = vadd.f32 %v4196_v56, %v1201_v8  ;;  %v1183_v38 = vmul.f32 %v3176_v27, %v4157_v36 }
 0x423   : > { %3181 = vrsqrt.f32 %v1160_v25  ;;  %v1148_v28 = vmul.f32 0.0078125, %v1134_v42 }
 0x424   : > { %1392 = vmatmul.mubr.f32.gmra.mrb[10].mxu1 %v1245_v15  ;;  %v1233_v13 = vmax.f32 %v1220_v18, 0.0  ;;  %v1202_v23 = vmul.f32 %v4190_v47, %v1183_v38 }
 0x425   : > { %v3178_v19 = vpop.eup %3177  ;;  %v1161_v21 = vadd.f32 1e-05, %v1148_v28  ;;  %1397 = vmatprep.mubr.f32.mxu1 %v3520_v29 }
 0x426   : > { %v1136_v12 = vpop.xlane.xlu1 %1135  ;;  %v1246_v32 = vadd.f32 %v1233_v13, %v4027_v49  ;;  %v1221_v26 = vadd.f32 %v4196_v56, %v1202_v23  ;;  %v1184_v45 = vmul.f32 %v3178_v19, %v4162_v46 }
 0x427   : > { %3183 = vrsqrt.f32 %v1161_v21  ;;  %v1149_v4 = vmul.f32 0.0078125, %v1136_v12 }
 0x428   : > { %1398 = vmatmul.mubr.f32.gmra.mrb[12].mxu1 %v1246_v32  ;;  %v1234_v36 = vmax.f32 %v1221_v26, 0.0  ;;  %v1203_v14 = vmul.f32 %v4190_v47, %v1184_v45 }
 0x429   : > { %v3180_v33 = vpop.eup %3179  ;;  %v1162_v31 = vadd.f32 1e-05, %v1149_v4  ;;  %1403 = vmatprep.mubr.f32.mxu1 %v3520_v29 }
 0x42a   : > { %v1247_v53 = vadd.f32 %v1234_v36, %v4035_v52  ;;  %v1222_v43 = vadd.f32 %v4196_v56, %v1203_v14  ;;  %v1185_v49 = vmul.f32 %v3180_v33, %v4167_v24 }
 0x42b   : > { %3185 = vrsqrt.f32 %v1162_v31 }
 0x42c   : > { %1404 = vmatmul.mubr.f32.gmra.mrb[14].mxu1 %v1247_v53  ;;  %v1235_v17 = vmax.f32 %v1222_v43, 0.0  ;;  %v1204_v46 = vmul.f32 %v4190_v47, %v1185_v49 }
 0x42d   : > { %v3182_v39 = vpop.eup %3181  ;;  %1409 = vmatprep.mubr.f32.mxu1 %v3520_v29 }
 0x42e   : > { %v1248_v41 = vadd.f32 %v1235_v17, %v4043_v59  ;;  %v1223_v35 = vadd.f32 %v4196_v56, %v1204_v46  ;;  %v1186_v10 = vmul.f32 %v3182_v39, %v4172_v55 }
 0x430   : > { %1410 = vmatmul.mubr.f32.gmra.mrb[16].mxu1 %v1248_v41  ;;  %v1236_v52 = vmax.f32 %v1223_v35, 0.0  ;;  %v1205_v34 = vmul.f32 %v4190_v47, %v1186_v10 }
 0x431   : > { %v3184_v37 = vpop.eup %3183  ;;  %1415 = vmatprep.mubr.f32.mxu1 %v3520_v29 }
 0x432   : > { %v1249_v24 = vadd.f32 %v1236_v52, %v4051_v60  ;;  %v1224_v57 = vadd.f32 %v4196_v56, %v1205_v34  ;;  %v1187_v51 = vmul.f32 %v3184_v37, %v4178_v62  ;;  %v1665_v52 = vld [vmem:[#allocation8] sm:$0xff]  ;;  %v1666_v34 = vld [vmem:[#allocation8 + $0x8] sm:$0xff]  ;;  %v1667_v37 = vld [vmem:[#allocation8 + $0x10] sm:$0xff] }
 0x434   : > { %1416 = vmatmul.mubr.f32.gmra.mrb[18].mxu1 %v1249_v24  ;;  %v1237_v50 = vmax.f32 %v1224_v57, 0.0  ;;  %v1206_v59 = vmul.f32 %v4190_v47, %v1187_v51  ;;  %v2995_v24 = vpack.c.bf16 %v1666_v34, %v1665_v52  ;;  %v1668_v57 = vld [vmem:[#allocation8 + $0x18] sm:$0xff] }
 0x435   : > { %v3186_v54 = vpop.eup %3185  ;;  %1421 = vmatprep.mubr.f32.mxu1 %v3520_v29  ;;  %v2998_v51 = vpack.c.bf16 %v1668_v57, %v1667_v37 }
 0x436   : > { %v1250_v55 = vadd.f32 %v1237_v50, %v4059_v6  ;;  %v1225_v20 = vadd.f32 %v4196_v56, %v1206_v59  ;;  %v1188_v58 = vmul.f32 %v3186_v54, %v4183_v48  ;;  %v1287_v48 = vlaneseq  ;;  %2996 = vmatpush3.bf16.msra.mxu0 %v2995_v24  ;;  %v1669_v50 = vld [vmem:[#allocation8 + $0x20] sm:$0xff]  ;;  %v1670_v59 = vld [vmem:[#allocation8 + $0x28] sm:$0xff] }
 0x437   : > { %2997 = vmatprep.subr.bf16.mxu0 %v3518_v16  ;;  %v3001_v54 = vpack.c.bf16 %v1670_v59, %v1669_v50 }
 0x438   : > { %1422 = vmatmul.mubr.f32.gmra.mrb[20].mxu1 %v1250_v55  ;;  %v1238_v22 = vmax.f32 %v1225_v20, 0.0  ;;  %v1207_v60 = vmul.f32 %v4190_v47, %v1188_v58  ;;  %v4264_v40 = vshrl.u32 %v1287_v48, 7  ;;  %v1671_v55 = vld [vmem:[#allocation8 + $0x30] sm:$0xff]  ;;  %v1672_v20 = vld [vmem:[#allocation8 + $0x38] sm:$0xff] }
 0x439   : > { %1427 = vmatprep.mubr.f32.mxu1 %v3520_v29  ;;  %v3004_v58 = vpack.c.bf16 %v1672_v20, %v1671_v55 }
 0x43a   : > { %v1251_v62 = vadd.f32 %v1238_v22, %v4067_v7  ;;  %v1226_v63 = vadd.f32 %v4196_v56, %v1207_v60  ;;  %v1289_v47 = vsub.s32 0, %v4264_v40  ;;  %v4270_v7 = vld [vmem:[%s5076_s8] sm:$0x3]  ;;  %2999 = vmatpush3.bf16.msra.mxu0 %v2998_v51  ;;  %v1673_v22 = vld [vmem:[#allocation8 + $0x40] sm:$0xff]  ;;  %v1674_v60 = vld [vmem:[#allocation8 + $0x48] sm:$0xff] }
 0x43b   : > { %3000 = vmatprep.subr.bf16.mxu0 %v3518_v16 }
 0x43c   : > { %1428 = vmatmul.mubr.f32.gmra.mrb[22].mxu1 %v1251_v62  ;;  %v1239_v44 = vmax.f32 %v1226_v63, 0.0  ;;  %v1290_v56 = vrot.slane %v4270_v7, %v1289_v47  ;;  %v3007_v62 = vpack.c.bf16 %v1674_v60, %v1673_v22  ;;  %v4344_v63 = vand.u32 127, %v1287_v48 }
 0x43d   : > { %1433 = vmatprep.mubr.f32.mxu1 %v3520_v29 }
 0x43e   : > { %v1252_v6 = vadd.f32 %v1239_v44, %v4074_v9  ;;  %3002 = vmatpush3.bf16.msra.mxu0 %v3001_v54  ;;  %vm1496_vm1 = vcmp.lt.s32.totalorder %v4344_v63, 64  ;;  %vm1872_vm2 = vcmp.lt.s32.totalorder %v4344_v63, 32 }
 0x43f   : > { %3003 = vmatprep.subr.bf16.mxu0 %v3518_v16 }
 0x440   : > { %1434 = vmatmul.mubr.f32.gmra.mrb[24].mxu1 %v1252_v6 }
 0x441   : > { %2899 = vmatprep.mubr.msk.f32.mxu1 %vm3519_vm0, %v3520_v29 }
 0x442   : > { %3005 = vmatpush3.bf16.msra.mxu0 %v3004_v58 }
 0x443   : > { %3006 = vmatprep.subr.bf16.mxu0 %v3518_v16 }
 0x446   : > { %3008 = vmatpush3.bf16.msra.mxu0 %v3007_v62 }
 0x447   : > { %3009 = vmatprep.subr.bf16.mxu0 %v3518_v16 }
 0x4e2   : > { %v1363_v0 = vpop.f32.mrb[0].mxu1 }
 0x4e3   : > { %v4273_v1 = vadd.f32 %v1363_v0, %v1290_v56  ;;  %v4275_v9 = vpop.f32.mrb[1].mxu1 }
 0x4e5   : > { %1442 = vadd.xlane.f32.xlu0 %v4273_v1 }
 0x4e7   : > { %v1369_v2 = vpop.f32.mrb[2].mxu1 }
 0x4e8   : > { %v4278_v3 = vadd.f32 %v1369_v2, %v1290_v56  ;;  %v4280_v11 = vpop.f32.mrb[3].mxu1 }
 0x4ea   : > { %1444 = vadd.xlane.f32.xlu1 %v4278_v3 }
 0x4eb   : > { %v1375_v30 = vpop.f32.mrb[4].mxu1 }
 0x4ec   : > { %v4283_v5 = vadd.f32 %v1375_v30, %v1290_v56  ;;  %v4285_v61 = vpop.f32.mrb[5].mxu1 }
 0x4ee   : > { %1446 = vadd.xlane.f32.xlu0 %v4283_v5 }
 0x4ef   : > { %v1381_v8 = vpop.f32.mrb[6].mxu1 }
 0x4f0   : > { %v4288_v27 = vadd.f32 %v1381_v8, %v1290_v56  ;;  %v4290_v25 = vpop.f32.mrb[7].mxu1 }
 0x4f2   : > { %1448 = vadd.xlane.f32.xlu1 %v4288_v27 }
 0x4f3   : > { %v1387_v42 = vpop.f32.mrb[8].mxu1 }
 0x4f4   : > { %v4293_v15 = vadd.f32 %v1387_v42, %v1290_v56  ;;  %v4295_v18 = vpop.f32.mrb[9].mxu1 }
 0x4f6   : > { %1450 = vadd.xlane.f32.xlu0 %v4293_v15 }
 0x4f7   : > { %v1393_v38 = vpop.f32.mrb[10].mxu1 }
 0x4f8   : > { %v4298_v28 = vadd.f32 %v1393_v38, %v1290_v56  ;;  %v4300_v13 = vpop.f32.mrb[11].mxu1 }
 0x4fa   : > { %1452 = vadd.xlane.f32.xlu1 %v4298_v28 }
 0x4fb   : > { %v1399_v23 = vpop.f32.mrb[12].mxu1 }
 0x4fc   : > { %v4303_v19 = vadd.f32 %v1399_v23, %v1290_v56  ;;  %v4305_v21 = vpop.f32.mrb[13].mxu1 }
 0x4fe   : > { %1454 = vadd.xlane.f32.xlu0 %v4303_v19 }
 0x4ff   : > { %v1405_v12 = vpop.f32.mrb[14].mxu1 }
 0x500   : > { %v4308_v32 = vadd.f32 %v1405_v12, %v1290_v56  ;;  %v4310_v26 = vpop.f32.mrb[15].mxu1 }
 0x502   : > { %1456 = vadd.xlane.f32.xlu1 %v4308_v32 }
 0x503   : > { %v1411_v45 = vpop.f32.mrb[16].mxu1 }
 0x504   : > { %v4313_v4 = vadd.f32 %v1411_v45, %v1290_v56  ;;  %v4315_v36 = vpop.f32.mrb[17].mxu1 }
 0x506   : > { %1458 = vadd.xlane.f32.xlu0 %v4313_v4 }
 0x507   : > { %v1417_v14 = vpop.f32.mrb[18].mxu1 }
 0x508   : > { %v4318_v33 = vadd.f32 %v1417_v14, %v1290_v56  ;;  %v4320_v31 = vpop.f32.mrb[19].mxu1 }
 0x50a   : > { %1460 = vadd.xlane.f32.xlu1 %v4318_v33 }
 0x50b   : > { %v1423_v53 = vpop.f32.mrb[20].mxu1 }
 0x50c   : > { %v4323_v43 = vadd.f32 %v1423_v53, %v1290_v56  ;;  %v4325_v49 = vpop.f32.mrb[21].mxu1 }
 0x50e   : > { %1462 = vadd.xlane.f32.xlu0 %v4323_v43 }
 0x50f   : > { %v1429_v17 = vpop.f32.mrb[22].mxu1 }
 0x510   : > { %v4328_v46 = vadd.f32 %v1429_v17, %v1290_v56  ;;  %v4330_v39 = vpop.f32.mrb[23].mxu1 }
 0x512   : > { %1464 = vadd.xlane.f32.xlu1 %v4328_v46 }
 0x513   : > { %v1435_v41 = vpop.f32.mrb[24].mxu1 }
 0x514   : > { %v4333_v35 = vadd.f32 %v1435_v41, %v1290_v56  ;;  %v4335_v10 = vpop.f32.mrb[25].mxu1 }
 0x516   : > { %1466 = vadd.xlane.f32.xlu0 %v4333_v35 }
 0x572   : > { %v1443_v44 = vpop.xlane.xlu0 %1442 }
 0x573   : > { %v1468_v6 = vmul.f32 0.015625, %v1443_v44 }
 0x575   : > { %v1481_v47 = vsub.f32 %v4273_v1, %v1468_v6 }
 0x577   : > { %v1445_v56 = vpop.xlane.xlu1 %1444  ;;  %v4350_v0 = vsel %vm1496_vm1, %v1481_v47, 0.0  ;;  %v1675_v47 = vld [vmem:[#allocation8 + $0x50] sm:$0xff] }
 0x578   : > { %v1469_v2 = vmul.f32 0.015625, %v1445_v56  ;;  %v1510_v30 = vmul.f32 %v4350_v0, %v4350_v0  ;;  %v1676_v56 = vld [vmem:[#allocation8 + $0x58] sm:$0xff] }
 0x57a   : > { %v1482_v8 = vsub.f32 %v4278_v3, %v1469_v2  ;;  %1523 = vadd.xlane.f32.xlu1 %v1510_v30  ;;  %v3010_v30 = vpack.c.bf16 %v1676_v56, %v1675_v47 }
 0x57b   : > { %v1447_v48 = vpop.xlane.xlu0 %1446 }
 0x57c   : > { %v1470_v42 = vmul.f32 0.015625, %v1447_v48  ;;  %v4357_v38 = vsel %vm1496_vm1, %v1482_v8, 0.0  ;;  %3011 = vmatpush3.bf16.msra.mxu0 %v3010_v30 }
 0x57d   : > { %v1511_v1 = vmul.f32 %v4357_v38, %v4357_v38  ;;  %3012 = vmatprep.subr.bf16.mxu0 %v3518_v16 }
 0x57e   : > { %v1483_v23 = vsub.f32 %v4283_v5, %v1470_v42 }
 0x57f   : > { %v1449_v12 = vpop.xlane.xlu1 %1448  ;;  %1525 = vadd.xlane.f32.xlu0 %v1511_v1  ;;  %v1677_v1 = vld [vmem:[#allocation8 + $0x60] sm:$0xff] }
 0x580   : > { %v1471_v45 = vmul.f32 0.015625, %v1449_v12  ;;  %v4364_v14 = vsel %vm1496_vm1, %v1483_v23, 0.0  ;;  %v1678_v23 = vld [vmem:[#allocation8 + $0x68] sm:$0xff] }
 0x581   : > { %v1512_v3 = vmul.f32 %v4364_v14, %v4364_v14 }
 0x582   : > { %v1484_v53 = vsub.f32 %v4288_v27, %v1471_v45  ;;  %v3013_v45 = vpack.c.bf16 %v1678_v23, %v1677_v1  ;;  %v4444_v1 = vld [vmem:[%s5077_s9] ss:$0 sm:$0xff] }
 0x583   : > { %1527 = vadd.xlane.f32.xlu1 %v1512_v3  ;;  %v1451_v17 = vpop.xlane.xlu0 %1450 }
 0x584   : > { %v1472_v41 = vmul.f32 0.015625, %v1451_v17  ;;  %v4371_v52 = vsel %vm1496_vm1, %v1484_v53, 0.0  ;;  %3014 = vmatpush3.bf16.msra.mxu0 %v3013_v45 }
 0x585   : > { %v1513_v5 = vmul.f32 %v4371_v52, %v4371_v52  ;;  %3015 = vmatprep.subr.bf16.mxu0 %v3518_v16 }
 0x586   : > { %v1485_v34 = vsub.f32 %v4293_v15, %v1472_v41  ;;  %v1679_v41 = vld [vmem:[#allocation8 + $0x70] sm:$0xff] }
 0x587   : > { %v1453_v37 = vpop.xlane.xlu1 %1452  ;;  %1529 = vadd.xlane.f32.xlu0 %v1513_v5  ;;  %v1680_v5 = vld [vmem:[#allocation8 + $0x78] sm:$0xff] }
 0x588   : > { %v1473_v24 = vmul.f32 0.015625, %v1453_v37  ;;  %v4378_v57 = vsel %vm1496_vm1, %v1485_v34, 0.0  ;;  %v3016_v37 = vpack.c.bf16 %v1680_v5, %v1679_v41 }
 0x589   : > { %v1514_v27 = vmul.f32 %v4378_v57, %v4378_v57 }
 0x58a   : > { %v1486_v51 = vsub.f32 %v4298_v28, %v1473_v24  ;;  %3017 = vmatpush3.bf16.msra.mxu0 %v3016_v37 }
 0x58b   : > { %1531 = vadd.xlane.f32.xlu1 %v1514_v27  ;;  %v1455_v50 = vpop.xlane.xlu0 %1454 }
 0x58c   : > { %v1474_v59 = vmul.f32 0.015625, %v1455_v50  ;;  %v4385_v54 = vsel %vm1496_vm1, %v1486_v51, 0.0 }
 0x58d   : > { %v1515_v15 = vmul.f32 %v4385_v54, %v4385_v54 }
 0x58e   : > { %v1487_v55 = vsub.f32 %v4303_v19, %v1474_v59 }
 0x58f   : > { %v1457_v20 = vpop.xlane.xlu1 %1456  ;;  %1533 = vadd.xlane.f32.xlu0 %v1515_v15 }
 0x590   : > { %v1475_v58 = vmul.f32 0.015625, %v1457_v20  ;;  %v4392_v22 = vsel %vm1496_vm1, %v1487_v55, 0.0 }
 0x591   : > { %v1516_v28 = vmul.f32 %v4392_v22, %v4392_v22 }
 0x592   : > { %v1488_v60 = vsub.f32 %v4308_v32, %v1475_v58 }
 0x593   : > { %1535 = vadd.xlane.f32.xlu1 %v1516_v28  ;;  %v1459_v62 = vpop.xlane.xlu0 %1458 }
 0x594   : > { %v1476_v44 = vmul.f32 0.015625, %v1459_v62  ;;  %v4399_v6 = vsel %vm1496_vm1, %v1488_v60, 0.0 }
 0x595   : > { %v1517_v19 = vmul.f32 %v4399_v6, %v4399_v6 }
 0x596   : > { %v1489_v2 = vsub.f32 %v4313_v4, %v1476_v44 }
 0x597   : > { %v1461_v8 = vpop.xlane.xlu1 %1460  ;;  %1537 = vadd.xlane.f32.xlu0 %v1517_v19 }
 0x598   : > { %v1477_v48 = vmul.f32 0.015625, %v1461_v8  ;;  %v4406_v32 = vsel %vm1496_vm1, %v1489_v2, 0.0  ;;  %v1293_v8 = vsub.s32 1, %v4264_v40 }
 0x599   : > { %v1518_v42 = vmul.f32 %v4406_v32, %v4406_v32 }
 0x59a   : > { %v1490_v12 = vsub.f32 %v4318_v33, %v1477_v48 }
 0x59b   : > { %1539 = vadd.xlane.f32.xlu1 %v1518_v42  ;;  %v1463_v4 = vpop.xlane.xlu0 %1462 }
 0x59c   : > { %v1478_v3 = vmul.f32 0.015625, %v1463_v4  ;;  %v4414_v53 = vsel %vm1496_vm1, %v1490_v12, 0.0  ;;  %v4450_v4 = vld [vmem:[%s5139_s16] ss:$0 sm:$0xff] }
 0x59d   : > { %v1519_v17 = vmul.f32 %v4414_v53, %v4414_v53 }
 0x59e   : > { %v1491_v34 = vsub.f32 %v4323_v43, %v1478_v3  ;;  %v4453_v3 = vrot.slane %v4270_v7, %v1293_v8 }
 0x59f   : > { %1541 = vadd.xlane.f32.xlu0 %v1519_v17  ;;  %v1465_v33 = vpop.xlane.xlu1 %1464 }
 0x5a0   : > { %v1479_v24 = vmul.f32 0.015625, %v1465_v33  ;;  %v4422_v27 = vsel %vm1496_vm1, %v1491_v34, 0.0  ;;  %v1366_v33 = vadd.f32 %v4275_v9, %v4453_v3 }
 0x5a1   : > { %v1520_v51 = vmul.f32 %v4422_v27, %v4422_v27 }
 0x5a2   : > { %v1492_v50 = vsub.f32 %v4328_v46, %v1479_v24 }
 0x5a3   : > { %1543 = vadd.xlane.f32.xlu1 %v1520_v51  ;;  %v1467_v59 = vpop.xlane.xlu0 %1466 }
 0x5a4   : > { %v1480_v15 = vmul.f32 0.015625, %v1467_v59  ;;  %v4429_v43 = vsel %vm1496_vm1, %v1492_v50, 0.0 }
 0x5a5   : > { %v1521_v55 = vmul.f32 %v4429_v43, %v4429_v43 }
 0x5a6   : > { %v1493_v20 = vsub.f32 %v4333_v35, %v1480_v15 }
 0x5a7   : > { %1545 = vadd.xlane.f32.xlu0 %v1521_v55 }
 0x5a8   : > { %v4436_v58 = vsel %vm1496_vm1, %v1493_v20, 0.0 }
 0x5a9   : > { %v1522_v46 = vmul.f32 %v4436_v58, %v4436_v58 }
 0x5ab   : > { %1547 = vadd.xlane.f32.xlu1 %v1522_v46 }
 0x607   : > { %v1524_v28 = vpop.xlane.xlu1 %1523 }
 0x608   : > { %v1549_v60 = vmul.f32 0.015625, %v1524_v28 }
 0x60a   : > { %v1562_v62 = vadd.f32 1e-05, %v1549_v60 }
 0x60c   : > { %3187 = vrsqrt.f32 %v1562_v62  ;;  %v1526_v44 = vpop.xlane.xlu0 %1525 }
 0x60d   : > { %v1550_v19 = vmul.f32 0.015625, %v1526_v44 }
 0x60f   : > { %v1563_v47 = vadd.f32 1e-05, %v1550_v19 }
 0x610   : > { %v1528_v56 = vpop.xlane.xlu1 %1527 }
 0x611   : > { %3189 = vrsqrt.f32 %v1563_v47  ;;  %v1551_v2 = vmul.f32 0.015625, %v1528_v56 }
 0x613   : > { %v1564_v35 = vadd.f32 1e-05, %v1551_v2 }
 0x614   : > { %v1530_v30 = vpop.xlane.xlu0 %1529 }
 0x615   : > { %3191 = vrsqrt.f32 %v1564_v35  ;;  %v1552_v48 = vmul.f32 0.015625, %v1530_v30  ;;  %v1378_v35 = vadd.f32 %v4285_v61, %v4453_v3  ;;  %v1384_v61 = vadd.f32 %v4290_v25, %v4453_v3 }
 0x616   : > { %v3188_v42 = vpop.eup %3187  ;;  %v1390_v25 = vadd.f32 %v4295_v18, %v4453_v3  ;;  %v1396_v18 = vadd.f32 %v4300_v13, %v4453_v3  ;;  %v1402_v13 = vadd.f32 %v4305_v21, %v4453_v3  ;;  %v1408_v21 = vadd.f32 %v4310_v26, %v4453_v3 }
 0x617   : > { %v1588_v23 = vmul.f32 %v3188_v42, %v4350_v0  ;;  %v1565_v12 = vadd.f32 1e-05, %v1552_v48 }
 0x618   : > { %v1532_v45 = vpop.xlane.xlu1 %1531 }
 0x619   : > { %v1607_v40 = vmul.f32 %v4444_v1, %v1588_v23  ;;  %3193 = vrsqrt.f32 %v1565_v12  ;;  %v1553_v17 = vmul.f32 0.015625, %v1532_v45 }
 0x61b   : > { %v3190_v41 = vpop.eup %3189  ;;  %v1566_v5 = vadd.f32 1e-05, %v1553_v17  ;;  %v1626_v34 = vadd.f32 %v4450_v4, %v1607_v40 }
 0x61c   : > { %v1534_v37 = vpop.xlane.xlu0 %1533  ;;  %v1589_v0 = vmul.f32 %v3190_v41, %v4357_v38  ;;  %v1372_v38 = vadd.f32 %v4280_v11, %v4453_v3 }
 0x61d   : > { %3195 = vrsqrt.f32 %v1566_v5  ;;  %v1554_v24 = vmul.f32 0.015625, %v1534_v37  ;;  %v1639_v51 = vmax.f32 %v1626_v34, 0.0 }
 0x61e   : > { %v1608_v7 = vmul.f32 %v4444_v1, %v1589_v0 }
 0x61f   : > { %v3192_v50 = vpop.eup %3191  ;;  %v1567_v59 = vadd.f32 1e-05, %v1554_v24  ;;  %v1652_v15 = vadd.f32 %v1639_v51, %v1366_v33 }
 0x620   : > { %v1536_v55 = vpop.xlane.xlu1 %1535  ;;  %v1627_v20 = vadd.f32 %v4450_v4, %v1608_v7  ;;  %v1590_v46 = vmul.f32 %v3192_v50, %v4364_v14 }
 0x621   : > { %3197 = vrsqrt.f32 %v1567_v59  ;;  %v1555_v28 = vmul.f32 0.015625, %v1536_v55  ;;  %2829 = vmatmul.mubr.f32.vlgmr.msra.gmra.mrb[26].mxu0 %v1652_v15 }
 0x622   : > { %2831 = vmatprep.mubr.msk.f32.mxu0 %vm3519_vm0, %v3520_v29  ;;  %v1640_v9 = vmax.f32 %v1627_v20, 0.0  ;;  %v1609_v60 = vmul.f32 %v4444_v1, %v1590_v46 }
 0x623   : > { %v3194_v62 = vpop.eup %3193  ;;  %v1568_v44 = vadd.f32 1e-05, %v1555_v28 }
 0x624   : > { %v1538_v19 = vpop.xlane.xlu0 %1537  ;;  %v1653_v47 = vadd.f32 %v1640_v9, %v1372_v38  ;;  %v1628_v56 = vadd.f32 %v4450_v4, %v1609_v60  ;;  %v1591_v14 = vmul.f32 %v3194_v62, %v4371_v52 }
 0x625   : > { %3199 = vrsqrt.f32 %v1568_v44  ;;  %v1556_v2 = vmul.f32 0.015625, %v1538_v19 }
 0x626   : > { %2832 = vmatmul.mubr.f32.gmra.mrb[28].mxu0 %v1653_v47  ;;  %v1641_v11 = vmax.f32 %v1628_v56, 0.0  ;;  %v1610_v30 = vmul.f32 %v4444_v1, %v1591_v14 }
 0x627   : > { %v3196_v8 = vpop.eup %3195  ;;  %v1569_v48 = vadd.f32 1e-05, %v1556_v2  ;;  %2834 = vmatprep.mubr.msk.f32.mxu0 %vm3519_vm0, %v3520_v29 }
 0x628   : > { %v1540_v42 = vpop.xlane.xlu1 %1539  ;;  %v1654_v23 = vadd.f32 %v1641_v11, %v1378_v35  ;;  %v1629_v12 = vadd.f32 %v4450_v4, %v1610_v30  ;;  %v1592_v52 = vmul.f32 %v3196_v8, %v4378_v57 }
 0x629   : > { %3201 = vrsqrt.f32 %v1569_v48  ;;  %v1557_v45 = vmul.f32 0.015625, %v1540_v42 }
 0x62a   : > { %2835 = vmatmul.mubr.f32.gmra.mrb[30].mxu0 %v1654_v23  ;;  %v1642_v40 = vmax.f32 %v1629_v12, 0.0  ;;  %v1611_v17 = vmul.f32 %v4444_v1, %v1592_v52 }
 0x62b   : > { %v3198_v41 = vpop.eup %3197  ;;  %v1570_v5 = vadd.f32 1e-05, %v1557_v45  ;;  %2837 = vmatprep.mubr.msk.f32.mxu0 %vm3519_vm0, %v3520_v29 }
 0x62c   : > { %v1542_v34 = vpop.xlane.xlu0 %1541  ;;  %v1655_v37 = vadd.f32 %v1642_v40, %v1384_v61  ;;  %v1630_v0 = vadd.f32 %v4450_v4, %v1611_v17  ;;  %v1593_v57 = vmul.f32 %v3198_v41, %v4385_v54 }
 0x62d   : > { %3203 = vrsqrt.f32 %v1570_v5  ;;  %v1558_v33 = vmul.f32 0.015625, %v1542_v34 }
 0x62e   : > { %2838 = vmatmul.mubr.f32.gmra.mrb[32].mxu0 %v1655_v37  ;;  %v1643_v24 = vmax.f32 %v1630_v0, 0.0  ;;  %v1612_v51 = vmul.f32 %v4444_v1, %v1593_v57 }
 0x62f   : > { %v3200_v7 = vpop.eup %3199  ;;  %v1571_v50 = vadd.f32 1e-05, %v1558_v33  ;;  %2840 = vmatprep.mubr.msk.f32.mxu0 %vm3519_vm0, %v3520_v29 }
 0x630   : > { %v1544_v59 = vpop.xlane.xlu1 %1543  ;;  %v1656_v15 = vadd.f32 %v1643_v24, %v1390_v25  ;;  %v1631_v55 = vadd.f32 %v4450_v4, %v1612_v51  ;;  %v1594_v54 = vmul.f32 %v3200_v7, %v4392_v22  ;;  %v1426_v24 = vadd.f32 %v4325_v49, %v4453_v3 }
 0x631   : > { %3205 = vrsqrt.f32 %v1571_v50  ;;  %v1559_v20 = vmul.f32 0.015625, %v1544_v59 }
 0x632   : > { %2841 = vmatmul.mubr.f32.gmra.mrb[34].mxu0 %v1656_v15  ;;  %v1644_v46 = vmax.f32 %v1631_v55, 0.0  ;;  %v1613_v28 = vmul.f32 %v4444_v1, %v1594_v54  ;;  %v1432_v15 = vadd.f32 %v4330_v39, %v4453_v3  ;;  %v2623_v39 = vld [vmem:[%s5140_s10] ss:$0 sm:$0xff]  ;;  %s4978_s10 = scalar_lea.vmem [#allocation11], %s3043_s17  ;;  %s2469_s17 = scalar_lea.sflag [#allocation4], %s3840_s12 }
 0x633   : > { %v3202_v38 = vpop.eup %3201  ;;  %v1572_v9 = vadd.f32 1e-05, %v1559_v20  ;;  %2843 = vmatprep.mubr.msk.f32.mxu0 %vm3519_vm0, %v3520_v29  ;;  %v1438_v20 = vadd.f32 %v4335_v10, %v4453_v3 }
 0x634   : > { %v1546_v60 = vpop.xlane.xlu0 %1545  ;;  %v1657_v62 = vadd.f32 %v1644_v46, %v1396_v18  ;;  %v1632_v44 = vadd.f32 %v4450_v4, %v1613_v28  ;;  %v1595_v22 = vmul.f32 %v3202_v38, %v4399_v6 }
 0x635   : > { %3207 = vrsqrt.f32 %v1572_v9  ;;  %v1560_v19 = vmul.f32 0.015625, %v1546_v60 }
 0x636   : > { %2844 = vmatmul.mubr.f32.gmra.mrb[36].mxu0 %v1657_v62  ;;  %v1645_v47 = vmax.f32 %v1632_v44, 0.0  ;;  %v1614_v56 = vmul.f32 %v4444_v1, %v1595_v22 }
 0x637   : > { %v3204_v14 = vpop.eup %3203  ;;  %v1573_v2 = vadd.f32 1e-05, %v1560_v19  ;;  %2846 = vmatprep.mubr.msk.f32.mxu0 %vm3519_vm0, %v3520_v29 }
 0x638   : > { %v1548_v35 = vpop.xlane.xlu1 %1547  ;;  %v1658_v11 = vadd.f32 %v1645_v47, %v1402_v13  ;;  %v1633_v30 = vadd.f32 %v4450_v4, %v1614_v56  ;;  %v1596_v6 = vmul.f32 %v3204_v14, %v4406_v32  ;;  %v1414_v32 = vadd.f32 %v4315_v36, %v4453_v3 }
 0x639   : > { %3209 = vrsqrt.f32 %v1573_v2  ;;  %v1561_v8 = vmul.f32 0.015625, %v1548_v35 }
 0x63a   : > { %2847 = vmatmul.mubr.f32.gmra.mrb[38].mxu0 %v1658_v11  ;;  %v1646_v48 = vmax.f32 %v1633_v30, 0.0  ;;  %v1615_v42 = vmul.f32 %v4444_v1, %v1596_v6 }
 0x63b   : > { %v3206_v23 = vpop.eup %3205  ;;  %v1574_v12 = vadd.f32 1e-05, %v1561_v8  ;;  %2849 = vmatprep.mubr.msk.f32.mxu0 %vm3519_vm0, %v3520_v29 }
 0x63c   : > { %v1659_v52 = vadd.f32 %v1646_v48, %v1408_v21  ;;  %v1634_v45 = vadd.f32 %v4450_v4, %v1615_v42  ;;  %v1597_v61 = vmul.f32 %v3206_v23, %v4414_v53  ;;  %v1420_v53 = vadd.f32 %v4320_v31, %v4453_v3 }
 0x63d   : > { %3211 = vrsqrt.f32 %v1574_v12 }
 0x63e   : > { %2850 = vmatmul.mubr.f32.gmra.mrb[40].mxu0 %v1659_v52  ;;  %v1647_v26 = vmax.f32 %v1634_v45, 0.0  ;;  %v1616_v40 = vmul.f32 %v4444_v1, %v1597_v61 }
 0x63f   : > { %v3208_v17 = vpop.eup %3207  ;;  %2852 = vmatprep.mubr.msk.f32.mxu0 %vm3519_vm0, %v3520_v29 }
 0x640   : > { %v1660_v41 = vadd.f32 %v1647_v26, %v1414_v32  ;;  %v1635_v5 = vadd.f32 %v4450_v4, %v1616_v40  ;;  %v1598_v34 = vmul.f32 %v3208_v17, %v4422_v27 }
 0x642   : > { %2853 = vmatmul.mubr.f32.gmra.mrb[42].mxu0 %v1660_v41  ;;  %v1648_v37 = vmax.f32 %v1635_v5, 0.0  ;;  %v1617_v36 = vmul.f32 %v4444_v1, %v1598_v34 }
 0x643   : > { %v3210_v0 = vpop.eup %3209  ;;  %2855 = vmatprep.mubr.msk.f32.mxu0 %vm3519_vm0, %v3520_v29 }
 0x644   : > { %v1661_v57 = vadd.f32 %v1648_v37, %v1420_v53  ;;  %v1636_v33 = vadd.f32 %v4450_v4, %v1617_v36  ;;  %v1599_v25 = vmul.f32 %v3210_v0, %v4429_v43  ;;  %v2028_v37 = vld [vmem:[#allocation10] sm:$0xff]  ;;  %v2029_v36 = vld [vmem:[#allocation10 + $0x8] sm:$0xff]  ;;  %v2030_v0 = vld [vmem:[#allocation10 + $0x10] sm:$0xff] }
 0x646   : > { %2856 = vmatmul.mubr.f32.gmra.mrb[44].mxu0 %v1661_v57  ;;  %v1649_v27 = vmax.f32 %v1636_v33, 0.0  ;;  %v1618_v31 = vmul.f32 %v4444_v1, %v1599_v25  ;;  %v3019_v57 = vpack.c.bf16 %v2029_v36, %v2028_v37  ;;  %v2031_v33 = vld [vmem:[#allocation10 + $0x18] sm:$0xff]  ;;  %v2038_v37 = vld [vmem:[#allocation10 + $0x50] sm:$0xff] }
 0x647   : > { %v3212_v51 = vpop.eup %3211  ;;  %2858 = vmatprep.mubr.msk.f32.mxu0 %vm3519_vm0, %v3520_v29  ;;  %v3022_v25 = vpack.c.bf16 %v2031_v33, %v2030_v0  ;;  %v2039_v36 = vld [vmem:[#allocation10 + $0x58] sm:$0xff] }
 0x648   : > { %v1662_v7 = vadd.f32 %v1649_v27, %v1426_v24  ;;  %v1637_v50 = vadd.f32 %v4450_v4, %v1618_v31  ;;  %v1600_v59 = vmul.f32 %v3212_v51, %v4436_v58  ;;  %3020 = vmatpush3.bf16.msra.mxu1 %v3019_v57  ;;  %v2032_v24 = vld [vmem:[#allocation10 + $0x20] sm:$0xff]  ;;  %v2033_v27 = vld [vmem:[#allocation10 + $0x28] sm:$0xff]  ;;  %v2034_v51 = vld [vmem:[#allocation10 + $0x30] sm:$0xff]  ;;  %v3034_v57 = vpack.c.bf16 %v2039_v36, %v2038_v37 }
 0x649   : > { %3021 = vmatprep.subr.bf16.mxu1 %v3518_v16  ;;  %v3025_v31 = vpack.c.bf16 %v2033_v27, %v2032_v24  ;;  %v2041_v27 = vld [vmem:[#allocation10 + $0x68] sm:$0xff] }
 0x64a   : > { %2859 = vmatmul.mubr.f32.gmra.mrb[46].mxu0 %v1662_v7  ;;  %v1650_v43 = vmax.f32 %v1637_v50, 0.0  ;;  %v1619_v49 = vmul.f32 %v4444_v1, %v1600_v59  ;;  %v2035_v7 = vld [vmem:[#allocation10 + $0x38] sm:$0xff]  ;;  %v2036_v59 = vld [vmem:[#allocation10 + $0x40] sm:$0xff] }
 0x64b   : > { %2861 = vmatprep.mubr.msk.f32.mxu0 %vm3519_vm0, %v3520_v29  ;;  %v3028_v50 = vpack.c.bf16 %v2035_v7, %v2034_v51 }
 0x64c   : > { %v1663_v55 = vadd.f32 %v1650_v43, %v1432_v15  ;;  %v1638_v54 = vadd.f32 %v4450_v4, %v1619_v49  ;;  %3023 = vmatpush3.bf16.msra.mxu1 %v3022_v25  ;;  %v2037_v15 = vld [vmem:[#allocation10 + $0x48] sm:$0xff] }
 0x64d   : > { %3024 = vmatprep.subr.bf16.mxu1 %v3518_v16  ;;  %v3031_v43 = vpack.c.bf16 %v2037_v15, %v2036_v59  ;;  %v2042_v15 = vld [vmem:[#allocation10 + $0x70] sm:$0xff] }
 0x64e   : > { %2862 = vmatmul.mubr.f32.gmra.mrb[48].mxu0 %v1663_v55  ;;  %v1651_v18 = vmax.f32 %v1638_v54, 0.0 }
 0x64f   : > { %2864 = vmatprep.mubr.msk.f32.mxu0 %vm3519_vm0, %v3520_v29 }
 0x650   : > { %v1664_v58 = vadd.f32 %v1651_v18, %v1438_v20  ;;  %3026 = vmatpush3.bf16.msra.mxu1 %v3025_v31 }
 0x651   : > { %3027 = vmatprep.subr.bf16.mxu1 %v3518_v16 }
 0x652   : > { %2865 = vmatmul.mubr.f32.gmra.mrb[50].mxu0 %v1664_v58 }
 0x654   : > { %3029 = vmatpush3.bf16.msra.mxu1 %v3028_v50 }
 0x655   : > { %3030 = vmatprep.subr.bf16.mxu1 %v3518_v16 }
 0x658   : > { %3032 = vmatpush3.bf16.msra.mxu1 %v3031_v43  ;;  %v2043_v43 = vld [vmem:[#allocation10 + $0x78] sm:$0xff] }
 0x659   : > { %3033 = vmatprep.subr.bf16.mxu1 %v3518_v16 }
 0x65c   : > { %3035 = vmatpush3.bf16.msra.mxu1 %v3034_v57 }
 0x65d   : > { %3036 = vmatprep.subr.bf16.mxu1 %v3518_v16 }
 0x6f4   : > { %v1754_v1 = vpop.f32.mrb[26].mxu0 }
 0x6f5   : > { %v4546_v46 = vadd.f32 %v2623_v39, %v1754_v1  ;;  %v2830_v28 = vpop.f32.mrb[27].mxu0 }
 0x6f7   : > { %1820 = vadd.xlane.f32.xlu0 %v4546_v46 }
 0x6f9   : > { %v1759_v4 = vpop.f32.mrb[28].mxu0 }
 0x6fa   : > { %v4549_v38 = vadd.f32 %v2623_v39, %v1759_v4  ;;  %v2833_v10 = vpop.f32.mrb[29].mxu0 }
 0x6fc   : > { %1822 = vadd.xlane.f32.xlu1 %v4549_v38 }
 0x6fd   : > { %v1764_v3 = vpop.f32.mrb[30].mxu0 }
 0x6fe   : > { %v4552_v9 = vadd.f32 %v2623_v39, %v1764_v3  ;;  %v2836_v60 = vpop.f32.mrb[31].mxu0 }
 0x700   : > { %1824 = vadd.xlane.f32.xlu0 %v4552_v9 }
 0x701   : > { %v1769_v62 = vpop.f32.mrb[32].mxu0 }
 0x702   : > { %v4555_v44 = vadd.f32 %v2623_v39, %v1769_v62  ;;  %v2839_v22 = vpop.f32.mrb[33].mxu0 }
 0x704   : > { %1826 = vadd.xlane.f32.xlu1 %v4555_v44 }
 0x705   : > { %v1774_v19 = vpop.f32.mrb[34].mxu0 }
 0x706   : > { %v4558_v13 = vadd.f32 %v2623_v39, %v1774_v19  ;;  %v2842_v47 = vpop.f32.mrb[35].mxu0 }
 0x708   : > { %1828 = vadd.xlane.f32.xlu0 %v4558_v13 }
 0x709   : > { %v1779_v56 = vpop.f32.mrb[36].mxu0 }
 0x70a   : > { %v4561_v14 = vadd.f32 %v2623_v39, %v1779_v56  ;;  %v2845_v2 = vpop.f32.mrb[37].mxu0 }
 0x70c   : > { %1830 = vadd.xlane.f32.xlu1 %v4561_v14 }
 0x70d   : > { %v1784_v35 = vpop.f32.mrb[38].mxu0 }
 0x70e   : > { %v4564_v11 = vadd.f32 %v2623_v39, %v1784_v35  ;;  %v2848_v30 = vpop.f32.mrb[39].mxu0 }
 0x710   : > { %1832 = vadd.xlane.f32.xlu0 %v4564_v11 }
 0x711   : > { %v1789_v6 = vpop.f32.mrb[40].mxu0 }
 0x712   : > { %v4567_v8 = vadd.f32 %v2623_v39, %v1789_v6  ;;  %v2851_v21 = vpop.f32.mrb[41].mxu0 }
 0x714   : > { %1834 = vadd.xlane.f32.xlu1 %v4567_v8 }
 0x715   : > { %v1794_v48 = vpop.f32.mrb[42].mxu0 }
 0x716   : > { %v4570_v42 = vadd.f32 %v2623_v39, %v1794_v48  ;;  %v2854_v23 = vpop.f32.mrb[43].mxu0 }
 0x718   : > { %1836 = vadd.xlane.f32.xlu0 %v4570_v42 }
 0x719   : > { %v1799_v12 = vpop.f32.mrb[44].mxu0 }
 0x71a   : > { %v4573_v52 = vadd.f32 %v2623_v39, %v1799_v12  ;;  %v2857_v45 = vpop.f32.mrb[45].mxu0 }
 0x71c   : > { %1838 = vadd.xlane.f32.xlu1 %v4573_v52 }
 0x71d   : > { %v1804_v61 = vpop.f32.mrb[46].mxu0 }
 0x71e   : > { %v4576_v32 = vadd.f32 %v2623_v39, %v1804_v61  ;;  %v2860_v26 = vpop.f32.mrb[47].mxu0 }
 0x720   : > { %1840 = vadd.xlane.f32.xlu0 %v4576_v32 }
 0x721   : > { %v1809_v40 = vpop.f32.mrb[48].mxu0 }
 0x722   : > { %v4579_v17 = vadd.f32 %v2623_v39, %v1809_v40  ;;  %v2863_v41 = vpop.f32.mrb[49].mxu0 }
 0x724   : > { %1842 = vadd.xlane.f32.xlu1 %v4579_v17 }
 0x725   : > { %v1814_v5 = vpop.f32.mrb[50].mxu0 }
 0x726   : > { %v4582_v34 = vadd.f32 %v2623_v39, %v1814_v5  ;;  %v2866_v53 = vpop.f32.mrb[51].mxu0 }
 0x728   : > { %1844 = vadd.xlane.f32.xlu0 %v4582_v34 }
 0x784   : > { %v1821_v49 = vpop.xlane.xlu0 %1820 }
 0x785   : > { %v1846_v55 = vmul.f32 0.03125, %v1821_v49 }
 0x787   : > { %v1859_v54 = vsub.f32 %v4546_v46, %v1846_v55 }
 0x789   : > { %v1823_v20 = vpop.xlane.xlu1 %1822  ;;  %v4594_v18 = vsel %vm1872_vm2, %v1859_v54, 0.0  ;;  %v3040_v54 = vpack.c.bf16 %v2043_v43, %v2042_v15 }
 0x78a   : > { %v1847_v58 = vmul.f32 0.03125, %v1823_v20  ;;  %v1886_v39 = vmul.f32 %v4594_v18, %v4594_v18 }
 0x78c   : > { %v1860_v1 = vsub.f32 %v4549_v38, %v1847_v58  ;;  %1899 = vadd.xlane.f32.xlu1 %v1886_v39 }
 0x78d   : > { %v1825_v28 = vpop.xlane.xlu0 %1824 }
 0x78e   : > { %v1848_v4 = vmul.f32 0.03125, %v1825_v28  ;;  %v4601_v10 = vsel %vm1872_vm2, %v1860_v1, 0.0 }
 0x78f   : > { %v1887_v46 = vmul.f32 %v4601_v10, %v4601_v10 }
 0x790   : > { %v1861_v3 = vsub.f32 %v4552_v9, %v1848_v4 }
 0x791   : > { %v1827_v60 = vpop.xlane.xlu1 %1826  ;;  %1901 = vadd.xlane.f32.xlu0 %v1887_v46 }
 0x792   : > { %v1849_v62 = vmul.f32 0.03125, %v1827_v60  ;;  %v4608_v22 = vsel %vm1872_vm2, %v1861_v3, 0.0 }
 0x793   : > { %v1888_v38 = vmul.f32 %v4608_v22, %v4608_v22 }
 0x794   : > { %v1862_v19 = vsub.f32 %v4555_v44, %v1849_v62 }
 0x795   : > { %1903 = vadd.xlane.f32.xlu1 %v1888_v38  ;;  %v1829_v47 = vpop.xlane.xlu0 %1828 }
 0x796   : > { %v1850_v56 = vmul.f32 0.03125, %v1829_v47  ;;  %v4615_v2 = vsel %vm1872_vm2, %v1862_v19, 0.0 }
 0x797   : > { %v1889_v9 = vmul.f32 %v4615_v2, %v4615_v2 }
 0x798   : > { %v1863_v35 = vsub.f32 %v4558_v13, %v1850_v56 }
 0x799   : > { %v1831_v30 = vpop.xlane.xlu1 %1830  ;;  %1905 = vadd.xlane.f32.xlu0 %v1889_v9 }
 0x79a   : > { %v1851_v6 = vmul.f32 0.03125, %v1831_v30  ;;  %v4622_v21 = vsel %vm1872_vm2, %v1863_v35, 0.0 }
 0x79b   : > { %v1890_v44 = vmul.f32 %v4622_v21, %v4622_v21 }
 0x79c   : > { %v1864_v48 = vsub.f32 %v4561_v14, %v1851_v6 }
 0x79d   : > { %1907 = vadd.xlane.f32.xlu1 %v1890_v44  ;;  %v1833_v23 = vpop.xlane.xlu0 %1832 }
 0x79e   : > { %v1852_v12 = vmul.f32 0.03125, %v1833_v23  ;;  %v4629_v45 = vsel %vm1872_vm2, %v1864_v48, 0.0 }
 0x79f   : > { %v1891_v13 = vmul.f32 %v4629_v45, %v4629_v45 }
 0x7a0   : > { %v1865_v61 = vsub.f32 %v4564_v11, %v1852_v12  ;;  %v4687_v12 = vld [vmem:[%s5141_s13] ss:$0 sm:$0xff]  ;;  %s2477_s13 = ssub.s32 (%p5147_p1), 25, %s2476_s22 }
 0x7a1   : > { %v1835_v26 = vpop.xlane.xlu1 %1834  ;;  %1909 = vadd.xlane.f32.xlu0 %v1891_v13  ;;  %p2478_p3 = scmp.lt.s32.totalorder (%p5147_p1), %s2477_s13, 13 }
 0x7a2   : > { %v1853_v40 = vmul.f32 0.03125, %v1835_v26  ;;  %v4636_v41 = vsel %vm1872_vm2, %v1865_v61, 0.0 }
 0x7a3   : > { %v1892_v14 = vmul.f32 %v4636_v41, %v4636_v41 }
 0x7a4   : > { %v1866_v5 = vsub.f32 %v4567_v8, %v1853_v40  ;;  %v2040_v8 = vld [vmem:[#allocation10 + $0x60] sm:$0xff]  ;;  %v4693_v40 = vld [vmem:[%s5142_s3] ss:$0 sm:$0xff] }
 0x7a5   : > { %1911 = vadd.xlane.f32.xlu1 %v1892_v14  ;;  %v1837_v53 = vpop.xlane.xlu0 %1836  ;;  %v3037_v7 = vpack.c.bf16 %v2041_v27, %v2040_v8 }
 0x7a6   : > { %v4643_v0 = vsel %vm1872_vm2, %v1866_v5, 0.0  ;;  %v1854_v11 = vmul.f32 0.03125, %v1837_v53 }
 0x7a7   : > { %v1893_v33 = vmul.f32 %v4643_v0, %v4643_v0  ;;  %3038 = vmatpush3.bf16.msra.mxu1 %v3037_v7 }
 0x7a8   : > { %v1867_v25 = vsub.f32 %v4570_v42, %v1854_v11  ;;  %3039 = vmatprep.subr.bf16.mxu1 %v3518_v16 }
 0x7a9   : > { %v1839_v24 = vpop.xlane.xlu1 %1838  ;;  %1913 = vadd.xlane.f32.xlu0 %v1893_v33 }
 0x7aa   : > { %v4651_v31 = vsel %vm1872_vm2, %v1867_v25, 0.0  ;;  %v1855_v51 = vmul.f32 0.03125, %v1839_v24 }
 0x7ab   : > { %v1894_v50 = vmul.f32 %v4651_v31, %v4651_v31  ;;  %3041 = vmatpush3.bf16.msra.mxu1 %v3040_v54 }
 0x7ac   : > { %v1868_v59 = vsub.f32 %v4573_v52, %v1855_v51 }
 0x7ad   : > { %1915 = vadd.xlane.f32.xlu1 %v1894_v50  ;;  %v1841_v42 = vpop.xlane.xlu0 %1840 }
 0x7ae   : > { %v4659_v49 = vsel %vm1872_vm2, %v1868_v59, 0.0  ;;  %v1856_v55 = vmul.f32 0.03125, %v1841_v42 }
 0x7af   : > { %v1895_v20 = vmul.f32 %v4659_v49, %v4659_v49 }
 0x7b0   : > { %v1869_v58 = vsub.f32 %v4576_v32, %v1856_v55 }
 0x7b1   : > { %v1843_v52 = vpop.xlane.xlu1 %1842  ;;  %1917 = vadd.xlane.f32.xlu0 %v1895_v20 }
 0x7b2   : > { %v4666_v39 = vsel %vm1872_vm2, %v1869_v58, 0.0  ;;  %v1857_v16 = vmul.f32 0.03125, %v1843_v52 }
 0x7b3   : > { %v1896_v1 = vmul.f32 %v4666_v39, %v4666_v39 }
 0x7b4   : > { %v1870_v28 = vsub.f32 %v4579_v17, %v1857_v16 }
 0x7b5   : > { %1919 = vadd.xlane.f32.xlu1 %v1896_v1  ;;  %v1845_v4 = vpop.xlane.xlu0 %1844 }
 0x7b6   : > { %v4673_v46 = vsel %vm1872_vm2, %v1870_v28, 0.0  ;;  %v1858_v32 = vmul.f32 0.03125, %v1845_v4 }
 0x7b7   : > { %v1897_v3 = vmul.f32 %v4673_v46, %v4673_v46 }
 0x7b8   : > { %v1871_v60 = vsub.f32 %v4582_v34, %v1858_v32 }
 0x7b9   : > { %1921 = vadd.xlane.f32.xlu0 %v1897_v3 }
 0x7ba   : > { %v4680_v62 = vsel %vm1872_vm2, %v1871_v60, 0.0 }
 0x7bb   : > { %v1898_v17 = vmul.f32 %v4680_v62, %v4680_v62 }
 0x7bd   : > { %1923 = vadd.xlane.f32.xlu1 %v1898_v17 }
 0x819   : > { %v1900_v38 = vpop.xlane.xlu1 %1899 }
 0x81a   : > { %v1925_v19 = vmul.f32 0.03125, %v1900_v38 }
 0x81c   : > { %v1938_v47 = vadd.f32 1e-05, %v1925_v19 }
 0x81e   : > { %3213 = vrsqrt.f32 %v1938_v47  ;;  %v1902_v56 = vpop.xlane.xlu0 %1901 }
 0x81f   : > { %v1926_v9 = vmul.f32 0.03125, %v1902_v56 }
 0x821   : > { %v1939_v35 = vadd.f32 1e-05, %v1926_v9 }
 0x822   : > { %v1904_v30 = vpop.xlane.xlu1 %1903 }
 0x823   : > { %3215 = vrsqrt.f32 %v1939_v35  ;;  %v1927_v6 = vmul.f32 0.03125, %v1904_v30 }
 0x825   : > { %v1940_v34 = vadd.f32 1e-05, %v1927_v6 }
 0x826   : > { %v1906_v44 = vpop.xlane.xlu0 %1905 }
 0x827   : > { %3217 = vrsqrt.f32 %v1940_v34  ;;  %v1928_v48 = vmul.f32 0.03125, %v1906_v44 }
 0x828   : > { %v3214_v23 = vpop.eup %3213 }
 0x829   : > { %v1964_v13 = vmul.f32 %v3214_v23, %v4594_v18  ;;  %v1941_v61 = vadd.f32 1e-05, %v1928_v48 }
 0x82a   : > { %v1908_v26 = vpop.xlane.xlu1 %1907 }
 0x82b   : > { %3219 = vrsqrt.f32 %v1941_v61  ;;  %v1929_v14 = vmul.f32 0.03125, %v1908_v26  ;;  %v1983_v5 = vmul.f32 %v4687_v12, %v1964_v13 }
 0x82d   : > { %v3216_v53 = vpop.eup %3215  ;;  %v1942_v37 = vadd.f32 1e-05, %v1929_v14  ;;  %v2002_v36 = vadd.f32 %v4693_v40, %v1983_v5 }
 0x82e   : > { %v1910_v11 = vpop.xlane.xlu0 %1909  ;;  %v1965_v57 = vmul.f32 %v3216_v53, %v4601_v10 }
 0x82f   : > { %3221 = vrsqrt.f32 %v1942_v37  ;;  %v1930_v18 = vmul.f32 0.03125, %v1910_v11  ;;  %v2015_v33 = vmax.f32 %v2002_v36, 0.0 }
 0x830   : > { %v1984_v25 = vmul.f32 %v4687_v12, %v1965_v57 }
 0x831   : > { %v3218_v24 = vpop.eup %3217  ;;  %v1943_v8 = vadd.f32 1e-05, %v1930_v18  ;;  %2900 = vmatmul.mubr.f32.vlgmr.msra.gmra.mrb[26].mxu1 %v2015_v33 }
 0x832   : > { %v1912_v27 = vpop.xlane.xlu1 %1911  ;;  %2902 = vmatprep.mubr.msk.f32.mxu1 %vm3519_vm0, %v3520_v29  ;;  %v2003_v51 = vadd.f32 %v4693_v40, %v1984_v25  ;;  %v1966_v7 = vmul.f32 %v3218_v24, %v4608_v22 }
 0x833   : > { %3223 = vrsqrt.f32 %v1943_v8  ;;  %v1931_v50 = vmul.f32 0.03125, %v1912_v27 }
 0x834   : > { %v2016_v59 = vmax.f32 %v2003_v51, 0.0  ;;  %v1985_v10 = vmul.f32 %v4687_v12, %v1966_v7 }
 0x835   : > { %v3220_v42 = vpop.eup %3219  ;;  %v1944_v15 = vadd.f32 1e-05, %v1931_v50 }
 0x836   : > { %2903 = vmatmul.mubr.f32.gmra.mrb[28].mxu1 %v2016_v59  ;;  %v1914_v43 = vpop.xlane.xlu0 %1913  ;;  %v2004_v55 = vadd.f32 %v4693_v40, %v1985_v10  ;;  %v1967_v54 = vmul.f32 %v3220_v42, %v4615_v2 }
 0x837   : > { %3225 = vrsqrt.f32 %v1944_v15  ;;  %v1932_v20 = vmul.f32 0.03125, %v1914_v43  ;;  %2905 = vmatprep.mubr.msk.f32.mxu1 %vm3519_vm0, %v3520_v29 }
 0x838   : > { %v2017_v58 = vmax.f32 %v2004_v55, 0.0  ;;  %v1986_v22 = vmul.f32 %v4687_v12, %v1967_v54 }
 0x839   : > { %v3222_v52 = vpop.eup %3221  ;;  %v1945_v16 = vadd.f32 1e-05, %v1932_v20 }
 0x83a   : > { %v1916_v1 = vpop.xlane.xlu1 %1915  ;;  %2906 = vmatmul.mubr.f32.gmra.mrb[30].mxu1 %v2017_v58  ;;  %v2005_v28 = vadd.f32 %v4693_v40, %v1986_v22  ;;  %v1968_v4 = vmul.f32 %v3222_v52, %v4622_v21 }
 0x83b   : > { %3227 = vrsqrt.f32 %v1945_v16  ;;  %v1933_v32 = vmul.f32 0.03125, %v1916_v1  ;;  %2908 = vmatprep.mubr.msk.f32.mxu1 %vm3519_vm0, %v3520_v29 }
 0x83c   : > { %v2018_v2 = vmax.f32 %v2005_v28, 0.0  ;;  %v1987_v3 = vmul.f32 %v4687_v12, %v1968_v4  ;;  %v2626_v4 = vld [vmem:[%s5143_s18] ss:$0 sm:$0xff] }
 0x83d   : > { %v3224_v60 = vpop.eup %3223  ;;  %v1946_v17 = vadd.f32 1e-05, %v1933_v32 }
 0x83e   : > { %2909 = vmatmul.mubr.f32.gmra.mrb[32].mxu1 %v2018_v2  ;;  %v1918_v38 = vpop.xlane.xlu0 %1917  ;;  %v2006_v19 = vadd.f32 %v4693_v40, %v1987_v3  ;;  %v1969_v47 = vmul.f32 %v3224_v60, %v4629_v45 }
 0x83f   : > { %3229 = vrsqrt.f32 %v1946_v17  ;;  %v1934_v56 = vmul.f32 0.03125, %v1918_v38  ;;  %2911 = vmatprep.mubr.msk.f32.mxu1 %vm3519_vm0, %v3520_v29 }
 0x840   : > { %v2019_v21 = vmax.f32 %v2006_v19, 0.0  ;;  %v1988_v9 = vmul.f32 %v4687_v12, %v1969_v47 }
 0x841   : > { %v3226_v35 = vpop.eup %3225  ;;  %v1947_v30 = vadd.f32 1e-05, %v1934_v56 }
 0x842   : > { %v1920_v6 = vpop.xlane.xlu1 %1919  ;;  %2912 = vmatmul.mubr.f32.gmra.mrb[34].mxu1 %v2019_v21  ;;  %v2007_v34 = vadd.f32 %v4693_v40, %v1988_v9  ;;  %v1970_v44 = vmul.f32 %v3226_v35, %v4636_v41 }
 0x843   : > { %3231 = vrsqrt.f32 %v1947_v30  ;;  %v1935_v48 = vmul.f32 0.03125, %v1920_v6  ;;  %2914 = vmatprep.mubr.msk.f32.mxu1 %vm3519_vm0, %v3520_v29 }
 0x844   : > { %v2020_v45 = vmax.f32 %v2007_v34, 0.0  ;;  %v1989_v23 = vmul.f32 %v4687_v12, %v1970_v44 }
 0x845   : > { %v3228_v13 = vpop.eup %3227  ;;  %v1948_v61 = vadd.f32 1e-05, %v1935_v48 }
 0x846   : > { %2915 = vmatmul.mubr.f32.gmra.mrb[36].mxu1 %v2020_v45  ;;  %v1922_v26 = vpop.xlane.xlu0 %1921  ;;  %v2008_v14 = vadd.f32 %v4693_v40, %v1989_v23  ;;  %v1971_v5 = vmul.f32 %v3228_v13, %v4643_v0 }
 0x847   : > { %3233 = vrsqrt.f32 %v1948_v61  ;;  %v1936_v53 = vmul.f32 0.03125, %v1922_v26  ;;  %2917 = vmatprep.mubr.msk.f32.mxu1 %vm3519_vm0, %v3520_v29 }
 0x848   : > { %v2021_v41 = vmax.f32 %v2008_v14, 0.0  ;;  %v1990_v37 = vmul.f32 %v4687_v12, %v1971_v5 }
 0x849   : > { %v3230_v36 = vpop.eup %3229  ;;  %v1949_v11 = vadd.f32 1e-05, %v1936_v53 }
 0x84a   : > { %v1924_v57 = vpop.xlane.xlu1 %1923  ;;  %2918 = vmatmul.mubr.f32.gmra.mrb[38].mxu1 %v2021_v41  ;;  %v2009_v18 = vadd.f32 %v4693_v40, %v1990_v37  ;;  %v1972_v33 = vmul.f32 %v3230_v36, %v4651_v31 }
 0x84b   : > { %3235 = vrsqrt.f32 %v1949_v11  ;;  %v1937_v25 = vmul.f32 0.03125, %v1924_v57  ;;  %2920 = vmatprep.mubr.msk.f32.mxu1 %vm3519_vm0, %v3520_v29 }
 0x84c   : > { %v2022_v0 = vmax.f32 %v2009_v18, 0.0  ;;  %v1991_v24 = vmul.f32 %v4687_v12, %v1972_v33 }
 0x84d   : > { %v3232_v8 = vpop.eup %3231  ;;  %v1950_v27 = vadd.f32 1e-05, %v1937_v25 }
 0x84e   : > { %2921 = vmatmul.mubr.f32.gmra.mrb[40].mxu1 %v2022_v0  ;;  %v2010_v51 = vadd.f32 %v4693_v40, %v1991_v24  ;;  %v1973_v7 = vmul.f32 %v3232_v8, %v4659_v49 }
 0x84f   : > { %3237 = vrsqrt.f32 %v1950_v27  ;;  %2923 = vmatprep.mubr.msk.f32.mxu1 %vm3519_vm0, %v3520_v29 }
 0x850   : > { %v2023_v31 = vmax.f32 %v2010_v51, 0.0  ;;  %v1992_v50 = vmul.f32 %v4687_v12, %v1973_v7 }
 0x851   : > { %v3234_v59 = vpop.eup %3233 }
 0x852   : > { %2924 = vmatmul.mubr.f32.gmra.mrb[42].mxu1 %v2023_v31  ;;  %v2011_v10 = vadd.f32 %v4693_v40, %v1992_v50  ;;  %v1974_v42 = vmul.f32 %v3234_v59, %v4666_v39 }
 0x853   : > { %2926 = vmatprep.mubr.msk.f32.mxu1 %vm3519_vm0, %v3520_v29 }
 0x854   : > { %v2024_v15 = vmax.f32 %v2011_v10, 0.0  ;;  %v1993_v43 = vmul.f32 %v4687_v12, %v1974_v42 }
 0x855   : > { %v3236_v49 = vpop.eup %3235 }
 0x856   : > { %2927 = vmatmul.mubr.f32.gmra.mrb[44].mxu1 %v2024_v15  ;;  %v2012_v55 = vadd.f32 %v4693_v40, %v1993_v43  ;;  %v1975_v54 = vmul.f32 %v3236_v49, %v4673_v46 }
 0x857   : > { %2929 = vmatprep.mubr.msk.f32.mxu1 %vm3519_vm0, %v3520_v29 }
 0x858   : > { %v2025_v20 = vmax.f32 %v2012_v55, 0.0  ;;  %v1994_v58 = vmul.f32 %v4687_v12, %v1975_v54 }
 0x859   : > { %v3238_v22 = vpop.eup %3237 }
 0x85a   : > { %2930 = vmatmul.mubr.f32.gmra.mrb[46].mxu1 %v2025_v20  ;;  %v2013_v39 = vadd.f32 %v4693_v40, %v1994_v58  ;;  %v1976_v52 = vmul.f32 %v3238_v22, %v4680_v62 }
 0x85b   : > { %2932 = vmatprep.mubr.msk.f32.mxu1 %vm3519_vm0, %v3520_v29 }
 0x85c   : > { %v2026_v16 = vmax.f32 %v2013_v39, 0.0  ;;  %v1995_v1 = vmul.f32 %v4687_v12, %v1976_v52 }
 0x85e   : > { %2933 = vmatmul.mubr.f32.gmra.mrb[48].mxu1 %v2026_v16  ;;  %v2014_v46 = vadd.f32 %v4693_v40, %v1995_v1 }
 0x85f   : > { %2935 = vmatprep.mubr.msk.f32.mxu1 %vm3519_vm0, %v3520_v29 }
 0x860   : > { %v2027_v28 = vmax.f32 %v2014_v46, 0.0 }
 0x862   : > { %2936 = vmatmul.mubr.f32.gmra.mrb[50].mxu1 %v2027_v28 }
 0x904   : > { %v2117_v32 = vpop.f32.mrb[26].mxu1 }
 0x905   : > { %v2118_v62 = vadd.f32 %v2626_v4, %v2117_v32  ;;  %v2901_v2 = vpop.f32.mrb[27].mxu1 }
 0x907   : > { %2183 = vadd.xlane.f32.xlu0 %v2118_v62 }
 0x909   : > { %v2122_v3 = vpop.f32.mrb[28].mxu1 }
 0x90a   : > { %v2123_v60 = vadd.f32 %v2626_v4, %v2122_v3  ;;  %v2904_v17 = vpop.f32.mrb[29].mxu1 }
 0x90c   : > { %2185 = vadd.xlane.f32.xlu1 %v2123_v60 }
 0x90d   : > { %v2127_v12 = vpop.f32.mrb[30].mxu1 }
 0x90e   : > { %v2128_v38 = vadd.f32 %v2626_v4, %v2127_v12  ;;  %v2907_v40 = vpop.f32.mrb[31].mxu1 }
 0x910   : > { %2187 = vadd.xlane.f32.xlu0 %v2128_v38 }
 0x911   : > { %v2132_v19 = vpop.f32.mrb[32].mxu1 }
 0x912   : > { %v2133_v29 = vadd.f32 %v2626_v4, %v2132_v19  ;;  %v2910_v47 = vpop.f32.mrb[33].mxu1 }
 0x914   : > { %2189 = vadd.xlane.f32.xlu1 %v2133_v29 }
 0x915   : > { %v2137_v56 = vpop.f32.mrb[34].mxu1 }
 0x916   : > { %v4760_v21 = vadd.f32 %v2626_v4, %v2137_v56  ;;  %v2913_v9 = vpop.f32.mrb[35].mxu1 }
 0x918   : > { %2191 = vadd.xlane.f32.xlu0 %v4760_v21 }
 0x919   : > { %v2142_v35 = vpop.f32.mrb[36].mxu1 }
 0x91a   : > { %v4763_v30 = vadd.f32 %v2626_v4, %v2142_v35  ;;  %v2916_v6 = vpop.f32.mrb[37].mxu1 }
 0x91c   : > { %2193 = vadd.xlane.f32.xlu1 %v4763_v30 }
 0x91d   : > { %v2147_v34 = vpop.f32.mrb[38].mxu1 }
 0x91e   : > { %v4766_v44 = vadd.f32 %v2626_v4, %v2147_v34  ;;  %v2919_v48 = vpop.f32.mrb[39].mxu1 }
 0x920   : > { %2195 = vadd.xlane.f32.xlu0 %v4766_v44 }
 0x921   : > { %v2152_v45 = vpop.f32.mrb[40].mxu1 }
 0x922   : > { %v4769_v23 = vadd.f32 %v2626_v4, %v2152_v45  ;;  %v2922_v13 = vpop.f32.mrb[41].mxu1 }
 0x924   : > { %2197 = vadd.xlane.f32.xlu1 %v4769_v23 }
 0x925   : > { %v2157_v61 = vpop.f32.mrb[42].mxu1 }
 0x926   : > { %v4772_v26 = vadd.f32 %v2626_v4, %v2157_v61  ;;  %v2925_v14 = vpop.f32.mrb[43].mxu1 }
 0x928   : > { %2199 = vadd.xlane.f32.xlu0 %v4772_v26 }
 0x929   : > { %v2162_v5 = vpop.f32.mrb[44].mxu1 }
 0x92a   : > { %v4775_v53 = vadd.f32 %v2626_v4, %v2162_v5  ;;  %v2928_v41 = vpop.f32.mrb[45].mxu1 }
 0x92c   : > { %2201 = vadd.xlane.f32.xlu1 %v4775_v53 }
 0x92d   : > { %v2167_v37 = vpop.f32.mrb[46].mxu1 }
 0x92e   : > { %v4778_v36 = vadd.f32 %v2626_v4, %v2167_v37  ;;  %v2931_v11 = vpop.f32.mrb[47].mxu1 }
 0x930   : > { %2203 = vadd.xlane.f32.xlu0 %v4778_v36 }
 0x931   : > { %v2172_v57 = vpop.f32.mrb[48].mxu1 }
 0x932   : > { %v4781_v18 = vadd.f32 %v2626_v4, %v2172_v57  ;;  %v2934_v33 = vpop.f32.mrb[49].mxu1 }
 0x934   : > { %2205 = vadd.xlane.f32.xlu1 %v4781_v18 }
 0x935   : > { %v2177_v25 = vpop.f32.mrb[50].mxu1 }
 0x936   : > { %v4784_v0 = vadd.f32 %v2626_v4, %v2177_v25  ;;  %v2937_v24 = vpop.f32.mrb[51].mxu1 }
 0x938   : > { %2207 = vadd.xlane.f32.xlu0 %v4784_v0 }
 0x994   : > { %v2184_v8 = vpop.xlane.xlu0 %2183 }
 0x995   : > { %v2209_v27 = vmul.f32 0.015625, %v2184_v8 }
 0x997   : > { %v2222_v51 = vsub.f32 %v2118_v62, %v2209_v27 }
 0x999   : > { %v4789_v7 = vsel %vm1496_vm1, %v2222_v51, 0.0  ;;  %v2186_v31 = vpop.xlane.xlu1 %2185 }
 0x99a   : > { %v2210_v50 = vmul.f32 0.015625, %v2186_v31  ;;  %v2248_v59 = vmul.f32 %v4789_v7, %v4789_v7 }
 0x99c   : > { %v2223_v10 = vsub.f32 %v2123_v60, %v2210_v50  ;;  %2261 = vadd.xlane.f32.xlu1 %v2248_v59 }
 0x99d   : > { %v2188_v42 = vpop.xlane.xlu0 %2187 }
 0x99e   : > { %v4795_v15 = vsel %vm1496_vm1, %v2223_v10, 0.0  ;;  %v2211_v43 = vmul.f32 0.015625, %v2188_v42 }
 0x99f   : > { %v2249_v49 = vmul.f32 %v4795_v15, %v4795_v15 }
 0x9a0   : > { %v2224_v55 = vsub.f32 %v2128_v38, %v2211_v43 }
 0x9a1   : > { %v2190_v54 = vpop.xlane.xlu1 %2189  ;;  %2263 = vadd.xlane.f32.xlu0 %v2249_v49 }
 0x9a2   : > { %v4801_v20 = vsel %vm1496_vm1, %v2224_v55, 0.0  ;;  %v2212_v58 = vmul.f32 0.015625, %v2190_v54 }
 0x9a3   : > { %v2250_v22 = vmul.f32 %v4801_v20, %v4801_v20 }
 0x9a4   : > { %v2225_v39 = vsub.f32 %v2133_v29, %v2212_v58 }
 0x9a5   : > { %2265 = vadd.xlane.f32.xlu1 %v2250_v22  ;;  %v2192_v52 = vpop.xlane.xlu0 %2191  ;;  %v4877_v22 = vld [vmem:[%s5144_s29] ss:$0 sm:$0xff] }
 0x9a6   : > { %v4807_v16 = vsel %vm1496_vm1, %v2225_v39, 0.0  ;;  %v2213_v1 = vmul.f32 0.015625, %v2192_v52 }
 0x9a7   : > { %v2251_v46 = vmul.f32 %v4807_v16, %v4807_v16 }
 0x9a8   : > { %v2226_v28 = vsub.f32 %v4760_v21, %v2213_v1 }
 0x9a9   : > { %v2194_v4 = vpop.xlane.xlu1 %2193  ;;  %2267 = vadd.xlane.f32.xlu0 %v2251_v46  ;;  %v4883_v46 = vld [vmem:[%s5145_s0] ss:$0 sm:$0xff] }
 0x9aa   : > { %v4814_v32 = vsel %vm1496_vm1, %v2226_v28, 0.0  ;;  %v2214_v62 = vmul.f32 0.015625, %v2194_v4 }
 0x9ab   : > { %v2252_v2 = vmul.f32 %v4814_v32, %v4814_v32 }
 0x9ac   : > { %v2227_v3 = vsub.f32 %v4763_v30, %v2214_v62 }
 0x9ad   : > { %2269 = vadd.xlane.f32.xlu1 %v2252_v2  ;;  %v2196_v60 = vpop.xlane.xlu0 %2195 }
 0x9ae   : > { %v4821_v17 = vsel %vm1496_vm1, %v2227_v3, 0.0  ;;  %v2215_v12 = vmul.f32 0.015625, %v2196_v60 }
 0x9af   : > { %v2253_v38 = vmul.f32 %v4821_v17, %v4821_v17 }
 0x9b0   : > { %v2228_v40 = vsub.f32 %v4766_v44, %v2215_v12 }
 0x9b1   : > { %v2198_v19 = vpop.xlane.xlu1 %2197  ;;  %2271 = vadd.xlane.f32.xlu0 %v2253_v38 }
 0x9b2   : > { %v4828_v29 = vsel %vm1496_vm1, %v2228_v40, 0.0  ;;  %v2216_v47 = vmul.f32 0.015625, %v2198_v19 }
 0x9b3   : > { %v2254_v56 = vmul.f32 %v4828_v29, %v4828_v29 }
 0x9b4   : > { %v2229_v21 = vsub.f32 %v4769_v23, %v2216_v47 }
 0x9b5   : > { %2273 = vadd.xlane.f32.xlu1 %v2254_v56  ;;  %v2200_v9 = vpop.xlane.xlu0 %2199 }
 0x9b6   : > { %v4835_v35 = vsel %vm1496_vm1, %v2229_v21, 0.0  ;;  %v2217_v30 = vmul.f32 0.015625, %v2200_v9 }
 0x9b7   : > { %v2255_v6 = vmul.f32 %v4835_v35, %v4835_v35 }
 0x9b8   : > { %v2230_v34 = vsub.f32 %v4772_v26, %v2217_v30 }
 0x9b9   : > { %v2202_v44 = vpop.xlane.xlu1 %2201  ;;  %2275 = vadd.xlane.f32.xlu0 %v2255_v6 }
 0x9ba   : > { %v4842_v48 = vsel %vm1496_vm1, %v2230_v34, 0.0  ;;  %v2218_v45 = vmul.f32 0.015625, %v2202_v44 }
 0x9bb   : > { %v2256_v23 = vmul.f32 %v4842_v48, %v4842_v48 }
 0x9bc   : > { %v2231_v13 = vsub.f32 %v4775_v53, %v2218_v45 }
 0x9bd   : > { %2277 = vadd.xlane.f32.xlu1 %v2256_v23  ;;  %v2204_v61 = vpop.xlane.xlu0 %2203 }
 0x9be   : > { %v4849_v14 = vsel %vm1496_vm1, %v2231_v13, 0.0  ;;  %v2219_v5 = vmul.f32 0.015625, %v2204_v61 }
 0x9bf   : > { %v2257_v26 = vmul.f32 %v4849_v14, %v4849_v14 }
 0x9c0   : > { %v2232_v41 = vsub.f32 %v4778_v36, %v2219_v5 }
 0x9c1   : > { %v2206_v37 = vpop.xlane.xlu1 %2205  ;;  %2279 = vadd.xlane.f32.xlu0 %v2257_v26 }
 0x9c2   : > { %v4856_v11 = vsel %vm1496_vm1, %v2232_v41, 0.0  ;;  %v2220_v57 = vmul.f32 0.015625, %v2206_v37 }
 0x9c3   : > { %v2258_v53 = vmul.f32 %v4856_v11, %v4856_v11 }
 0x9c4   : > { %v2233_v33 = vsub.f32 %v4781_v18, %v2220_v57 }
 0x9c5   : > { %2281 = vadd.xlane.f32.xlu1 %v2258_v53  ;;  %v2208_v25 = vpop.xlane.xlu0 %2207 }
 0x9c6   : > { %v4863_v24 = vsel %vm1496_vm1, %v2233_v33, 0.0  ;;  %v2221_v8 = vmul.f32 0.015625, %v2208_v25 }
 0x9c7   : > { %v2259_v36 = vmul.f32 %v4863_v24, %v4863_v24 }
 0x9c8   : > { %v2234_v27 = vsub.f32 %v4784_v0, %v2221_v8 }
 0x9c9   : > { %2283 = vadd.xlane.f32.xlu0 %v2259_v36 }
 0x9ca   : > { %v4870_v51 = vsel %vm1496_vm1, %v2234_v27, 0.0 }
 0x9cb   : > { %v2260_v18 = vmul.f32 %v4870_v51, %v4870_v51 }
 0x9cd   : > { %2285 = vadd.xlane.f32.xlu1 %v2260_v18 }
 0xa29   : > { %v2262_v31 = vpop.xlane.xlu1 %2261 }
 0xa2a   : > { %v2287_v50 = vmul.f32 0.015625, %v2262_v31 }
 0xa2c   : > { %v2300_v59 = vadd.f32 1e-05, %v2287_v50 }
 0xa2e   : > { %3239 = vrsqrt.f32 %v2300_v59  ;;  %v2264_v10 = vpop.xlane.xlu0 %2263 }
 0xa2f   : > { %v2288_v42 = vmul.f32 0.015625, %v2264_v10 }
 0xa31   : > { %v2301_v43 = vadd.f32 1e-05, %v2288_v42 }
 0xa32   : > { %v2266_v49 = vpop.xlane.xlu1 %2265 }
 0xa33   : > { %3241 = vrsqrt.f32 %v2301_v43  ;;  %v2289_v55 = vmul.f32 0.015625, %v2266_v49 }
 0xa35   : > { %v2302_v0 = vadd.f32 1e-05, %v2289_v55 }
 0xa36   : > { %v2268_v54 = vpop.xlane.xlu0 %2267 }
 0xa37   : > { %3243 = vrsqrt.f32 %v2302_v0  ;;  %v2290_v63 = vmul.f32 0.015625, %v2268_v54 }
 0xa38   : > { %v3240_v58 = vpop.eup %3239 }
 0xa39   : > { %v2303_v39 = vadd.f32 1e-05, %v2290_v63  ;;  %v2326_v52 = vmul.f32 %v3240_v58, %v4789_v7 }
 0xa3a   : > { %v2270_v1 = vpop.xlane.xlu1 %2269 }
 0xa3b   : > { %3245 = vrsqrt.f32 %v2303_v39  ;;  %v2291_v28 = vmul.f32 0.015625, %v2270_v1  ;;  %v2345_v4 = vmul.f32 %v4877_v22, %v2326_v52 }
 0xa3d   : > { %v3242_v62 = vpop.eup %3241  ;;  %v2304_v2 = vadd.f32 1e-05, %v2291_v28  ;;  %v4887_v3 = vadd.f32 %v4883_v46, %v2345_v4 }
 0xa3e   : > { %v2272_v60 = vpop.xlane.xlu0 %2271  ;;  %v2327_v12 = vmul.f32 %v3242_v62, %v4795_v15 }
 0xa3f   : > { %3247 = vrsqrt.f32 %v2304_v2  ;;  %v2292_v7 = vmul.f32 0.015625, %v2272_v60  ;;  %v2377_v38 = vmul.f32 %v4887_v3, %v4887_v3 }
 0xa40   : > { %v2346_v40 = vmul.f32 %v4877_v22, %v2327_v12 }
 0xa41   : > { %v3244_v19 = vpop.eup %3243  ;;  %v2305_v47 = vadd.f32 1e-05, %v2292_v7  ;;  %2390 = vadd.xlane.f32.xlu0 %v2377_v38 }
 0xa42   : > { %v2274_v56 = vpop.xlane.xlu1 %2273  ;;  %v4894_v21 = vadd.f32 %v4883_v46, %v2346_v40  ;;  %v2328_v9 = vmul.f32 %v3244_v19, %v4801_v20 }
 0xa43   : > { %3249 = vrsqrt.f32 %v2305_v47  ;;  %v2293_v30 = vmul.f32 0.015625, %v2274_v56 }
 0xa44   : > { %v2378_v15 = vmul.f32 %v4894_v21, %v4894_v21  ;;  %v2347_v6 = vmul.f32 %v4877_v22, %v2328_v9 }
 0xa45   : > { %v3246_v34 = vpop.eup %3245  ;;  %v2306_v44 = vadd.f32 1e-05, %v2293_v30 }
 0xa46   : > { %2392 = vadd.xlane.f32.xlu1 %v2378_v15  ;;  %v2276_v45 = vpop.xlane.xlu0 %2275  ;;  %v4901_v23 = vadd.f32 %v4883_v46, %v2347_v6  ;;  %v2329_v13 = vmul.f32 %v3246_v34, %v4807_v16 }
 0xa47   : > { %3251 = vrsqrt.f32 %v2306_v44  ;;  %v2294_v61 = vmul.f32 0.015625, %v2276_v45 }
 0xa48   : > { %v2379_v20 = vmul.f32 %v4901_v23, %v4901_v23  ;;  %v2348_v5 = vmul.f32 %v4877_v22, %v2329_v13 }
 0xa49   : > { %v3248_v26 = vpop.eup %3247  ;;  %v2307_v41 = vadd.f32 1e-05, %v2294_v61 }
 0xa4a   : > { %2394 = vadd.xlane.f32.xlu0 %v2379_v20  ;;  %v2278_v37 = vpop.xlane.xlu1 %2277  ;;  %v4908_v57 = vadd.f32 %v4883_v46, %v2348_v5  ;;  %v2330_v53 = vmul.f32 %v3248_v26, %v4814_v32 }
 0xa4b   : > { %3253 = vrsqrt.f32 %v2307_v41  ;;  %v2295_v33 = vmul.f32 0.015625, %v2278_v37 }
 0xa4c   : > { %v2380_v16 = vmul.f32 %v4908_v57, %v4908_v57  ;;  %v2349_v25 = vmul.f32 %v4877_v22, %v2330_v53 }
 0xa4d   : > { %v3250_v8 = vpop.eup %3249  ;;  %v2308_v36 = vadd.f32 1e-05, %v2295_v33 }
 0xa4e   : > { %2396 = vadd.xlane.f32.xlu1 %v2380_v16  ;;  %v2280_v27 = vpop.xlane.xlu0 %2279  ;;  %v4915_v18 = vadd.f32 %v4883_v46, %v2349_v25  ;;  %v2331_v31 = vmul.f32 %v3250_v8, %v4821_v17 }
 0xa4f   : > { %3255 = vrsqrt.f32 %v2308_v36  ;;  %v2296_v50 = vmul.f32 0.015625, %v2280_v27 }
 0xa50   : > { %v2381_v32 = vmul.f32 %v4915_v18, %v4915_v18  ;;  %v2350_v59 = vmul.f32 %v4877_v22, %v2331_v31 }
 0xa51   : > { %v3252_v10 = vpop.eup %3251  ;;  %v2309_v42 = vadd.f32 1e-05, %v2296_v50 }
 0xa52   : > { %2398 = vadd.xlane.f32.xlu0 %v2381_v32  ;;  %v2282_v43 = vpop.xlane.xlu1 %2281  ;;  %v4922_v49 = vadd.f32 %v4883_v46, %v2350_v59  ;;  %v2332_v55 = vmul.f32 %v3252_v10, %v4828_v29 }
 0xa53   : > { %3257 = vrsqrt.f32 %v2309_v42  ;;  %v2297_v0 = vmul.f32 0.015625, %v2282_v43 }
 0xa54   : > { %v2382_v17 = vmul.f32 %v4922_v49, %v4922_v49  ;;  %v2351_v54 = vmul.f32 %v4877_v22, %v2332_v55 }
 0xa55   : > { %v3254_v63 = vpop.eup %3253  ;;  %v2310_v58 = vadd.f32 1e-05, %v2297_v0 }
 0xa56   : > { %2400 = vadd.xlane.f32.xlu1 %v2382_v17  ;;  %v2284_v39 = vpop.xlane.xlu0 %2283  ;;  %v4929_v52 = vadd.f32 %v4883_v46, %v2351_v54  ;;  %v2333_v1 = vmul.f32 %v3254_v63, %v4835_v35 }
 0xa57   : > { %3259 = vrsqrt.f32 %v2310_v58  ;;  %v2298_v28 = vmul.f32 0.015625, %v2284_v39 }
 0xa58   : > { %v2383_v29 = vmul.f32 %v4929_v52, %v4929_v52  ;;  %v2352_v4 = vmul.f32 %v4877_v22, %v2333_v1 }
 0xa59   : > { %v3256_v62 = vpop.eup %3255  ;;  %v2311_v2 = vadd.f32 1e-05, %v2298_v28 }
 0xa5a   : > { %2402 = vadd.xlane.f32.xlu0 %v2383_v29  ;;  %v2286_v60 = vpop.xlane.xlu1 %2285  ;;  %v4936_v12 = vadd.f32 %v4883_v46, %v2352_v4  ;;  %v2334_v7 = vmul.f32 %v3256_v62, %v4842_v48 }
 0xa5b   : > { %3261 = vrsqrt.f32 %v2311_v2  ;;  %v2299_v38 = vmul.f32 0.015625, %v2286_v60 }
 0xa5c   : > { %v2384_v35 = vmul.f32 %v4936_v12, %v4936_v12  ;;  %v2353_v40 = vmul.f32 %v4877_v22, %v2334_v7 }
 0xa5d   : > { %v3258_v19 = vpop.eup %3257  ;;  %v2312_v47 = vadd.f32 1e-05, %v2299_v38 }
 0xa5e   : > { %2404 = vadd.xlane.f32.xlu1 %v2384_v35  ;;  %v4943_v56 = vadd.f32 %v4883_v46, %v2353_v40  ;;  %v2335_v9 = vmul.f32 %v3258_v19, %v4849_v14 }
 0xa5f   : > { %3263 = vrsqrt.f32 %v2312_v47 }
 0xa60   : > { %v2385_v30 = vmul.f32 %v4943_v56, %v4943_v56  ;;  %v2354_v48 = vmul.f32 %v4877_v22, %v2335_v9 }
 0xa61   : > { %v3260_v15 = vpop.eup %3259 }
 0xa62   : > { %2406 = vadd.xlane.f32.xlu0 %v2385_v30  ;;  %v4950_v6 = vadd.f32 %v4883_v46, %v2354_v48  ;;  %v2336_v34 = vmul.f32 %v3260_v15, %v4856_v11 }
 0xa64   : > { %v2386_v44 = vmul.f32 %v4950_v6, %v4950_v6  ;;  %v2355_v45 = vmul.f32 %v4877_v22, %v2336_v34 }
 0xa65   : > { %v3262_v13 = vpop.eup %3261 }
 0xa66   : > { %2408 = vadd.xlane.f32.xlu1 %v2386_v44  ;;  %v4957_v14 = vadd.f32 %v4883_v46, %v2355_v45  ;;  %v2337_v61 = vmul.f32 %v3262_v13, %v4863_v24 }
 0xa68   : > { %v2387_v20 = vmul.f32 %v4957_v14, %v4957_v14  ;;  %v2356_v5 = vmul.f32 %v4877_v22, %v2337_v61 }
 0xa69   : > { %v3264_v26 = vpop.eup %3263 }
 0xa6a   : > { %2410 = vadd.xlane.f32.xlu0 %v2387_v20  ;;  %v4964_v11 = vadd.f32 %v4883_v46, %v2356_v5  ;;  %v2338_v41 = vmul.f32 %v3264_v26, %v4870_v51 }
 0xa6c   : > { %v2388_v37 = vmul.f32 %v4964_v11, %v4964_v11  ;;  %v2357_v53 = vmul.f32 %v4877_v22, %v2338_v41 }
 0xa6e   : > { %2412 = vadd.xlane.f32.xlu1 %v2388_v37  ;;  %v4971_v24 = vadd.f32 %v4883_v46, %v2357_v53 }
 0xa70   : > { %v2389_v33 = vmul.f32 %v4971_v24, %v4971_v24 }
 0xa72   : > { %2414 = vadd.xlane.f32.xlu0 %v2389_v33 }
 0xace   : > { %v2391_v16 = vpop.xlane.xlu0 %2390 }
 0xacf   : > { %v2416_v25 = vmax.f32 %v2391_v16, 1e-24 }
 0xad1   : > { %3265 = vrsqrt.f32 %v2416_v25 }
 0xad3   : > { %v2393_v8 = vpop.xlane.xlu1 %2392 }
 0xad4   : > { %v2417_v36 = vmax.f32 %v2393_v8, 1e-24 }
 0xad6   : > { %3267 = vrsqrt.f32 %v2417_v36 }
 0xad7   : > { %v2395_v51 = vpop.xlane.xlu0 %2394 }
 0xad8   : > { %v2418_v27 = vmax.f32 %v2395_v51, 1e-24 }
 0xada   : > { %3269 = vrsqrt.f32 %v2418_v27 }
 0xadb   : > { %v3266_v31 = vpop.eup %3265  ;;  %v2397_v22 = vpop.xlane.xlu1 %2396 }
 0xadc   : > { %v2442_v50 = vmul.f32 %v3266_v31, %v4887_v3  ;;  %v2419_v46 = vmax.f32 %v2397_v22, 1e-24 }
 0xade   : > { %2455 = vst [vmem:[%s4978_s10] sm:$0xff] %v2442_v50  ;;  %3271 = vrsqrt.f32 %v2419_v46 }
 0xadf   : > { %v2399_v32 = vpop.xlane.xlu0 %2398 }
 0xae0   : > { %v3268_v59 = vpop.eup %3267  ;;  %v2420_v10 = vmax.f32 %v2399_v32, 1e-24 }
 0xae1   : > { %v2443_v42 = vmul.f32 %v3268_v59, %v4894_v21 }
 0xae2   : > { %3273 = vrsqrt.f32 %v2420_v10 }
 0xae3   : > { %2456 = vst [vmem:[%s4978_s10 + $0x8] sm:$0xff] %v2443_v42  ;;  %v2401_v43 = vpop.xlane.xlu1 %2400 }
 0xae4   : > { %v3270_v55 = vpop.eup %3269  ;;  %v2421_v3 = vmax.f32 %v2401_v43, 1e-24 }
 0xae5   : > { %v2444_v0 = vmul.f32 %v3270_v55, %v4901_v23 }
 0xae6   : > { %3275 = vrsqrt.f32 %v2421_v3 }
 0xae7   : > { %2457 = vst [vmem:[%s4978_s10 + $0x10] sm:$0xff] %v2444_v0  ;;  %v2403_v17 = vpop.xlane.xlu0 %2402 }
 0xae8   : > { %v3272_v54 = vpop.eup %3271  ;;  %v2422_v63 = vmax.f32 %v2403_v17, 1e-24 }
 0xae9   : > { %v2445_v58 = vmul.f32 %v3272_v54, %v4908_v57 }
 0xaea   : > { %3277 = vrsqrt.f32 %v2422_v63 }
 0xaeb   : > { %2458 = vst [vmem:[%s4978_s10 + $0x18] sm:$0xff] %v2445_v58  ;;  %v2405_v39 = vpop.xlane.xlu1 %2404 }
 0xaec   : > { %v3274_v21 = vpop.eup %3273  ;;  %v2423_v1 = vmax.f32 %v2405_v39, 1e-24 }
 0xaed   : > { %v2446_v28 = vmul.f32 %v3274_v21, %v4915_v18 }
 0xaee   : > { %3279 = vrsqrt.f32 %v2423_v1 }
 0xaef   : > { %2459 = vst [vmem:[%s4978_s10 + $0x20] sm:$0xff] %v2446_v28  ;;  %v2407_v29 = vpop.xlane.xlu0 %2406 }
 0xaf0   : > { %v3276_v23 = vpop.eup %3275  ;;  %v2424_v4 = vmax.f32 %v2407_v29, 1e-24 }
 0xaf1   : > { %v2447_v62 = vmul.f32 %v3276_v23, %v4922_v49 }
 0xaf2   : > { %3281 = vrsqrt.f32 %v2424_v4 }
 0xaf3   : > { %2460 = vst [vmem:[%s4978_s10 + $0x28] sm:$0xff] %v2447_v62  ;;  %v2409_v2 = vpop.xlane.xlu1 %2408 }
 0xaf4   : > { %v3278_v57 = vpop.eup %3277  ;;  %v2425_v60 = vmax.f32 %v2409_v2, 1e-24 }
 0xaf5   : > { %v2448_v7 = vmul.f32 %v3278_v57, %v4929_v52 }
 0xaf6   : > { %3283 = vrsqrt.f32 %v2425_v60 }
 0xaf7   : > { %2461 = vst [vmem:[%s4978_s10 + $0x30] sm:$0xff] %v2448_v7  ;;  %v2411_v38 = vpop.xlane.xlu0 %2410 }
 0xaf8   : > { %v3280_v18 = vpop.eup %3279  ;;  %v2426_v35 = vmax.f32 %v2411_v38, 1e-24 }
 0xaf9   : > { %v2449_v40 = vmul.f32 %v3280_v18, %v4936_v12 }
 0xafa   : > { %3285 = vrsqrt.f32 %v2426_v35 }
 0xafb   : > { %2462 = vst [vmem:[%s4978_s10 + $0x38] sm:$0xff] %v2449_v40  ;;  %v2413_v49 = vpop.xlane.xlu1 %2412 }
 0xafc   : > { %v3282_v19 = vpop.eup %3281  ;;  %v2427_v47 = vmax.f32 %v2413_v49, 1e-24 }
 0xafd   : > { %v2450_v9 = vmul.f32 %v3282_v19, %v4943_v56 }
 0xafe   : > { %3287 = vrsqrt.f32 %v2427_v47 }
 0xaff   : > { %2463 = vst [vmem:[%s4978_s10 + $0x40] sm:$0xff] %v2450_v9  ;;  %v2415_v52 = vpop.xlane.xlu0 %2414 }
 0xb00   : > { %v3284_v30 = vpop.eup %3283  ;;  %v2428_v48 = vmax.f32 %v2415_v52, 1e-24 }
 0xb01   : > { %v2451_v15 = vmul.f32 %v3284_v30, %v4950_v6 }
 0xb02   : > { %3289 = vrsqrt.f32 %v2428_v48 }
 0xb03   : > { %2464 = vst [vmem:[%s4978_s10 + $0x48] sm:$0xff] %v2451_v15 }
 0xb04   : > { %v3286_v12 = vpop.eup %3285 }
 0xb05   : > { %v2452_v34 = vmul.f32 %v3286_v12, %v4957_v14 }
 0xb07   : > { %2465 = vst [vmem:[%s4978_s10 + $0x50] sm:$0xff] %v2452_v34 }
 0xb08   : > { %v3288_v44 = vpop.eup %3287 }
 0xb09   : > { %v2453_v45 = vmul.f32 %v3288_v44, %v4964_v11  ;;  %2475 = sbr.rel (!%p5147_p1) target bundleno = 2861 (0xb2d), region = 120 }
 0xb0b   : > { %2466 = vst [vmem:[%s4978_s10 + $0x58] sm:$0xff] %v2453_v45 }
 0xb0c   : > { %v3290_v56 = vpop.eup %3289 }
 0xb0d   : > { %v2454_v13 = vmul.f32 %v3290_v56, %v4971_v24 }
 0xb0f   : > { %2467 = vst [vmem:[%s4978_s10 + $0x60] sm:$0xff] %v2454_v13 }
 0xb10   : > { %s5160_s13 = smov (!%p2478_p3, %s2477_s13), 13 }
 0xb11   : > { %s5009_s27 = sshll.u32 %s5160_s13, 7 }
 0xb12   : > { %s2482_s25 = ssub.s32 1664, %s5009_s27 }
 0xb13   : > { %2483 = vsyncadd %s2469_s17, %s2482_s25  ;;  %p2630_p5 = scmp.ne.s32.totalorder %s5009_s27, 0  ;;  %s2637_s3 = smul.u32 1664, %s3645_s1 }
 0xb14   : > { %s2488_s24 = sshll.u32 %s4978_s10, 4  ;;  %s5148_s23 = sld [smem:[#allocation32_spill]]  ;;  %s5022_s24 = int_to_ptr.vmem [resolvable:$true] %s2488_s24 }
 0xb15   : > { %s3431_s29 = scalar_lea.vmem %s5022_s24, %s5009_s27  ;;  %s3521_s16 = smov [#allocation11]  }
 0xb16   : > { %p3432_p6 = scmp.ne.s32.totalorder %s5022_s24, %s3431_s29  ;;  %s3435_s28 = sshll.u32 %s3521_s16, 4  ;;  %s3436_s28 = int_to_ptr.vmem [resolvable:$false] %s3435_s28 }
 0xb17   : > { %s3437_s1 = scalar_lea.vmem %s3436_s28, 3328  ;;  %p3438_p0 = scmp.lt.s32.totalorder %s5022_s24, %s3436_s28 }
 0xb18   : > { %p3433_p11 = pnand %p3432_p6, %p2630_p5  ;;  %p3439_p12 = scmp.lt.s32.totalorder %s3437_s1, %s3431_s29 }
 0xb1a   : > { %s5020_s26 = scalar_lea.hbm %s5148_s23, %s2637_s3  ;;  %p3434_p13 = pneg %p3433_p11 }
 0xb1b   : > { %p3440_p7 = por %p3439_p12, %p3438_p0 }
 0xb1d   : > { %p3441_p2 = pnand %p3440_p7, %p3434_p13 }
 0xb1f   : > { %3444 = shalt.err (!%p3441_p2)
}
 0xb20   : > { %s3445_s0 = scalar_lea.hbm %s5020_s26, %s5009_s27  ;;  %s3449_s22 = scalar_lea.hbm %s5148_s23, 3200 }
 0xb21   : > { %p3446_p8 = scmp.ne.s32.totalorder %s5020_s26, %s3445_s0  ;;  %p3450_p1 = scmp.lt.u32.totalorder %s5020_s26, %s5148_s23 }
 0xb22   : > { %p3451_p3 = scmp.lt.u32.totalorder %s3449_s22, %s3445_s0  ;;  %p3453_p11 = scmp.lt.u32.totalorder %s3445_s0, %s5020_s26 }
 0xb23   : > { %p3447_p9 = pnand %p3446_p8, %p2630_p5 }
 0xb24   : > { %p3452_p6 = por %p3451_p3, %p3450_p1 }
 0xb25   : > { %p3448_p10 = pneg %p3447_p9 }
 0xb26   : > { %p3454_p13 = por %p3453_p11, %p3452_p6 }
 0xb28   : > { %p3455_p0 = pnand %p3454_p13, %p3448_p10 }
 0xb2a   : > { %3458 = shalt.err (!%p3455_p0)
}
 0xb2b   : > { %s3522_s3 = smov 128   ;;  %s3523_s2 = smov 8  }
 0xb2c   : > { %2494 = dma.vmem_to_hbm [thread:$0]  (%p2630_p5), %s5022_s24, %s5009_s27, %s5020_s26, %s2469_s17, %s3522_s3, %s3522_s3, %s3523_s2  }
 0xb2d PF: > { %s5149_s18 = sld [smem:[#allocation16_spill]]  ;;  %s5150_s29 = sld [smem:[#allocation20_spill]] }
 0xb33   : > { %s2503_s16 = sand.u32 1, %s5149_s18   ;;  %p5151_p12 = scmp.ne.s32.totalorder %s5150_s29, 0 }
 0xb34   : > { %s2504_s28 = scalar_lea.sflag [#allocation4], %s2503_s16 }
 0xb35   : > { %p3076_p7 = pnand %p2605_p4, %p5151_p12 }
 0xb37   : > { %3488 = dma.done.wait (!%p3076_p7), %s2504_s28, 1664  }
 0xb38   : > { %3490 = vsyncadd (!%p3076_p7), %s2504_s28, 4294965632  ;;  %s5152_s21 = sld [smem:[#allocation17_spill]]  ;;  %s5153_s1 = sld [smem:[#allocation18_spill]] }
 0xb39   : > { %s5154_s0 = smov %s3497_s30  ;;  %s5155_s30 = smov %s3501_s20 }
 0xb3e   : > { %p34_p2 = scmp.ge.s32.totalorder %s5152_s21, 4   ;;  %s5156_s20 = smov %s5153_s1 }
 0xb40   :  { %36 = sbr.rel (!%p34_p2) target bundleno = 20 (0x14), region = 157 }
 0xb47   :  { %2509 = vsyncpa [#allocation3], 1 }
 0xb48   :  { %2511 = vsyncpa [#allocation3 + $0x1], 1 }
 0xb49   :  { %2512 = vsyncpa [#allocation6], 1 }
 0xb4a   :  { %2513 = vsyncpa [#allocation9], 1 }
 0xb4b   :  { %2514 = vsyncpa [#allocation4], 1 }
 0xb4c   :  { %2516 = vsyncpa [#allocation4 + $0x1], 1 }

</bundles_post_ra>
